<compile_context>
chip_gen: v7x
topology: tpu7x:2x2x1
jax: 0.10.0
libtpu: 0.0.40
codegen_flags: <defaults>
</compile_context>

<pallas_src>
import functools

import jax
import jax.numpy as jnp
from jax.experimental import pallas as pl
from jax.experimental.pallas import tpu as pltpu

# ---------------- problem sizes (consistent with the module) -----------------
OBS_DIM = 33                         # 32 "real" obs features + trailing phase
OBS_MAIN = OBS_DIM - 1               # 32
PHASE_EMBED_DIM = 16
MAX_LEVEL = PHASE_EMBED_DIM // 2     # 8 frequencies
HIDDEN = (64, 64)                    # BaseModule MLP hidden sizes
NUM_ACTIONS = 12
MLP_IN = OBS_MAIN + PHASE_EMBED_DIM  # 48

_TWO_PI = 2.0 * jnp.pi
_HALF_PI = 0.5 * jnp.pi


def _elu(x):
    # ELU(alpha=1). Clamp the exp argument so the unselected branch never
    # produces inf (matches PyTorch's alpha*(exp(x)-1) on the negative side).
    return jnp.where(x > 0, x, jnp.exp(jnp.minimum(x, 0.0)) - 1.0)


# ------------------------------- kernel --------------------------------------
def phase_aware_actor_kernel(x_ref, pe_ref,
                             w1o_ref, w1p_ref, b1_ref,
                             w2_ref, b2_ref, w3_ref, b3_ref,
                             out_ref):
    x = x_ref[...]                                   # (tb, 48)
    obs = x[:, :OBS_MAIN]                            # (tb, 32) lanes 0..31
    ph = x[:, OBS_MAIN:]                             # (tb, 16) lanes 32..47 (in-tile)

    # sinusoidal embedding, cos fused into sin via a pi/2 lane offset:
    #   angles16 = 2*pi*phase*[f, f] + [0..0, pi/2..pi/2]
    angles = ph * pe_ref[0:1, :] + pe_ref[1:2, :]    # (tb, 16)
    emb = jnp.sin(angles)                            # == [sin(a), cos(a)]

    # layer 1: concat-free, two small matmuls (MXU is idle anyway)
    h1 = _elu(
        jnp.dot(obs, w1o_ref[...], preferred_element_type=jnp.float32)
        + jnp.dot(emb, w1p_ref[...], preferred_element_type=jnp.float32)
        + b1_ref[...])

    # layer 2
    h2 = _elu(jnp.dot(h1, w2_ref[...], preferred_element_type=jnp.float32)
              + b2_ref[...])

    # layer 3: narrow (12-lane) output; masked vst but ~10x less HBM writeback
    out = jnp.dot(h2, w3_ref[...], preferred_element_type=jnp.float32) + b3_ref[...]
    out_ref[...] = out.astype(out_ref.dtype)


# --------------------------- param preprocessing ------------------------------
def preprocess_params(params):
    """One-time preprocessing (hoisted out of the per-call path)."""
    freqs, w1, b1, w2, b2, w3, b3 = params
    freqs = jnp.asarray(freqs, jnp.float32).reshape(-1)          # robust to (1,8)/(8,)
    assert freqs.shape == (MAX_LEVEL,)

    scale16 = _TWO_PI * jnp.concatenate([freqs, freqs])          # (16,)
    offset16 = jnp.concatenate([jnp.zeros((MAX_LEVEL,), jnp.float32),
                                jnp.full((MAX_LEVEL,), _HALF_PI, jnp.float32)])
    pe_aff = jnp.stack([scale16, offset16], axis=0)              # (2, 16)

    w1 = jnp.asarray(w1, jnp.float32)
    w1_obs = w1[:OBS_MAIN]                                       # (32, 64)
    w1_pe = w1[OBS_MAIN:]                                        # (16, 64)  [sin|cos]

    b1 = jnp.asarray(b1, jnp.float32).reshape(1, HIDDEN[0])
    b2 = jnp.asarray(b2, jnp.float32).reshape(1, HIDDEN[1])
    b3 = jnp.asarray(b3, jnp.float32).reshape(1, NUM_ACTIONS)
    w2 = jnp.asarray(w2, jnp.float32)
    w3 = jnp.asarray(w3, jnp.float32)
    return (pe_aff, w1_obs, w1_pe, b1, w2, b2, w3, b3)


def _choose_tile(batch, block_b, min_tb=256):
    """Batch tile: as large as block_b, but prefer >=4 grid steps (>=2 per
    v7x TensorCore) without dropping below min_tb rows (per-step overhead)."""
    b8 = max(8, pl.cdiv(batch, 8) * 8)
    tb = min(block_b, b8)
    if b8 > min_tb:
        desired = max(min_tb, (b8 // 4) // 8 * 8)
        tb = min(tb, desired)
    return max(8, (tb // 8) * 8)


# -------------------------------- forward ------------------------------------
def phase_aware_actor_forward(obs, prep_params, *, block_b=1024):
    """obs: (B, OBS_DIM) f32. prep_params: output of preprocess_params().
    Returns (B, NUM_ACTIONS) f32 action means."""
    pe_aff, w1_obs, w1_pe, b1, w2, b2, w3, b3 = prep_params
    B = obs.shape[0]

    tb = _choose_tile(B, block_b)
    b_pad = pl.cdiv(B, tb) * tb

    # merged 48-lane input: [obs_main(32) | phase broadcast to 16 lanes]
    obs = obs.astype(jnp.float32)
    obs_main = obs[:, :OBS_MAIN]
    ph16 = jnp.broadcast_to(obs[:, OBS_MAIN:OBS_DIM], (B, PHASE_EMBED_DIM))
    x48 = jnp.concatenate([obs_main, ph16], axis=-1)             # (B, 48)
    if b_pad != B:
        x48 = jnp.pad(x48, ((0, b_pad - B), (0, 0)))

    const = lambda i: (0, 0)       # weights stay VMEM-resident across the grid
    moving = lambda i: (i, 0)      # input / output blocks advance with batch

    grid_spec = pltpu.PrefetchScalarGridSpec(
        num_scalar_prefetch=0,
        grid=(b_pad // tb,),
        in_specs=[
            pl.BlockSpec((tb, MLP_IN), moving),                  # x48
            pl.BlockSpec((2, PHASE_EMBED_DIM), const),           # pe_aff
            pl.BlockSpec((OBS_MAIN, HIDDEN[0]), const),          # w1_obs
            pl.BlockSpec((PHASE_EMBED_DIM, HIDDEN[0]), const),   # w1_pe
            pl.BlockSpec((1, HIDDEN[0]), const),                 # b1
            pl.BlockSpec((HIDDEN[0], HIDDEN[1]), const),         # w2
            pl.BlockSpec((1, HIDDEN[1]), const),                 # b2
            pl.BlockSpec((HIDDEN[1], NUM_ACTIONS), const),       # w3
            pl.BlockSpec((1, NUM_ACTIONS), const),               # b3
        ],
        out_specs=pl.BlockSpec((tb, NUM_ACTIONS), moving),
    )

    flops = 2 * b_pad * (MLP_IN * HIDDEN[0]
                         + HIDDEN[0] * HIDDEN[1]
                         + HIDDEN[1] * NUM_ACTIONS)
    transcendentals = b_pad * (PHASE_EMBED_DIM + HIDDEN[0] + HIDDEN[1])
    weight_bytes = 4 * (2 * PHASE_EMBED_DIM
                        + OBS_MAIN * HIDDEN[0] + PHASE_EMBED_DIM * HIDDEN[0]
                        + HIDDEN[0] + HIDDEN[0] * HIDDEN[1] + HIDDEN[1]
                        + HIDDEN[1] * NUM_ACTIONS + NUM_ACTIONS)
    bytes_accessed = 4 * b_pad * (MLP_IN + NUM_ACTIONS) + weight_bytes

    out = pl.pallas_call(
        phase_aware_actor_kernel,
        out_shape=jax.ShapeDtypeStruct((b_pad, NUM_ACTIONS), jnp.float32),
        grid_spec=grid_spec,
        compiler_params=pltpu.CompilerParams(
            dimension_semantics=("parallel",),
            vmem_limit_bytes=32 * 1024 * 1024),
        cost_estimate=pl.CostEstimate(
            flops=flops,
            transcendentals=transcendentals,
            bytes_accessed=bytes_accessed),
    )(x48, pe_aff, w1_obs, w1_pe, b1, w2, b2, w3, b3)

    return out[:B] if b_pad != B else out


# ------------------------------ test harness ---------------------------------
def make_params(key):
    """Deterministic synthetic parameters (shapes from the module's __init__)."""
    ks = jax.random.split(key, 6)
    freqs = (2.0 ** jnp.arange(MAX_LEVEL, dtype=jnp.float32)).reshape(1, MAX_LEVEL)

    def lin(kw, fan_in, fan_out):
        scale = 1.0 / jnp.sqrt(jnp.float32(fan_in))
        return jax.random.normal(kw, (fan_in, fan_out), jnp.float32) * scale

    w1 = lin(ks[0], MLP_IN, HIDDEN[0])
    b1 = jax.random.normal(ks[1], (1, HIDDEN[0]), jnp.float32) * 0.01
    w2 = lin(ks[2], HIDDEN[0], HIDDEN[1])
    b2 = jax.random.normal(ks[3], (1, HIDDEN[1]), jnp.float32) * 0.01
    w3 = lin(ks[4], HIDDEN[1], NUM_ACTIONS)
    b3 = jax.random.normal(ks[5], (1, NUM_ACTIONS), jnp.float32) * 0.01
    return (freqs, w1, b1, w2, b2, w3, b3)


def reference_forward(obs, params):
    """Pure-JAX reference mirroring the PyTorch forward."""
    freqs, w1, b1, w2, b2, w3, b3 = params
    phase = obs[..., -1:]
    angles = 2.0 * jnp.pi * phase * freqs.reshape(-1)
    emb = jnp.concatenate([jnp.sin(angles), jnp.cos(angles)], axis=-1)
    x = jnp.concatenate([obs[..., :-1], emb], axis=-1)
    h1 = jax.nn.elu(x @ w1 + b1)
    h2 = jax.nn.elu(h1 @ w2 + b2)
    return h2 @ w3 + b3


# TODO(synk): the Normal-distribution sampling path (act / log_prob / entropy /
# std parameter) is host-side PPO bookkeeping, not part of the deterministic
# forward pass, so it is not implemented in the kernel.

if __name__ == "__main__":
    key = jax.random.PRNGKey(0)
    k_obs, k_phase, k_params = jax.random.split(key, 3)

    BATCH = 512   # -> tb=256, 2-step batch grid (one step per TC on v7x)
    obs_main = jax.random.normal(k_obs, (BATCH, OBS_MAIN), jnp.float32)
    phase = jax.random.uniform(k_phase, (BATCH, 1), jnp.float32)   # phase in [0, 1]
    obs = jnp.concatenate([obs_main, phase], axis=-1)              # (BATCH, OBS_DIM)

    params = make_params(k_params)
    prep = preprocess_params(params)          # one-time; not in the per-call path

    fwd = jax.jit(functools.partial(phase_aware_actor_forward, block_b=1024))
    out = jax.block_until_ready(fwd(obs, prep))

    ref = reference_forward(obs, params)
    assert out.shape == (BATCH, NUM_ACTIONS)
    assert jnp.allclose(out, ref, atol=2e-3, rtol=2e-3), float(
        jnp.max(jnp.abs(out - ref)))

    print("KERNEL_OK")
</pallas_src>

<mosaic_0001>
module attributes {stable_mosaic.version = 11 : i64} {
  func.func @phase_aware_actor_kernel(%arg0: i32, %arg1: memref<256x48xf32, #tpu.memory_space<vmem>>, %arg2: memref<2x16xf32, #tpu.memory_space<vmem>>, %arg3: memref<32x64xf32, #tpu.memory_space<vmem>>, %arg4: memref<16x64xf32, #tpu.memory_space<vmem>>, %arg5: memref<1x64xf32, #tpu.memory_space<vmem>>, %arg6: memref<64x64xf32, #tpu.memory_space<vmem>>, %arg7: memref<1x64xf32, #tpu.memory_space<vmem>>, %arg8: memref<64x12xf32, #tpu.memory_space<vmem>>, %arg9: memref<1x12xf32, #tpu.memory_space<vmem>>, %arg10: memref<256x12xf32, #tpu.memory_space<vmem>>) attributes {dimension_semantics = [#tpu.dimension_semantics<parallel>], iteration_bounds = array<i64: 2>, scalar_prefetch = 0 : i64, scratch_operands = 0 : i64, tpu.core_type = #tpu.core_type<tc>, window_params = [{transform_indices = @transform_0, window_bounds = array<i64: 256, 48>}, {pipeline_mode = #tpu.pipeline_mode<synchronous>, transform_indices = @transform_1, window_bounds = array<i64: 2, 16>}, {pipeline_mode = #tpu.pipeline_mode<synchronous>, transform_indices = @transform_2, window_bounds = array<i64: 32, 64>}, {pipeline_mode = #tpu.pipeline_mode<synchronous>, transform_indices = @transform_3, window_bounds = array<i64: 16, 64>}, {pipeline_mode = #tpu.pipeline_mode<synchronous>, transform_indices = @transform_4, window_bounds = array<i64: 1, 64>}, {pipeline_mode = #tpu.pipeline_mode<synchronous>, transform_indices = @transform_5, window_bounds = array<i64: 64, 64>}, {pipeline_mode = #tpu.pipeline_mode<synchronous>, transform_indices = @transform_6, window_bounds = array<i64: 1, 64>}, {pipeline_mode = #tpu.pipeline_mode<synchronous>, transform_indices = @transform_7, window_bounds = array<i64: 64, 12>}, {pipeline_mode = #tpu.pipeline_mode<synchronous>, transform_indices = @transform_8, window_bounds = array<i64: 1, 12>}, {transform_indices = @transform_9, window_bounds = array<i64: 256, 12>}]} {
    %c0 = arith.constant 0 : index
    %c0_0 = arith.constant 0 : index
    %0 = vector.load %arg1[%c0, %c0_0] : memref<256x48xf32, #tpu.memory_space<vmem>>, vector<256x48xf32>
    %1 = vector.extract_strided_slice %0 {offsets = [0, 0], sizes = [256, 32], strides = [1, 1]} : vector<256x48xf32> to vector<256x32xf32>
    %2 = vector.extract_strided_slice %0 {offsets = [0, 32], sizes = [256, 16], strides = [1, 1]} : vector<256x48xf32> to vector<256x16xf32>
    %c0_1 = arith.constant 0 : index
    %c0_2 = arith.constant 0 : index
    %3 = vector.load %arg2[%c0_1, %c0_2] : memref<2x16xf32, #tpu.memory_space<vmem>>, vector<1x16xf32>
    %4 = vector.broadcast %3 : vector<1x16xf32> to vector<256x16xf32>
    %5 = arith.mulf %2, %4 : vector<256x16xf32>
    %c1 = arith.constant 1 : index
    %c0_3 = arith.constant 0 : index
    %6 = vector.load %arg2[%c1, %c0_3] : memref<2x16xf32, #tpu.memory_space<vmem>>, vector<1x16xf32>
    %7 = vector.broadcast %6 : vector<1x16xf32> to vector<256x16xf32>
    %8 = arith.addf %5, %7 : vector<256x16xf32>
    %9 = math.sin %8 : vector<256x16xf32>
    %c0_4 = arith.constant 0 : index
    %c0_5 = arith.constant 0 : index
    %10 = vector.load %arg3[%c0_4, %c0_5] : memref<32x64xf32, #tpu.memory_space<vmem>>, vector<32x64xf32>
    %cst = arith.constant dense<0.000000e+00> : vector<256x64xf32>
    %11 = tpu.matmul %1, %10, %cst {dimension_numbers = #tpu.dot_dimension_numbers<[1], [0], [0], [1], [0, 0, 1, 1], [], []>} : vector<256x32xf32>, vector<32x64xf32>, vector<256x64xf32> -> vector<256x64xf32>
    %c0_6 = arith.constant 0 : index
    %c0_7 = arith.constant 0 : index
    %12 = vector.load %arg4[%c0_6, %c0_7] : memref<16x64xf32, #tpu.memory_space<vmem>>, vector<16x64xf32>
    %cst_8 = arith.constant dense<0.000000e+00> : vector<256x64xf32>
    %13 = tpu.matmul %9, %12, %cst_8 {dimension_numbers = #tpu.dot_dimension_numbers<[1], [0], [0], [1], [0, 0, 1, 1], [], []>} : vector<256x16xf32>, vector<16x64xf32>, vector<256x64xf32> -> vector<256x64xf32>
    %14 = arith.addf %11, %13 : vector<256x64xf32>
    %c0_9 = arith.constant 0 : index
    %c0_10 = arith.constant 0 : index
    %15 = vector.load %arg5[%c0_9, %c0_10] : memref<1x64xf32, #tpu.memory_space<vmem>>, vector<1x64xf32>
    %16 = vector.broadcast %15 : vector<1x64xf32> to vector<256x64xf32>
    %17 = arith.addf %14, %16 : vector<256x64xf32>
    %cst_11 = arith.constant 0.000000e+00 : f32
    %18 = vector.broadcast %cst_11 : f32 to vector<256x64xf32>
    %19 = arith.cmpf ogt, %17, %18 : vector<256x64xf32>
    %cst_12 = arith.constant 0.000000e+00 : f32
    %20 = vector.broadcast %cst_12 : f32 to vector<256x64xf32>
    %21 = arith.minimumf %17, %20 : vector<256x64xf32>
    %22 = math.exp %21 : vector<256x64xf32>
    %cst_13 = arith.constant 1.000000e+00 : f32
    %23 = vector.broadcast %cst_13 : f32 to vector<256x64xf32>
    %24 = arith.subf %22, %23 : vector<256x64xf32>
    %25 = arith.select %19, %17, %24 : vector<256x64xi1>, vector<256x64xf32>
    %c0_14 = arith.constant 0 : index
    %c0_15 = arith.constant 0 : index
    %26 = vector.load %arg6[%c0_14, %c0_15] : memref<64x64xf32, #tpu.memory_space<vmem>>, vector<64x64xf32>
    %cst_16 = arith.constant dense<0.000000e+00> : vector<256x64xf32>
    %27 = tpu.matmul %25, %26, %cst_16 {dimension_numbers = #tpu.dot_dimension_numbers<[1], [0], [0], [1], [0, 0, 1, 1], [], []>} : vector<256x64xf32>, vector<64x64xf32>, vector<256x64xf32> -> vector<256x64xf32>
    %c0_17 = arith.constant 0 : index
    %c0_18 = arith.constant 0 : index
    %28 = vector.load %arg7[%c0_17, %c0_18] : memref<1x64xf32, #tpu.memory_space<vmem>>, vector<1x64xf32>
    %29 = vector.broadcast %28 : vector<1x64xf32> to vector<256x64xf32>
    %30 = arith.addf %27, %29 : vector<256x64xf32>
    %cst_19 = arith.constant 0.000000e+00 : f32
    %31 = vector.broadcast %cst_19 : f32 to vector<256x64xf32>
    %32 = arith.cmpf ogt, %30, %31 : vector<256x64xf32>
    %cst_20 = arith.constant 0.000000e+00 : f32
    %33 = vector.broadcast %cst_20 : f32 to vector<256x64xf32>
    %34 = arith.minimumf %30, %33 : vector<256x64xf32>
    %35 = math.exp %34 : vector<256x64xf32>
    %cst_21 = arith.constant 1.000000e+00 : f32
    %36 = vector.broadcast %cst_21 : f32 to vector<256x64xf32>
    %37 = arith.subf %35, %36 : vector<256x64xf32>
    %38 = arith.select %32, %30, %37 : vector<256x64xi1>, vector<256x64xf32>
    %c0_22 = arith.constant 0 : index
    %c0_23 = arith.constant 0 : index
    %39 = vector.load %arg8[%c0_22, %c0_23] : memref<64x12xf32, #tpu.memory_space<vmem>>, vector<64x12xf32>
    %cst_24 = arith.constant dense<0.000000e+00> : vector<256x12xf32>
    %40 = tpu.matmul %38, %39, %cst_24 {dimension_numbers = #tpu.dot_dimension_numbers<[1], [0], [0], [1], [0, 0, 1, 1], [], []>} : vector<256x64xf32>, vector<64x12xf32>, vector<256x12xf32> -> vector<256x12xf32>
    %c0_25 = arith.constant 0 : index
    %c0_26 = arith.constant 0 : index
    %41 = vector.load %arg9[%c0_25, %c0_26] : memref<1x12xf32, #tpu.memory_space<vmem>>, vector<1x12xf32>
    %42 = vector.broadcast %41 : vector<1x12xf32> to vector<256x12xf32>
    %43 = arith.addf %40, %42 : vector<256x12xf32>
    %c0_27 = arith.constant 0 : index
    %c0_28 = arith.constant 0 : index
    %44 = vector.load %arg10[%c0_27, %c0_28] : memref<256x12xf32, #tpu.memory_space<vmem>>, vector<256x12xf32>
    tpu.vector_store %arg10[%c0_27, %c0_28], %43 {strides = array<i32>} : memref<256x12xf32, #tpu.memory_space<vmem>>, vector<256x12xf32>,
    return
  }
  func.func @transform_0(%arg0: i32) -> (i32, i32) {
    %c0_i32 = arith.constant 0 : i32
    %c0_i32_0 = arith.constant 0 : i32
    return %arg0, %c0_i32 : i32, i32
  }
  func.func @transform_1(%arg0: i32) -> (i32, i32) {
    %c0_i32 = arith.constant 0 : i32
    %c0_i32_0 = arith.constant 0 : i32
    %c0_i32_1 = arith.constant 0 : i32
    return %c0_i32, %c0_i32_0 : i32, i32
  }
  func.func @transform_2(%arg0: i32) -> (i32, i32) {
    %c0_i32 = arith.constant 0 : i32
    %c0_i32_0 = arith.constant 0 : i32
    %c0_i32_1 = arith.constant 0 : i32
    return %c0_i32, %c0_i32_0 : i32, i32
  }
  func.func @transform_3(%arg0: i32) -> (i32, i32) {
    %c0_i32 = arith.constant 0 : i32
    %c0_i32_0 = arith.constant 0 : i32
    %c0_i32_1 = arith.constant 0 : i32
    return %c0_i32, %c0_i32_0 : i32, i32
  }
  func.func @transform_4(%arg0: i32) -> (i32, i32) {
    %c0_i32 = arith.constant 0 : i32
    %c0_i32_0 = arith.constant 0 : i32
    %c0_i32_1 = arith.constant 0 : i32
    return %c0_i32, %c0_i32_0 : i32, i32
  }
  func.func @transform_5(%arg0: i32) -> (i32, i32) {
    %c0_i32 = arith.constant 0 : i32
    %c0_i32_0 = arith.constant 0 : i32
    %c0_i32_1 = arith.constant 0 : i32
    return %c0_i32, %c0_i32_0 : i32, i32
  }
  func.func @transform_6(%arg0: i32) -> (i32, i32) {
    %c0_i32 = arith.constant 0 : i32
    %c0_i32_0 = arith.constant 0 : i32
    %c0_i32_1 = arith.constant 0 : i32
    return %c0_i32, %c0_i32_0 : i32, i32
  }
  func.func @transform_7(%arg0: i32) -> (i32, i32) {
    %c0_i32 = arith.constant 0 : i32
    %c0_i32_0 = arith.constant 0 : i32
    %c0_i32_1 = arith.constant 0 : i32
    return %c0_i32, %c0_i32_0 : i32, i32
  }
  func.func @transform_8(%arg0: i32) -> (i32, i32) {
    %c0_i32 = arith.constant 0 : i32
    %c0_i32_0 = arith.constant 0 : i32
    %c0_i32_1 = arith.constant 0 : i32
    return %c0_i32, %c0_i32_0 : i32, i32
  }
  func.func @transform_9(%arg0: i32) -> (i32, i32) {
    %c0_i32 = arith.constant 0 : i32
    %c0_i32_0 = arith.constant 0 : i32
    return %arg0, %c0_i32 : i32, i32
  }
}

</mosaic_0001>

<bundles_post_ra>
// kernel: phase_aware_actor_forward.1
= control target key start
LH: loop header
LB: loop body
LE: loop exit
PB: predicated region body
PF: predicated region fallthrough
CT: control target
= control target key end

     0   :  { %s6979_s30 = smov 0   ;;  %s10360_s0 = inlined_call_operand.vmem [shape: f32[512,48], index: 0, kind: input, shape index: {}]   ;;  %s10361_s1 = inlined_call_operand.vmem [shape: f32[2,16], index: 1, kind: input, shape index: {}]   ;;  %s10362_s2 = inlined_call_operand.vmem [shape: f32[32,64], index: 2, kind: input, shape index: {}]   ;;  %s10363_s3 = inlined_call_operand.vmem [shape: f32[16,64], index: 3, kind: input, shape index: {}]   ;;  %s10364_s4 = inlined_call_operand.vmem [shape: f32[1,64], index: 4, kind: input, shape index: {}]   ;;  %s10365_s5 = inlined_call_operand.vmem [shape: f32[64,64], index: 5, kind: input, shape index: {}]   ;;  %s10366_s6 = inlined_call_operand.vmem [shape: f32[1,64], index: 6, kind: input, shape index: {}]   ;;  %s10367_s7 = inlined_call_operand.vmem [shape: f32[64,12], index: 7, kind: input, shape index: {}]   ;;  %s10368_s8 = inlined_call_operand.vmem [shape: f32[1,12], index: 8, kind: input, shape index: {}]   ;;  %s10369_s9 = inlined_call_operand.vmem [shape: f32[512,12], index: 9, kind: output, shape index: {}]  }
   0x1 LB: > { %s5677_s10 = sadd.s32 4294967295, %s6919_s30   ;;  %p5681_p0 = scmp.ge.s32.totalorder %s6919_s30, 1  ;;  %s6919_s30 = sphi %s6979_s30, %s19_s30  }
   0x2   : > { %p288_p1 = scmp.lt.s32.totalorder %s6919_s30, 3 }
   0x4   : > { %p289_p2 = pnand %p5681_p0, %p288_p1 }
   0x5   : > { %v5686_v0 = vld [vmem:[%s10361_s1] ss:$0 sm:$0xff] (!%p289_p2)  ;;  %s6921_s13 = smov (!%p289_p2), 32   ;;  %v5687_v1 = vld [vmem:[%s10361_s1 + $0x1] ss:$0 sm:$0xff] (!%p289_p2)  ;;  %s5682_s16 = sshll.u32 (!%p289_p2), %s5677_s10, 5 }
   0x6   : > { %292 = sbr.rel (%p289_p2) target bundleno = 1826 (0x722), region = 56  ;;  %374 = vrot.lane.b32.xlu0 (!%p289_p2), %v5686_v0, %s6921_s13  ;;  %p325_p3 = scmp.lt.s32.totalorder (!%p289_p2), %s5682_s16, 63  ;;  %v6922_v44 = vmov (!%p289_p2), 683565275   ;;  %v6923_v48 = vmov (!%p289_p2), 2475754826  }
   0x7   : > { %v6924_v50 = vmov (!%p289_p2), 2131351028   ;;  %v6925_v52 = vmov (!%p289_p2), 2102212464   ;;  %v6926_v54 = vmov (!%p289_p2), 920167782  }
   0x8   : > { %v6927_v61 = vmov (!%p289_p2), 1326507024   ;;  %s6928_s21 = smov (!%p289_p2), 96  }
   0xa   : > { %415 = vrot.lane.b32.xlu0 (!%p289_p2), %v5687_v1, %s6921_s13 }
   0xd   : > { %s10431_s16 = smov (!%p325_p3, %s5682_s16), 63 }
   0xe   : > { %s5683_s17 = sshll.u32 %s10431_s16, 3 }
   0xf   : > { %s7001_s20 = scalar_lea.vmem %s10360_s0, %s5683_s17  ;;  %s10259_s22 = scalar_lea.vmem %s10369_s9, %s5683_s17 }
  0x10   : > { %v338_v3 = vld [vmem:[%s7001_s20 + $0x10] sm:$0xff]  ;;  %v336_v4 = vld [vmem:[%s7001_s20] sm:$0xff]  ;;  %v337_v17 = vld [vmem:[%s7001_s20 + $0x8] sm:$0xff] }
  0x11   : > { %v340_v5 = vld [vmem:[%s7001_s20 + $0x20] sm:$0xff] }
  0x78   : > { %v7003_v2 = vpop.permute.xlu0 %374 }
  0x79   : > { %v379_v6 = vmul.f32 %v7003_v2, %v338_v3  ;;  %v377_v7 = vmul.f32 %v7003_v2, %v336_v4  ;;  %v381_v9 = vmul.f32 %v7003_v2, %v340_v5  ;;  %v378_v24 = vmul.f32 %v7003_v2, %v337_v17 }
  0x7c   : > { %v7010_v8 = vpop.permute.xlu0 %415 }
  0x7d   : > { %v7014_v10 = vadd.f32 %v7010_v8, %v379_v6  ;;  %v7017_v11 = vadd.f32 %v7010_v8, %v377_v7  ;;  %v7020_v12 = vadd.f32 %v7010_v8, %v381_v9  ;;  %v7034_v29 = vadd.f32 %v7010_v8, %v378_v24 }
  0x7f   : > { %v658_v13 = vand.u32 2147483647, %v7014_v10  ;;  %v661_v14 = vand.u32 2139095040, %v7014_v10  ;;  %v450_v15 = vand.u32 2147483647, %v7017_v11  ;;  %v453_v16 = vand.u32 2139095040, %v7017_v11 }
  0x80   : > { %v869_v22 = vand.u32 2139095040, %v7020_v12  ;;  %v866_v32 = vand.u32 2147483647, %v7020_v12  ;;  %v557_v42 = vand.u32 2139095040, %v7034_v29  ;;  %vm660_vm13 = vcmp.lt.s32.totalorder %v7014_v10, 0 }
  0x81   : > { %v662_v18 = vshrl.u32 %v661_v14, 23  ;;  %v665_v19 = vand.u32 8388607, %v658_v13  ;;  %v454_v20 = vshrl.u32 %v453_v16, 23  ;;  %v457_v21 = vand.u32 8388607, %v450_v15 }
  0x82   : > { %v870_v26 = vshrl.u32 %v869_v22, 23  ;;  %v7043_v40 = vand.u32 8388607, %v866_v32  ;;  %vm7147_vm14 = vcmp.le.f32.partialorder %v658_v13, 0.7853982 }
  0x83   : > { %v5696_v23 = vadd.s32 4294967169, %v662_v18  ;;  %v5688_v25 = vadd.s32 4294967169, %v454_v20  ;;  %v666_v27 = vor.u32 8388608, %v665_v19  ;;  %v458_v30 = vor.u32 8388608, %v457_v21 }
  0x84   : > { %v5704_v33 = vadd.s32 4294967169, %v870_v26 }
  0x85   : > { %v668_v28 = vadd.s32 1, %v5696_v23  ;;  %v460_v31 = vadd.s32 1, %v5688_v25  ;;  %v7037_v37 = vshll.u32 %v666_v27, 8  ;;  %v7039_v39 = vshll.u32 %v458_v30, 8 }
  0x86   : > { %v7045_v41 = vadd.s32 1, %v5704_v33 }
  0x87   : > { %vm669_vm0 = vcmp.gt.s32.totalorder %v668_v28, 0  ;;  %vm461_vm1 = vcmp.gt.s32.totalorder %v460_v31, 0 }
  0x88   : > { %v670_v34 = vsel %vm669_vm0, %v668_v28, 0  ;;  %v462_v38 = vsel %vm461_vm1, %v460_v31, 0  ;;  %vm877_vm6 = vcmp.gt.s32.totalorder %v7045_v41, 0 }
  0x89   : > { %v671_v35 = vshrl.u32 %v670_v34, 5  ;;  %v672_v36 = vand.u32 31, %v670_v34  ;;  %v7049_v46 = vshrl.u32 %v462_v38, 5  ;;  %v464_v47 = vand.u32 31, %v462_v38 }
  0x8b   : > { %v673_v43 = vsub.s32 32, %v672_v36  ;;  %v675_v45 = vshll.u32 %v6922_v44, %v672_v36  ;;  %v678_v49 = vshll.u32 %v6923_v48, %v672_v36  ;;  %v681_v51 = vshll.u32 %v6924_v50, %v672_v36 }
  0x8c   : > { %v684_v53 = vshll.u32 %v6925_v52, %v672_v36  ;;  %v687_v55 = vshll.u32 %v6926_v54, %v672_v36  ;;  %vm690_vm2 = vcmp.lt.s32.totalorder %v671_v35, 1  ;;  %vm691_vm3 = vcmp.lt.s32.totalorder %v671_v35, 2 }
  0x8d   : > { %v676_v56 = vshrl.u32 %v6923_v48, %v673_v43  ;;  %v679_v57 = vshrl.u32 %v6924_v50, %v673_v43  ;;  %v682_v58 = vshrl.u32 %v6925_v52, %v673_v43  ;;  %v674_v59 = vshrl.u32 %v6922_v44, %v673_v43 }
  0x8e   : > { %v685_v60 = vshrl.u32 %v6926_v54, %v673_v43  ;;  %v688_v62 = vshrl.u32 %v6927_v61, %v673_v43  ;;  %v465_v3 = vsub.s32 32, %v464_v47  ;;  %vm692_vm4 = vcmp.lt.s32.totalorder %v671_v35, 3 }
  0x8f   : > { %v677_v63 = vor.u32 %v676_v56, %v675_v45  ;;  %v680_v0 = vor.u32 %v679_v57, %v678_v49  ;;  %v683_v1 = vor.u32 %v682_v58, %v681_v51  ;;  %vm693_vm5 = vcmp.lt.s32.totalorder %v671_v35, 4 }
  0x90   : > { %v686_v4 = vor.u32 %v685_v60, %v684_v53  ;;  %v689_v5 = vor.u32 %v688_v62, %v687_v55  ;;  %v467_v19 = vshll.u32 %v6922_v44, %v464_v47  ;;  %v468_v22 = vshrl.u32 %v6923_v48, %v465_v3 }
  0x91   : > { %v694_v6 = vsel %vm690_vm2, %v674_v59, %v677_v63  ;;  %v695_v7 = vsel %vm693_vm5, %v683_v1, 2102212464  ;;  %v698_v9 = vsel %vm690_vm2, %v677_v63, %v680_v0  ;;  %v702_v14 = vsel %vm690_vm2, %v680_v0, %v683_v1 }
  0x92   : > { %v696_v16 = vsel %vm692_vm4, %v680_v0, %v695_v7  ;;  %v699_v17 = vsel %vm693_vm5, %v686_v4, 920167782  ;;  %v703_v18 = vsel %vm693_vm5, %v689_v5, 1326507024  ;;  %v470_v23 = vshll.u32 %v6923_v48, %v464_v47 }
  0x93   : > { %v700_v20 = vsel %vm692_vm4, %v683_v1, %v699_v17  ;;  %v704_v21 = vsel %vm692_vm4, %v686_v4, %v703_v18  ;;  %v697_v24 = vsel %vm691_vm3, %v694_v6, %v696_v16  ;;  %v471_v27 = vshrl.u32 %v6924_v50, %v465_v3 }
  0x94   : > { %v701_v25 = vsel %vm691_vm3, %v698_v9, %v700_v20  ;;  %v705_v26 = vsel %vm691_vm3, %v702_v14, %v704_v21  ;;  %v469_v34 = vor.u32 %v468_v22, %v467_v19  ;;  %v473_v38 = vshll.u32 %v6924_v50, %v464_v47  ;;  %v342_v19 = vld [vmem:[%s7001_s20 + $0x30] sm:$0xff]  ;;  %v339_v20 = vld [vmem:[%s7001_s20 + $0x18] sm:$0xff] }
  0x95   : > { %v7073_v28 = vmul.u32.u64.low %v7037_v37, %v705_v26  ;;  %v7074_v30 = vmul.u32.u64.high %v7037_v37, %v705_v26, %v7073_v28  ;;  %v7077_v31 = vmul.u32.u64.low %v7037_v37, %v701_v25  ;;  %v7078_v33 = vmul.u32.u64.high %v7037_v37, %v701_v25, %v7077_v31 }
  0x96   : > { %v472_v36 = vor.u32 %v471_v27, %v470_v23  ;;  %v474_v43 = vshrl.u32 %v6925_v52, %v465_v3  ;;  %v466_v35 = vshrl.u32 %v6922_v44, %v465_v3  ;;  %v476_v45 = vshll.u32 %v6925_v52, %v464_v47  ;;  %v344_v27 = vld [vmem:[%s7001_s20 + $0x40] sm:$0xff] }
  0x97   : > { %v477_v49 = vshrl.u32 %v6926_v54, %v465_v3  ;;  %v480_v51 = vshrl.u32 %v6927_v61, %v465_v3  ;;  %v713_v53 = vmul.u32 %v7037_v37, %v697_v24  ;;  %v479_v56 = vshll.u32 %v6926_v54, %v464_v47 }
  0x98   : > { %v475_v55 = vor.u32 %v474_v43, %v473_v38  ;;  %vm482_vm7 = vcmp.lt.s32.totalorder %v7049_v46, 1  ;;  %vm715_vm8 = vc.u32 %v7074_v30, %v7077_v31  ;;  %v716_v57 = vadd.s32 1, %v7078_v33 }
  0x99   : > { %v478_v58 = vor.u32 %v477_v49, %v476_v45  ;;  %vm483_vm9 = vcmp.lt.s32.totalorder %v7049_v46, 2  ;;  %v481_v59 = vor.u32 %v480_v51, %v479_v56  ;;  %vm484_vm10 = vcmp.lt.s32.totalorder %v7049_v46, 3 }
  0x9a   : > { %vm485_vm11 = vcmp.lt.s32.totalorder %v7049_v46, 4  ;;  %v490_v60 = vsel %vm482_vm7, %v469_v34, %v472_v36  ;;  %v717_v37 = vsel %vm715_vm8, %v716_v57, %v7078_v33  ;;  %v494_v63 = vsel %vm482_vm7, %v472_v36, %v475_v55 }
  0x9b   : > { %v487_v47 = vsel %vm485_vm11, %v475_v55, 2102212464  ;;  %v491_v62 = vsel %vm485_vm11, %v478_v58, 920167782  ;;  %v718_v0 = vadd.s32 %v717_v37, %v713_v53  ;;  %v486_v1 = vsel %vm482_vm7, %v466_v35, %v469_v34 }
  0x9c   : > { %v492_v3 = vsel %vm484_vm10, %v475_v55, %v491_v62  ;;  %v495_v4 = vsel %vm485_vm11, %v481_v59, 1326507024  ;;  %v488_v5 = vsel %vm484_vm10, %v472_v36, %v487_v47  ;;  %v878_v9 = vsel %vm877_vm6, %v7045_v41, 0 }
  0x9d   : > { %v493_v6 = vsel %vm483_vm9, %v490_v60, %v492_v3  ;;  %v496_v7 = vsel %vm484_vm10, %v478_v58, %v495_v4  ;;  %v719_v14 = vadd.s32 536870912, %v718_v0  ;;  %v554_v23 = vand.u32 2147483647, %v7034_v29 }
  0x9e   : > { %v497_v16 = vsel %vm483_vm9, %v494_v63, %v496_v7  ;;  %v7105_v17 = vmul.u32.u64.low %v7039_v39, %v493_v6  ;;  %v7106_v18 = vmul.u32.u64.high %v7039_v39, %v493_v6, %v7105_v17  ;;  %v489_v41 = vsel %vm483_vm9, %v486_v1, %v488_v5 }
  0x9f   : > { %v7112_v21 = vmul.u32.u64.low %v7039_v39, %v497_v16  ;;  %v7113_v22 = vmul.u32.u64.high %v7039_v39, %v497_v16, %v7112_v21  ;;  %v720_v24 = vshrl.u32 %v719_v14, 30  ;;  %v874_v25 = vor.u32 8388608, %v7043_v40 }
  0xa0   : > { %v880_v26 = vand.u32 31, %v878_v9  ;;  %v7121_v28 = vmul.f32 %v7003_v2, %v342_v19  ;;  %v7124_v33 = vmul.f32 %v7003_v2, %v339_v20  ;;  %v508_v36 = vadd.s32 1, %v7106_v18 }
  0xa1   : > { %v721_v34 = vshll.u32 %v720_v24, 30  ;;  %v558_v43 = vshrl.u32 %v557_v42, 23  ;;  %v505_v46 = vmul.u32 %v7039_v39, %v489_v41  ;;  %vm507_vm12 = vc.u32 %v7113_v22, %v7105_v17 }
  0xa2   : > { %v881_v38 = vsub.s32 32, %v880_v26  ;;  %v7134_v40 = vand.u32 8388607, %v554_v23  ;;  %v7137_v35 = vmul.f32 %v7003_v2, %v344_v27  ;;  %v509_v49 = vsel %vm507_vm12, %v508_v36, %v7106_v18 }
  0xa3   : > { %v7140_v45 = vsub.s32 %v718_v0, %v721_v34  ;;  %v7143_v51 = vshll.u32 %v874_v25, 8  ;;  %v714_v42 = vadd.s32 %v7077_v31, %v7074_v30  ;;  %v510_v53 = vadd.s32 %v509_v49, %v505_v46 }
  0xa4   : > { %v7153_v55 = vshrl.u32 %v878_v9, 5  ;;  %v884_v56 = vshrl.u32 %v6923_v48, %v881_v38  ;;  %v887_v58 = vshrl.u32 %v6924_v50, %v881_v38  ;;  %v890_v59 = vshrl.u32 %v6925_v52, %v881_v38 }
  0xa5   : > { %v724_v57 = vsub.s32 0, %v7140_v45  ;;  %v5692_v60 = vadd.s32 4294967169, %v558_v43  ;;  %v744_v37 = vsub.s32 4, %v720_v24  ;;  %v511_v13 = vadd.s32 536870912, %v510_v53 }
  0xa6   : > { %v883_v47 = vshll.u32 %v6922_v44, %v880_v26  ;;  %v562_v62 = vor.u32 8388608, %v7134_v40  ;;  %v886_v31 = vshll.u32 %v6923_v48, %v880_v26  ;;  %v889_v63 = vshll.u32 %v6924_v50, %v880_v26 }
  0xa7   : > { %v5697_v30 = vmin.u32 %v724_v57, %v7140_v45  ;;  %v893_v0 = vshrl.u32 %v6926_v54, %v881_v38  ;;  %v512_v1 = vshrl.u32 %v511_v13, 30  ;;  %v892_v4 = vshll.u32 %v6925_v52, %v880_v26 }
  0xa8   : > { %v885_v3 = vor.u32 %v884_v56, %v883_v47  ;;  %v896_v5 = vshrl.u32 %v6927_v61, %v881_v38  ;;  %v888_v7 = vor.u32 %v887_v58, %v886_v31  ;;  %v891_v9 = vor.u32 %v890_v59, %v889_v63 }
  0xa9   : > { %v726_v6 = vclz %v5697_v30  ;;  %v895_v14 = vshll.u32 %v6926_v54, %v880_v26  ;;  %v745_v16 = vsel %vm660_vm13, %v744_v37, %v720_v24  ;;  %v513_v18 = vshll.u32 %v512_v1, 30 }
  0xaa   : > { %v894_v19 = vor.u32 %v893_v0, %v892_v4  ;;  %vm898_vm15 = vcmp.lt.s32.totalorder %v7153_v55, 1  ;;  %vm899_vm0 = vcmp.lt.s32.totalorder %v7153_v55, 2  ;;  %vm901_vm1 = vcmp.lt.s32.totalorder %v7153_v55, 4 }
  0xab   : > { %v5698_v20 = vadd.s32 4294967294, %v726_v6  ;;  %v897_v21 = vor.u32 %v896_v5, %v895_v14  ;;  %vm452_vm2 = vcmp.lt.s32.totalorder %v7017_v11, 0  ;;  %v7174_v41 = vsub.s32 %v510_v53, %v513_v18 }
  0xac   : > { %v882_v25 = vshrl.u32 %v6922_v44, %v881_v38  ;;  %vm900_vm3 = vcmp.lt.s32.totalorder %v7153_v55, 3  ;;  %v907_v24 = vsel %vm901_vm1, %v894_v19, 920167782  ;;  %v747_v26 = vsel %vm7147_vm14, 0, %v745_v16 }
  0xad   : > { %vm5699_vm4 = vcmp.lt.s32.totalorder %v5698_v20, 0  ;;  %v906_v27 = vsel %vm898_vm15, %v885_v3, %v888_v7  ;;  %v908_v34 = vsel %vm900_vm3, %v891_v9, %v907_v24  ;;  %v516_v43 = vsub.s32 0, %v7174_v41 }
  0xae   : > { %v729_v36 = vsel %vm5699_vm4, 0, %v5698_v20  ;;  %v536_v46 = vsub.s32 4, %v512_v1  ;;  %v910_v38 = vsel %vm898_vm15, %v888_v7, %v891_v9  ;;  %vm7191_vm5 = vcmp.le.f32.partialorder %v450_v15, 0.7853982 }
  0xaf   : > { %v730_v49 = vsub.s32 32, %v729_v36  ;;  %v734_v53 = vsub.s32 4294967266, %v729_v36  ;;  %v903_v57 = vsel %vm901_vm1, %v891_v9, 2102212464  ;;  %v911_v58 = vsel %vm901_vm1, %v897_v21, 1326507024 }
  0xb0   : > { %v731_v59 = vshll.u32 %v7140_v45, %v729_v36  ;;  %v5689_v37 = vmin.u32 %v516_v43, %v7174_v41  ;;  %v909_v13 = vsel %vm899_vm0, %v906_v27, %v908_v34  ;;  %v912_v47 = vsel %vm900_vm3, %v894_v19, %v911_v58 }
  0xb1   : > { %v732_v15 = vshrl.u32 %v714_v42, %v730_v49  ;;  %v735_v30 = vadd.s32 127, %v734_v53  ;;  %v913_v31 = vsel %vm899_vm0, %v910_v38, %v912_v47  ;;  %v564_v63 = vadd.s32 1, %v5692_v60 }
  0xb2   : > { %v751_v0 = vadd.s32 3, %v747_v26  ;;  %v518_v4 = vclz %v5689_v37  ;;  %v902_v5 = vsel %vm898_vm15, %v882_v25, %v885_v3  ;;  %v904_v45 = vsel %vm900_vm3, %v888_v7, %v903_v57 }
  0xb3   : > { %v733_v6 = vor.u32 %v732_v15, %v731_v59  ;;  %v736_v9 = vshll.u32 %v735_v30, 23  ;;  %v7212_v14 = vmul.u32.u64.low %v7143_v51, %v913_v31  ;;  %v7213_v16 = vmul.u32.u64.high %v7143_v51, %v913_v31, %v7212_v14 }
  0xb4   : > { %v5690_v42 = vadd.s32 4294967294, %v518_v4  ;;  %v7216_v18 = vmul.u32.u64.low %v7143_v51, %v909_v13  ;;  %v7217_v19 = vmul.u32.u64.high %v7143_v51, %v909_v13, %v7216_v18  ;;  %vm565_vm6 = vcmp.gt.s32.totalorder %v564_v63, 0 }
  0xb5   : > { %v737_v60 = vor.u32 4788187, %v736_v9  ;;  %v506_v3 = vadd.s32 %v7105_v17, %v7113_v22  ;;  %v537_v7 = vsel %vm452_vm2, %v536_v46, %v512_v1  ;;  %v566_v20 = vsel %vm565_vm6, %v564_v63, 0 }
  0xb6   : > { %v7224_v21 = vand.u32 3, %v751_v0  ;;  %vm5691_vm7 = vcmp.lt.s32.totalorder %v5690_v42, 0  ;;  %v905_v25 = vsel %vm899_vm0, %v902_v5, %v904_v45  ;;  %v568_v24 = vand.u32 31, %v566_v20 }
  0xb7   : > { %v738_v26 = vand.u32 2147483647, %v737_v60  ;;  %v740_v27 = vcvt.s32.f32 %v733_v6  ;;  %v521_v34 = vsel %vm5691_vm7, 0, %v5690_v42  ;;  %vm923_vm8 = vc.u32 %v7213_v16, %v7216_v18 }
  0xb8   : > { %v522_v36 = vsub.s32 32, %v521_v34  ;;  %v526_v43 = vsub.s32 4294967266, %v521_v34  ;;  %v539_v17 = vsel %vm7191_vm5, 0, %v537_v7  ;;  %v924_v22 = vadd.s32 1, %v7217_v19 }
  0xb9   : > { %v741_v1 = vmul.f32 %v740_v27, %v738_v26  ;;  %v921_v46 = vmul.u32 %v7143_v51, %v905_v25  ;;  %v7234_v38 = vshrl.u32 %v566_v20, 5  ;;  %v569_v55 = vsub.s32 32, %v568_v24 }
  0xba   : > { %v523_v49 = vshll.u32 %v7174_v41, %v521_v34  ;;  %v524_v53 = vshrl.u32 %v506_v3, %v522_v36  ;;  %v527_v57 = vadd.s32 127, %v526_v43  ;;  %v925_v58 = vsel %vm923_vm8, %v924_v22, %v7217_v19 }
  0xbb   : > { %v742_v59 = vxor.u32 2147483648, %v741_v1  ;;  %v926_v37 = vadd.s32 %v925_v58, %v921_v46  ;;  %v571_v13 = vshll.u32 %v6922_v44, %v568_v24  ;;  %v572_v47 = vshrl.u32 %v6923_v48, %v569_v55 }
  0xbc   : > { %v525_v15 = vor.u32 %v524_v53, %v523_v49  ;;  %v528_v30 = vshll.u32 %v527_v57, 23  ;;  %v574_v31 = vshll.u32 %v6923_v48, %v568_v24  ;;  %v575_v51 = vshrl.u32 %v6924_v50, %v569_v55 }
  0xbd   : > { %v743_v63 = vsel %vm660_vm13, %v742_v59, %v741_v1  ;;  %v927_v41 = vadd.s32 536870912, %v926_v37  ;;  %v577_v0 = vshll.u32 %v6924_v50, %v568_v24  ;;  %v578_v4 = vshrl.u32 %v6925_v52, %v569_v55 }
  0xbe   : > { %v746_v5 = vsel %vm7147_vm14, %v7014_v10, %v743_v63  ;;  %v529_v45 = vor.u32 4788187, %v528_v30  ;;  %v573_v6 = vor.u32 %v572_v47, %v571_v13  ;;  %v580_v9 = vshll.u32 %v6925_v52, %v568_v24 }
  0xbf   : > { %6627 = vcosq.f32 %v746_v5  ;;  %v532_v14 = vcvt.s32.f32 %v525_v15  ;;  %v928_v42 = vshrl.u32 %v927_v41, 30  ;;  %v581_v19 = vshrl.u32 %v6926_v54, %v569_v55 }
  0xc0   : > { %6629 = vsinq.f32 %v746_v5  ;;  %v530_v60 = vand.u32 2147483647, %v529_v45  ;;  %v576_v3 = vor.u32 %v575_v51, %v574_v31  ;;  %v584_v7 = vshrl.u32 %v6927_v61, %v569_v55 }
  0xc1   : > { %v929_v20 = vshll.u32 %v928_v42, 30  ;;  %v582_v25 = vor.u32 %v581_v19, %v580_v9  ;;  %v7254_v39 = vadd.f32 %v7010_v8, %v7121_v28  ;;  %v7258_v26 = vadd.f32 %v7010_v8, %v7124_v33 }
  0xc2   : > { %v533_v27 = vmul.f32 %v532_v14, %v530_v60  ;;  %v543_v34 = vadd.s32 3, %v539_v17  ;;  %vm868_vm9 = vcmp.lt.s32.totalorder %v7020_v12, 0  ;;  %v579_v36 = vor.u32 %v578_v4, %v577_v0 }
  0xc3   : > { %v583_v43 = vshll.u32 %v6926_v54, %v568_v24  ;;  %v7262_v22 = vsub.s32 %v926_v37, %v929_v20  ;;  %v570_v1 = vshrl.u32 %v6922_v44, %v569_v55  ;;  %vm586_vm10 = vcmp.lt.s32.totalorder %v7234_v38, 1 }
  0xc4   : > { %v7268_v28 = vshll.u32 %v562_v62, 8  ;;  %vm754_vm11 = vcmp.eq.s32.totalorder %v7224_v21, 0  ;;  %v534_v33 = vxor.u32 2147483648, %v533_v27  ;;  %vm589_vm12 = vcmp.lt.s32.totalorder %v7234_v38, 4 }
  0xc5   : > { %v585_v46 = vor.u32 %v584_v7, %v583_v43  ;;  %v594_v17 = vsel %vm586_vm10, %v573_v6, %v576_v3  ;;  %vm753_vm13 = vcmp.lt.s32.totalorder %v7224_v21, 2  ;;  %v932_v24 = vsub.s32 0, %v7262_v22 }
  0xc6   : > { %v952_v55 = vsub.s32 4, %v928_v42  ;;  %vm588_vm14 = vcmp.lt.s32.totalorder %v7234_v38, 3  ;;  %v595_v40 = vsel %vm589_vm12, %v582_v25, 920167782  ;;  %vm750_vm15 = vweird.f32 %v7014_v10 }
  0xc7   : > { %v535_v62 = vsel %vm452_vm2, %v534_v33, %v533_v27  ;;  %vm7284_vm0 = vcmp.le.f32.partialorder %v866_v32, 0.7853982  ;;  %vm587_vm1 = vcmp.lt.s32.totalorder %v7234_v38, 2  ;;  %v591_v53 = vsel %vm589_vm12, %v579_v36, 2102212464 }
  0xc8   : > { %v596_v57 = vsel %vm588_vm14, %v579_v36, %v595_v40  ;;  %v538_v58 = vsel %vm7191_vm5, %v7017_v11, %v535_v62  ;;  %v5705_v59 = vmin.u32 %v932_v24, %v7262_v22  ;;  %v598_v37 = vsel %vm586_vm10, %v576_v3, %v579_v36 }
  0xc9   : > { %v597_v32 = vsel %vm587_vm1, %v594_v17, %v596_v57  ;;  %6631 = vcosq.f32 %v538_v58  ;;  %v599_v13 = vsel %vm589_vm12, %v585_v46, 1326507024  ;;  %v6628_v30 = vpop.eup %6627  ;;  %vm757_vm2 = vcmp.eq.s32.totalorder %v7224_v21, 2 }
  0xca   : > { %v7304_v47 = vmul.u32.u64.low %v7268_v28, %v597_v32  ;;  %v7305_v15 = vmul.u32.u64.high %v7268_v28, %v597_v32, %v7304_v47  ;;  %6633 = vsinq.f32 %v538_v58  ;;  %v7309_v56 = vand.u32 3, %v543_v34  ;;  %v6630_v51 = vpop.eup %6629 }
  0xcb   : > { %v934_v31 = vclz %v5705_v59  ;;  %v758_v63 = vxor.u32 2147483648, %v6628_v30  ;;  %v590_v41 = vsel %vm586_vm10, %v570_v1, %v573_v6  ;;  %v592_v0 = vsel %vm588_vm14, %v576_v3, %v591_v53 }
  0xcc   : > { %v600_v4 = vsel %vm588_vm14, %v582_v25, %v599_v13  ;;  %v755_v5 = vxor.u32 2147483648, %v6630_v51  ;;  %v953_v9 = vsel %vm868_vm9, %v952_v55, %v928_v42  ;;  %v1074_v6 = vand.u32 2147483647, %v7254_v39 }
  0xcd   : > { %v5706_v45 = vadd.s32 4294967294, %v934_v31  ;;  %v601_v14 = vsel %vm587_vm1, %v598_v37, %v600_v4  ;;  %v759_v19 = vsel %vm757_vm2, %v758_v63, %v6630_v51  ;;  %v593_v20 = vsel %vm587_vm1, %v590_v41, %v592_v0 }
  0xce   : > { %v7322_v60 = vmul.u32.u64.low %v7268_v28, %v601_v14  ;;  %v7323_v7 = vmul.u32.u64.high %v7268_v28, %v601_v14, %v7322_v60  ;;  %v756_v3 = vsel %vm754_vm11, %v6628_v30, %v755_v5  ;;  %v612_v25 = vadd.s32 1, %v7305_v15 }
  0xcf   : > { %vm5707_vm3 = vcmp.lt.s32.totalorder %v5706_v45, 0  ;;  %v760_v42 = vsel %vm753_vm13, %v756_v3, %v759_v19  ;;  %vm545_vm4 = vcmp.lt.s32.totalorder %v7309_v56, 2  ;;  %v922_v27 = vadd.s32 %v7216_v18, %v7213_v16 }
  0xd0   : > { %v937_v34 = vsel %vm5707_vm3, 0, %v5706_v45  ;;  %v1077_v36 = vand.u32 2139095040, %v7254_v39  ;;  %v761_v43 = vsel %vm750_vm15, nan, %v760_v42  ;;  %vm542_vm5 = vweird.f32 %v7017_v11 }
  0xd1   : > { %v938_v38 = vsub.s32 32, %v937_v34  ;;  %v942_v1 = vsub.s32 4294967266, %v937_v34  ;;  %v955_v33 = vsel %vm7284_vm0, 0, %v953_v9  ;;  %3820 = vrot.lane.b32.xlu0 %v761_v43, %s6928_s21  ;;  %v609_v21 = vmul.u32 %v7268_v28, %v593_v20 }
  0xd2   : > { %vm611_vm6 = vc.u32 %v7323_v7, %v7304_v47  ;;  %v1078_v16 = vshrl.u32 %v1077_v36, 23  ;;  %v1081_v10 = vand.u32 8388607, %v1074_v6  ;;  %v939_v18 = vshll.u32 %v7262_v22, %v937_v34 }
  0xd3   : > { %v940_v46 = vshrl.u32 %v922_v27, %v938_v38  ;;  %v943_v17 = vadd.s32 127, %v942_v1  ;;  %v613_v24 = vsel %vm611_vm6, %v612_v25, %v7305_v15  ;;  %v6632_v55 = vpop.eup %6631  ;;  %vm546_vm7 = vcmp.eq.s32.totalorder %v7309_v56, 0 }
  0xd4   : > { %vm549_vm8 = vcmp.eq.s32.totalorder %v7309_v56, 2  ;;  %v614_v40 = vadd.s32 %v613_v24, %v609_v21  ;;  %v5712_v28 = vadd.s32 4294967169, %v1078_v16  ;;  %v6634_v62 = vpop.eup %6633  ;;  %v550_v53 = vxor.u32 2147483648, %v6632_v55 }
  0xd5   : > { %v941_v57 = vor.u32 %v940_v46, %v939_v18  ;;  %v944_v58 = vshll.u32 %v943_v17, 23  ;;  %v762_v59 = vand.u32 2147483647, %v7258_v26  ;;  %v547_v32 = vxor.u32 2147483648, %v6634_v62 }
  0xd6   : > { %v959_v37 = vadd.s32 3, %v955_v33  ;;  %v615_v22 = vadd.s32 536870912, %v614_v40  ;;  %v1084_v13 = vadd.s32 1, %v5712_v28  ;;  %v551_v30 = vsel %vm549_vm8, %v550_v53, %v6634_v62 }
  0xd7   : > { %v945_v31 = vor.u32 4788187, %v944_v58  ;;  %v1082_v15 = vor.u32 8388608, %v1081_v10  ;;  %v765_v51 = vand.u32 2139095040, %v7258_v26  ;;  %v548_v63 = vsel %vm546_vm7, %v6632_v55, %v547_v32 }
  0xd8   : > { %v948_v41 = vcvt.s32.f32 %v941_v57  ;;  %v616_v0 = vshrl.u32 %v615_v22, 30  ;;  %vm1085_vm10 = vcmp.gt.s32.totalorder %v1084_v13, 0  ;;  %v552_v4 = vsel %vm545_vm4, %v548_v63, %v551_v30 }
  0xd9   : > { %v946_v5 = vand.u32 2147483647, %v945_v31  ;;  %v1086_v45 = vsel %vm1085_vm10, %v1084_v13, 0  ;;  %v7360_v9 = vand.u32 8388607, %v762_v59  ;;  %v553_v14 = vsel %vm542_vm5, nan, %v552_v4 }
  0xda   : > { %v617_v19 = vshll.u32 %v616_v0, 30  ;;  %v640_v60 = vsub.s32 4, %v616_v0  ;;  %v766_v3 = vshrl.u32 %v765_v51, 23  ;;  %3816 = vrot.lane.b32.xlu1 %v553_v14, %s6928_s21  ;;  %v1088_v25 = vand.u32 31, %v1086_v45 }
  0xdb   : > { %v949_v20 = vmul.f32 %v948_v41, %v946_v5  ;;  %v7367_v56 = vadd.f32 %v7010_v8, %v7137_v35  ;;  %v7369_v42 = vand.u32 3, %v959_v37  ;;  %vm7373_vm11 = vcmp.le.f32.partialorder %v554_v23, 0.7853982 }
  0xdc   : > { %vm556_vm12 = vcmp.lt.s32.totalorder %v7034_v29, 0  ;;  %v610_v11 = vadd.s32 %v7304_v47, %v7323_v7  ;;  %v7380_v34 = vsub.s32 %v614_v40, %v617_v19  ;;  %v7382_v43 = vshrl.u32 %v1086_v45, 5 }
  0xdd   : > { %v950_v36 = vxor.u32 2147483648, %v949_v20  ;;  %v1089_v35 = vsub.s32 32, %v1088_v25  ;;  %v7384_v38 = vshll.u32 %v1082_v15, 8  ;;  %v7389_v23 = vsel %vm556_vm12, %v640_v60, %v616_v0 }
  0xde   : > { %v620_v1 = vsub.s32 0, %v7380_v34  ;;  %v5700_v33 = vadd.s32 4294967169, %v766_v3  ;;  %v770_v21 = vor.u32 8388608, %v7360_v9  ;;  %v1091_v7 = vshll.u32 %v6922_v44, %v1088_v25 }
  0xdf   : > { %v951_v47 = vsel %vm868_vm9, %v950_v36, %v949_v20  ;;  %v1092_v16 = vshrl.u32 %v6923_v48, %v1089_v35  ;;  %v1095_v10 = vshrl.u32 %v6924_v50, %v1089_v35  ;;  %v1094_v17 = vshll.u32 %v6923_v48, %v1088_v25 }
  0xe0   : > { %v954_v18 = vsel %vm7284_vm0, %v7020_v12, %v951_v47  ;;  %v5693_v46 = vmin.u32 %v620_v1, %v7380_v34  ;;  %v1098_v24 = vshrl.u32 %v6925_v52, %v1089_v35  ;;  %v1097_v55 = vshll.u32 %v6924_v50, %v1088_v25 }
  0xe1   : > { %6635 = vcosq.f32 %v954_v18  ;;  %vm1106_vm9 = vcmp.lt.s32.totalorder %v7382_v43, 1  ;;  %vm1107_vm13 = vcmp.lt.s32.totalorder %v7382_v43, 2  ;;  %v1093_v28 = vor.u32 %v1092_v16, %v1091_v7 }
  0xe2   : > { %6637 = vsinq.f32 %v954_v18  ;;  %v622_v40 = vclz %v5693_v46  ;;  %v1096_v62 = vor.u32 %v1095_v10, %v1094_v17  ;;  %v1090_v49 = vshrl.u32 %v6922_v44, %v1089_v35 }
  0xe3   : > { %v1099_v53 = vor.u32 %v1098_v24, %v1097_v55  ;;  %v1100_v57 = vshll.u32 %v6925_v52, %v1088_v25  ;;  %v1101_v58 = vshrl.u32 %v6926_v54, %v1089_v35  ;;  %v1103_v37 = vshll.u32 %v6926_v54, %v1088_v25 }
  0xe4   : > { %v5694_v32 = vadd.s32 4294967294, %v622_v40  ;;  %v1104_v22 = vshrl.u32 %v6927_v61, %v1089_v35  ;;  %vm1109_vm14 = vcmp.lt.s32.totalorder %v7382_v43, 4  ;;  %vm965_vm15 = vcmp.eq.s32.totalorder %v7369_v42, 2 }
  0xe5   : > { %v643_v13 = vsel %vm7373_vm11, 0, %v7389_v23  ;;  %v1102_v30 = vor.u32 %v1101_v58, %v1100_v57  ;;  %vm1108_vm0 = vcmp.lt.s32.totalorder %v7382_v43, 3  ;;  %v1111_v31 = vsel %vm1109_vm14, %v1099_v53, 2102212464 }
  0xe6   : > { %vm962_vm1 = vcmp.eq.s32.totalorder %v7369_v42, 0  ;;  %vm5695_vm2 = vcmp.lt.s32.totalorder %v5694_v32, 0  ;;  %v1105_v15 = vor.u32 %v1104_v22, %v1103_v37  ;;  %v1110_v51 = vsel %vm1106_vm9, %v1090_v49, %v1093_v28 }
  0xe7   : > { %v1114_v63 = vsel %vm1106_vm9, %v1093_v28, %v1096_v62  ;;  %vm961_vm3 = vcmp.lt.s32.totalorder %v7369_v42, 2  ;;  %v625_v41 = vsel %vm5695_vm2, 0, %v5694_v32  ;;  %v1112_v0 = vsel %vm1108_vm0, %v1096_v62, %v1111_v31 }
  0xe8   : > { %v1115_v4 = vsel %vm1109_vm14, %v1102_v30, 920167782  ;;  %v772_v5 = vadd.s32 1, %v5700_v33  ;;  %vm958_vm4 = vweird.f32 %v7020_v12  ;;  %v626_v45 = vsub.s32 32, %v625_v41 }
  0xe9   : > { %v630_v14 = vsub.s32 4294967266, %v625_v41  ;;  %v1116_v19 = vsel %vm1108_vm0, %v1099_v53, %v1115_v4  ;;  %v1118_v60 = vsel %vm1106_vm9, %v1096_v62, %v1099_v53  ;;  %v627_v3 = vshll.u32 %v7380_v34, %v625_v41 }
  0xea   : > { %v1117_v20 = vsel %vm1107_vm13, %v1114_v63, %v1116_v19  ;;  %v1119_v25 = vsel %vm1109_vm14, %v1105_v15, 1326507024  ;;  %vm773_vm5 = vcmp.gt.s32.totalorder %v772_v5, 0  ;;  %v628_v36 = vshrl.u32 %v610_v11, %v626_v45 }
  0xeb   : > { %v631_v35 = vadd.s32 127, %v630_v14  ;;  %v1120_v1 = vsel %vm1108_vm0, %v1102_v30, %v1119_v25  ;;  %v774_v23 = vsel %vm773_vm5, %v772_v5, 0  ;;  %v6636_v33 = vpop.eup %6635  ;;  %v1113_v47 = vsel %vm1107_vm13, %v1110_v51, %v1112_v0 }
  0xec   : > { %v1121_v34 = vsel %vm1107_vm13, %v1118_v60, %v1120_v1  ;;  %v7446_v7 = vmul.u32.u64.low %v7384_v38, %v1117_v20  ;;  %v7447_v16 = vmul.u32.u64.high %v7384_v38, %v1117_v20, %v7446_v7  ;;  %v6638_v10 = vpop.eup %6637  ;;  %v966_v18 = vxor.u32 2147483648, %v6636_v33 }
  0xed   : > { %v629_v11 = vor.u32 %v628_v36, %v627_v3  ;;  %v632_v46 = vshll.u32 %v631_v35, 23  ;;  %v776_v17 = vand.u32 31, %v774_v23  ;;  %v963_v24 = vxor.u32 2147483648, %v6638_v10 }
  0xee   : > { %v7450_v55 = vadd.s32 3, %v643_v13  ;;  %v7453_v40 = vmul.u32.u64.low %v7384_v38, %v1121_v34  ;;  %v7454_v28 = vmul.u32.u64.high %v7384_v38, %v1121_v34, %v7453_v40  ;;  %v967_v43 = vsel %vm965_vm15, %v966_v18, %v6638_v10 }
  0xef   : > { %v633_v62 = vor.u32 4788187, %v632_v46  ;;  %v1129_v49 = vmul.u32 %v7384_v38, %v1113_v47  ;;  %v777_v53 = vsub.s32 32, %v776_v17  ;;  %v964_v57 = vsel %vm962_vm1, %v6636_v33, %v963_v24 }
  0xf0   : > { %v636_v58 = vcvt.s32.f32 %v629_v11  ;;  %v1132_v32 = vadd.s32 1, %v7447_v16  ;;  %v775_v37 = vshrl.u32 %v774_v23, 5  ;;  %v968_v22 = vsel %vm961_vm3, %v964_v57, %v967_v43 }
  0xf1   : > { %v634_v13 = vand.u32 2147483647, %v633_v62  ;;  %v779_v30 = vshll.u32 %v6922_v44, %v776_v17  ;;  %v780_v31 = vshrl.u32 %v6923_v48, %v777_v53  ;;  %v969_v15 = vsel %vm958_vm4, nan, %v968_v22 }
  0xf2   : > { %vm1131_vm6 = vc.u32 %v7454_v28, %v7446_v7  ;;  %v782_v38 = vshll.u32 %v6923_v48, %v776_v17  ;;  %v783_v51 = vshrl.u32 %v6924_v50, %v777_v53  ;;  %3824 = vrot.lane.b32.xlu0 %v969_v15, %s6928_s21  ;;  %v785_v0 = vshll.u32 %v6924_v50, %v776_v17 }
  0xf3   : > { %v637_v63 = vmul.f32 %v636_v58, %v634_v13  ;;  %v1133_v42 = vsel %vm1131_vm6, %v1132_v32, %v7447_v16  ;;  %v781_v41 = vor.u32 %v780_v31, %v779_v30  ;;  %v786_v12 = vshrl.u32 %v6925_v52, %v777_v53 }
  0xf4   : > { %v1134_v4 = vadd.s32 %v1133_v42, %v1129_v49  ;;  %v784_v5 = vor.u32 %v783_v51, %v782_v38  ;;  %v788_v45 = vshll.u32 %v6925_v52, %v776_v17  ;;  %v789_v19 = vshrl.u32 %v6926_v54, %v777_v53 }
  0xf5   : > { %v638_v14 = vxor.u32 2147483648, %v637_v63  ;;  %v791_v60 = vshll.u32 %v6926_v54, %v776_v17  ;;  %v792_v3 = vshrl.u32 %v6927_v61, %v777_v53  ;;  %v778_v25 = vshrl.u32 %v6922_v44, %v777_v53 }
  0xf6   : > { %v1135_v20 = vadd.s32 536870912, %v1134_v4  ;;  %v787_v36 = vor.u32 %v786_v12, %v785_v0  ;;  %vm794_vm7 = vcmp.lt.s32.totalorder %v775_v37, 1  ;;  %v790_v1 = vor.u32 %v789_v19, %v788_v45 }
  0xf7   : > { %v639_v35 = vsel %vm556_vm12, %v638_v14, %v637_v63  ;;  %v793_v23 = vor.u32 %v792_v3, %v791_v60  ;;  %vm797_vm8 = vcmp.lt.s32.totalorder %v775_v37, 4  ;;  %vm795_vm10 = vcmp.lt.s32.totalorder %v775_v37, 2 }
  0xf8   : > { %v642_v33 = vsel %vm7373_vm11, %v7034_v29, %v639_v35  ;;  %v1136_v47 = vshrl.u32 %v1135_v20, 30  ;;  %v799_v34 = vsel %vm797_vm8, %v787_v36, 2102212464  ;;  %vm796_vm9 = vcmp.lt.s32.totalorder %v775_v37, 3 }
  0xf9   : > { %6639 = vcosq.f32 %v642_v33  ;;  %v802_v16 = vsel %vm794_vm7, %v781_v41, %v784_v5  ;;  %v803_v10 = vsel %vm797_vm8, %v790_v1, 920167782  ;;  %v798_v11 = vsel %vm794_vm7, %v778_v25, %v781_v41 }
  0xfa   : > { %6641 = vsinq.f32 %v642_v33  ;;  %v1137_v18 = vshll.u32 %v1136_v47, 30  ;;  %v800_v46 = vsel %vm796_vm9, %v784_v5, %v799_v34  ;;  %v804_v17 = vsel %vm796_vm9, %v787_v36, %v803_v10 }
  0xfb   : > { %v806_v24 = vsel %vm794_vm7, %v784_v5, %v787_v36  ;;  %v807_v40 = vsel %vm797_vm8, %v793_v23, 1326507024  ;;  %v810_v27 = vshll.u32 %v770_v21, 8  ;;  %v1160_v62 = vsub.s32 4, %v1136_v47  ;;  %v341_v5 = vld [vmem:[%s7001_s20 + $0x28] sm:$0xff] }
  0xfc   : > { %v7491_v43 = vsub.s32 %v1134_v4, %v1137_v18  ;;  %v805_v49 = vsel %vm795_vm10, %v802_v16, %v804_v17  ;;  %v808_v53 = vsel %vm796_vm9, %v790_v1, %v807_v40  ;;  %v648_v22 = vand.u32 3, %v7450_v55 }
  0xfd   : > { %v809_v57 = vsel %vm795_vm10, %v806_v24, %v808_v53  ;;  %v7495_v58 = vmul.u32.u64.low %v810_v27, %v805_v49  ;;  %v7496_v32 = vmul.u32.u64.high %v810_v27, %v805_v49, %v7495_v58  ;;  %vm1076_vm11 = vcmp.lt.s32.totalorder %v7254_v39, 0 }
  0xfe   : > { %v1140_v13 = vsub.s32 0, %v7491_v43  ;;  %v7501_v30 = vmul.u32.u64.low %v810_v27, %v809_v57  ;;  %v7502_v31 = vmul.u32.u64.high %v810_v27, %v809_v57, %v7501_v30  ;;  %v801_v9 = vsel %vm795_vm10, %v798_v11, %v800_v46 }
  0xff   : > { %v1161_v15 = vsel %vm1076_vm11, %v1160_v62, %v1136_v47  ;;  %v1282_v38 = vand.u32 2147483647, %v7367_v56  ;;  %v1285_v51 = vand.u32 2139095040, %v7367_v56  ;;  %vm646_vm12 = vweird.f32 %v7034_v29 }
 0x100   : > { %v5713_v21 = vmin.u32 %v1140_v13, %v7491_v43  ;;  %vm7514_vm13 = vcmp.le.f32.partialorder %v1074_v6, 0.7853982  ;;  %v820_v37 = vadd.s32 1, %v7496_v32  ;;  %vm649_vm14 = vcmp.lt.s32.totalorder %v648_v22, 2 }
 0x101   : > { %vm650_vm15 = vcmp.eq.s32.totalorder %v648_v22, 0  ;;  %vm653_vm0 = vcmp.eq.s32.totalorder %v648_v22, 2  ;;  %v1163_v41 = vsel %vm7514_vm13, 0, %v1161_v15  ;;  %v817_v0 = vmul.u32 %v810_v27, %v801_v9 }
 0x102   : > { %v1142_v63 = vclz %v5713_v21  ;;  %vm819_vm1 = vc.u32 %v7502_v31, %v7495_v58  ;;  %v1286_v4 = vshrl.u32 %v1285_v51, 23  ;;  %v1289_v19 = vand.u32 8388607, %v1282_v38 }
 0x103   : > { %v6640_v42 = vpop.eup %6639  ;;  %v821_v14 = vsel %vm819_vm1, %v820_v37, %v7496_v32  ;;  %v1130_v3 = vadd.s32 %v7446_v7, %v7454_v28  ;;  %v1167_v35 = vadd.s32 3, %v1163_v41  ;;  %v382_v1 = vmul.f32 %v7003_v2, %v341_v5 }
 0x104   : > { %v6642_v6 = vpop.eup %6641  ;;  %v654_v12 = vxor.u32 2147483648, %v6640_v42  ;;  %v5714_v45 = vadd.s32 4294967294, %v1142_v63  ;;  %v822_v20 = vadd.s32 %v821_v14, %v817_v0  ;;  %v5720_v25 = vadd.s32 4294967169, %v1286_v4 }
 0x105   : > { %v651_v60 = vxor.u32 2147483648, %v6642_v6  ;;  %v1290_v11 = vor.u32 8388608, %v1289_v19  ;;  %v7538_v46 = vadd.f32 %v7010_v8, %v382_v1  ;;  %v7543_v29 = vand.u32 3, %v1167_v35 }
 0x106   : > { %v655_v36 = vsel %vm653_vm0, %v654_v12, %v6642_v6  ;;  %vm5715_vm2 = vcmp.lt.s32.totalorder %v5714_v45, 0  ;;  %v823_v47 = vadd.s32 536870912, %v822_v20  ;;  %v1292_v34 = vadd.s32 1, %v5720_v25 }
 0x107   : > { %v652_v23 = vsel %vm650_vm15, %v6640_v42, %v651_v60  ;;  %v1145_v33 = vsel %vm5715_vm2, 0, %v5714_v45  ;;  %v818_v30 = vadd.s32 %v7495_v58, %v7502_v31  ;;  %v7549_v9 = vshll.u32 %v1290_v11, 8 }
 0x108   : > { %v656_v16 = vsel %vm649_vm14, %v652_v23, %v655_v36  ;;  %v1146_v10 = vsub.s32 32, %v1145_v33  ;;  %v1150_v18 = vsub.s32 4294967266, %v1145_v33  ;;  %v7535_v28 = vshrl.u32 %v823_v47, 30 }
 0x109   : > { %v657_v7 = vsel %vm646_vm12, nan, %v656_v16  ;;  %vm1293_vm3 = vcmp.gt.s32.totalorder %v1292_v34, 0  ;;  %v1147_v17 = vshll.u32 %v7491_v43, %v1145_v33  ;;  %v973_v43 = vand.u32 2139095040, %v7538_v46 }
 0x10a   : > { %3818 = vrot.lane.b32.xlu1 %v657_v7, %s6928_s21  ;;  %v1148_v24 = vshrl.u32 %v1130_v3, %v1146_v10  ;;  %v1151_v40 = vadd.s32 127, %v1150_v18  ;;  %v1294_v27 = vsel %vm1293_vm3, %v1292_v34, 0  ;;  %v825_v62 = vshll.u32 %v7535_v28, 30 }
 0x10b   : > { %v1296_v49 = vand.u32 31, %v1294_v27  ;;  %v848_v15 = vsub.s32 4, %v7535_v28  ;;  %v1295_v51 = vshrl.u32 %v1294_v27, 5  ;;  %v974_v14 = vshrl.u32 %v973_v43, 23 }
 0x10c   : > { %v1149_v53 = vor.u32 %v1148_v24, %v1147_v17  ;;  %v1152_v57 = vshll.u32 %v1151_v40, 23  ;;  %v7545_v32 = vsub.s32 %v822_v20, %v825_v62  ;;  %vm764_vm4 = vcmp.lt.s32.totalorder %v7258_v26, 0 }
 0x10d   : > { %v1297_v22 = vsub.s32 32, %v1296_v49  ;;  %v1299_v58 = vshll.u32 %v6922_v44, %v1296_v49  ;;  %v1302_v31 = vshll.u32 %v6923_v48, %v1296_v49  ;;  %v1305_v5 = vshll.u32 %v6924_v50, %v1296_v49 }
 0x10e   : > { %v1153_v13 = vor.u32 4788187, %v1152_v57  ;;  %v828_v21 = vsub.s32 0, %v7545_v32  ;;  %v1156_v42 = vcvt.s32.f32 %v1149_v53  ;;  %v1308_v12 = vshll.u32 %v6925_v52, %v1296_v49 }
 0x10f   : > { %v1300_v37 = vshrl.u32 %v6923_v48, %v1297_v22  ;;  %v1303_v41 = vshrl.u32 %v6924_v50, %v1297_v22  ;;  %v1306_v0 = vshrl.u32 %v6925_v52, %v1297_v22  ;;  %v1309_v45 = vshrl.u32 %v6926_v54, %v1297_v22 }
 0x110   : > { %v1154_v63 = vand.u32 2147483647, %v1153_v13  ;;  %v5701_v4 = vmin.u32 %v828_v21, %v7545_v32  ;;  %v1311_v35 = vshll.u32 %v6926_v54, %v1296_v49  ;;  %v1312_v1 = vshrl.u32 %v6927_v61, %v1297_v22 }
 0x111   : > { %v1301_v60 = vor.u32 %v1300_v37, %v1299_v58  ;;  %v1304_v3 = vor.u32 %v1303_v41, %v1302_v31  ;;  %v1307_v20 = vor.u32 %v1306_v0, %v1305_v5  ;;  %v1310_v36 = vor.u32 %v1309_v45, %v1308_v12 }
 0x112   : > { %v1157_v6 = vmul.f32 %v1156_v42, %v1154_v63  ;;  %v830_v19 = vclz %v5701_v4  ;;  %v1298_v33 = vshrl.u32 %v6922_v44, %v1297_v22  ;;  %vm1314_vm5 = vcmp.lt.s32.totalorder %v1295_v51, 1 }
 0x113   : > { %vm1315_vm6 = vcmp.lt.s32.totalorder %v1295_v51, 2  ;;  %v1313_v34 = vor.u32 %v1312_v1, %v1311_v35  ;;  %vm1316_vm7 = vcmp.lt.s32.totalorder %v1295_v51, 3  ;;  %vm1317_vm8 = vcmp.lt.s32.totalorder %v1295_v51, 4 }
 0x114   : > { %v1158_v25 = vxor.u32 2147483648, %v1157_v6  ;;  %v5702_v23 = vadd.s32 4294967294, %v830_v19  ;;  %v1318_v10 = vsel %vm1314_vm5, %v1298_v33, %v1301_v60  ;;  %v1319_v18 = vsel %vm1317_vm8, %v1307_v20, 2102212464 }
 0x115   : > { %v1322_v7 = vsel %vm1314_vm5, %v1301_v60, %v1304_v3  ;;  %v1323_v17 = vsel %vm1317_vm8, %v1310_v36, 920167782  ;;  %v1320_v27 = vsel %vm1316_vm7, %v1304_v3, %v1319_v18  ;;  %v1326_v49 = vsel %vm1314_vm5, %v1304_v3, %v1307_v20 }
 0x116   : > { %v1159_v47 = vsel %vm1076_vm11, %v1158_v25, %v1157_v6  ;;  %vm5703_vm10 = vcmp.lt.s32.totalorder %v5702_v23, 0  ;;  %v1324_v55 = vsel %vm1316_vm7, %v1307_v20, %v1323_v17  ;;  %v1327_v53 = vsel %vm1317_vm8, %v1313_v34, 1326507024  ;;  %v346_v20 = vld [vmem:[%s7001_s20 + $0x50] sm:$0xff] }
 0x117   : > { %v1162_v16 = vsel %vm7514_vm13, %v7254_v39, %v1159_v47  ;;  %v833_v11 = vsel %vm5703_vm10, 0, %v5702_v23  ;;  %v1325_v13 = vsel %vm1315_vm6, %v1322_v7, %v1324_v55  ;;  %v1328_v43 = vsel %vm1316_vm7, %v1310_v36, %v1327_v53 }
 0x118   : > { %6643 = vcosq.f32 %v1162_v16  ;;  %v834_v24 = vsub.s32 32, %v833_v11  ;;  %v838_v40 = vsub.s32 4294967266, %v833_v11  ;;  %v835_v62 = vshll.u32 %v7545_v32, %v833_v11 }
 0x119   : > { %6645 = vsinq.f32 %v1162_v16  ;;  %v849_v21 = vsel %vm764_vm4, %v848_v15, %v7535_v28  ;;  %v1329_v37 = vsel %vm1315_vm6, %v1326_v49, %v1328_v43  ;;  %vm7598_vm9 = vcmp.le.f32.partialorder %v762_v59, 0.7853982 }
 0x11a   : > { %v836_v57 = vshrl.u32 %v818_v30, %v834_v24  ;;  %v839_v22 = vadd.s32 127, %v838_v40  ;;  %v7588_v32 = vmul.u32.u64.low %v7549_v9, %v1325_v13  ;;  %v7589_v63 = vmul.u32.u64.high %v7549_v9, %v1325_v13, %v7588_v32 }
 0x11b   : > { %v7593_v30 = vmul.u32.u64.low %v7549_v9, %v1329_v37  ;;  %v7594_v0 = vmul.u32.u64.high %v7549_v9, %v1329_v37, %v7593_v30  ;;  %v1321_v28 = vsel %vm1315_vm6, %v1318_v10, %v1320_v27  ;;  %v970_v15 = vand.u32 2147483647, %v7538_v46 }
 0x11c   : > { %v837_v42 = vor.u32 %v836_v57, %v835_v62  ;;  %v840_v41 = vshll.u32 %v839_v22, 23  ;;  %v5708_v58 = vadd.s32 4294967169, %v974_v14  ;;  %v851_v5 = vsel %vm7598_vm9, 0, %v849_v21 }
 0x11d   : > { %vm1166_vm11 = vweird.f32 %v7254_v39  ;;  %vm1169_vm12 = vcmp.lt.s32.totalorder %v7543_v29, 2  ;;  %v1340_v6 = vadd.s32 1, %v7589_v63  ;;  %v1337_v51 = vmul.u32 %v7549_v9, %v1321_v28 }
 0x11e   : > { %v841_v31 = vor.u32 4788187, %v840_v41  ;;  %v980_v59 = vadd.s32 1, %v5708_v58  ;;  %v844_v45 = vcvt.s32.f32 %v837_v42  ;;  %vm1339_vm13 = vc.u32 %v7594_v0, %v7588_v32 }
 0x11f   : > { %v855_v19 = vadd.s32 3, %v851_v5  ;;  %v1341_v60 = vsel %vm1339_vm13, %v1340_v6, %v7589_v63  ;;  %v977_v3 = vand.u32 8388607, %v970_v15  ;;  %vm1170_vm15 = vcmp.eq.s32.totalorder %v7543_v29, 0 }
 0x120   : > { %v842_v12 = vand.u32 2147483647, %v841_v31  ;;  %vm981_vm14 = vcmp.gt.s32.totalorder %v980_v59, 0  ;;  %v1342_v1 = vadd.s32 %v1341_v60, %v1337_v51  ;;  %vm1173_vm0 = vcmp.eq.s32.totalorder %v7543_v29, 2 }
 0x121   : > { %v982_v23 = vsel %vm981_vm14, %v980_v59, 0  ;;  %v387_v10 = vmul.f32 %v7003_v2, %v346_v20  ;;  %v7619_v11 = vand.u32 3, %v855_v19  ;;  %v978_v7 = vor.u32 8388608, %v977_v3 }
 0x122   : > { %v6644_v14 = vpop.eup %6643  ;;  %v845_v35 = vmul.f32 %v844_v45, %v842_v12  ;;  %v984_v33 = vand.u32 31, %v982_v23  ;;  %v1343_v16 = vadd.s32 536870912, %v1342_v1  ;;  %v7635_v53 = vshrl.u32 %v982_v23, 5 }
 0x123   : > { %v6646_v25 = vpop.eup %6645  ;;  %v1174_v36 = vxor.u32 2147483648, %v6644_v14  ;;  %v7628_v62 = vadd.f32 %v7010_v8, %v387_v10  ;;  %vm858_vm1 = vcmp.eq.s32.totalorder %v7619_v11, 0  ;;  %vm861_vm2 = vcmp.eq.s32.totalorder %v7619_v11, 2 }
 0x124   : > { %v1171_v9 = vxor.u32 2147483648, %v6646_v25  ;;  %v846_v34 = vxor.u32 2147483648, %v845_v35  ;;  %v985_v17 = vsub.s32 32, %v984_v33  ;;  %v7625_v27 = vshrl.u32 %v1343_v16, 30 }
 0x125   : > { %v1175_v47 = vsel %vm1173_vm0, %v1174_v36, %v6646_v25  ;;  %v987_v22 = vshll.u32 %v6922_v44, %v984_v33  ;;  %v990_v39 = vshll.u32 %v6923_v48, %v984_v33  ;;  %v993_v43 = vshll.u32 %v6924_v50, %v984_v33 }
 0x126   : > { %v1172_v18 = vsel %vm1170_vm15, %v6644_v14, %v1171_v9  ;;  %v847_v40 = vsel %vm764_vm4, %v846_v34, %v845_v35  ;;  %v988_v29 = vshrl.u32 %v6923_v48, %v985_v17  ;;  %v1345_v57 = vshll.u32 %v7625_v27, 30 }
 0x127   : > { %v1176_v24 = vsel %vm1169_vm12, %v1172_v18, %v1175_v47  ;;  %v850_v49 = vsel %vm7598_vm9, %v7258_v26, %v847_v40  ;;  %v991_v13 = vshrl.u32 %v6924_v50, %v985_v17  ;;  %v994_v21 = vshrl.u32 %v6925_v52, %v985_v17 }
 0x128   : > { %v1177_v55 = vsel %vm1166_vm11, nan, %v1176_v24  ;;  %6647 = vcosq.f32 %v850_v49  ;;  %v7645_v37 = vsub.s32 %v1342_v1, %v1345_v57  ;;  %v989_v63 = vor.u32 %v988_v29, %v987_v22 }
 0x129   : > { %3828 = vrot.lane.b32.xlu0 %v1177_v55, %s6928_s21  ;;  %6649 = vsinq.f32 %v850_v49  ;;  %v996_v42 = vshll.u32 %v6925_v52, %v984_v33  ;;  %v997_v41 = vshrl.u32 %v6926_v54, %v985_v17  ;;  %v992_v30 = vor.u32 %v991_v13, %v990_v39 }
 0x12a   : > { %v995_v4 = vor.u32 %v994_v21, %v993_v43  ;;  %v999_v28 = vshll.u32 %v6926_v54, %v984_v33  ;;  %v1000_v58 = vshrl.u32 %v6927_v61, %v985_v17  ;;  %v1348_v31 = vsub.s32 0, %v7645_v37 }
 0x12b   : > { %v998_v5 = vor.u32 %v997_v41, %v996_v42  ;;  %v1018_v59 = vshll.u32 %v978_v7, 8  ;;  %v1493_v12 = vand.u32 2139095040, %v7628_v62  ;;  %vm857_vm3 = vcmp.lt.s32.totalorder %v7619_v11, 2 }
 0x12c   : > { %v1001_v6 = vor.u32 %v1000_v58, %v999_v28  ;;  %v1338_v45 = vadd.s32 %v7588_v32, %v7594_v0  ;;  %v5721_v51 = vmin.u32 %v1348_v31, %v7645_v37  ;;  %vm1002_vm4 = vcmp.lt.s32.totalorder %v7635_v53, 1  ;;  %v343_v31 = vld [vmem:[%s7001_s20 + $0x38] sm:$0xff] }
 0x12d   : > { %vm1005_vm5 = vcmp.lt.s32.totalorder %v7635_v53, 4  ;;  %vm854_vm6 = vweird.f32 %v7258_v26  ;;  %v986_v14 = vshrl.u32 %v6922_v44, %v985_v17  ;;  %v1010_v60 = vsel %vm1002_vm4, %v989_v63, %v992_v30 }
 0x12e   : > { %v1007_v19 = vsel %vm1005_vm5, %v995_v4, 2102212464  ;;  %v1011_v3 = vsel %vm1005_vm5, %v998_v5, 920167782  ;;  %vm1284_vm7 = vcmp.lt.s32.totalorder %v7367_v56, 0  ;;  %v1350_v20 = vclz %v5721_v51 }
 0x12f   : > { %vm1003_vm8 = vcmp.lt.s32.totalorder %v7635_v53, 2  ;;  %vm1004_vm10 = vcmp.lt.s32.totalorder %v7635_v53, 3  ;;  %v1014_v32 = vsel %vm1002_vm4, %v992_v30, %v995_v4  ;;  %v1006_v0 = vsel %vm1002_vm4, %v986_v14, %v989_v63 }
 0x130   : > { %v1012_v25 = vsel %vm1004_vm10, %v995_v4, %v1011_v3  ;;  %v1015_v36 = vsel %vm1005_vm5, %v1001_v6, 1326507024  ;;  %v1494_v35 = vshrl.u32 %v1493_v12, 23  ;;  %v5722_v23 = vadd.s32 4294967294, %v1350_v20 }
 0x131   : > { %v1008_v9 = vsel %vm1004_vm10, %v992_v30, %v1007_v19  ;;  %v1013_v33 = vsel %vm1003_vm8, %v1010_v60, %v1012_v25  ;;  %v1016_v47 = vsel %vm1004_vm10, %v998_v5, %v1015_v36  ;;  %v1368_v29 = vsub.s32 4, %v7625_v27 }
 0x132   : > { %v6648_v1 = vpop.eup %6647  ;;  %v1017_v10 = vsel %vm1003_vm8, %v1014_v32, %v1016_v47  ;;  %v7670_v18 = vmul.u32.u64.low %v1018_v59, %v1013_v33  ;;  %v7671_v7 = vmul.u32.u64.high %v1018_v59, %v1013_v33, %v7670_v18  ;;  %vm5723_vm9 = vcmp.lt.s32.totalorder %v5722_v23, 0 }
 0x133   : > { %v6650_v34 = vpop.eup %6649  ;;  %v862_v16 = vxor.u32 2147483648, %v6648_v1  ;;  %v7674_v24 = vmul.u32.u64.low %v1018_v59, %v1017_v10  ;;  %v7675_v40 = vmul.u32.u64.high %v1018_v59, %v1017_v10, %v7674_v24  ;;  %v1353_v49 = vsel %vm5723_vm9, 0, %v5722_v23 }
 0x134   : > { %v859_v17 = vxor.u32 2147483648, %v6650_v34  ;;  %v5728_v57 = vadd.s32 4294967169, %v1494_v35  ;;  %v1354_v13 = vsub.s32 32, %v1353_v49  ;;  %v1358_v39 = vsub.s32 4294967266, %v1353_v49 }
 0x135   : > { %v863_v55 = vsel %vm861_vm2, %v862_v16, %v6650_v34  ;;  %v1009_v43 = vsel %vm1003_vm8, %v1006_v0, %v1008_v9  ;;  %v1028_v63 = vadd.s32 1, %v7671_v7  ;;  %v1490_v42 = vand.u32 2147483647, %v7628_v62 }
 0x136   : > { %v860_v22 = vsel %vm858_vm1, %v6648_v1, %v859_v17  ;;  %v1500_v41 = vadd.s32 1, %v5728_v57  ;;  %v1355_v4 = vshll.u32 %v7645_v37, %v1353_v49  ;;  %v1356_v28 = vshrl.u32 %v1338_v45, %v1354_v13 }
 0x137   : > { %v864_v21 = vsel %vm857_vm3, %v860_v22, %v863_v55  ;;  %v1359_v58 = vadd.s32 127, %v1358_v39  ;;  %v1369_v11 = vsel %vm1284_vm7, %v1368_v29, %v7625_v27  ;;  %v1025_v53 = vmul.u32 %v1018_v59, %v1009_v43 }
 0x138   : > { %v865_v30 = vsel %vm854_vm6, nan, %v864_v21  ;;  %vm1027_vm11 = vc.u32 %v7675_v40, %v7670_v18  ;;  %vm1501_vm12 = vcmp.gt.s32.totalorder %v1500_v41, 0  ;;  %v1357_v5 = vor.u32 %v1356_v28, %v1355_v4 }
 0x139   : > { %3822 = vrot.lane.b32.xlu1 %v865_v30, %s6928_s21  ;;  %v1360_v6 = vshll.u32 %v1359_v58, 23  ;;  %v1029_v26 = vsel %vm1027_vm11, %v1028_v63, %v7671_v7  ;;  %v1502_v12 = vsel %vm1501_vm12, %v1500_v41, 0  ;;  %v384_v51 = vmul.f32 %v7003_v2, %v343_v31 }
 0x13a   : > { %v1030_v37 = vadd.s32 %v1029_v26, %v1025_v53  ;;  %v1504_v45 = vand.u32 31, %v1502_v12  ;;  %vm7702_vm13 = vcmp.le.f32.partialorder %v1282_v38, 0.7853982  ;;  %v1364_v32 = vcvt.s32.f32 %v1357_v5 }
 0x13b   : > { %v1361_v27 = vor.u32 4788187, %v1360_v6  ;;  %v1371_v59 = vsel %vm7702_vm13, 0, %v1369_v11  ;;  %v7709_v3 = vadd.f32 %v7010_v8, %v384_v51  ;;  %v1497_v0 = vand.u32 8388607, %v1490_v42 }
 0x13c   : > { %v1031_v19 = vadd.s32 536870912, %v1030_v37  ;;  %v1505_v60 = vsub.s32 32, %v1504_v45  ;;  %v1503_v25 = vshrl.u32 %v1502_v12, 5  ;;  %v1516_v1 = vshll.u32 %v6925_v52, %v1504_v45 }
 0x13d   : > { %v1362_v20 = vand.u32 2147483647, %v1361_v27  ;;  %v1507_v16 = vshll.u32 %v6922_v44, %v1504_v45  ;;  %v1510_v10 = vshll.u32 %v6923_v48, %v1504_v45  ;;  %v1513_v7 = vshll.u32 %v6924_v50, %v1504_v45 }
 0x13e   : > { %v1032_v36 = vshrl.u32 %v1031_v19, 30  ;;  %v1508_v38 = vshrl.u32 %v6923_v48, %v1505_v60  ;;  %v1511_v35 = vshrl.u32 %v6924_v50, %v1505_v60  ;;  %v1514_v9 = vshrl.u32 %v6925_v52, %v1505_v60 }
 0x13f   : > { %v1365_v23 = vmul.f32 %v1364_v32, %v1362_v20  ;;  %v1517_v33 = vshrl.u32 %v6926_v54, %v1505_v60  ;;  %v1520_v47 = vshrl.u32 %v6927_v61, %v1505_v60  ;;  %v1375_v24 = vadd.s32 3, %v1371_v59 }
 0x140   : > { %v1033_v34 = vshll.u32 %v1032_v36, 30  ;;  %v1519_v49 = vshll.u32 %v6926_v54, %v1504_v45  ;;  %vm972_vm14 = vcmp.lt.s32.totalorder %v7538_v46, 0  ;;  %v1509_v57 = vor.u32 %v1508_v38, %v1507_v16 }
 0x141   : > { %v1366_v17 = vxor.u32 2147483648, %v1365_v23  ;;  %v1518_v55 = vor.u32 %v1517_v33, %v1516_v1  ;;  %v1512_v22 = vor.u32 %v1511_v35, %v1510_v10  ;;  %v1515_v13 = vor.u32 %v1514_v9, %v1513_v7 }
 0x142   : > { %v7724_v29 = vsub.s32 %v1030_v37, %v1033_v34  ;;  %v1498_v43 = vor.u32 8388608, %v1497_v0  ;;  %v1521_v21 = vor.u32 %v1520_v47, %v1519_v49  ;;  %v1181_v63 = vand.u32 2139095040, %v7709_v3 }
 0x143   : > { %v1367_v39 = vsel %vm1284_vm7, %v1366_v17, %v1365_v23  ;;  %v1506_v4 = vshrl.u32 %v6922_v44, %v1505_v60  ;;  %vm1525_vm15 = vcmp.lt.s32.totalorder %v1503_v25, 4  ;;  %vm7736_vm0 = vcmp.le.f32.partialorder %v970_v15, 0.7853982 }
 0x144   : > { %v1370_v41 = vsel %vm7702_vm13, %v7367_v56, %v1367_v39  ;;  %v1036_v30 = vsub.s32 0, %v7724_v29  ;;  %vm1522_vm1 = vcmp.lt.s32.totalorder %v1503_v25, 1  ;;  %vm1524_vm2 = vcmp.lt.s32.totalorder %v1503_v25, 3 }
 0x145   : > { %6651 = vcosq.f32 %v1370_v41  ;;  %v1531_v58 = vsel %vm1525_vm15, %v1518_v55, 920167782  ;;  %v1527_v11 = vsel %vm1525_vm15, %v1515_v13, 2102212464  ;;  %v1530_v53 = vsel %vm1522_vm1, %v1509_v57, %v1512_v22 }
 0x146   : > { %6653 = vsinq.f32 %v1370_v41  ;;  %v5709_v31 = vmin.u32 %v1036_v30, %v7724_v29  ;;  %v1056_v5 = vsub.s32 4, %v1032_v36  ;;  %v1532_v6 = vsel %vm1524_vm2, %v1515_v13, %v1531_v58 }
 0x147   : > { %v1534_v26 = vsel %vm1522_vm1, %v1512_v22, %v1515_v13  ;;  %v1535_v12 = vsel %vm1525_vm15, %v1521_v21, 1326507024  ;;  %v1376_v37 = vand.u32 3, %v1375_v24  ;;  %vm1523_vm3 = vcmp.lt.s32.totalorder %v1503_v25, 2 }
 0x148   : > { %v1038_v45 = vclz %v5709_v31  ;;  %v1538_v15 = vshll.u32 %v1498_v43, 8  ;;  %v1526_v51 = vsel %vm1522_vm1, %v1506_v4, %v1509_v57  ;;  %v1528_v14 = vsel %vm1524_vm2, %v1512_v22, %v1527_v11  ;;  %v348_v31 = vld [vmem:[%s7001_s20 + $0x60] sm:$0xff] }
 0x149   : > { %v1533_v27 = vsel %vm1523_vm3, %v1530_v53, %v1532_v6  ;;  %v1536_v59 = vsel %vm1524_vm2, %v1518_v55, %v1535_v12  ;;  %v1057_v0 = vsel %vm972_vm14, %v1056_v5, %v1032_v36  ;;  %v1182_v1 = vshrl.u32 %v1181_v63, 23 }
 0x14a   : > { %v5710_v19 = vadd.s32 4294967294, %v1038_v45  ;;  %v1537_v60 = vsel %vm1523_vm3, %v1534_v26, %v1536_v59  ;;  %v7744_v20 = vmul.u32.u64.low %v1538_v15, %v1533_v27  ;;  %v7745_v32 = vmul.u32.u64.high %v1538_v15, %v1533_v27, %v7744_v20 }
 0x14b   : > { %v7750_v38 = vmul.u32.u64.low %v1538_v15, %v1537_v60  ;;  %v7751_v35 = vmul.u32.u64.high %v1538_v15, %v1537_v60, %v7750_v38  ;;  %vm1377_vm4 = vcmp.lt.s32.totalorder %v1376_v37, 2  ;;  %vm1378_vm5 = vcmp.eq.s32.totalorder %v1376_v37, 0 }
 0x14c   : > { %vm5711_vm6 = vcmp.lt.s32.totalorder %v5710_v19, 0  ;;  %v1529_v23 = vsel %vm1523_vm3, %v1526_v51, %v1528_v14  ;;  %vm1381_vm7 = vcmp.eq.s32.totalorder %v1376_v37, 2  ;;  %v1026_v25 = vadd.s32 %v7670_v18, %v7675_v40 }
 0x14d   : > { %v1041_v9 = vsel %vm5711_vm6, 0, %v5710_v19  ;;  %v5716_v33 = vadd.s32 4294967169, %v1182_v1  ;;  %v1059_v16 = vsel %vm7736_vm0, 0, %v1057_v0  ;;  %v1548_v36 = vadd.s32 1, %v7745_v32 }
 0x14e   : > { %v1042_v47 = vsub.s32 32, %v1041_v9  ;;  %v1046_v34 = vsub.s32 4294967266, %v1041_v9  ;;  %v1043_v7 = vshll.u32 %v7724_v29, %v1041_v9  ;;  %v1545_v17 = vmul.u32 %v1538_v15, %v1529_v23 }
 0x14f   : > { %v6652_v10 = vpop.eup %6651  ;;  %vm1547_vm8 = vc.u32 %v7751_v35, %v7744_v20  ;;  %v1188_v24 = vadd.s32 1, %v5716_v33  ;;  %v1178_v39 = vand.u32 2147483647, %v7709_v3  ;;  %v1063_v30 = vadd.s32 3, %v1059_v16 }
 0x150   : > { %v6654_v55 = vpop.eup %6653  ;;  %v1382_v49 = vxor.u32 2147483648, %v6652_v10  ;;  %v1044_v18 = vshrl.u32 %v1026_v25, %v1042_v47  ;;  %v1047_v40 = vadd.s32 127, %v1046_v34  ;;  %v1549_v57 = vsel %vm1547_vm8, %v1548_v36, %v7745_v32 }
 0x151   : > { %v1379_v22 = vxor.u32 2147483648, %v6654_v55  ;;  %v1550_v13 = vadd.s32 %v1549_v57, %v1545_v17  ;;  %vm1189_vm10 = vcmp.gt.s32.totalorder %v1188_v24, 0  ;;  %vm1374_vm9 = vweird.f32 %v7367_v56 }
 0x152   : > { %v1383_v43 = vsel %vm1381_vm7, %v1382_v49, %v6654_v55  ;;  %v1045_v29 = vor.u32 %v1044_v18, %v1043_v7  ;;  %v1048_v21 = vshll.u32 %v1047_v40, 23  ;;  %v1190_v63 = vsel %vm1189_vm10, %v1188_v24, 0 }
 0x153   : > { %v1380_v41 = vsel %vm1378_vm5, %v6652_v10, %v1379_v22  ;;  %v1551_v4 = vadd.s32 536870912, %v1550_v13  ;;  %v1192_v58 = vand.u32 31, %v1190_v63  ;;  %v1185_v26 = vand.u32 8388607, %v1178_v39 }
 0x154   : > { %v1384_v11 = vsel %vm1377_vm4, %v1380_v41, %v1383_v43  ;;  %v1049_v53 = vor.u32 4788187, %v1048_v21  ;;  %v1052_v15 = vcvt.s32.f32 %v1045_v29  ;;  %v389_v51 = vmul.f32 %v7003_v2, %v348_v31 }
 0x155   : > { %v1385_v5 = vsel %vm1374_vm9, nan, %v1384_v11  ;;  %v7768_v6 = vshrl.u32 %v1551_v4, 30  ;;  %v1193_v12 = vsub.s32 32, %v1192_v58  ;;  %v7774_v14 = vand.u32 3, %v1063_v30 }
 0x156   : > { %3832 = vrot.lane.b32.xlu0 %v1385_v5, %s6928_s21  ;;  %v1050_v45 = vand.u32 2147483647, %v1049_v53  ;;  %v1195_v37 = vshll.u32 %v6922_v44, %v1192_v58  ;;  %v1186_v38 = vor.u32 8388608, %v1185_v26  ;;  %v1191_v1 = vshrl.u32 %v1190_v63, 5 }
 0x157   : > { %v1553_v56 = vshll.u32 %v7768_v6, 30  ;;  %v1196_v27 = vshrl.u32 %v6923_v48, %v1193_v12  ;;  %v1199_v19 = vshrl.u32 %v6924_v50, %v1193_v12  ;;  %v1202_v60 = vshrl.u32 %v6925_v52, %v1193_v12 }
 0x158   : > { %v1053_v59 = vmul.f32 %v1052_v15, %v1050_v45  ;;  %v1205_v32 = vshrl.u32 %v6926_v54, %v1193_v12  ;;  %v1198_v23 = vshll.u32 %v6923_v48, %v1192_v58  ;;  %v1201_v33 = vshll.u32 %v6924_v50, %v1192_v58 }
 0x159   : > { %v7782_v0 = vsub.s32 %v1550_v13, %v1553_v56  ;;  %v1197_v9 = vor.u32 %v1196_v27, %v1195_v37  ;;  %v1204_v47 = vshll.u32 %v6925_v52, %v1192_v58  ;;  %v1207_v36 = vshll.u32 %v6926_v54, %v1192_v58 }
 0x15a   : > { %v1054_v25 = vxor.u32 2147483648, %v1053_v59  ;;  %v1200_v16 = vor.u32 %v1199_v19, %v1198_v23  ;;  %v1208_v10 = vshrl.u32 %v6927_v61, %v1193_v12  ;;  %v1203_v17 = vor.u32 %v1202_v60, %v1201_v33  ;;  %v345_v60 = vld [vmem:[%s7001_s20 + $0x48] sm:$0xff] }
 0x15b   : > { %v1556_v34 = vsub.s32 0, %v7782_v0  ;;  %v1206_v24 = vor.u32 %v1205_v32, %v1204_v47  ;;  %v7793_v55 = vadd.f32 %v7010_v8, %v389_v51  ;;  %vm1492_vm11 = vcmp.lt.s32.totalorder %v7628_v62, 0 }
 0x15c   : > { %v1055_v7 = vsel %vm972_vm14, %v1054_v25, %v1053_v59  ;;  %v1209_v40 = vor.u32 %v1208_v10, %v1207_v36  ;;  %v1226_v57 = vshll.u32 %v1186_v38, 8  ;;  %v1576_v22 = vsub.s32 4, %v7768_v6 }
 0x15d   : > { %v1058_v49 = vsel %vm7736_vm0, %v7538_v46, %v1055_v7  ;;  %v5729_v18 = vmin.u32 %v1556_v34, %v7782_v0  ;;  %v1194_v13 = vshrl.u32 %v6922_v44, %v1193_v12  ;;  %vm1210_vm12 = vcmp.lt.s32.totalorder %v1191_v1, 1 }
 0x15e   : > { %6655 = vcosq.f32 %v1058_v49  ;;  %vm1213_vm13 = vcmp.lt.s32.totalorder %v1191_v1, 4  ;;  %v1218_v29 = vsel %vm1210_vm12, %v1197_v9, %v1200_v16  ;;  %vm1212_vm14 = vcmp.lt.s32.totalorder %v1191_v1, 3 }
 0x15f   : > { %6657 = vsinq.f32 %v1058_v49  ;;  %v1558_v43 = vclz %v5729_v18  ;;  %v1215_v21 = vsel %vm1213_vm13, %v1203_v17, 2102212464  ;;  %v1219_v28 = vsel %vm1213_vm13, %v1206_v24, 920167782 }
 0x160   : > { %v1222_v63 = vsel %vm1210_vm12, %v1200_v16, %v1203_v17  ;;  %vm1211_vm15 = vcmp.lt.s32.totalorder %v1191_v1, 2  ;;  %v1220_v30 = vsel %vm1212_vm14, %v1203_v17, %v1219_v28  ;;  %v1223_v4 = vsel %vm1213_vm13, %v1209_v40, 1326507024 }
 0x161   : > { %v5730_v41 = vadd.s32 4294967294, %v1558_v43  ;;  %v1214_v58 = vsel %vm1210_vm12, %v1194_v13, %v1197_v9  ;;  %v1216_v31 = vsel %vm1212_vm14, %v1200_v16, %v1215_v21  ;;  %v1221_v11 = vsel %vm1211_vm15, %v1218_v29, %v1220_v30 }
 0x162   : > { %v1224_v53 = vsel %vm1212_vm14, %v1206_v24, %v1223_v4  ;;  %v7804_v26 = vmul.u32.u64.low %v1226_v57, %v1221_v11  ;;  %v7805_v12 = vmul.u32.u64.high %v1226_v57, %v1221_v11, %v7804_v26  ;;  %v1546_v45 = vadd.s32 %v7744_v20, %v7751_v35 }
 0x163   : > { %vm5731_vm0 = vcmp.lt.s32.totalorder %v5730_v41, 0  ;;  %v1225_v5 = vsel %vm1211_vm15, %v1222_v63, %v1224_v53  ;;  %vm1062_vm1 = vweird.f32 %v7538_v46  ;;  %v1217_v59 = vsel %vm1211_vm15, %v1214_v58, %v1216_v31 }
 0x164   : > { %v1561_v15 = vsel %vm5731_vm0, 0, %v5730_v41  ;;  %v7809_v51 = vmul.u32.u64.low %v1226_v57, %v1225_v5  ;;  %v7810_v56 = vmul.u32.u64.high %v1226_v57, %v1225_v5, %v7809_v51  ;;  %v1701_v19 = vand.u32 2139095040, %v7793_v55 }
 0x165   : > { %v1562_v37 = vsub.s32 32, %v1561_v15  ;;  %v1566_v27 = vsub.s32 4294967266, %v1561_v15  ;;  %vm1069_vm2 = vcmp.eq.s32.totalorder %v7774_v14, 2  ;;  %vm7819_vm3 = vcmp.le.f32.partialorder %v1490_v42, 0.7853982 }
 0x166   : > { %v1563_v20 = vshll.u32 %v7782_v0, %v1561_v15  ;;  %v1577_v35 = vsel %vm1492_vm11, %v1576_v22, %v7768_v6  ;;  %v1236_v23 = vadd.s32 1, %v7805_v12  ;;  %v1702_v25 = vshrl.u32 %v1701_v19, 23 }
 0x167   : > { %v1564_v38 = vshrl.u32 %v1546_v45, %v1562_v37  ;;  %v1567_v1 = vadd.s32 127, %v1566_v27  ;;  %v1233_v33 = vmul.u32 %v1226_v57, %v1217_v59  ;;  %vm1235_vm4 = vc.u32 %v7810_v56, %v7804_v26 }
 0x168   : > { %v6656_v9 = vpop.eup %6655  ;;  %v1698_v42 = vand.u32 2147483647, %v7793_v55  ;;  %v386_v47 = vmul.f32 %v7003_v2, %v345_v60  ;;  %v1237_v10 = vsel %vm1235_vm4, %v1236_v23, %v7805_v12  ;;  %v1579_v7 = vsel %vm7819_vm3, 0, %v1577_v35 }
 0x169   : > { %v6658_v34 = vpop.eup %6657  ;;  %v1070_v16 = vxor.u32 2147483648, %v6656_v9  ;;  %v1565_v0 = vor.u32 %v1564_v38, %v1563_v20  ;;  %v1568_v36 = vshll.u32 %v1567_v1, 23  ;;  %v1238_v17 = vadd.s32 %v1237_v10, %v1233_v33 }
 0x16a   : > { %v1067_v6 = vxor.u32 2147483648, %v6658_v34  ;;  %v5736_v24 = vadd.s32 4294967169, %v1702_v25  ;;  %vm1066_vm5 = vcmp.eq.s32.totalorder %v7774_v14, 0  ;;  %v7838_v40 = vadd.f32 %v7010_v8, %v386_v47 }
 0x16b   : > { %v1071_v49 = vsel %vm1069_vm2, %v1070_v16, %v6658_v34  ;;  %v1569_v18 = vor.u32 4788187, %v1568_v36  ;;  %vm1065_vm6 = vcmp.lt.s32.totalorder %v7774_v14, 2  ;;  %v1239_v22 = vadd.s32 536870912, %v1238_v17 }
 0x16c   : > { %v1068_v57 = vsel %vm1066_vm5, %v6656_v9, %v1067_v6  ;;  %v1708_v13 = vadd.s32 1, %v5736_v24  ;;  %v1572_v21 = vcvt.s32.f32 %v1565_v0  ;;  %v1583_v28 = vadd.s32 3, %v1579_v7 }
 0x16d   : > { %v1072_v43 = vsel %vm1065_vm6, %v1068_v57, %v1071_v49  ;;  %v1570_v29 = vand.u32 2147483647, %v1569_v18  ;;  %v1240_v41 = vshrl.u32 %v1239_v22, 30  ;;  %v1705_v30 = vand.u32 8388607, %v1698_v42 }
 0x16e   : > { %v1073_v63 = vsel %vm1062_vm1, nan, %v1072_v43  ;;  %vm1709_vm7 = vcmp.gt.s32.totalorder %v1708_v13, 0  ;;  %v1389_v14 = vand.u32 2139095040, %v7838_v40  ;;  %v7847_v5 = vand.u32 3, %v1583_v28 }
 0x16f   : > { %3826 = vrot.lane.b32.xlu1 %v1073_v63, %s6928_s21  ;;  %v1573_v4 = vmul.f32 %v1572_v21, %v1570_v29  ;;  %v1710_v58 = vsel %vm1709_vm7, %v1708_v13, 0  ;;  %v1241_v31 = vshll.u32 %v1240_v41, 30  ;;  %vm1180_vm8 = vcmp.lt.s32.totalorder %v7709_v3, 0 }
 0x170   : > { %v1712_v11 = vand.u32 31, %v1710_v58  ;;  %v7851_v46 = vadd.s32 %v7804_v26, %v7810_v56  ;;  %v1706_v45 = vor.u32 8388608, %v1705_v30  ;;  %v1386_v51 = vand.u32 2147483647, %v7838_v40 }
 0x171   : > { %v1574_v53 = vxor.u32 2147483648, %v1573_v4  ;;  %v7853_v12 = vsub.s32 %v1238_v17, %v1241_v31  ;;  %v1264_v27 = vsub.s32 4, %v1240_v41  ;;  %v1390_v19 = vshrl.u32 %v1389_v14, 23 }
 0x172   : > { %v1713_v15 = vsub.s32 32, %v1712_v11  ;;  %v1715_v59 = vshll.u32 %v6922_v44, %v1712_v11  ;;  %v1718_v56 = vshll.u32 %v6923_v48, %v1712_v11  ;;  %v1721_v20 = vshll.u32 %v6924_v50, %v1712_v11 }
 0x173   : > { %v1575_v37 = vsel %vm1492_vm11, %v1574_v53, %v1573_v4  ;;  %v1244_v26 = vsub.s32 0, %v7853_v12  ;;  %v1711_v25 = vshrl.u32 %v1710_v58, 5  ;;  %v1724_v32 = vshll.u32 %v6925_v52, %v1712_v11 }
 0x174   : > { %v1578_v60 = vsel %vm7819_vm3, %v7628_v62, %v1575_v37  ;;  %v1716_v35 = vshrl.u32 %v6923_v48, %v1713_v15  ;;  %v1719_v38 = vshrl.u32 %v6924_v50, %v1713_v15  ;;  %v1722_v1 = vshrl.u32 %v6925_v52, %v1713_v15 }
 0x175   : > { %6659 = vcosq.f32 %v1578_v60  ;;  %v5717_v23 = vmin.u32 %v1244_v26, %v7853_v12  ;;  %v1725_v34 = vshrl.u32 %v6926_v54, %v1713_v15  ;;  %v7871_v0 = vshll.u32 %v1706_v45, 8 }
 0x176   : > { %6661 = vsinq.f32 %v1578_v60  ;;  %v1717_v9 = vor.u32 %v1716_v35, %v1715_v59  ;;  %v1720_v33 = vor.u32 %v1719_v38, %v1718_v56  ;;  %v1723_v47 = vor.u32 %v1722_v1, %v1721_v20 }
 0x177   : > { %v1246_v16 = vclz %v5717_v23  ;;  %v5724_v36 = vadd.s32 4294967169, %v1390_v19  ;;  %v7875_v10 = vand.u32 8388607, %v1386_v51  ;;  %vm1589_vm10 = vcmp.eq.s32.totalorder %v7847_v5, 2 }
 0x178   : > { %v7880_v6 = vsel %vm1180_vm8, %v1264_v27, %v1240_v41  ;;  %v1726_v7 = vor.u32 %v1725_v34, %v1724_v32  ;;  %v1727_v17 = vshll.u32 %v6926_v54, %v1712_v11  ;;  %v1728_v24 = vshrl.u32 %v6927_v61, %v1713_v15 }
 0x179   : > { %vm1586_vm9 = vcmp.eq.s32.totalorder %v7847_v5, 0  ;;  %v5718_v49 = vadd.s32 4294967294, %v1246_v16  ;;  %v1714_v18 = vshrl.u32 %v6922_v44, %v1713_v15  ;;  %vm1730_vm11 = vcmp.lt.s32.totalorder %v1711_v25, 1 }
 0x17a   : > { %vm1733_vm12 = vcmp.lt.s32.totalorder %v1711_v25, 4  ;;  %vm1585_vm13 = vcmp.lt.s32.totalorder %v7847_v5, 2  ;;  %v1729_v57 = vor.u32 %v1728_v24, %v1727_v17  ;;  %vm1731_vm14 = vcmp.lt.s32.totalorder %v1711_v25, 2 }
 0x17b   : > { %v1735_v22 = vsel %vm1733_vm12, %v1723_v47, 2102212464  ;;  %v1738_v13 = vsel %vm1730_vm11, %v1717_v9, %v1720_v33  ;;  %vm1582_vm15 = vweird.f32 %v7628_v62  ;;  %vm7890_vm0 = vcmp.le.f32.partialorder %v1178_v39, 0.7853982 }
 0x17c   : > { %vm5719_vm1 = vcmp.lt.s32.totalorder %v5718_v49, 0  ;;  %vm1732_vm2 = vcmp.lt.s32.totalorder %v1711_v25, 3  ;;  %v1734_v29 = vsel %vm1730_vm11, %v1714_v18, %v1717_v9  ;;  %v1739_v21 = vsel %vm1733_vm12, %v1726_v7, 920167782 }
 0x17d   : > { %v1249_v28 = vsel %vm5719_vm1, 0, %v5718_v49  ;;  %v1740_v63 = vsel %vm1732_vm2, %v1723_v47, %v1739_v21  ;;  %v1742_v41 = vsel %vm1730_vm11, %v1720_v33, %v1723_v47  ;;  %v1743_v30 = vsel %vm1733_vm12, %v1729_v57, 1326507024 }
 0x17e   : > { %v1250_v4 = vsub.s32 32, %v1249_v28  ;;  %v1254_v58 = vsub.s32 4294967266, %v1249_v28  ;;  %v1736_v14 = vsel %vm1732_vm2, %v1720_v33, %v1735_v22  ;;  %v1741_v31 = vsel %vm1731_vm14, %v1738_v13, %v1740_v63 }
 0x17f   : > { %v6660_v11 = vpop.eup %6659  ;;  %v1251_v39 = vshll.u32 %v7853_v12, %v1249_v28  ;;  %v1744_v53 = vsel %vm1732_vm2, %v1726_v7, %v1743_v30  ;;  %v7897_v45 = vmul.u32.u64.low %v7871_v0, %v1741_v31  ;;  %v7898_v15 = vmul.u32.u64.high %v7871_v0, %v1741_v31, %v7897_v45  ;;  %v350_v12 = vld [vmem:[%s7001_s20 + $0x70] sm:$0xff] }
 0x180   : > { %v6662_v37 = vpop.eup %6661  ;;  %v1590_v27 = vxor.u32 2147483648, %v6660_v11  ;;  %v1252_v59 = vshrl.u32 %v7851_v46, %v1250_v4  ;;  %v1255_v19 = vadd.s32 127, %v1254_v58  ;;  %v1745_v60 = vsel %vm1731_vm14, %v1742_v41, %v1744_v53 }
 0x181   : > { %v1587_v26 = vxor.u32 2147483648, %v6662_v37  ;;  %v7904_v56 = vmul.u32.u64.low %v7871_v0, %v1745_v60  ;;  %v7905_v20 = vmul.u32.u64.high %v7871_v0, %v1745_v60, %v7904_v56  ;;  %v1396_v35 = vadd.s32 1, %v5724_v36 }
 0x182   : > { %v1591_v38 = vsel %vm1589_vm10, %v1590_v27, %v6662_v37  ;;  %v1253_v1 = vor.u32 %v1252_v59, %v1251_v39  ;;  %v1256_v23 = vshll.u32 %v1255_v19, 23  ;;  %v1737_v32 = vsel %vm1731_vm14, %v1734_v29, %v1736_v14 }
 0x183   : > { %v1588_v46 = vsel %vm1586_vm9, %v6660_v11, %v1587_v26  ;;  %v1756_v9 = vadd.s32 1, %v7898_v15  ;;  %v1394_v33 = vor.u32 8388608, %v7875_v10  ;;  %vm1397_vm3 = vcmp.gt.s32.totalorder %v1396_v35, 0 }
 0x184   : > { %v1592_v47 = vsel %vm1585_vm13, %v1588_v46, %v1591_v38  ;;  %v1257_v34 = vor.u32 4788187, %v1256_v23  ;;  %v1398_v16 = vsel %vm1397_vm3, %v1396_v35, 0  ;;  %v391_v36 = vmul.f32 %v7003_v2, %v350_v12 }
 0x185   : > { %v1593_v7 = vsel %vm1582_vm15, nan, %v1592_v47  ;;  %v1267_v25 = vsel %vm7890_vm0, 0, %v7880_v6  ;;  %v1753_v17 = vmul.u32 %v7871_v0, %v1737_v32  ;;  %vm1755_vm4 = vc.u32 %v7905_v20, %v7897_v45 }
 0x186   : > { %3836 = vrot.lane.b32.xlu0 %v1593_v7, %s6928_s21  ;;  %v1258_v5 = vand.u32 2147483647, %v1257_v34  ;;  %v1260_v10 = vcvt.s32.f32 %v1253_v1  ;;  %v1757_v24 = vsel %vm1755_vm4, %v1756_v9, %v7898_v15  ;;  %v1400_v49 = vand.u32 31, %v1398_v16 }
 0x187   : > { %v1758_v18 = vadd.s32 %v1757_v24, %v1753_v17  ;;  %v7928_v57 = vshll.u32 %v1394_v33, 8  ;;  %v7931_v62 = vadd.f32 %v7010_v8, %v391_v36  ;;  %v1271_v6 = vadd.s32 3, %v1267_v25 }
 0x188   : > { %v1261_v22 = vmul.f32 %v1260_v10, %v1258_v5  ;;  %v1399_v13 = vshrl.u32 %v1398_v16, 5  ;;  %v1401_v0 = vsub.s32 32, %v1400_v49  ;;  %v1403_v21 = vshll.u32 %v6922_v44, %v1400_v49 }
 0x189   : > { %v1759_v29 = vadd.s32 536870912, %v1758_v18  ;;  %v1406_v28 = vshll.u32 %v6923_v48, %v1400_v49  ;;  %v1409_v63 = vshll.u32 %v6924_v50, %v1400_v49  ;;  %v1412_v58 = vshll.u32 %v6925_v52, %v1400_v49 }
 0x18a   : > { %v1262_v41 = vxor.u32 2147483648, %v1261_v22  ;;  %v1404_v30 = vshrl.u32 %v6923_v48, %v1401_v0  ;;  %v1407_v4 = vshrl.u32 %v6924_v50, %v1401_v0  ;;  %v1410_v31 = vshrl.u32 %v6925_v52, %v1401_v0 }
 0x18b   : > { %v1760_v14 = vshrl.u32 %v1759_v29, 30  ;;  %v1413_v11 = vshrl.u32 %v6926_v54, %v1401_v0  ;;  %v1416_v39 = vshrl.u32 %v6927_v61, %v1401_v0  ;;  %v1415_v27 = vshll.u32 %v6926_v54, %v1400_v49 }
 0x18c   : > { %v1263_v53 = vsel %vm1180_vm8, %v1262_v41, %v1261_v22  ;;  %v1405_v15 = vor.u32 %v1404_v30, %v1403_v21  ;;  %v1408_v37 = vor.u32 %v1407_v4, %v1406_v28  ;;  %v7948_v19 = vand.u32 3, %v1271_v6 }
 0x18d   : > { %v1266_v59 = vsel %vm7890_vm0, %v7709_v3, %v1263_v53  ;;  %v1761_v60 = vshll.u32 %v1760_v14, 30  ;;  %v1411_v26 = vor.u32 %v1410_v31, %v1409_v63  ;;  %v1414_v56 = vor.u32 %v1413_v11, %v1412_v58 }
 0x18e   : > { %6663 = vcosq.f32 %v1266_v59  ;;  %v1417_v35 = vor.u32 %v1416_v39, %v1415_v27  ;;  %v1909_v12 = vand.u32 2139095040, %v7931_v62  ;;  %vm1418_vm5 = vcmp.lt.s32.totalorder %v1399_v13, 1 }
 0x18f   : > { %6665 = vsinq.f32 %v1266_v59  ;;  %v7951_v38 = vsub.s32 %v1758_v18, %v1761_v60  ;;  %vm1421_vm6 = vcmp.lt.s32.totalorder %v1399_v13, 4  ;;  %vm1419_vm7 = vcmp.lt.s32.totalorder %v1399_v13, 2 }
 0x190   : > { %vm1420_vm8 = vcmp.lt.s32.totalorder %v1399_v13, 3  ;;  %v1426_v1 = vsel %vm1418_vm5, %v1405_v15, %v1408_v37  ;;  %v1427_v23 = vsel %vm1421_vm6, %v1414_v56, 920167782  ;;  %v1402_v32 = vshrl.u32 %v6922_v44, %v1401_v0 }
 0x191   : > { %v1764_v43 = vsub.s32 0, %v7951_v38  ;;  %v1423_v46 = vsel %vm1421_vm6, %v1411_v26, 2102212464  ;;  %v1428_v9 = vsel %vm1420_vm8, %v1411_v26, %v1427_v23  ;;  %v1784_v33 = vsub.s32 4, %v1760_v14 }
 0x192   : > { %v1429_v47 = vsel %vm1419_vm7, %v1426_v1, %v1428_v9  ;;  %v1430_v34 = vsel %vm1418_vm5, %v1408_v37, %v1411_v26  ;;  %v1431_v16 = vsel %vm1421_vm6, %v1417_v35, 1326507024  ;;  %v1422_v7 = vsel %vm1418_vm5, %v1402_v32, %v1405_v15 }
 0x193   : > { %v5737_v36 = vmin.u32 %v1764_v43, %v7951_v38  ;;  %v1432_v25 = vsel %vm1420_vm8, %v1414_v56, %v1431_v16  ;;  %v1910_v17 = vshrl.u32 %v1909_v12, 23  ;;  %v1424_v5 = vsel %vm1420_vm8, %v1408_v37, %v1423_v46  ;;  %v347_v12 = vld [vmem:[%s7001_s20 + $0x58] sm:$0xff] }
 0x194   : > { %v1433_v10 = vsel %vm1419_vm7, %v1430_v34, %v1432_v25  ;;  %v7959_v24 = vmul.u32.u64.low %v7928_v57, %v1429_v47  ;;  %v7960_v49 = vmul.u32.u64.high %v7928_v57, %v1429_v47, %v7959_v24  ;;  %vm1270_vm10 = vweird.f32 %v7709_v3 }
 0x195   : > { %vm7966_vm9 = vcmp.le.f32.partialorder %v1698_v42, 0.7853982  ;;  %vm1700_vm11 = vcmp.lt.s32.totalorder %v7793_v55, 0  ;;  %v1766_v22 = vclz %v5737_v36  ;;  %v5744_v21 = vadd.s32 4294967169, %v1910_v17 }
 0x196   : > { %v1785_v6 = vsel %vm1700_vm11, %v1784_v33, %v1760_v14  ;;  %v7974_v0 = vmul.u32.u64.low %v7928_v57, %v1433_v10  ;;  %v7975_v29 = vmul.u32.u64.high %v7928_v57, %v1433_v10, %v7974_v0  ;;  %vm1273_vm12 = vcmp.lt.s32.totalorder %v7948_v19, 2 }
 0x197   : > { %v5738_v28 = vadd.s32 4294967294, %v1766_v22  ;;  %v1425_v63 = vsel %vm1419_vm7, %v1422_v7, %v1424_v5  ;;  %v1906_v42 = vand.u32 2147483647, %v7931_v62  ;;  %vm1274_vm13 = vcmp.eq.s32.totalorder %v7948_v19, 0 }
 0x198   : > { %v6664_v41 = vpop.eup %6663  ;;  %vm1277_vm14 = vcmp.eq.s32.totalorder %v7948_v19, 2  ;;  %v1444_v30 = vadd.s32 1, %v7960_v49  ;;  %v1916_v4 = vadd.s32 1, %v5744_v21  ;;  %v1754_v31 = vadd.s32 %v7897_v45, %v7905_v20 }
 0x199   : > { %v6666_v58 = vpop.eup %6665  ;;  %v1278_v14 = vxor.u32 2147483648, %v6664_v41  ;;  %vm5739_vm15 = vcmp.lt.s32.totalorder %v5738_v28, 0  ;;  %v1787_v13 = vsel %vm7966_vm9, 0, %v1785_v6  ;;  %v1441_v53 = vmul.u32 %v7928_v57, %v1425_v63 }
 0x19a   : > { %v1275_v11 = vxor.u32 2147483648, %v6666_v58  ;;  %v1769_v39 = vsel %vm5739_vm15, 0, %v5738_v28  ;;  %vm1443_vm0 = vc.u32 %v7975_v29, %v7959_v24  ;;  %v1913_v59 = vand.u32 8388607, %v1906_v42 }
 0x19b   : > { %v1279_v15 = vsel %vm1277_vm14, %v1278_v14, %v6666_v58  ;;  %v1770_v37 = vsub.s32 32, %v1769_v39  ;;  %v1774_v27 = vsub.s32 4294967266, %v1769_v39  ;;  %v1771_v20 = vshll.u32 %v7951_v38, %v1769_v39 }
 0x19c   : > { %v1276_v45 = vsel %vm1274_vm13, %v6664_v41, %v1275_v11  ;;  %v1445_v60 = vsel %vm1443_vm0, %v1444_v30, %v7960_v49  ;;  %vm1917_vm1 = vcmp.gt.s32.totalorder %v1916_v4, 0  ;;  %v1791_v46 = vadd.s32 3, %v1787_v13 }
 0x19d   : > { %v1280_v57 = vsel %vm1273_vm12, %v1276_v45, %v1279_v15  ;;  %v1772_v26 = vshrl.u32 %v1754_v31, %v1770_v37  ;;  %v1775_v56 = vadd.s32 127, %v1774_v27  ;;  %v1446_v35 = vadd.s32 %v1445_v60, %v1441_v53 }
 0x19e   : > { %v1281_v1 = vsel %vm1270_vm10, nan, %v1280_v57  ;;  %v1918_v23 = vsel %vm1917_vm1, %v1916_v4, 0  ;;  %v1914_v9 = vor.u32 8388608, %v1913_v59  ;;  %v388_v47 = vmul.f32 %v7003_v2, %v347_v12 }
 0x19f   : > { %3830 = vrot.lane.b32.xlu1 %v1281_v1, %s6928_s21  ;;  %v1773_v43 = vor.u32 %v1772_v26, %v1771_v20  ;;  %v1776_v32 = vshll.u32 %v1775_v56, 23  ;;  %v1447_v38 = vadd.s32 536870912, %v1446_v35  ;;  %v1920_v33 = vand.u32 31, %v1918_v23 }
 0x1a0   : > { %v8006_v36 = vadd.f32 %v7010_v8, %v388_v47  ;;  %v8008_v25 = vand.u32 3, %v1791_v46  ;;  %v8014_v22 = vshll.u32 %v1914_v9, 8  ;;  %v1919_v63 = vshrl.u32 %v1918_v23, 5 }
 0x1a1   : > { %v1777_v19 = vor.u32 4788187, %v1776_v32  ;;  %v8003_v34 = vshrl.u32 %v1447_v38, 30  ;;  %v1921_v16 = vsub.s32 32, %v1920_v33  ;;  %v1780_v7 = vcvt.s32.f32 %v1773_v43 }
 0x1a2   : > { %v1923_v21 = vshll.u32 %v6922_v44, %v1920_v33  ;;  %v1926_v41 = vshll.u32 %v6923_v48, %v1920_v33  ;;  %v1929_v30 = vshll.u32 %v6924_v50, %v1920_v33  ;;  %v1594_v4 = vand.u32 2147483647, %v8006_v36 }
 0x1a3   : > { %v1778_v3 = vand.u32 2147483647, %v1777_v19  ;;  %v1449_v17 = vshll.u32 %v8003_v34, 30  ;;  %v1924_v5 = vshrl.u32 %v6923_v48, %v1921_v16  ;;  %v1927_v10 = vshrl.u32 %v6924_v50, %v1921_v16 }
 0x1a4   : > { %v1930_v49 = vshrl.u32 %v6925_v52, %v1921_v16  ;;  %v1933_v28 = vshrl.u32 %v6926_v54, %v1921_v16  ;;  %v1932_v13 = vshll.u32 %v6925_v52, %v1920_v33  ;;  %v1935_v53 = vshll.u32 %v6926_v54, %v1920_v33 }
 0x1a5   : > { %v1781_v6 = vmul.f32 %v1780_v7, %v1778_v3  ;;  %v8016_v0 = vsub.s32 %v1446_v35, %v1449_v17  ;;  %v1925_v31 = vor.u32 %v1924_v5, %v1923_v21  ;;  %v1928_v11 = vor.u32 %v1927_v10, %v1926_v41 }
 0x1a6   : > { %v1931_v39 = vor.u32 %v1930_v49, %v1929_v30  ;;  %v1936_v15 = vshrl.u32 %v6927_v61, %v1921_v16  ;;  %vm1388_vm2 = vcmp.lt.s32.totalorder %v7838_v40, 0  ;;  %v1934_v59 = vor.u32 %v1933_v28, %v1932_v13 }
 0x1a7   : > { %v1782_v58 = vxor.u32 2147483648, %v1781_v6  ;;  %v1452_v14 = vsub.s32 0, %v8016_v0  ;;  %v1597_v45 = vand.u32 2139095040, %v8006_v36  ;;  %v1472_v60 = vsub.s32 4, %v8003_v34 }
 0x1a8   : > { %v1937_v57 = vor.u32 %v1936_v15, %v1935_v53  ;;  %vm1938_vm3 = vcmp.lt.s32.totalorder %v1919_v63, 1  ;;  %v1922_v56 = vshrl.u32 %v6922_v44, %v1921_v16  ;;  %vm1941_vm4 = vcmp.lt.s32.totalorder %v1919_v63, 4 }
 0x1a9   : > { %v1783_v37 = vsel %vm1700_vm11, %v1782_v58, %v1781_v6  ;;  %v5725_v27 = vmin.u32 %v1452_v14, %v8016_v0  ;;  %vm8039_vm5 = vcmp.le.f32.partialorder %v1386_v51, 0.7853982  ;;  %vm1939_vm6 = vcmp.lt.s32.totalorder %v1919_v63, 2  ;;  %v352_v6 = vld [vmem:[%s7001_s20 + $0x80] sm:$0xff] }
 0x1aa   : > { %v1786_v20 = vsel %vm7966_vm9, %v7793_v55, %v1783_v37  ;;  %v1943_v12 = vsel %vm1941_vm4, %v1931_v39, 2102212464  ;;  %v1946_v18 = vsel %vm1938_vm3, %v1925_v31, %v1928_v11  ;;  %vm1940_vm7 = vcmp.lt.s32.totalorder %v1919_v63, 3 }
 0x1ab   : > { %6667 = vcosq.f32 %v1786_v20  ;;  %v1454_v26 = vclz %v5725_v27  ;;  %v1947_v23 = vsel %vm1941_vm4, %v1934_v59, 920167782  ;;  %v1950_v43 = vsel %vm1938_vm3, %v1928_v11, %v1931_v39 }
 0x1ac   : > { %6669 = vsinq.f32 %v1786_v20  ;;  %v1942_v32 = vsel %vm1938_vm3, %v1922_v56, %v1925_v31  ;;  %v1948_v46 = vsel %vm1940_vm7, %v1931_v39, %v1947_v23  ;;  %v1951_v38 = vsel %vm1941_vm4, %v1937_v57, 1326507024 }
 0x1ad   : > { %v5726_v1 = vadd.s32 4294967294, %v1454_v26  ;;  %v1598_v9 = vshrl.u32 %v1597_v45, 23  ;;  %v1944_v33 = vsel %vm1940_vm7, %v1928_v11, %v1943_v12  ;;  %v1949_v47 = vsel %vm1939_vm6, %v1946_v18, %v1948_v46 }
 0x1ae   : > { %v1952_v51 = vsel %vm1940_vm7, %v1934_v59, %v1951_v38  ;;  %v8046_v3 = vmul.u32.u64.low %v8014_v22, %v1949_v47  ;;  %v8047_v7 = vmul.u32.u64.high %v8014_v22, %v1949_v47, %v8046_v3  ;;  %vm1793_vm10 = vcmp.lt.s32.totalorder %v8008_v25, 2 }
 0x1af   : > { %vm5727_vm8 = vcmp.lt.s32.totalorder %v5726_v1, 0  ;;  %v1953_v16 = vsel %vm1939_vm6, %v1950_v43, %v1952_v51  ;;  %v1442_v17 = vadd.s32 %v7959_v24, %v7975_v29  ;;  %v5732_v49 = vadd.s32 4294967169, %v1598_v9 }
 0x1b0   : > { %v1457_v19 = vsel %vm5727_vm8, 0, %v5726_v1  ;;  %vm1790_vm9 = vweird.f32 %v7793_v55  ;;  %v1473_v21 = vsel %vm1388_vm2, %v1472_v60, %v8003_v34  ;;  %v1945_v28 = vsel %vm1939_vm6, %v1942_v32, %v1944_v33 }
 0x1b1   : > { %v1458_v5 = vsub.s32 32, %v1457_v19  ;;  %v1462_v10 = vsub.s32 4294967266, %v1457_v19  ;;  %v8060_v41 = vmul.u32.u64.low %v8014_v22, %v1953_v16  ;;  %v8061_v30 = vmul.u32.u64.high %v8014_v22, %v1953_v16, %v8060_v41 }
 0x1b2   : > { %v1459_v58 = vshll.u32 %v8016_v0, %v1457_v19  ;;  %v1604_v29 = vadd.s32 1, %v5732_v49  ;;  %vm1794_vm11 = vcmp.eq.s32.totalorder %v8008_v25, 0  ;;  %v1964_v31 = vadd.s32 1, %v8047_v7 }
 0x1b3   : > { %v1460_v14 = vshrl.u32 %v1442_v17, %v1458_v5  ;;  %v1463_v24 = vadd.s32 127, %v1462_v10  ;;  %v1601_v13 = vand.u32 8388607, %v1594_v4  ;;  %v393_v34 = vmul.f32 %v7003_v2, %v352_v6 }
 0x1b4   : > { %v1475_v53 = vsel %vm8039_vm5, 0, %v1473_v21  ;;  %vm1605_vm12 = vcmp.gt.s32.totalorder %v1604_v29, 0  ;;  %v1961_v37 = vmul.u32 %v8014_v22, %v1945_v28  ;;  %vm1963_vm13 = vc.u32 %v8061_v30, %v8046_v3 }
 0x1b5   : > { %v6668_v63 = vpop.eup %6667  ;;  %v1461_v11 = vor.u32 %v1460_v14, %v1459_v58  ;;  %v1464_v39 = vshll.u32 %v1463_v24, 23  ;;  %v1606_v27 = vsel %vm1605_vm12, %v1604_v29, 0  ;;  %vm1797_vm14 = vcmp.eq.s32.totalorder %v8008_v25, 2 }
 0x1b6   : > { %v6670_v0 = vpop.eup %6669  ;;  %v1798_v15 = vxor.u32 2147483648, %v6668_v63  ;;  %v1965_v20 = vsel %vm1963_vm13, %v1964_v31, %v8047_v7  ;;  %v1608_v26 = vand.u32 31, %v1606_v27  ;;  %v8077_v56 = vadd.f32 %v7010_v8, %v393_v34 }
 0x1b7   : > { %v1795_v59 = vxor.u32 2147483648, %v6670_v0  ;;  %v1465_v45 = vor.u32 4788187, %v1464_v39  ;;  %v1966_v57 = vadd.s32 %v1965_v20, %v1961_v37  ;;  %v1468_v18 = vcvt.s32.f32 %v1461_v11 }
 0x1b8   : > { %v1799_v60 = vsel %vm1797_vm14, %v1798_v15, %v6670_v0  ;;  %v1479_v1 = vadd.s32 3, %v1475_v53  ;;  %v1602_v32 = vor.u32 8388608, %v1601_v13  ;;  %v1609_v46 = vsub.s32 32, %v1608_v26 }
 0x1b9   : > { %v1796_v12 = vsel %vm1794_vm11, %v6668_v63, %v1795_v59  ;;  %v1466_v22 = vand.u32 2147483647, %v1465_v45  ;;  %v1967_v43 = vadd.s32 536870912, %v1966_v57  ;;  %v1611_v33 = vshll.u32 %v6922_v44, %v1608_v26 }
 0x1ba   : > { %v1800_v23 = vsel %vm1793_vm10, %v1796_v12, %v1799_v60  ;;  %v1614_v47 = vshll.u32 %v6923_v48, %v1608_v26  ;;  %v1612_v19 = vshrl.u32 %v6923_v48, %v1609_v46  ;;  %v1615_v25 = vshrl.u32 %v6924_v50, %v1609_v46 }
 0x1bb   : > { %v1801_v38 = vsel %vm1790_vm9, nan, %v1800_v23  ;;  %v1469_v9 = vmul.f32 %v1468_v18, %v1466_v22  ;;  %v8088_v51 = vshrl.u32 %v1967_v43, 30  ;;  %v1617_v16 = vshll.u32 %v6924_v50, %v1608_v26 }
 0x1bc   : > { %3840 = vrot.lane.b32.xlu0 %v1801_v38, %s6928_s21  ;;  %v1618_v17 = vshrl.u32 %v6925_v52, %v1609_v46  ;;  %v1620_v55 = vshll.u32 %v6925_v52, %v1608_v26  ;;  %v1621_v5 = vshrl.u32 %v6926_v54, %v1609_v46  ;;  %v1607_v49 = vshrl.u32 %v1606_v27, 5 }
 0x1bd   : > { %v1470_v7 = vxor.u32 2147483648, %v1469_v9  ;;  %v1969_v10 = vshll.u32 %v8088_v51, 30  ;;  %v1613_v6 = vor.u32 %v1612_v19, %v1611_v33  ;;  %v2117_v21 = vand.u32 2139095040, %v8077_v56 }
 0x1be   : > { %v1616_v41 = vor.u32 %v1615_v25, %v1614_v47  ;;  %v1619_v58 = vor.u32 %v1618_v17, %v1617_v16  ;;  %v1622_v14 = vor.u32 %v1621_v5, %v1620_v55  ;;  %v1623_v31 = vshll.u32 %v6926_v54, %v1608_v26 }
 0x1bf   : > { %v1471_v28 = vsel %vm1388_vm2, %v1470_v7, %v1469_v9  ;;  %v8103_v29 = vsub.s32 %v1966_v57, %v1969_v10  ;;  %v1624_v13 = vshrl.u32 %v6927_v61, %v1609_v46  ;;  %v8107_v34 = vand.u32 3, %v1479_v1 }
 0x1c0   : > { %v1474_v24 = vsel %vm8039_vm5, %v7838_v40, %v1471_v28  ;;  %v8109_v63 = vshll.u32 %v1602_v32, 8  ;;  %vm1908_vm15 = vcmp.lt.s32.totalorder %v7931_v62, 0  ;;  %v2118_v53 = vshrl.u32 %v2117_v21, 23 }
 0x1c1   : > { %6671 = vcosq.f32 %v1474_v24  ;;  %v1972_v11 = vsub.s32 0, %v8103_v29  ;;  %v1625_v39 = vor.u32 %v1624_v13, %v1623_v31  ;;  %v1610_v35 = vshrl.u32 %v6922_v44, %v1609_v46 }
 0x1c2   : > { %6673 = vsinq.f32 %v1474_v24  ;;  %vm1626_vm0 = vcmp.lt.s32.totalorder %v1607_v49, 1  ;;  %vm1628_vm1 = vcmp.lt.s32.totalorder %v1607_v49, 3  ;;  %vm1629_vm2 = vcmp.lt.s32.totalorder %v1607_v49, 4 }
 0x1c3   : > { %v5745_v0 = vmin.u32 %v1972_v11, %v8103_v29  ;;  %v1631_v15 = vsel %vm1629_vm2, %v1619_v58, 2102212464  ;;  %v1634_v37 = vsel %vm1626_vm0, %v1613_v6, %v1616_v41  ;;  %v1635_v27 = vsel %vm1629_vm2, %v1622_v14, 920167782 }
 0x1c4   : > { %v1636_v59 = vsel %vm1628_vm1, %v1619_v58, %v1635_v27  ;;  %v1638_v45 = vsel %vm1626_vm0, %v1616_v41, %v1619_v58  ;;  %v1639_v20 = vsel %vm1629_vm2, %v1625_v39, 1326507024  ;;  %v2114_v60 = vand.u32 2147483647, %v8077_v56 }
 0x1c5   : > { %vm8119_vm3 = vcmp.le.f32.partialorder %v1906_v42, 0.7853982  ;;  %v1974_v26 = vclz %v5745_v0  ;;  %vm1627_vm4 = vcmp.lt.s32.totalorder %v1607_v49, 2  ;;  %v1630_v12 = vsel %vm1626_vm0, %v1610_v35, %v1613_v6 }
 0x1c6   : > { %v1632_v22 = vsel %vm1628_vm1, %v1616_v41, %v1631_v15  ;;  %vm1481_vm5 = vcmp.lt.s32.totalorder %v8107_v34, 2  ;;  %v1992_v18 = vsub.s32 4, %v8088_v51  ;;  %v1637_v1 = vsel %vm1627_vm4, %v1634_v37, %v1636_v59 }
 0x1c7   : > { %v1640_v23 = vsel %vm1628_vm1, %v1622_v14, %v1639_v20  ;;  %v5752_v43 = vadd.s32 4294967169, %v2118_v53  ;;  %vm1478_vm6 = vweird.f32 %v7838_v40  ;;  %v5746_v32 = vadd.s32 4294967294, %v1974_v26 }
 0x1c8   : > { %v1641_v42 = vsel %vm1627_vm4, %v1638_v45, %v1640_v23  ;;  %v8129_v46 = vmul.u32.u64.low %v8109_v63, %v1637_v1  ;;  %v8130_v38 = vmul.u32.u64.high %v8109_v63, %v1637_v1, %v8129_v46  ;;  %v1633_v9 = vsel %vm1627_vm4, %v1630_v12, %v1632_v22 }
 0x1c9   : > { %v8134_v33 = vmul.u32.u64.low %v8109_v63, %v1641_v42  ;;  %v8135_v47 = vmul.u32.u64.high %v8109_v63, %v1641_v42, %v8134_v33  ;;  %v2124_v19 = vadd.s32 1, %v5752_v43  ;;  %vm1482_vm7 = vcmp.eq.s32.totalorder %v8107_v34, 0 }
 0x1ca   : > { %vm1485_vm8 = vcmp.eq.s32.totalorder %v8107_v34, 2  ;;  %vm5747_vm10 = vcmp.lt.s32.totalorder %v5746_v32, 0  ;;  %v2121_v25 = vand.u32 8388607, %v2114_v60  ;;  %v1962_v7 = vadd.s32 %v8046_v3, %v8061_v30 }
 0x1cb   : > { %v6672_v16 = vpop.eup %6671  ;;  %v1977_v17 = vsel %vm5747_vm10, 0, %v5746_v32  ;;  %v1993_v55 = vsel %vm1908_vm15, %v1992_v18, %v8088_v51  ;;  %vm2125_vm9 = vcmp.gt.s32.totalorder %v2124_v19, 0  ;;  %v1649_v21 = vmul.u32 %v8109_v63, %v1633_v9  ;;  %v349_v63 = vld [vmem:[%s7001_s20 + $0x68] sm:$0xff] }
 0x1cc   : > { %v6674_v5 = vpop.eup %6673  ;;  %v1486_v10 = vxor.u32 2147483648, %v6672_v16  ;;  %v1978_v49 = vsub.s32 32, %v1977_v17  ;;  %v1982_v6 = vsub.s32 4294967266, %v1977_v17  ;;  %v1979_v41 = vshll.u32 %v8103_v29, %v1977_v17 }
 0x1cd   : > { %v1483_v28 = vxor.u32 2147483648, %v6674_v5  ;;  %vm1651_vm11 = vc.u32 %v8135_v47, %v8129_v46  ;;  %v1652_v3 = vadd.s32 1, %v8130_v38  ;;  %v2126_v14 = vsel %vm2125_vm9, %v2124_v19, 0 }
 0x1ce   : > { %v1487_v30 = vsel %vm1485_vm8, %v1486_v10, %v6674_v5  ;;  %v1980_v51 = vshrl.u32 %v1962_v7, %v1978_v49  ;;  %v1983_v58 = vadd.s32 127, %v1982_v6  ;;  %v1995_v31 = vsel %vm8119_vm3, 0, %v1993_v55 }
 0x1cf   : > { %v1484_v24 = vsel %vm1482_vm7, %v6672_v16, %v1483_v28  ;;  %v1653_v13 = vsel %vm1651_vm11, %v1652_v3, %v8130_v38  ;;  %v2128_v29 = vand.u32 31, %v2126_v14  ;;  %v2122_v15 = vor.u32 8388608, %v2121_v25 }
 0x1d0   : > { %v1488_v11 = vsel %vm1481_vm5, %v1484_v24, %v1487_v30  ;;  %v1981_v39 = vor.u32 %v1980_v51, %v1979_v41  ;;  %v1984_v53 = vshll.u32 %v1983_v58, 23  ;;  %v1654_v35 = vadd.s32 %v1653_v13, %v1649_v21 }
 0x1d1   : > { %v1489_v0 = vsel %vm1478_vm6, nan, %v1488_v11  ;;  %v2129_v37 = vsub.s32 32, %v2128_v29  ;;  %v1999_v59 = vadd.s32 3, %v1995_v31  ;;  %v390_v20 = vmul.f32 %v7003_v2, %v349_v63 }
 0x1d2   : > { %3834 = vrot.lane.b32.xlu1 %v1489_v0, %s6928_s21  ;;  %v1985_v27 = vor.u32 4788187, %v1984_v53  ;;  %v1655_v45 = vadd.s32 536870912, %v1654_v35  ;;  %v1988_v26 = vcvt.s32.f32 %v1981_v39  ;;  %v2131_v12 = vshll.u32 %v6922_v44, %v2128_v29 }
 0x1d3   : > { %v2132_v34 = vshrl.u32 %v6923_v48, %v2129_v37  ;;  %v2135_v22 = vshrl.u32 %v6924_v50, %v2129_v37  ;;  %v2138_v40 = vshrl.u32 %v6925_v52, %v2129_v37  ;;  %v2141_v23 = vshrl.u32 %v6926_v54, %v2129_v37 }
 0x1d4   : > { %v1986_v18 = vand.u32 2147483647, %v1985_v27  ;;  %v1656_v1 = vshrl.u32 %v1655_v45, 30  ;;  %v2127_v43 = vshrl.u32 %v2126_v14, 5  ;;  %v2134_v32 = vshll.u32 %v6923_v48, %v2128_v29 }
 0x1d5   : > { %v2140_v42 = vshll.u32 %v6925_v52, %v2128_v29  ;;  %v8172_v38 = vshll.u32 %v2122_v15, 8  ;;  %v2133_v19 = vor.u32 %v2132_v34, %v2131_v12  ;;  %v2137_v25 = vshll.u32 %v6924_v50, %v2128_v29 }
 0x1d6   : > { %v1989_v9 = vmul.f32 %v1988_v26, %v1986_v18  ;;  %v1657_v33 = vshll.u32 %v1656_v1, 30  ;;  %v2136_v16 = vor.u32 %v2135_v22, %v2134_v32  ;;  %v2143_v17 = vshll.u32 %v6926_v54, %v2128_v29 }
 0x1d7   : > { %v2142_v7 = vor.u32 %v2141_v23, %v2140_v42  ;;  %v2144_v55 = vshrl.u32 %v6927_v61, %v2129_v37  ;;  %v2139_v49 = vor.u32 %v2138_v40, %v2137_v25  ;;  %v8180_v6 = vadd.f32 %v7010_v8, %v390_v20 }
 0x1d8   : > { %v1990_v5 = vxor.u32 2147483648, %v1989_v9  ;;  %v8177_v10 = vsub.s32 %v1654_v35, %v1657_v33  ;;  %v1680_v21 = vsub.s32 4, %v1656_v1  ;;  %v2130_v28 = vshrl.u32 %v6922_v44, %v2129_v37 }
 0x1d9   : > { %v2145_v41 = vor.u32 %v2144_v55, %v2143_v17  ;;  %vm2146_vm12 = vcmp.lt.s32.totalorder %v2127_v43, 1  ;;  %vm2147_vm13 = vcmp.lt.s32.totalorder %v2127_v43, 2  ;;  %vm2149_vm14 = vcmp.lt.s32.totalorder %v2127_v43, 4 }
 0x1da   : > { %v1991_v3 = vsel %vm1908_vm15, %v1990_v5, %v1989_v9  ;;  %v1660_v30 = vsub.s32 0, %v8177_v10  ;;  %vm2148_vm0 = vcmp.lt.s32.totalorder %v2127_v43, 3  ;;  %v2154_v58 = vsel %vm2146_vm12, %v2133_v19, %v2136_v16 }
 0x1db   : > { %v1994_v51 = vsel %vm8119_vm3, %v7931_v62, %v1991_v3  ;;  %v2155_v14 = vsel %vm2149_vm14, %v2142_v7, 920167782  ;;  %v2151_v31 = vsel %vm2149_vm14, %v2139_v49, 2102212464  ;;  %v2158_v63 = vsel %vm2146_vm12, %v2136_v16, %v2139_v49 }
 0x1dc   : > { %6675 = vcosq.f32 %v1994_v51  ;;  %v5733_v24 = vmin.u32 %v1660_v30, %v8177_v10  ;;  %v2156_v13 = vsel %vm2148_vm0, %v2139_v49, %v2155_v14  ;;  %v2159_v11 = vsel %vm2149_vm14, %v2145_v41, 1326507024 }
 0x1dd   : > { %6677 = vsinq.f32 %v1994_v51  ;;  %v2157_v29 = vsel %vm2147_vm13, %v2154_v58, %v2156_v13  ;;  %v2000_v39 = vand.u32 3, %v1999_v59  ;;  %v2150_v57 = vsel %vm2146_vm12, %v2130_v28, %v2133_v19  ;;  %v354_v19 = vld [vmem:[%s7001_s20 + $0x90] sm:$0xff] }
 0x1de   : > { %v1662_v53 = vclz %v5733_v24  ;;  %v2152_v35 = vsel %vm2148_vm0, %v2136_v16, %v2151_v31  ;;  %v2160_v0 = vsel %vm2148_vm0, %v2142_v7, %v2159_v11  ;;  %vm1596_vm15 = vcmp.lt.s32.totalorder %v8006_v36, 0  ;;  %v351_v11 = vld [vmem:[%s7001_s20 + $0x78] sm:$0xff] }
 0x1df   : > { %v8195_v15 = vmul.u32.u64.low %v8172_v38, %v2157_v29  ;;  %v8196_v37 = vmul.u32.u64.high %v8172_v38, %v2157_v29, %v8195_v15  ;;  %v2161_v45 = vsel %vm2147_vm13, %v2158_v63, %v2160_v0  ;;  %v1681_v20 = vsel %vm1596_vm15, %v1680_v21, %v1656_v1 }
 0x1e0   : > { %v5734_v27 = vadd.s32 4294967294, %v1662_v53  ;;  %v8204_v59 = vmul.u32.u64.low %v8172_v38, %v2161_v45  ;;  %v8205_v26 = vmul.u32.u64.high %v8172_v38, %v2161_v45, %v8204_v59  ;;  %v1805_v12 = vand.u32 2139095040, %v8180_v6 }
 0x1e1   : > { %vm2001_vm1 = vcmp.lt.s32.totalorder %v2000_v39, 2  ;;  %vm8210_vm2 = vcmp.le.f32.partialorder %v1594_v4, 0.7853982  ;;  %v2153_v22 = vsel %vm2147_vm13, %v2150_v57, %v2152_v35  ;;  %vm1998_vm4 = vweird.f32 %v7931_v62 }
 0x1e2   : > { %vm5735_vm3 = vcmp.lt.s32.totalorder %v5734_v27, 0  ;;  %vm2002_vm5 = vcmp.eq.s32.totalorder %v2000_v39, 0  ;;  %v2172_v1 = vadd.s32 1, %v8196_v37  ;;  %v1806_v40 = vshrl.u32 %v1805_v12, 23 }
 0x1e3   : > { %v1665_v18 = vsel %vm5735_vm3, 0, %v5734_v27  ;;  %v1650_v23 = vadd.s32 %v8129_v46, %v8135_v47  ;;  %v1683_v4 = vsel %vm8210_vm2, 0, %v1681_v20  ;;  %v2169_v9 = vmul.u32 %v8172_v38, %v2153_v22 }
 0x1e4   : > { %v1666_v32 = vsub.s32 32, %v1665_v18  ;;  %v1670_v42 = vsub.s32 4294967266, %v1665_v18  ;;  %vm2171_vm6 = vc.u32 %v8205_v26, %v8195_v15  ;;  %v1802_v43 = vand.u32 2147483647, %v8180_v6 }
 0x1e5   : > { %v5740_v33 = vadd.s32 4294967169, %v1806_v40  ;;  %v1667_v16 = vshll.u32 %v8177_v10, %v1665_v18  ;;  %v2173_v46 = vsel %vm2171_vm6, %v2172_v1, %v8196_v37  ;;  %vm2005_vm7 = vcmp.eq.s32.totalorder %v2000_v39, 2 }
 0x1e6   : > { %v6676_v25 = vpop.eup %6675  ;;  %v1668_v7 = vshrl.u32 %v1650_v23, %v1666_v32  ;;  %v1671_v17 = vadd.s32 127, %v1670_v42  ;;  %v2174_v5 = vadd.s32 %v2173_v46, %v2169_v9  ;;  %v395_v41 = vmul.f32 %v7003_v2, %v354_v19 }
 0x1e7   : > { %v6678_v47 = vpop.eup %6677  ;;  %v2006_v55 = vxor.u32 2147483648, %v6676_v25  ;;  %v1812_v49 = vadd.s32 1, %v5740_v33  ;;  %v1687_v30 = vadd.s32 3, %v1683_v4  ;;  %v1809_v14 = vand.u32 8388607, %v1802_v43 }
 0x1e8   : > { %v2003_v38 = vxor.u32 2147483648, %v6678_v47  ;;  %v1669_v21 = vor.u32 %v1668_v7, %v1667_v16  ;;  %v1672_v28 = vshll.u32 %v1671_v17, 23  ;;  %v2175_v51 = vadd.s32 536870912, %v2174_v5 }
 0x1e9   : > { %v2007_v3 = vsel %vm2005_vm7, %v2006_v55, %v6678_v47  ;;  %vm1813_vm8 = vcmp.gt.s32.totalorder %v1812_v49, 0  ;;  %v8236_v63 = vadd.f32 %v7010_v8, %v395_v41  ;;  %v8243_v39 = vand.u32 3, %v1687_v30 }
 0x1ea   : > { %v2004_v10 = vsel %vm2002_vm5, %v6676_v25, %v2003_v38  ;;  %v1673_v58 = vor.u32 4788187, %v1672_v28  ;;  %v1814_v24 = vsel %vm1813_vm8, %v1812_v49, 0  ;;  %v8233_v13 = vshrl.u32 %v2175_v51, 30 }
 0x1eb   : > { %v2008_v31 = vsel %vm2001_vm1, %v2004_v10, %v2007_v3  ;;  %v1816_v29 = vand.u32 31, %v1814_v24  ;;  %v1676_v35 = vcvt.s32.f32 %v1669_v21  ;;  %v1810_v45 = vor.u32 8388608, %v1809_v14 }
 0x1ec   : > { %v2009_v53 = vsel %vm1998_vm4, nan, %v2008_v31  ;;  %v1674_v57 = vand.u32 2147483647, %v1673_v58  ;;  %v2177_v0 = vshll.u32 %v8233_v13, 30  ;;  %v8246_v20 = vmul.f32 %v7003_v2, %v351_v11 }
 0x1ed   : > { %3844 = vrot.lane.b32.xlu0 %v2009_v53, %s6928_s21  ;;  %v1817_v37 = vsub.s32 32, %v1816_v29  ;;  %v2170_v59 = vadd.s32 %v8195_v15, %v8205_v26  ;;  %v2325_v22 = vand.u32 2139095040, %v8236_v63  ;;  %v1819_v1 = vshll.u32 %v6922_v44, %v1816_v29 }
 0x1ee   : > { %v1677_v27 = vmul.f32 %v1676_v35, %v1674_v57  ;;  %v8250_v12 = vsub.s32 %v2174_v5, %v2177_v0  ;;  %v1822_v42 = vshll.u32 %v6923_v48, %v1816_v29  ;;  %v1825_v4 = vshll.u32 %v6924_v50, %v1816_v29 }
 0x1ef   : > { %v1820_v62 = vshrl.u32 %v6923_v48, %v1817_v37  ;;  %v1823_v40 = vshrl.u32 %v6924_v50, %v1817_v37  ;;  %v1826_v23 = vshrl.u32 %v6925_v52, %v1817_v37  ;;  %v1829_v15 = vshrl.u32 %v6926_v54, %v1817_v37 }
 0x1f0   : > { %v1678_v18 = vxor.u32 2147483648, %v1677_v27  ;;  %v2180_v32 = vsub.s32 0, %v8250_v12  ;;  %v1815_v9 = vshrl.u32 %v1814_v24, 5  ;;  %v1828_v19 = vshll.u32 %v6925_v52, %v1816_v29 }
 0x1f1   : > { %v1821_v33 = vor.u32 %v1820_v62, %v1819_v1  ;;  %v1824_v7 = vor.u32 %v1823_v40, %v1822_v42  ;;  %v1827_v17 = vor.u32 %v1826_v23, %v1825_v4  ;;  %v1831_v47 = vshll.u32 %v6926_v54, %v1816_v29 }
 0x1f2   : > { %v1679_v26 = vsel %vm1596_vm15, %v1678_v18, %v1677_v27  ;;  %v5753_v16 = vmin.u32 %v2180_v32, %v8250_v12  ;;  %v1830_v46 = vor.u32 %v1829_v15, %v1828_v19  ;;  %v1832_v55 = vshrl.u32 %v6927_v61, %v1817_v37 }
 0x1f3   : > { %v1682_v25 = vsel %vm8210_vm2, %v8006_v36, %v1679_v26  ;;  %vm2116_vm10 = vcmp.lt.s32.totalorder %v8077_v56, 0  ;;  %v8271_v49 = vshll.u32 %v1810_v45, 8  ;;  %v2326_v38 = vshrl.u32 %v2325_v22, 23 }
 0x1f4   : > { %6679 = vcosq.f32 %v1682_v25  ;;  %v2182_v5 = vclz %v5753_v16  ;;  %v2200_v34 = vsub.s32 4, %v8233_v13  ;;  %v1818_v21 = vshrl.u32 %v6922_v44, %v1817_v37 }
 0x1f5   : > { %6681 = vsinq.f32 %v1682_v25  ;;  %v1833_v28 = vor.u32 %v1832_v55, %v1831_v47  ;;  %vm1834_vm9 = vcmp.lt.s32.totalorder %v1815_v9, 1  ;;  %vm1836_vm11 = vcmp.lt.s32.totalorder %v1815_v9, 3 }
 0x1f6   : > { %v5754_v41 = vadd.s32 4294967294, %v2182_v5  ;;  %vm1837_vm12 = vcmp.lt.s32.totalorder %v1815_v9, 4  ;;  %v1842_v3 = vsel %vm1834_vm9, %v1821_v33, %v1824_v7  ;;  %v1846_v10 = vsel %vm1834_vm9, %v1824_v7, %v1827_v17 }
 0x1f7   : > { %v1839_v30 = vsel %vm1837_vm12, %v1827_v17, 2102212464  ;;  %v1843_v51 = vsel %vm1837_vm12, %v1830_v46, 920167782  ;;  %v1847_v58 = vsel %vm1837_vm12, %v1833_v28, 1326507024  ;;  %v1838_v11 = vsel %vm1834_vm9, %v1818_v21, %v1821_v33 }
 0x1f8   : > { %vm8279_vm13 = vcmp.le.f32.partialorder %v2114_v60, 0.7853982  ;;  %vm5755_vm14 = vcmp.lt.s32.totalorder %v5754_v41, 0  ;;  %vm1835_vm0 = vcmp.lt.s32.totalorder %v1815_v9, 2  ;;  %v1844_v24 = vsel %vm1836_vm11, %v1827_v17, %v1843_v51 }
 0x1f9   : > { %v1848_v31 = vsel %vm1836_vm11, %v1830_v46, %v1847_v58  ;;  %vm1689_vm15 = vcmp.lt.s32.totalorder %v8243_v39, 2  ;;  %v2185_v29 = vsel %vm5755_vm14, 0, %v5754_v41  ;;  %v1845_v53 = vsel %vm1835_vm0, %v1842_v3, %v1844_v24 }
 0x1fa   : > { %v1849_v57 = vsel %vm1835_vm0, %v1846_v10, %v1848_v31  ;;  %vm1686_vm1 = vweird.f32 %v8006_v36  ;;  %v2186_v60 = vsub.s32 32, %v2185_v29  ;;  %v2190_v35 = vsub.s32 4294967266, %v2185_v29 }
 0x1fb   : > { %v1840_v0 = vsel %vm1836_vm11, %v1824_v7, %v1839_v30  ;;  %v5760_v37 = vadd.s32 4294967169, %v2326_v38  ;;  %v8292_v27 = vmul.u32.u64.low %v8271_v49, %v1849_v57  ;;  %v8293_v45 = vmul.u32.u64.high %v8271_v49, %v1849_v57, %v8292_v27 }
 0x1fc   : > { %v8296_v62 = vmul.u32.u64.low %v8271_v49, %v1845_v53  ;;  %v8297_v22 = vmul.u32.u64.high %v8271_v49, %v1845_v53, %v8296_v62  ;;  %v2187_v18 = vshll.u32 %v8250_v12, %v2185_v29  ;;  %v2188_v1 = vshrl.u32 %v2170_v59, %v2186_v60 }
 0x1fd   : > { %v2191_v40 = vadd.s32 127, %v2190_v35  ;;  %v2332_v23 = vadd.s32 1, %v5760_v37  ;;  %vm1690_vm2 = vcmp.eq.s32.totalorder %v8243_v39, 0  ;;  %vm1693_vm3 = vcmp.eq.s32.totalorder %v8243_v39, 2 }
 0x1fe   : > { %v6680_v32 = vpop.eup %6679  ;;  %v2201_v42 = vsel %vm2116_vm10, %v2200_v34, %v8233_v13  ;;  %v1841_v4 = vsel %vm1835_vm0, %v1838_v11, %v1840_v0  ;;  %v2189_v33 = vor.u32 %v2188_v1, %v2187_v18  ;;  %vm1859_vm5 = vc.u32 %v8293_v45, %v8296_v62 }
 0x1ff   : > { %v6682_v15 = vpop.eup %6681  ;;  %v1694_v26 = vxor.u32 2147483648, %v6680_v32  ;;  %v2192_v19 = vshll.u32 %v2191_v40, 23  ;;  %vm2333_vm4 = vcmp.gt.s32.totalorder %v2332_v23, 0  ;;  %v1860_v59 = vadd.s32 1, %v8297_v22 }
 0x200   : > { %v1691_v12 = vxor.u32 2147483648, %v6682_v15  ;;  %v2322_v25 = vand.u32 2147483647, %v8236_v63  ;;  %v1857_v17 = vmul.u32 %v8271_v49, %v1841_v4  ;;  %v2334_v13 = vsel %vm2333_vm4, %v2332_v23, 0 }
 0x201   : > { %v1695_v16 = vsel %vm1693_vm3, %v1694_v26, %v6682_v15  ;;  %v2193_v7 = vor.u32 4788187, %v2192_v19  ;;  %v2203_v46 = vsel %vm8279_vm13, 0, %v2201_v42  ;;  %v1861_v47 = vsel %vm1859_vm5, %v1860_v59, %v8297_v22 }
 0x202   : > { %v1692_v9 = vsel %vm1690_vm2, %v6680_v32, %v1691_v12  ;;  %v2336_v55 = vand.u32 31, %v2334_v13  ;;  %v2196_v34 = vcvt.s32.f32 %v2189_v33  ;;  %v1862_v21 = vadd.s32 %v1861_v47, %v1857_v17 }
 0x203   : > { %v1696_v5 = vsel %vm1689_vm15, %v1692_v9, %v1695_v16  ;;  %v2194_v38 = vand.u32 2147483647, %v2193_v7  ;;  %v2329_v49 = vand.u32 8388607, %v2322_v25  ;;  %v8325_v3 = vadd.f32 %v7010_v8, %v8246_v20 }
 0x204   : > { %v1697_v28 = vsel %vm1686_vm1, nan, %v1696_v5  ;;  %v2337_v41 = vsub.s32 32, %v2336_v55  ;;  %v2207_v51 = vadd.s32 3, %v2203_v46  ;;  %v1863_v39 = vadd.s32 536870912, %v1862_v21 }
 0x205   : > { %3838 = vrot.lane.b32.xlu1 %v1697_v28, %s6928_s21  ;;  %v2197_v30 = vmul.f32 %v2196_v34, %v2194_v38  ;;  %v2335_v10 = vshrl.u32 %v2334_v13, 5  ;;  %v2339_v58 = vshll.u32 %v6922_v44, %v2336_v55  ;;  %v2342_v53 = vshll.u32 %v6923_v48, %v2336_v55 }
 0x206   : > { %v2340_v24 = vshrl.u32 %v6923_v48, %v2337_v41  ;;  %v2343_v36 = vshrl.u32 %v6924_v50, %v2337_v41  ;;  %v2346_v31 = vshrl.u32 %v6925_v52, %v2337_v41  ;;  %v1864_v11 = vshrl.u32 %v1863_v39, 30 }
 0x207   : > { %v2198_v29 = vxor.u32 2147483648, %v2197_v30  ;;  %v2349_v20 = vshrl.u32 %v6926_v54, %v2337_v41  ;;  %vm1804_vm6 = vcmp.lt.s32.totalorder %v8180_v6, 0  ;;  %v2345_v57 = vshll.u32 %v6924_v50, %v2336_v55 }
 0x208   : > { %v2348_v60 = vshll.u32 %v6925_v52, %v2336_v55  ;;  %v2351_v35 = vshll.u32 %v6926_v54, %v2336_v55  ;;  %v2352_v0 = vshrl.u32 %v6927_v61, %v2337_v41  ;;  %v1865_v27 = vshll.u32 %v1864_v11, 30 }
 0x209   : > { %v2199_v37 = vsel %vm2116_vm10, %v2198_v29, %v2197_v30  ;;  %v2341_v22 = vor.u32 %v2340_v24, %v2339_v58  ;;  %v2344_v18 = vor.u32 %v2343_v36, %v2342_v53  ;;  %v2347_v40 = vor.u32 %v2346_v31, %v2345_v57 }
 0x20a   : > { %v2202_v1 = vsel %vm8279_vm13, %v8077_v56, %v2199_v37  ;;  %v2350_v23 = vor.u32 %v2349_v20, %v2348_v60  ;;  %v2353_v32 = vor.u32 %v2352_v0, %v2351_v35  ;;  %v8344_v42 = vand.u32 3, %v2207_v51 }
 0x20b   : > { %6683 = vcosq.f32 %v2202_v1  ;;  %v8346_v4 = vsub.s32 %v1862_v21, %v1865_v27  ;;  %v2330_v15 = vor.u32 8388608, %v2329_v49  ;;  %v1888_v26 = vsub.s32 4, %v1864_v11 }
 0x20c   : > { %6685 = vsinq.f32 %v2202_v1  ;;  %vm2354_vm7 = vcmp.lt.s32.totalorder %v2335_v10, 1  ;;  %v2013_v33 = vand.u32 2139095040, %v8325_v3  ;;  %vm2356_vm8 = vcmp.lt.s32.totalorder %v2335_v10, 3 }
 0x20d   : > { %v1868_v19 = vsub.s32 0, %v8346_v4  ;;  %vm2357_vm10 = vcmp.lt.s32.totalorder %v2335_v10, 4  ;;  %v2362_v14 = vsel %vm2354_vm7, %v2341_v22, %v2344_v18  ;;  %v2338_v12 = vshrl.u32 %v6922_v44, %v2337_v41 }
 0x20e   : > { %v2359_v59 = vsel %vm2357_vm10, %v2347_v40, 2102212464  ;;  %v2363_v16 = vsel %vm2357_vm10, %v2350_v23, 920167782  ;;  %v2367_v7 = vsel %vm2357_vm10, %v2353_v32, 1326507024  ;;  %v2366_v9 = vsel %vm2354_vm7, %v2344_v18, %v2347_v40 }
 0x20f   : > { %v5741_v17 = vmin.u32 %v1868_v19, %v8346_v4  ;;  %vm2355_vm9 = vcmp.lt.s32.totalorder %v2335_v10, 2  ;;  %v2364_v13 = vsel %vm2356_vm8, %v2347_v40, %v2363_v16  ;;  %vm8357_vm11 = vcmp.le.f32.partialorder %v1802_v43, 0.7853982 }
 0x210   : > { %v2365_v47 = vsel %vm2355_vm9, %v2362_v14, %v2364_v13  ;;  %v2368_v55 = vsel %vm2356_vm8, %v2350_v23, %v2367_v7  ;;  %v2370_v5 = vshll.u32 %v2330_v15, 8  ;;  %v1889_v34 = vsel %vm1804_vm6, %v1888_v26, %v1864_v11 }
 0x211   : > { %v1870_v38 = vclz %v5741_v17  ;;  %v2358_v21 = vsel %vm2354_vm7, %v2338_v12, %v2341_v22  ;;  %v2360_v28 = vsel %vm2356_vm8, %v2344_v18, %v2359_v59  ;;  %vm2206_vm12 = vweird.f32 %v8077_v56  ;;  %v356_v59 = vld [vmem:[%s7001_s20 + $0xa0] sm:$0xff] }
 0x212   : > { %v2369_v43 = vsel %vm2355_vm9, %v2366_v9, %v2368_v55  ;;  %v8369_v49 = vmul.u32.u64.low %v2370_v5, %v2365_v47  ;;  %v8370_v41 = vmul.u32.u64.high %v2370_v5, %v2365_v47, %v8369_v49  ;;  %v2014_v30 = vshrl.u32 %v2013_v33, 23 }
 0x213   : > { %vm2209_vm13 = vcmp.lt.s32.totalorder %v8344_v42, 2  ;;  %v5742_v51 = vadd.s32 4294967294, %v1870_v38  ;;  %v8374_v39 = vmul.u32.u64.low %v2370_v5, %v2369_v43  ;;  %v8375_v58 = vmul.u32.u64.high %v2370_v5, %v2369_v43, %v8374_v39 }
 0x214   : > { %vm2210_vm14 = vcmp.eq.s32.totalorder %v8344_v42, 0  ;;  %vm2213_vm0 = vcmp.eq.s32.totalorder %v8344_v42, 2  ;;  %v2361_v24 = vsel %vm2355_vm9, %v2358_v21, %v2360_v28  ;;  %v5748_v36 = vadd.s32 4294967169, %v2014_v30 }
 0x215   : > { %v6684_v31 = vpop.eup %6683  ;;  %v1858_v29 = vadd.s32 %v8296_v62, %v8293_v45  ;;  %vm5743_vm15 = vcmp.lt.s32.totalorder %v5742_v51, 0  ;;  %v1891_v11 = vsel %vm8357_vm11, 0, %v1889_v34  ;;  %v2010_v53 = vand.u32 2147483647, %v8325_v3 }
 0x216   : > { %v6686_v20 = vpop.eup %6685  ;;  %v2214_v57 = vxor.u32 2147483648, %v6684_v31  ;;  %v1873_v60 = vsel %vm5743_vm15, 0, %v5742_v51  ;;  %v2380_v35 = vadd.s32 1, %v8370_v41  ;;  %v2020_v0 = vadd.s32 1, %v5748_v36 }
 0x217   : > { %v2211_v37 = vxor.u32 2147483648, %v6686_v20  ;;  %v1874_v10 = vsub.s32 32, %v1873_v60  ;;  %v1878_v27 = vsub.s32 4294967266, %v1873_v60  ;;  %v2377_v22 = vmul.u32 %v2370_v5, %v2361_v24 }
 0x218   : > { %v2215_v18 = vsel %vm2213_vm0, %v2214_v57, %v6686_v20  ;;  %v1875_v45 = vshll.u32 %v8346_v4, %v1873_v60  ;;  %vm2379_vm1 = vc.u32 %v8375_v58, %v8369_v49  ;;  %vm2021_vm2 = vcmp.gt.s32.totalorder %v2020_v0, 0 }
 0x219   : > { %v2212_v62 = vsel %vm2210_vm14, %v6684_v31, %v2211_v37  ;;  %v1876_v1 = vshrl.u32 %v1858_v29, %v1874_v10  ;;  %v1879_v40 = vadd.s32 127, %v1878_v27  ;;  %v2381_v23 = vsel %vm2379_vm1, %v2380_v35, %v8370_v41 }
 0x21a   : > { %v2216_v32 = vsel %vm2209_vm13, %v2212_v62, %v2215_v18  ;;  %v1895_v15 = vadd.s32 3, %v1891_v11  ;;  %v2382_v26 = vadd.s32 %v2381_v23, %v2377_v22  ;;  %v2022_v33 = vsel %vm2021_vm2, %v2020_v0, 0 }
 0x21b   : > { %v2217_v4 = vsel %vm2206_vm12, nan, %v2216_v32  ;;  %v1877_v19 = vor.u32 %v1876_v1, %v1875_v45  ;;  %v1880_v14 = vshll.u32 %v1879_v40, 23  ;;  %v2017_v12 = vand.u32 8388607, %v2010_v53 }
 0x21c   : > { %3848 = vrot.lane.b32.xlu0 %v2217_v4, %s6928_s21  ;;  %v2383_v16 = vadd.s32 536870912, %v2382_v26  ;;  %v2024_v7 = vand.u32 31, %v2022_v33  ;;  %v8402_v13 = vand.u32 3, %v1895_v15  ;;  %v397_v47 = vmul.f32 %v7003_v2, %v356_v59 }
 0x21d   : > { %v1881_v17 = vor.u32 4788187, %v1880_v14  ;;  %v1884_v56 = vcvt.s32.f32 %v1877_v19  ;;  %v2018_v5 = vor.u32 8388608, %v2017_v12  ;;  %v2023_v38 = vshrl.u32 %v2022_v33, 5 }
 0x21e   : > { %v2384_v42 = vshrl.u32 %v2383_v16, 30  ;;  %v2025_v9 = vsub.s32 32, %v2024_v7  ;;  %v2027_v21 = vshll.u32 %v6922_v44, %v2024_v7  ;;  %v2030_v43 = vshll.u32 %v6923_v48, %v2024_v7 }
 0x21f   : > { %v1882_v55 = vand.u32 2147483647, %v1881_v17  ;;  %v2033_v36 = vshll.u32 %v6924_v50, %v2024_v7  ;;  %v2036_v31 = vshll.u32 %v6925_v52, %v2024_v7  ;;  %v8417_v60 = vadd.f32 %v7010_v8, %v397_v47 }
 0x220   : > { %v2385_v34 = vshll.u32 %v2384_v42, 30  ;;  %v2028_v28 = vshrl.u32 %v6923_v48, %v2025_v9  ;;  %v2031_v30 = vshrl.u32 %v6924_v50, %v2025_v9  ;;  %v2034_v51 = vshrl.u32 %v6925_v52, %v2025_v9 }
 0x221   : > { %v1885_v41 = vmul.f32 %v1884_v56, %v1882_v55  ;;  %v2037_v39 = vshrl.u32 %v6926_v54, %v2025_v9  ;;  %v2040_v29 = vshrl.u32 %v6927_v61, %v2025_v9  ;;  %vm2324_vm3 = vcmp.lt.s32.totalorder %v8236_v63, 0 }
 0x222   : > { %v8411_v24 = vsub.s32 %v2382_v26, %v2385_v34  ;;  %v2029_v20 = vor.u32 %v2028_v28, %v2027_v21  ;;  %v2032_v57 = vor.u32 %v2031_v30, %v2030_v43  ;;  %v2035_v0 = vor.u32 %v2034_v51, %v2033_v36 }
 0x223   : > { %v1886_v11 = vxor.u32 2147483648, %v1885_v41  ;;  %v2038_v37 = vor.u32 %v2037_v39, %v2036_v31  ;;  %v2039_v10 = vshll.u32 %v6926_v54, %v2024_v7  ;;  %v2378_v22 = vadd.s32 %v8369_v49, %v8375_v58 }
 0x224   : > { %v2388_v35 = vsub.s32 0, %v8411_v24  ;;  %vm2042_vm4 = vcmp.lt.s32.totalorder %v2023_v38, 1  ;;  %v2058_v18 = vshll.u32 %v2018_v5, 8  ;;  %vm2045_vm5 = vcmp.lt.s32.totalorder %v2023_v38, 4 }
 0x225   : > { %v1887_v27 = vsel %vm1804_vm6, %v1886_v11, %v1885_v41  ;;  %v2041_v1 = vor.u32 %v2040_v29, %v2039_v10  ;;  %v2026_v40 = vshrl.u32 %v6922_v44, %v2025_v9  ;;  %v2050_v23 = vsel %vm2042_vm4, %v2029_v20, %v2032_v57 }
 0x226   : > { %v1890_v45 = vsel %vm8357_vm11, %v8180_v6, %v1887_v27  ;;  %v5761_v62 = vmin.u32 %v2388_v35, %v8411_v24  ;;  %v2051_v32 = vsel %vm2045_vm5, %v2038_v37, 920167782  ;;  %vm2044_vm6 = vcmp.lt.s32.totalorder %v2023_v38, 3 }
 0x227   : > { %6687 = vcosq.f32 %v1890_v45  ;;  %v2047_v49 = vsel %vm2045_vm5, %v2035_v0, 2102212464  ;;  %v2408_v58 = vsub.s32 4, %v2384_v42  ;;  %vm2043_vm7 = vcmp.lt.s32.totalorder %v2023_v38, 2 }
 0x228   : > { %6689 = vsinq.f32 %v1890_v45  ;;  %v2390_v15 = vclz %v5761_v62  ;;  %v2052_v46 = vsel %vm2044_vm6, %v2035_v0, %v2051_v32  ;;  %v2054_v26 = vsel %vm2042_vm4, %v2032_v57, %v2035_v0 }
 0x229   : > { %v2046_v4 = vsel %vm2042_vm4, %v2026_v40, %v2029_v20  ;;  %v2053_v19 = vsel %vm2043_vm7, %v2050_v23, %v2052_v46  ;;  %v2055_v14 = vsel %vm2045_vm5, %v2041_v1, 1326507024  ;;  %v2048_v12 = vsel %vm2044_vm6, %v2032_v57, %v2047_v49  ;;  %v353_v20 = vld [vmem:[%s7001_s20 + $0x88] sm:$0xff] }
 0x22a   : > { %v5762_v33 = vadd.s32 4294967294, %v2390_v15  ;;  %v2056_v59 = vsel %vm2044_vm6, %v2038_v37, %v2055_v14  ;;  %v8438_v16 = vmul.u32.u64.low %v2058_v18, %v2053_v19  ;;  %v8439_v7 = vmul.u32.u64.high %v2058_v18, %v2053_v19, %v8438_v16 }
 0x22b   : > { %v2057_v17 = vsel %vm2043_vm7, %v2054_v26, %v2056_v59  ;;  %v2530_v9 = vand.u32 2147483647, %v8417_v60  ;;  %v2533_v47 = vand.u32 2139095040, %v8417_v60  ;;  %v2409_v56 = vsel %vm2324_vm3, %v2408_v58, %v2384_v42  ;;  %v358_v26 = vld [vmem:[%s7001_s20 + $0xb0] sm:$0xff] }
 0x22c   : > { %vm5763_vm8 = vcmp.lt.s32.totalorder %v5762_v33, 0  ;;  %v8447_v5 = vmul.u32.u64.low %v2058_v18, %v2057_v17  ;;  %v8448_v34 = vmul.u32.u64.high %v2058_v18, %v2057_v17, %v8447_v5  ;;  %vm1894_vm10 = vweird.f32 %v8180_v6 }
 0x22d   : > { %v2393_v55 = vsel %vm5763_vm8, 0, %v5762_v33  ;;  %v2049_v43 = vsel %vm2043_vm7, %v2046_v4, %v2048_v12  ;;  %v2534_v41 = vshrl.u32 %v2533_v47, 23  ;;  %vm1897_vm9 = vcmp.lt.s32.totalorder %v8402_v13, 2  ;;  %v355_v12 = vld [vmem:[%s7001_s20 + $0x98] sm:$0xff] }
 0x22e   : > { %v2394_v21 = vsub.s32 32, %v2393_v55  ;;  %v2398_v28 = vsub.s32 4294967266, %v2393_v55  ;;  %vm1898_vm11 = vcmp.eq.s32.totalorder %v8402_v13, 0  ;;  %vm8456_vm12 = vcmp.le.f32.partialorder %v2322_v25, 0.7853982 }
 0x22f   : > { %v2068_v42 = vadd.s32 1, %v8439_v7  ;;  %v2395_v51 = vshll.u32 %v8411_v24, %v2393_v55  ;;  %v5768_v38 = vadd.s32 4294967169, %v2534_v41  ;;  %v2411_v29 = vsel %vm8456_vm12, 0, %v2409_v56 }
 0x230   : > { %v2396_v39 = vshrl.u32 %v2378_v22, %v2394_v21  ;;  %v2399_v36 = vadd.s32 127, %v2398_v28  ;;  %v2065_v11 = vmul.u32 %v2058_v18, %v2049_v43  ;;  %vm2067_vm13 = vc.u32 %v8448_v34, %v8438_v16 }
 0x231   : > { %v6688_v31 = vpop.eup %6687  ;;  %v2537_v25 = vand.u32 8388607, %v2530_v9  ;;  %v2069_v24 = vsel %vm2067_vm13, %v2068_v42, %v8439_v7  ;;  %vm1901_vm14 = vcmp.eq.s32.totalorder %v8402_v13, 2  ;;  %v2540_v22 = vadd.s32 1, %v5768_v38 }
 0x232   : > { %v6690_v57 = vpop.eup %6689  ;;  %v1902_v35 = vxor.u32 2147483648, %v6688_v31  ;;  %v2397_v0 = vor.u32 %v2396_v39, %v2395_v51  ;;  %v2400_v37 = vshll.u32 %v2399_v36, 23  ;;  %v2070_v27 = vadd.s32 %v2069_v24, %v2065_v11 }
 0x233   : > { %v1899_v10 = vxor.u32 2147483648, %v6690_v57  ;;  %v2415_v62 = vadd.s32 3, %v2411_v29  ;;  %v394_v1 = vmul.f32 %v7003_v2, %v353_v20  ;;  %v2538_v32 = vor.u32 8388608, %v2537_v25 }
 0x234   : > { %v1903_v18 = vsel %vm1901_vm14, %v1902_v35, %v6690_v57  ;;  %v2401_v45 = vor.u32 4788187, %v2400_v37  ;;  %v2071_v23 = vadd.s32 536870912, %v2070_v27  ;;  %vm2541_vm0 = vcmp.gt.s32.totalorder %v2540_v22, 0 }
 0x235   : > { %v1900_v40 = vsel %vm1898_vm11, %v6688_v31, %v1899_v10  ;;  %v2404_v58 = vcvt.s32.f32 %v2397_v0  ;;  %v2542_v46 = vsel %vm2541_vm0, %v2540_v22, 0  ;;  %v8482_v14 = vadd.f32 %v7010_v8, %v394_v1 }
 0x236   : > { %v1904_v15 = vsel %vm1897_vm9, %v1900_v40, %v1903_v18  ;;  %v2402_v49 = vand.u32 2147483647, %v2401_v45  ;;  %v8479_v4 = vshrl.u32 %v2071_v23, 30  ;;  %v2544_v19 = vand.u32 31, %v2542_v46 }
 0x237   : > { %v1905_v33 = vsel %vm1894_vm10, nan, %v1904_v15  ;;  %v8488_v17 = vmul.f32 %v7003_v2, %v358_v26  ;;  %v8490_v55 = vand.u32 3, %v2415_v62  ;;  %v8492_v6 = vshll.u32 %v2538_v32, 8 }
 0x238   : > { %3842 = vrot.lane.b32.xlu1 %v1905_v33, %s6928_s21  ;;  %v2405_v59 = vmul.f32 %v2404_v58, %v2402_v49  ;;  %v2073_v13 = vshll.u32 %v8479_v4, 30  ;;  %v2545_v7 = vsub.s32 32, %v2544_v19  ;;  %v8495_v56 = vmul.f32 %v7003_v2, %v355_v12 }
 0x239   : > { %v2543_v21 = vshrl.u32 %v2542_v46, 5  ;;  %v2221_v43 = vand.u32 2139095040, %v8482_v14  ;;  %v2547_v42 = vshll.u32 %v6922_v44, %v2544_v19  ;;  %v2550_v31 = vshll.u32 %v6923_v48, %v2544_v19 }
 0x23a   : > { %v2406_v47 = vxor.u32 2147483648, %v2405_v59  ;;  %v8497_v5 = vsub.s32 %v2070_v27, %v2073_v13  ;;  %v2548_v28 = vshrl.u32 %v6923_v48, %v2545_v7  ;;  %v2551_v51 = vshrl.u32 %v6924_v50, %v2545_v7 }
 0x23b   : > { %v2554_v39 = vshrl.u32 %v6925_v52, %v2545_v7  ;;  %v2553_v29 = vshll.u32 %v6924_v50, %v2544_v19  ;;  %v2556_v25 = vshll.u32 %v6925_v52, %v2544_v19  ;;  %v2557_v20 = vshrl.u32 %v6926_v54, %v2545_v7 }
 0x23c   : > { %v2407_v41 = vsel %vm2324_vm3, %v2406_v47, %v2405_v59  ;;  %v2076_v38 = vsub.s32 0, %v8497_v5  ;;  %v2549_v11 = vor.u32 %v2548_v28, %v2547_v42  ;;  %v2552_v35 = vor.u32 %v2551_v51, %v2550_v31 }
 0x23d   : > { %v2410_v36 = vsel %vm8456_vm12, %v8236_v63, %v2407_v41  ;;  %v2555_v0 = vor.u32 %v2554_v39, %v2553_v29  ;;  %v2558_v37 = vor.u32 %v2557_v20, %v2556_v25  ;;  %v2559_v30 = vshll.u32 %v6926_v54, %v2544_v19 }
 0x23e   : > { %6691 = vcosq.f32 %v2410_v36  ;;  %v5749_v57 = vmin.u32 %v2076_v38, %v8497_v5  ;;  %v2560_v24 = vshrl.u32 %v6927_v61, %v2545_v7  ;;  %v2218_v10 = vand.u32 2147483647, %v8482_v14 }
 0x23f   : > { %6693 = vsinq.f32 %v2410_v36  ;;  %v2546_v22 = vshrl.u32 %v6922_v44, %v2545_v7  ;;  %vm2562_vm15 = vcmp.lt.s32.totalorder %v2543_v21, 1  ;;  %v2222_v18 = vshrl.u32 %v2221_v43, 23 }
 0x240   : > { %v2078_v27 = vclz %v5749_v57  ;;  %vm2421_vm1 = vcmp.eq.s32.totalorder %v8490_v55, 2  ;;  %vm2012_vm2 = vcmp.lt.s32.totalorder %v8325_v3, 0  ;;  %v2561_v45 = vor.u32 %v2560_v24, %v2559_v30 }
 0x241   : > { %vm2563_vm3 = vcmp.lt.s32.totalorder %v2543_v21, 2  ;;  %vm2564_vm4 = vcmp.lt.s32.totalorder %v2543_v21, 3  ;;  %vm2565_vm5 = vcmp.lt.s32.totalorder %v2543_v21, 4  ;;  %vm2418_vm6 = vcmp.eq.s32.totalorder %v8490_v55, 0 }
 0x242   : > { %v5750_v62 = vadd.s32 4294967294, %v2078_v27  ;;  %v2567_v1 = vsel %vm2565_vm5, %v2555_v0, 2102212464  ;;  %v2570_v40 = vsel %vm2562_vm15, %v2549_v11, %v2552_v35  ;;  %v2571_v23 = vsel %vm2565_vm5, %v2558_v37, 920167782 }
 0x243   : > { %vm2417_vm7 = vcmp.lt.s32.totalorder %v8490_v55, 2  ;;  %v2566_v32 = vsel %vm2562_vm15, %v2546_v22, %v2549_v11  ;;  %v2572_v15 = vsel %vm2564_vm4, %v2555_v0, %v2571_v23  ;;  %v2574_v49 = vsel %vm2562_vm15, %v2552_v35, %v2555_v0 }
 0x244   : > { %v2575_v58 = vsel %vm2565_vm5, %v2561_v45, 1326507024  ;;  %vm2414_vm8 = vweird.f32 %v8236_v63  ;;  %vm8530_vm10 = vcmp.le.f32.partialorder %v2010_v53, 0.7853982  ;;  %vm5751_vm9 = vcmp.lt.s32.totalorder %v5750_v62, 0 }
 0x245   : > { %v2568_v26 = vsel %vm2564_vm4, %v2552_v35, %v2567_v1  ;;  %v2573_v33 = vsel %vm2563_vm3, %v2570_v40, %v2572_v15  ;;  %v2576_v19 = vsel %vm2564_vm4, %v2558_v37, %v2575_v58  ;;  %v2081_v12 = vsel %vm5751_vm9, 0, %v5750_v62 }
 0x246   : > { %v2577_v59 = vsel %vm2563_vm3, %v2574_v49, %v2576_v19  ;;  %v8539_v13 = vmul.u32.u64.low %v8492_v6, %v2573_v33  ;;  %v8540_v7 = vmul.u32.u64.high %v8492_v6, %v2573_v33, %v8539_v13  ;;  %v2066_v53 = vadd.s32 %v8438_v16, %v8448_v34 }
 0x247   : > { %v2082_v47 = vsub.s32 32, %v2081_v12  ;;  %v2086_v28 = vsub.s32 4294967266, %v2081_v12  ;;  %v2096_v43 = vsub.s32 4, %v8479_v4  ;;  %v2569_v42 = vsel %vm2563_vm3, %v2566_v32, %v2568_v26 }
 0x248   : > { %v6692_v41 = vpop.eup %6691  ;;  %v8548_v51 = vmul.u32.u64.low %v8492_v6, %v2577_v59  ;;  %v8549_v39 = vmul.u32.u64.high %v8492_v6, %v2577_v59, %v8548_v51  ;;  %v5756_v36 = vadd.s32 4294967169, %v2222_v18  ;;  %v2083_v29 = vshll.u32 %v8497_v5, %v2081_v12 }
 0x249   : > { %v6694_v38 = vpop.eup %6693  ;;  %v2422_v31 = vxor.u32 2147483648, %v6692_v41  ;;  %v2084_v11 = vshrl.u32 %v2066_v53, %v2082_v47  ;;  %v2087_v25 = vadd.s32 127, %v2086_v28  ;;  %v2588_v16 = vadd.s32 1, %v8540_v7 }
 0x24a   : > { %v2419_v20 = vxor.u32 2147483648, %v6694_v38  ;;  %v8555_v34 = vand.u32 8388607, %v2218_v10  ;;  %v2228_v21 = vadd.s32 1, %v5756_v36  ;;  %v2097_v37 = vsel %vm2012_vm2, %v2096_v43, %v8479_v4 }
 0x24b   : > { %v2423_v57 = vsel %vm2421_vm1, %v2422_v31, %v6694_v38  ;;  %v2085_v35 = vor.u32 %v2084_v11, %v2083_v29  ;;  %v2088_v0 = vshll.u32 %v2087_v25, 23  ;;  %v2585_v30 = vmul.u32 %v8492_v6, %v2569_v42 }
 0x24c   : > { %v2420_v5 = vsel %vm2418_vm6, %v6692_v41, %v2419_v20  ;;  %vm2587_vm11 = vc.u32 %v8549_v39, %v8539_v13  ;;  %vm2229_vm12 = vcmp.gt.s32.totalorder %v2228_v21, 0  ;;  %v8572_v18 = vadd.f32 %v7010_v8, %v8488_v17 }
 0x24d   : > { %v2424_v24 = vsel %vm2417_vm7, %v2420_v5, %v2423_v57  ;;  %v2089_v27 = vor.u32 4788187, %v2088_v0  ;;  %v2589_v22 = vsel %vm2587_vm11, %v2588_v16, %v8540_v7  ;;  %v2099_v6 = vsel %vm8530_vm10, 0, %v2097_v37 }
 0x24e   : > { %v2425_v4 = vsel %vm2414_vm8, nan, %v2424_v24  ;;  %v2590_v45 = vadd.s32 %v2589_v22, %v2585_v30  ;;  %v2230_v62 = vsel %vm2229_vm12, %v2228_v21, 0  ;;  %v2092_v55 = vcvt.s32.f32 %v2085_v35 }
 0x24f   : > { %3852 = vrot.lane.b32.xlu0 %v2425_v4, %s6928_s21  ;;  %v2090_v1 = vand.u32 2147483647, %v2089_v27  ;;  %v2232_v40 = vand.u32 31, %v2230_v62  ;;  %v2226_v32 = vor.u32 8388608, %v8555_v34  ;;  %v8582_v17 = vadd.f32 %v7010_v8, %v8495_v56 }
 0x250   : > { %v2591_v23 = vadd.s32 536870912, %v2590_v45  ;;  %v2103_v63 = vadd.s32 3, %v2099_v6  ;;  %v2741_v58 = vand.u32 2139095040, %v8572_v18  ;;  %v2231_v33 = vshrl.u32 %v2230_v62, 5 }
 0x251   : > { %v2093_v15 = vmul.f32 %v2092_v55, %v2090_v1  ;;  %v2233_v49 = vsub.s32 32, %v2232_v40  ;;  %v2235_v19 = vshll.u32 %v6922_v44, %v2232_v40  ;;  %v2238_v12 = vshll.u32 %v6923_v48, %v2232_v40 }
 0x252   : > { %v2592_v26 = vshrl.u32 %v2591_v23, 30  ;;  %vm2532_vm13 = vcmp.lt.s32.totalorder %v8417_v60, 0  ;;  %v2241_v56 = vshll.u32 %v6924_v50, %v2232_v40  ;;  %v2244_v43 = vshll.u32 %v6925_v52, %v2232_v40 }
 0x253   : > { %v2094_v59 = vxor.u32 2147483648, %v2093_v15  ;;  %v2236_v7 = vshrl.u32 %v6923_v48, %v2233_v49  ;;  %v2239_v53 = vshrl.u32 %v6924_v50, %v2233_v49  ;;  %v2242_v28 = vshrl.u32 %v6925_v52, %v2233_v49 }
 0x254   : > { %v2593_v47 = vshll.u32 %v2592_v26, 30  ;;  %v2245_v41 = vshrl.u32 %v6926_v54, %v2233_v49  ;;  %v2247_v36 = vshll.u32 %v6926_v54, %v2232_v40  ;;  %v2248_v38 = vshrl.u32 %v6927_v61, %v2233_v49 }
 0x255   : > { %v2095_v42 = vsel %vm2012_vm2, %v2094_v59, %v2093_v15  ;;  %v2237_v51 = vor.u32 %v2236_v7, %v2235_v19  ;;  %v2240_v11 = vor.u32 %v2239_v53, %v2238_v12  ;;  %v2243_v25 = vor.u32 %v2242_v28, %v2241_v56 }
 0x256   : > { %v2098_v31 = vsel %vm8530_vm10, %v8325_v3, %v2095_v42  ;;  %v8601_v29 = vsub.s32 %v2590_v45, %v2593_v47  ;;  %v8603_v20 = vand.u32 3, %v2103_v63  ;;  %v2246_v16 = vor.u32 %v2245_v41, %v2244_v43 }
 0x257   : > { %6695 = vcosq.f32 %v2098_v31  ;;  %v2249_v34 = vor.u32 %v2248_v38, %v2247_v36  ;;  %vm8607_vm14 = vcmp.le.f32.partialorder %v2530_v9, 0.7853982  ;;  %v2616_v46 = vsub.s32 4, %v2592_v26 }
 0x258   : > { %6697 = vsinq.f32 %v2098_v31  ;;  %v2596_v57 = vsub.s32 0, %v8601_v29  ;;  %v2234_v35 = vshrl.u32 %v6922_v44, %v2233_v49  ;;  %vm2250_vm0 = vcmp.lt.s32.totalorder %v2231_v33, 1 }
 0x259   : > { %vm2252_vm15 = vcmp.lt.s32.totalorder %v2231_v33, 3  ;;  %vm2253_vm1 = vcmp.lt.s32.totalorder %v2231_v33, 4  ;;  %v2742_v0 = vshrl.u32 %v2741_v58, 23  ;;  %v2258_v24 = vsel %vm2250_vm0, %v2237_v51, %v2240_v11 }
 0x25a   : > { %v5769_v37 = vmin.u32 %v2596_v57, %v8601_v29  ;;  %v2254_v5 = vsel %vm2250_vm0, %v2234_v35, %v2237_v51  ;;  %v2255_v30 = vsel %vm2253_vm1, %v2243_v25, 2102212464  ;;  %v2259_v9 = vsel %vm2253_vm1, %v2246_v16, 920167782 }
 0x25b   : > { %v2256_v27 = vsel %vm2252_vm15, %v2240_v11, %v2255_v30  ;;  %v2262_v22 = vsel %vm2250_vm0, %v2240_v11, %v2243_v25  ;;  %v2263_v4 = vsel %vm2253_vm1, %v2249_v34, 1326507024  ;;  %v2617_v45 = vsel %vm2532_vm13, %v2616_v46, %v2592_v26 }
 0x25c   : > { %v2598_v6 = vclz %v5769_v37  ;;  %v2266_v62 = vshll.u32 %v2226_v32, 8  ;;  %v2738_v1 = vand.u32 2147483647, %v8572_v18  ;;  %vm2105_vm2 = vcmp.lt.s32.totalorder %v8603_v20, 2 }
 0x25d   : > { %vm2251_vm3 = vcmp.lt.s32.totalorder %v2231_v33, 2  ;;  %v2260_v55 = vsel %vm2252_vm15, %v2243_v25, %v2259_v9  ;;  %v2264_v40 = vsel %vm2252_vm15, %v2246_v16, %v2263_v4  ;;  %v5776_v23 = vadd.s32 4294967169, %v2742_v0 }
 0x25e   : > { %vm2102_vm4 = vweird.f32 %v8325_v3  ;;  %v5770_v15 = vadd.s32 4294967294, %v2598_v6  ;;  %v2257_v63 = vsel %vm2251_vm3, %v2254_v5, %v2256_v27  ;;  %v2261_v49 = vsel %vm2251_vm3, %v2258_v24, %v2260_v55 }
 0x25f   : > { %v2265_v58 = vsel %vm2251_vm3, %v2262_v22, %v2264_v40  ;;  %v8625_v32 = vmul.u32.u64.low %v2266_v62, %v2261_v49  ;;  %v8626_v26 = vmul.u32.u64.high %v2266_v62, %v2261_v49, %v8625_v32  ;;  %vm2106_vm5 = vcmp.eq.s32.totalorder %v8603_v20, 0 }
 0x260   : > { %v8622_v19 = vmul.u32.u64.low %v2266_v62, %v2265_v58  ;;  %v8623_v12 = vmul.u32.u64.high %v2266_v62, %v2265_v58, %v8622_v19  ;;  %vm2109_vm6 = vcmp.eq.s32.totalorder %v8603_v20, 2  ;;  %vm5771_vm7 = vcmp.lt.s32.totalorder %v5770_v15, 0 }
 0x261   : > { %v2748_v33 = vadd.s32 1, %v5776_v23  ;;  %v6696_v59 = vpop.eup %6695  ;;  %v2586_v7 = vadd.s32 %v8539_v13, %v8549_v39  ;;  %v2601_v53 = vsel %vm5771_vm7, 0, %v5770_v15  ;;  %v2619_v56 = vsel %vm8607_vm14, 0, %v2617_v45 }
 0x262   : > { %v2745_v47 = vand.u32 8388607, %v2738_v1  ;;  %v6698_v28 = vpop.eup %6697  ;;  %v2110_v43 = vxor.u32 2147483648, %v6696_v59  ;;  %v2602_v41 = vsub.s32 32, %v2601_v53  ;;  %v2606_v42 = vsub.s32 4294967266, %v2601_v53 }
 0x263   : > { %v2273_v51 = vmul.u32 %v2266_v62, %v2257_v63  ;;  %v2107_v36 = vxor.u32 2147483648, %v6698_v28  ;;  %v2603_v38 = vshll.u32 %v8601_v29, %v2601_v53  ;;  %vm2275_vm8 = vc.u32 %v8623_v12, %v8625_v32 }
 0x264   : > { %v2276_v13 = vadd.s32 1, %v8626_v26  ;;  %v2111_v39 = vsel %vm2109_vm6, %v2110_v43, %v6698_v28  ;;  %v2604_v31 = vshrl.u32 %v2586_v7, %v2602_v41  ;;  %v2607_v11 = vadd.s32 127, %v2606_v42 }
 0x265   : > { %vm2749_vm10 = vcmp.gt.s32.totalorder %v2748_v33, 0  ;;  %v2108_v25 = vsel %vm2106_vm5, %v6696_v59, %v2107_v36  ;;  %v2623_v16 = vadd.s32 3, %v2619_v56  ;;  %v2746_v9 = vor.u32 8388608, %v2745_v47 }
 0x266   : > { %v2277_v34 = vsel %vm2275_vm8, %v2276_v13, %v8626_v26  ;;  %v2750_v57 = vsel %vm2749_vm10, %v2748_v33, 0  ;;  %v2112_v29 = vsel %vm2105_vm2, %v2108_v25, %v2111_v39  ;;  %v2605_v46 = vor.u32 %v2604_v31, %v2603_v38 }
 0x267   : > { %v2608_v35 = vshll.u32 %v2607_v11, 23  ;;  %v2278_v0 = vadd.s32 %v2277_v34, %v2273_v51  ;;  %v2113_v37 = vsel %vm2102_vm4, nan, %v2112_v29  ;;  %v2752_v5 = vand.u32 31, %v2750_v57 }
 0x268   : > { %3846 = vrot.lane.b32.xlu1 %v2113_v37, %s6928_s21  ;;  %v8651_v27 = vand.u32 3, %v2623_v16  ;;  %v2612_v6 = vcvt.s32.f32 %v2605_v46  ;;  %v2429_v20 = vand.u32 2139095040, %v8582_v17  ;;  %v2751_v62 = vshrl.u32 %v2750_v57, 5 }
 0x269   : > { %v2609_v30 = vor.u32 4788187, %v2608_v35  ;;  %v2279_v24 = vadd.s32 536870912, %v2278_v0  ;;  %v2753_v22 = vsub.s32 32, %v2752_v5  ;;  %v2761_v63 = vshll.u32 %v6924_v50, %v2752_v5 }
 0x26a   : > { %vm2220_vm9 = vcmp.lt.s32.totalorder %v8482_v14, 0  ;;  %v2755_v58 = vshll.u32 %v6922_v44, %v2752_v5  ;;  %v2758_v19 = vshll.u32 %v6923_v48, %v2752_v5  ;;  %v2764_v26 = vshll.u32 %v6925_v52, %v2752_v5 }
 0x26b   : > { %v2610_v4 = vand.u32 2147483647, %v2609_v30  ;;  %v2280_v45 = vshrl.u32 %v2279_v24, 30  ;;  %v2756_v55 = vshrl.u32 %v6923_v48, %v2753_v22  ;;  %v2759_v3 = vshrl.u32 %v6924_v50, %v2753_v22 }
 0x26c   : > { %v2762_v40 = vshrl.u32 %v6925_v52, %v2753_v22  ;;  %v2765_v49 = vshrl.u32 %v6926_v54, %v2753_v22  ;;  %v2768_v33 = vshrl.u32 %v6927_v61, %v2753_v22  ;;  %v8666_v56 = vshll.u32 %v2746_v9, 8 }
 0x26d   : > { %v2613_v23 = vmul.f32 %v2612_v6, %v2610_v4  ;;  %v2281_v15 = vshll.u32 %v2280_v45, 30  ;;  %v2757_v47 = vor.u32 %v2756_v55, %v2755_v58  ;;  %v2760_v28 = vor.u32 %v2759_v3, %v2758_v19 }
 0x26e   : > { %v2763_v53 = vor.u32 %v2762_v40, %v2761_v63  ;;  %v2766_v43 = vor.u32 %v2765_v49, %v2764_v26  ;;  %v2767_v41 = vshll.u32 %v6926_v54, %v2752_v5  ;;  %v2754_v36 = vshrl.u32 %v6922_v44, %v2753_v22 }
 0x26f   : > { %v2614_v59 = vxor.u32 2147483648, %v2613_v23  ;;  %v8664_v7 = vsub.s32 %v2278_v0, %v2281_v15  ;;  %v2430_v38 = vshrl.u32 %v2429_v20, 23  ;;  %v2304_v39 = vsub.s32 4, %v2280_v45 }
 0x270   : > { %v2769_v31 = vor.u32 %v2768_v33, %v2767_v41  ;;  %vm2773_vm11 = vcmp.lt.s32.totalorder %v2751_v62, 4  ;;  %vm8678_vm12 = vcmp.le.f32.partialorder %v2218_v10, 0.7853982  ;;  %vm2771_vm0 = vcmp.lt.s32.totalorder %v2751_v62, 2 }
 0x271   : > { %v2615_v42 = vsel %vm2532_vm13, %v2614_v59, %v2613_v23  ;;  %v2284_v51 = vsub.s32 0, %v8664_v7  ;;  %vm2770_vm13 = vcmp.lt.s32.totalorder %v2751_v62, 1  ;;  %v2775_v16 = vsel %vm2773_vm11, %v2763_v53, 2102212464 }
 0x272   : > { %v2618_v13 = vsel %vm8607_vm14, %v8417_v60, %v2615_v42  ;;  %v2778_v34 = vsel %vm2770_vm13, %v2757_v47, %v2760_v28  ;;  %v2779_v21 = vsel %vm2773_vm11, %v2766_v43, 920167782  ;;  %vm2772_vm14 = vcmp.lt.s32.totalorder %v2751_v62, 3  ;;  %v360_v42 = vld [vmem:[%s7001_s20 + $0xc0] sm:$0xff] }
 0x273   : > { %6699 = vcosq.f32 %v2618_v13  ;;  %v5757_v25 = vmin.u32 %v2284_v51, %v8664_v7  ;;  %v2774_v29 = vsel %vm2770_vm13, %v2754_v36, %v2757_v47  ;;  %v2782_v46 = vsel %vm2770_vm13, %v2760_v28, %v2763_v53 }
 0x274   : > { %6701 = vsinq.f32 %v2618_v13  ;;  %v2776_v35 = vsel %vm2772_vm14, %v2760_v28, %v2775_v16  ;;  %v2780_v0 = vsel %vm2772_vm14, %v2763_v53, %v2779_v21  ;;  %v2783_v10 = vsel %vm2773_vm11, %v2769_v31, 1326507024 }
 0x275   : > { %v2286_v57 = vclz %v5757_v25  ;;  %v5764_v37 = vadd.s32 4294967169, %v2430_v38  ;;  %v2305_v30 = vsel %vm2220_vm9, %v2304_v39, %v2280_v45  ;;  %v2781_v24 = vsel %vm2771_vm0, %v2778_v34, %v2780_v0 }
 0x276   : > { %v2784_v9 = vsel %vm2772_vm14, %v2766_v43, %v2783_v10  ;;  %v8691_v4 = vmul.u32.u64.low %v8666_v56, %v2781_v24  ;;  %v8692_v6 = vmul.u32.u64.high %v8666_v56, %v2781_v24, %v8691_v4  ;;  %v2777_v55 = vsel %vm2771_vm0, %v2774_v29, %v2776_v35 }
 0x277   : > { %v5758_v5 = vadd.s32 4294967294, %v2286_v57  ;;  %v2785_v22 = vsel %vm2771_vm0, %v2782_v46, %v2784_v9  ;;  %v2436_v20 = vadd.s32 1, %v5764_v37  ;;  %vm2622_vm1 = vweird.f32 %v8417_v60 }
 0x278   : > { %v8697_v3 = vmul.u32.u64.low %v8666_v56, %v2785_v22  ;;  %v8698_v40 = vmul.u32.u64.high %v8666_v56, %v2785_v22, %v8697_v3  ;;  %vm2625_vm2 = vcmp.lt.s32.totalorder %v8651_v27, 2  ;;  %v2426_v23 = vand.u32 2147483647, %v8582_v17 }
 0x279   : > { %vm5759_vm15 = vcmp.lt.s32.totalorder %v5758_v5, 0  ;;  %vm2437_vm3 = vcmp.gt.s32.totalorder %v2436_v20, 0  ;;  %v2274_v15 = vadd.s32 %v8625_v32, %v8623_v12  ;;  %v2307_v58 = vsel %vm8678_vm12, 0, %v2305_v30 }
 0x27a   : > { %v2289_v45 = vsel %vm5759_vm15, 0, %v5758_v5  ;;  %v2438_v62 = vsel %vm2437_vm3, %v2436_v20, 0  ;;  %v2793_v19 = vmul.u32 %v8666_v56, %v2777_v55  ;;  %v2796_v26 = vadd.s32 1, %v8692_v6 }
 0x27b   : > { %v2290_v63 = vsub.s32 32, %v2289_v45  ;;  %v2294_v49 = vsub.s32 4294967266, %v2289_v45  ;;  %v2440_v33 = vand.u32 31, %v2438_v62  ;;  %v2291_v53 = vshll.u32 %v8664_v7, %v2289_v45 }
 0x27c   : > { %vm2795_vm4 = vc.u32 %v8698_v40, %v8691_v4  ;;  %vm2629_vm5 = vcmp.eq.s32.totalorder %v8651_v27, 2  ;;  %vm2626_vm6 = vcmp.eq.s32.totalorder %v8651_v27, 0  ;;  %v2311_v13 = vadd.s32 3, %v2307_v58 }
 0x27d   : > { %v6700_v59 = vpop.eup %6699  ;;  %v2292_v47 = vshrl.u32 %v2274_v15, %v2290_v63  ;;  %v2295_v28 = vadd.s32 127, %v2294_v49  ;;  %v2797_v43 = vsel %vm2795_vm4, %v2796_v26, %v8692_v6  ;;  %v2441_v41 = vsub.s32 32, %v2440_v33 }
 0x27e   : > { %v6702_v12 = vpop.eup %6701  ;;  %v2630_v32 = vxor.u32 2147483648, %v6700_v59  ;;  %v2798_v38 = vadd.s32 %v2797_v43, %v2793_v19  ;;  %v2433_v39 = vand.u32 8388607, %v2426_v23  ;;  %v401_v34 = vmul.f32 %v7003_v2, %v360_v42 }
 0x27f   : > { %v2627_v56 = vxor.u32 2147483648, %v6702_v12  ;;  %v2293_v51 = vor.u32 %v2292_v47, %v2291_v53  ;;  %v2296_v36 = vshll.u32 %v2295_v28, 23  ;;  %v2444_v29 = vshrl.u32 %v6923_v48, %v2441_v41 }
 0x280   : > { %v2631_v7 = vsel %vm2629_vm5, %v2630_v32, %v6702_v12  ;;  %v2799_v16 = vadd.s32 536870912, %v2798_v38  ;;  %v2447_v46 = vshrl.u32 %v6924_v50, %v2441_v41  ;;  %v2450_v37 = vshrl.u32 %v6925_v52, %v2441_v41 }
 0x281   : > { %v2628_v31 = vsel %vm2626_vm6, %v6700_v59, %v2627_v56  ;;  %v2297_v25 = vor.u32 4788187, %v2296_v36  ;;  %v2300_v57 = vcvt.s32.f32 %v2293_v51  ;;  %v2439_v5 = vshrl.u32 %v2438_v62, 5 }
 0x282   : > { %v2632_v21 = vsel %vm2625_vm2, %v2628_v31, %v2631_v7  ;;  %v8725_v10 = vshrl.u32 %v2799_v16, 30  ;;  %v2443_v30 = vshll.u32 %v6922_v44, %v2440_v33  ;;  %v2452_v27 = vshll.u32 %v6925_v52, %v2440_v33 }
 0x283   : > { %v2633_v35 = vsel %vm2622_vm1, nan, %v2632_v21  ;;  %v2298_v0 = vand.u32 2147483647, %v2297_v25  ;;  %v2453_v24 = vshrl.u32 %v6926_v54, %v2441_v41  ;;  %v2446_v60 = vshll.u32 %v6923_v48, %v2440_v33 }
 0x284   : > { %3856 = vrot.lane.b32.xlu0 %v2633_v35, %s6928_s21  ;;  %v2801_v22 = vshll.u32 %v8725_v10, 30  ;;  %v2449_v6 = vshll.u32 %v6924_v50, %v2440_v33  ;;  %v2445_v20 = vor.u32 %v2444_v29, %v2443_v30  ;;  %v2455_v3 = vshll.u32 %v6926_v54, %v2440_v33 }
 0x285   : > { %v2301_v9 = vmul.f32 %v2300_v57, %v2298_v0  ;;  %v2454_v55 = vor.u32 %v2453_v24, %v2452_v27  ;;  %v2456_v45 = vshrl.u32 %v6927_v61, %v2441_v41  ;;  %v2448_v49 = vor.u32 %v2447_v46, %v2446_v60 }
 0x286   : > { %v8737_v63 = vsub.s32 %v2798_v38, %v2801_v22  ;;  %v2451_v62 = vor.u32 %v2450_v37, %v2449_v6  ;;  %v8739_v58 = vand.u32 3, %v2311_v13  ;;  %v2434_v19 = vor.u32 8388608, %v2433_v39 }
 0x287   : > { %v2302_v15 = vxor.u32 2147483648, %v2301_v9  ;;  %v2457_v26 = vor.u32 %v2456_v45, %v2455_v3  ;;  %v8742_v59 = vadd.f32 %v7010_v8, %v401_v34  ;;  %v2442_v33 = vshrl.u32 %v6922_v44, %v2441_v41  ;;  %v357_v45 = vld [vmem:[%s7001_s20 + $0xa8] sm:$0xff] }
 0x288   : > { %v2804_v47 = vsub.s32 0, %v8737_v63  ;;  %vm2461_vm7 = vcmp.lt.s32.totalorder %v2439_v5, 4  ;;  %vm2458_vm8 = vcmp.lt.s32.totalorder %v2439_v5, 1  ;;  %vm2460_vm10 = vcmp.lt.s32.totalorder %v2439_v5, 3 }
 0x289   : > { %v2303_v53 = vsel %vm2220_vm9, %v2302_v15, %v2301_v9  ;;  %v2467_v12 = vsel %vm2461_vm7, %v2454_v55, 920167782  ;;  %v2463_v43 = vsel %vm2461_vm7, %v2451_v62, 2102212464  ;;  %v2466_v42 = vsel %vm2458_vm8, %v2445_v20, %v2448_v49 }
 0x28a   : > { %v2306_v28 = vsel %vm8678_vm12, %v8482_v14, %v2303_v53  ;;  %v5777_v32 = vmin.u32 %v2804_v47, %v8737_v63  ;;  %v2468_v56 = vsel %vm2460_vm10, %v2451_v62, %v2467_v12  ;;  %v2470_v51 = vsel %vm2458_vm8, %v2448_v49, %v2451_v62 }
 0x28b   : > { %6703 = vcosq.f32 %v2306_v28  ;;  %v2471_v36 = vsel %vm2461_vm7, %v2457_v26, 1326507024  ;;  %v2824_v41 = vsub.s32 4, %v8725_v10  ;;  %vm2459_vm9 = vcmp.lt.s32.totalorder %v2439_v5, 2 }
 0x28c   : > { %6705 = vsinq.f32 %v2306_v28  ;;  %v2806_v38 = vclz %v5777_v32  ;;  %v2474_v7 = vshll.u32 %v2434_v19, 8  ;;  %v2462_v11 = vsel %vm2458_vm8, %v2442_v33, %v2445_v20 }
 0x28d   : > { %v2464_v13 = vsel %vm2460_vm10, %v2448_v49, %v2463_v43  ;;  %v2469_v39 = vsel %vm2459_vm9, %v2466_v42, %v2468_v56  ;;  %v2472_v31 = vsel %vm2460_vm10, %v2454_v55, %v2471_v36  ;;  %vm2740_vm11 = vcmp.lt.s32.totalorder %v8572_v18, 0 }
 0x28e   : > { %v5778_v25 = vadd.s32 4294967294, %v2806_v38  ;;  %v2473_v16 = vsel %vm2459_vm9, %v2470_v51, %v2472_v31  ;;  %v8756_v34 = vmul.u32.u64.low %v2474_v7, %v2469_v39  ;;  %v8757_v21 = vmul.u32.u64.high %v2474_v7, %v2469_v39, %v8756_v34 }
 0x28f   : > { %v8760_v57 = vmul.u32.u64.low %v2474_v7, %v2473_v16  ;;  %v8761_v29 = vmul.u32.u64.high %v2474_v7, %v2473_v16, %v8760_v57  ;;  %v2946_v46 = vand.u32 2147483647, %v8742_v59  ;;  %vm8766_vm12 = vcmp.le.f32.partialorder %v2738_v1, 0.7853982 }
 0x290   : > { %vm5779_vm13 = vcmp.lt.s32.totalorder %v5778_v25, 0  ;;  %v2465_v0 = vsel %vm2459_vm9, %v2462_v11, %v2464_v13  ;;  %v2949_v37 = vand.u32 2139095040, %v8742_v59  ;;  %vm2310_vm0 = vweird.f32 %v8482_v14 }
 0x291   : > { %vm2313_vm14 = vcmp.lt.s32.totalorder %v8739_v58, 2  ;;  %vm2314_vm15 = vcmp.eq.s32.totalorder %v8739_v58, 0  ;;  %v2794_v5 = vadd.s32 %v8691_v4, %v8698_v40  ;;  %v2809_v30 = vsel %vm5779_vm13, 0, %v5778_v25 }
 0x292   : > { %v2810_v27 = vsub.s32 32, %v2809_v30  ;;  %v2814_v1 = vsub.s32 4294967266, %v2809_v30  ;;  %v2825_v24 = vsel %vm2740_vm11, %v2824_v41, %v8725_v10  ;;  %v2484_v9 = vadd.s32 1, %v8757_v21 }
 0x293   : > { %v2481_v22 = vmul.u32 %v2474_v7, %v2465_v0  ;;  %vm2483_vm1 = vc.u32 %v8761_v29, %v8756_v34  ;;  %v2950_v60 = vshrl.u32 %v2949_v37, 23  ;;  %v2953_v6 = vand.u32 8388607, %v2946_v46 }
 0x294   : > { %v2811_v55 = vshll.u32 %v8737_v63, %v2809_v30  ;;  %v2812_v4 = vshrl.u32 %v2794_v5, %v2810_v27  ;;  %v2815_v40 = vadd.s32 127, %v2814_v1  ;;  %v2485_v3 = vsel %vm2483_vm1, %v2484_v9, %v8757_v21 }
 0x295   : > { %v6704_v20 = vpop.eup %6703  ;;  %v2827_v10 = vsel %vm8766_vm12, 0, %v2825_v24  ;;  %v2486_v62 = vadd.s32 %v2485_v3, %v2481_v22  ;;  %v5784_v19 = vadd.s32 4294967169, %v2950_v60  ;;  %vm2317_vm2 = vcmp.eq.s32.totalorder %v8739_v58, 2 }
 0x296   : > { %v6706_v15 = vpop.eup %6705  ;;  %v2318_v49 = vxor.u32 2147483648, %v6704_v20  ;;  %v2813_v53 = vor.u32 %v2812_v4, %v2811_v55  ;;  %v2816_v47 = vshll.u32 %v2815_v40, 23  ;;  %v398_v12 = vmul.f32 %v7003_v2, %v357_v45 }
 0x297   : > { %v2315_v26 = vxor.u32 2147483648, %v6706_v15  ;;  %v2487_v28 = vadd.s32 536870912, %v2486_v62  ;;  %v2956_v63 = vadd.s32 1, %v5784_v19  ;;  %v2831_v42 = vadd.s32 3, %v2827_v10 }
 0x298   : > { %v2319_v33 = vsel %vm2317_vm2, %v2318_v49, %v6706_v15  ;;  %v2817_v43 = vor.u32 4788187, %v2816_v47  ;;  %v2954_v56 = vor.u32 8388608, %v2953_v6  ;;  %v8797_v38 = vadd.f32 %v7010_v8, %v398_v12 }
 0x299   : > { %v2316_v32 = vsel %vm2314_vm15, %v6704_v20, %v2315_v26  ;;  %v8794_v36 = vshrl.u32 %v2487_v28, 30  ;;  %vm2957_vm3 = vcmp.gt.s32.totalorder %v2956_v63, 0  ;;  %v2820_v11 = vcvt.s32.f32 %v2813_v53 }
 0x29a   : > { %v2320_v51 = vsel %vm2313_vm14, %v2316_v32, %v2319_v33  ;;  %v2818_v7 = vand.u32 2147483647, %v2817_v43  ;;  %v2958_v13 = vsel %vm2957_vm3, %v2956_v63, 0  ;;  %v8803_v58 = vand.u32 3, %v2831_v42 }
 0x29b   : > { %v2321_v41 = vsel %vm2310_vm0, nan, %v2320_v51  ;;  %v2489_v39 = vshll.u32 %v8794_v36, 30  ;;  %v2960_v31 = vand.u32 31, %v2958_v13  ;;  %v2482_v16 = vadd.s32 %v8756_v34, %v8761_v29 }
 0x29c   : > { %3850 = vrot.lane.b32.xlu1 %v2321_v41, %s6928_s21  ;;  %v2821_v25 = vmul.f32 %v2820_v11, %v2818_v7  ;;  %v8808_v37 = vshll.u32 %v2954_v56, 8  ;;  %v2634_v14 = vand.u32 2147483647, %v8797_v38  ;;  %v2637_v5 = vand.u32 2139095040, %v8797_v38 }
 0x29d   : > { %v8806_v21 = vsub.s32 %v2486_v62, %v2489_v39  ;;  %v2961_v57 = vsub.s32 32, %v2960_v31  ;;  %v2959_v27 = vshrl.u32 %v2958_v13, 5  ;;  %v2963_v1 = vshll.u32 %v6922_v44, %v2960_v31 }
 0x29e   : > { %v2822_v0 = vxor.u32 2147483648, %v2821_v25  ;;  %vm2428_vm4 = vcmp.lt.s32.totalorder %v8582_v17, 0  ;;  %v2966_v29 = vshll.u32 %v6923_v48, %v2960_v31  ;;  %v2969_v20 = vshll.u32 %v6924_v50, %v2960_v31 }
 0x29f   : > { %v2492_v30 = vsub.s32 0, %v8806_v21  ;;  %v2964_v24 = vshrl.u32 %v6923_v48, %v2961_v57  ;;  %v2967_v9 = vshrl.u32 %v6924_v50, %v2961_v57  ;;  %v2970_v22 = vshrl.u32 %v6925_v52, %v2961_v57 }
 0x2a0   : > { %v2823_v34 = vsel %vm2740_vm11, %v2822_v0, %v2821_v25  ;;  %v2972_v55 = vshll.u32 %v6925_v52, %v2960_v31  ;;  %v2973_v3 = vshrl.u32 %v6926_v54, %v2961_v57  ;;  %v2512_v15 = vsub.s32 4, %v8794_v36 }
 0x2a1   : > { %v2826_v60 = vsel %vm8766_vm12, %v8572_v18, %v2823_v34  ;;  %v5765_v6 = vmin.u32 %v2492_v30, %v8806_v21  ;;  %v2965_v4 = vor.u32 %v2964_v24, %v2963_v1  ;;  %v2968_v40 = vor.u32 %v2967_v9, %v2966_v29 }
 0x2a2   : > { %6707 = vcosq.f32 %v2826_v60  ;;  %v2971_v49 = vor.u32 %v2970_v22, %v2969_v20  ;;  %v2962_v10 = vshrl.u32 %v6922_v44, %v2961_v57  ;;  %v2974_v35 = vor.u32 %v2973_v3, %v2972_v55 }
 0x2a3   : > { %6709 = vsinq.f32 %v2826_v60  ;;  %v2494_v45 = vclz %v5765_v6  ;;  %v2975_v62 = vshll.u32 %v6926_v54, %v2960_v31  ;;  %v2976_v19 = vshrl.u32 %v6927_v61, %v2961_v57 }
 0x2a4   : > { %vm2978_vm5 = vcmp.lt.s32.totalorder %v2959_v27, 1  ;;  %vm2980_vm6 = vcmp.lt.s32.totalorder %v2959_v27, 3  ;;  %v2638_v53 = vshrl.u32 %v2637_v5, 23  ;;  %vm8834_vm7 = vcmp.le.f32.partialorder %v2426_v23, 0.7853982 }
 0x2a5   : > { %v5766_v26 = vadd.s32 4294967294, %v2494_v45  ;;  %v2977_v33 = vor.u32 %v2976_v19, %v2975_v62  ;;  %vm2981_vm8 = vcmp.lt.s32.totalorder %v2959_v27, 4  ;;  %v2982_v28 = vsel %vm2978_vm5, %v2962_v10, %v2965_v4 }
 0x2a6   : > { %v2986_v63 = vsel %vm2978_vm5, %v2965_v4, %v2968_v40  ;;  %v2983_v12 = vsel %vm2981_vm8, %v2971_v49, 2102212464  ;;  %v2987_v32 = vsel %vm2981_vm8, %v2974_v35, 920167782  ;;  %v2990_v43 = vsel %vm2978_vm5, %v2968_v40, %v2971_v49 }
 0x2a7   : > { %vm5767_vm10 = vcmp.lt.s32.totalorder %v5766_v26, 0  ;;  %vm2833_vm9 = vcmp.lt.s32.totalorder %v8803_v58, 2  ;;  %v2984_v56 = vsel %vm2980_vm6, %v2968_v40, %v2983_v12  ;;  %v2988_v51 = vsel %vm2980_vm6, %v2971_v49, %v2987_v32 }
 0x2a8   : > { %v2497_v42 = vsel %vm5767_vm10, 0, %v5766_v26  ;;  %v2991_v41 = vsel %vm2981_vm8, %v2977_v33, 1326507024  ;;  %vm2830_vm11 = vweird.f32 %v8572_v18  ;;  %v2513_v11 = vsel %vm2428_vm4, %v2512_v15, %v8794_v36 }
 0x2a9   : > { %v2498_v23 = vsub.s32 32, %v2497_v42  ;;  %v2502_v7 = vsub.s32 4294967266, %v2497_v42  ;;  %vm2979_vm12 = vcmp.lt.s32.totalorder %v2959_v27, 2  ;;  %v2499_v13 = vshll.u32 %v8806_v21, %v2497_v42 }
 0x2aa   : > { %v2989_v39 = vsel %vm2979_vm12, %v2986_v63, %v2988_v51  ;;  %v2992_v31 = vsel %vm2980_vm6, %v2974_v35, %v2991_v41  ;;  %v5772_v25 = vadd.s32 4294967169, %v2638_v53  ;;  %v2985_v5 = vsel %vm2979_vm12, %v2982_v28, %v2984_v56 }
 0x2ab   : > { %v2500_v57 = vshrl.u32 %v2482_v16, %v2498_v23  ;;  %v2503_v0 = vadd.s32 127, %v2502_v7  ;;  %v2993_v30 = vsel %vm2979_vm12, %v2990_v43, %v2992_v31  ;;  %vm2834_vm13 = vcmp.eq.s32.totalorder %v8803_v58, 0 }
 0x2ac   : > { %v6708_v1 = vpop.eup %6707  ;;  %v8848_v24 = vmul.u32.u64.low %v8808_v37, %v2993_v30  ;;  %v8849_v34 = vmul.u32.u64.high %v8808_v37, %v2993_v30, %v8848_v24  ;;  %v8852_v29 = vmul.u32.u64.low %v8808_v37, %v2989_v39  ;;  %v8853_v9 = vmul.u32.u64.high %v8808_v37, %v2989_v39, %v8852_v29 }
 0x2ad   : > { %v6710_v36 = vpop.eup %6709  ;;  %v2838_v21 = vxor.u32 2147483648, %v6708_v1  ;;  %v2501_v22 = vor.u32 %v2500_v57, %v2499_v13  ;;  %v2504_v27 = vshll.u32 %v2503_v0, 23  ;;  %v2644_v60 = vadd.s32 1, %v5772_v25 }
 0x2ae   : > { %v2835_v16 = vxor.u32 2147483648, %v6710_v36  ;;  %vm2837_vm0 = vcmp.eq.s32.totalorder %v8803_v58, 2  ;;  %v2641_v6 = vand.u32 8388607, %v2634_v14  ;;  %v2515_v4 = vsel %vm8834_vm7, 0, %v2513_v11  ;;  %v362_v11 = vld [vmem:[%s7001_s20 + $0xd0] sm:$0xff] }
 0x2af   : > { %v2839_v20 = vsel %vm2837_vm0, %v2838_v21, %v6710_v36  ;;  %v2505_v55 = vor.u32 4788187, %v2504_v27  ;;  %vm2645_vm14 = vcmp.gt.s32.totalorder %v2644_v60, 0  ;;  %v3001_v3 = vmul.u32 %v8808_v37, %v2985_v5 }
 0x2b0   : > { %v2836_v40 = vsel %vm2834_vm13, %v6708_v1, %v2835_v16  ;;  %vm3003_vm15 = vc.u32 %v8849_v34, %v8852_v29  ;;  %v3004_v45 = vadd.s32 1, %v8853_v9  ;;  %v2508_v10 = vcvt.s32.f32 %v2501_v22 }
 0x2b1   : > { %v2840_v15 = vsel %vm2833_vm9, %v2836_v40, %v2839_v20  ;;  %v2506_v49 = vand.u32 2147483647, %v2505_v55  ;;  %v2646_v35 = vsel %vm2645_vm14, %v2644_v60, 0  ;;  %v2519_v53 = vadd.s32 3, %v2515_v4 }
 0x2b2   : > { %v2841_v62 = vsel %vm2830_vm11, nan, %v2840_v15  ;;  %v3005_v19 = vsel %vm3003_vm15, %v3004_v45, %v8853_v9  ;;  %v2648_v26 = vand.u32 31, %v2646_v35  ;;  %v2642_v28 = vor.u32 8388608, %v2641_v6 }
 0x2b3   : > { %3860 = vrot.lane.b32.xlu0 %v2841_v62, %s6928_s21  ;;  %v2509_v37 = vmul.f32 %v2508_v10, %v2506_v49  ;;  %v3006_v33 = vadd.s32 %v3005_v19, %v3001_v3  ;;  %v2647_v63 = vshrl.u32 %v2646_v35, 5  ;;  %vm2948_vm1 = vcmp.lt.s32.totalorder %v8742_v59, 0  ;;  %v359_v3 = vld [vmem:[%s7001_s20 + $0xb8] sm:$0xff] }
 0x2b4   : > { %v2649_v12 = vsub.s32 32, %v2648_v26  ;;  %v2651_v58 = vshll.u32 %v6922_v44, %v2648_v26  ;;  %v2654_v32 = vshll.u32 %v6923_v48, %v2648_v26  ;;  %v2657_v18 = vshll.u32 %v6924_v50, %v2648_v26 }
 0x2b5   : > { %v2510_v43 = vxor.u32 2147483648, %v2509_v37  ;;  %v3007_v42 = vadd.s32 536870912, %v3006_v33  ;;  %v2660_v56 = vshll.u32 %v6925_v52, %v2648_v26  ;;  %v2663_v7 = vshll.u32 %v6926_v54, %v2648_v26 }
 0x2b6   : > { %v2652_v51 = vshrl.u32 %v6923_v48, %v2649_v12  ;;  %v2655_v41 = vshrl.u32 %v6924_v50, %v2649_v12  ;;  %v2658_v23 = vshrl.u32 %v6925_v52, %v2649_v12  ;;  %v2661_v31 = vshrl.u32 %v6926_v54, %v2649_v12 }
 0x2b7   : > { %v2511_v13 = vsel %vm2428_vm4, %v2510_v43, %v2509_v37  ;;  %v3008_v39 = vshrl.u32 %v3007_v42, 30  ;;  %v2664_v25 = vshrl.u32 %v6927_v61, %v2649_v12  ;;  %v403_v9 = vmul.f32 %v7003_v2, %v362_v11 }
 0x2b8   : > { %v2514_v57 = vsel %vm8834_vm7, %v8582_v17, %v2511_v13  ;;  %v2653_v0 = vor.u32 %v2652_v51, %v2651_v58  ;;  %v2656_v5 = vor.u32 %v2655_v41, %v2654_v32  ;;  %v2659_v30 = vor.u32 %v2658_v23, %v2657_v18 }
 0x2b9   : > { %6711 = vcosq.f32 %v2514_v57  ;;  %v3009_v1 = vshll.u32 %v3008_v39, 30  ;;  %v2662_v24 = vor.u32 %v2661_v31, %v2660_v56  ;;  %v2520_v36 = vand.u32 3, %v2519_v53 }
 0x2ba   : > { %6713 = vsinq.f32 %v2514_v57  ;;  %v2665_v21 = vor.u32 %v2664_v25, %v2663_v7  ;;  %v8890_v22 = vshll.u32 %v2642_v28, 8  ;;  %vm2666_vm2 = vcmp.lt.s32.totalorder %v2647_v63, 1 }
 0x2bb   : > { %v8892_v27 = vsub.s32 %v3006_v33, %v3009_v1  ;;  %vm2669_vm3 = vcmp.lt.s32.totalorder %v2647_v63, 4  ;;  %v8895_v47 = vadd.f32 %v7010_v8, %v403_v9  ;;  %vm8899_vm4 = vcmp.le.f32.partialorder %v2946_v46, 0.7853982 }
 0x2bc   : > { %v3032_v16 = vsub.s32 4, %v3008_v39  ;;  %v2650_v6 = vshrl.u32 %v6922_v44, %v2649_v12  ;;  %v2671_v20 = vsel %vm2669_vm3, %v2659_v30, 2102212464  ;;  %v2674_v55 = vsel %vm2666_vm2, %v2653_v0, %v2656_v5 }
 0x2bd   : > { %v3012_v4 = vsub.s32 0, %v8892_v27  ;;  %vm2667_vm5 = vcmp.lt.s32.totalorder %v2647_v63, 2  ;;  %vm2668_vm6 = vcmp.lt.s32.totalorder %v2647_v63, 3  ;;  %v2675_v40 = vsel %vm2669_vm3, %v2662_v24, 920167782 }
 0x2be   : > { %v2670_v45 = vsel %vm2666_vm2, %v2650_v6, %v2653_v0  ;;  %v2676_v15 = vsel %vm2668_vm6, %v2659_v30, %v2675_v40  ;;  %v2678_v49 = vsel %vm2666_vm2, %v2656_v5, %v2659_v30  ;;  %v2679_v10 = vsel %vm2669_vm3, %v2665_v21, 1326507024 }
 0x2bf   : > { %v5785_v46 = vmin.u32 %v3012_v4, %v8892_v27  ;;  %v2672_v35 = vsel %vm2668_vm6, %v2656_v5, %v2671_v20  ;;  %v2677_v62 = vsel %vm2667_vm5, %v2674_v55, %v2676_v15  ;;  %v2680_v19 = vsel %vm2668_vm6, %v2662_v24, %v2679_v10 }
 0x2c0   : > { %vm2518_vm7 = vweird.f32 %v8582_v17  ;;  %v2681_v26 = vsel %vm2667_vm5, %v2678_v49, %v2680_v19  ;;  %v8911_v37 = vmul.u32.u64.low %v8890_v22, %v2677_v62  ;;  %v8912_v53 = vmul.u32.u64.high %v8890_v22, %v2677_v62, %v8911_v37 }
 0x2c1   : > { %v400_v33 = vmul.f32 %v7003_v2, %v359_v3  ;;  %vm2521_vm8 = vcmp.lt.s32.totalorder %v2520_v36, 2  ;;  %v3014_v28 = vclz %v5785_v46  ;;  %v3033_v12 = vsel %vm2948_vm1, %v3032_v16, %v3008_v39 }
 0x2c2   : > { %v3154_v58 = vand.u32 2147483647, %v8895_v47  ;;  %v2673_v32 = vsel %vm2667_vm5, %v2670_v45, %v2672_v35  ;;  %v8920_v43 = vmul.u32.u64.low %v8890_v22, %v2681_v26  ;;  %v8921_v42 = vmul.u32.u64.high %v8890_v22, %v2681_v26, %v8920_v43 }
 0x2c3   : > { %v3157_v18 = vand.u32 2139095040, %v8895_v47  ;;  %v6712_v56 = vpop.eup %6711  ;;  %vm2522_vm10 = vcmp.eq.s32.totalorder %v2520_v36, 0  ;;  %vm2525_vm9 = vcmp.eq.s32.totalorder %v2520_v36, 2  ;;  %v5786_v51 = vadd.s32 4294967294, %v3014_v28  ;;  %v364_v36 = vld [vmem:[%s7001_s20 + $0xe0] sm:$0xff] }
 0x2c4   : > { %v8925_v41 = vadd.f32 %v7010_v8, %v400_v33  ;;  %v6714_v23 = vpop.eup %6713  ;;  %v2526_v7 = vxor.u32 2147483648, %v6712_v56  ;;  %v3002_v11 = vadd.s32 %v8852_v29, %v8849_v34  ;;  %v2692_v63 = vadd.s32 1, %v8912_v53 }
 0x2c5   : > { %v3158_v13 = vshrl.u32 %v3157_v18, 23  ;;  %v2523_v39 = vxor.u32 2147483648, %v6714_v23  ;;  %vm5787_vm11 = vcmp.lt.s32.totalorder %v5786_v51, 0  ;;  %v3035_v31 = vsel %vm8899_vm4, 0, %v3033_v12 }
 0x2c6   : > { %v2689_v25 = vmul.u32 %v8890_v22, %v2673_v32  ;;  %v2527_v57 = vsel %vm2525_vm9, %v2526_v7, %v6714_v23  ;;  %v3017_v0 = vsel %vm5787_vm11, 0, %v5786_v51  ;;  %vm2691_vm12 = vc.u32 %v8921_v42, %v8911_v37 }
 0x2c7   : > { %v3161_v5 = vand.u32 8388607, %v3154_v58  ;;  %v2524_v30 = vsel %vm2522_vm10, %v6712_v56, %v2523_v39  ;;  %v3018_v34 = vsub.s32 32, %v3017_v0  ;;  %v3022_v29 = vsub.s32 4294967266, %v3017_v0 }
 0x2c8   : > { %v2845_v1 = vand.u32 2139095040, %v8925_v41  ;;  %v2528_v24 = vsel %vm2521_vm8, %v2524_v30, %v2527_v57  ;;  %v3019_v9 = vshll.u32 %v8892_v27, %v3017_v0  ;;  %v2693_v21 = vsel %vm2691_vm12, %v2692_v63, %v8912_v53 }
 0x2c9   : > { %v5792_v22 = vadd.s32 4294967169, %v3158_v13  ;;  %v2529_v16 = vsel %vm2518_vm7, nan, %v2528_v24  ;;  %v3020_v6 = vshrl.u32 %v3002_v11, %v3018_v34  ;;  %v3023_v20 = vadd.s32 127, %v3022_v29 }
 0x2ca   : > { %v2694_v55 = vadd.s32 %v2693_v21, %v2689_v25  ;;  %3854 = vrot.lane.b32.xlu1 %v2529_v16, %s6928_s21  ;;  %v3039_v45 = vadd.s32 3, %v3035_v31  ;;  %v3162_v49 = vor.u32 8388608, %v3161_v5  ;;  %v2846_v35 = vshrl.u32 %v2845_v1, 23 }
 0x2cb   : > { %v3164_v4 = vadd.s32 1, %v5792_v22  ;;  %v3021_v40 = vor.u32 %v3020_v6, %v3019_v9  ;;  %v3024_v3 = vshll.u32 %v3023_v20, 23  ;;  %v8946_v17 = vmul.f32 %v7003_v2, %v364_v36 }
 0x2cc   : > { %v2695_v15 = vadd.s32 536870912, %v2694_v55  ;;  %v8948_v53 = vand.u32 3, %v3039_v45  ;;  %vm2636_vm0 = vcmp.lt.s32.totalorder %v8797_v38, 0  ;;  %v2690_v28 = vadd.s32 %v8911_v37, %v8921_v42 }
 0x2cd   : > { %vm3165_vm13 = vcmp.gt.s32.totalorder %v3164_v4, 0  ;;  %v3025_v27 = vor.u32 4788187, %v3024_v3  ;;  %v3028_v26 = vcvt.s32.f32 %v3021_v40  ;;  %v8952_v32 = vshll.u32 %v3162_v49, 8 }
 0x2ce   : > { %v2696_v10 = vshrl.u32 %v2695_v15, 30  ;;  %v3166_v46 = vsel %vm3165_vm13, %v3164_v4, 0  ;;  %v2842_v43 = vand.u32 2147483647, %v8925_v41  ;;  %v5780_v23 = vadd.s32 4294967169, %v2846_v35 }
 0x2cf   : > { %v3168_v62 = vand.u32 31, %v3166_v46  ;;  %v3026_v19 = vand.u32 2147483647, %v3025_v27  ;;  %v3167_v51 = vshrl.u32 %v3166_v46, 5  ;;  %vm8981_vm14 = vcmp.le.f32.partialorder %v2634_v14, 0.7853982 }
 0x2d0   : > { %v2697_v33 = vshll.u32 %v2696_v10, 30  ;;  %v2720_v7 = vsub.s32 4, %v2696_v10  ;;  %v2849_v6 = vand.u32 8388607, %v2842_v43  ;;  %v2852_v20 = vadd.s32 1, %v5780_v23 }
 0x2d1   : > { %v3169_v12 = vsub.s32 32, %v3168_v62  ;;  %v3029_v18 = vmul.f32 %v3028_v26, %v3026_v19  ;;  %v3171_v11 = vshll.u32 %v6922_v44, %v3168_v62  ;;  %v3174_v42 = vshll.u32 %v6923_v48, %v3168_v62 }
 0x2d2   : > { %v8955_v56 = vsub.s32 %v2694_v55, %v2697_v33  ;;  %v3177_v57 = vshll.u32 %v6924_v50, %v3168_v62  ;;  %v3180_v0 = vshll.u32 %v6925_v52, %v3168_v62  ;;  %v3183_v1 = vshll.u32 %v6926_v54, %v3168_v62 }
 0x2d3   : > { %v3172_v63 = vshrl.u32 %v6923_v48, %v3169_v12  ;;  %v3175_v13 = vshrl.u32 %v6924_v50, %v3169_v12  ;;  %v3030_v39 = vxor.u32 2147483648, %v3029_v18  ;;  %v3178_v31 = vshrl.u32 %v6925_v52, %v3169_v12 }
 0x2d4   : > { %v2700_v37 = vsub.s32 0, %v8955_v56  ;;  %v3181_v5 = vshrl.u32 %v6926_v54, %v3169_v12  ;;  %v3184_v22 = vshrl.u32 %v6927_v61, %v3169_v12  ;;  %v2721_v55 = vsel %vm2636_vm0, %v2720_v7, %v2696_v10 }
 0x2d5   : > { %v3173_v25 = vor.u32 %v3172_v63, %v3171_v11  ;;  %v3031_v30 = vsel %vm2948_vm1, %v3030_v39, %v3029_v18  ;;  %v3176_v29 = vor.u32 %v3175_v13, %v3174_v42  ;;  %v3179_v9 = vor.u32 %v3178_v31, %v3177_v57 }
 0x2d6   : > { %v5773_v34 = vmin.u32 %v2700_v37, %v8955_v56  ;;  %v3034_v24 = vsel %vm8899_vm4, %v8742_v59, %v3031_v30  ;;  %v3182_v21 = vor.u32 %v3181_v5, %v3180_v0  ;;  %v3170_v4 = vshrl.u32 %v6922_v44, %v3169_v12 }
 0x2d7   : > { %6715 = vcosq.f32 %v3034_v24  ;;  %v3185_v40 = vor.u32 %v3184_v22, %v3183_v1  ;;  %vm3186_vm15 = vcmp.lt.s32.totalorder %v3167_v51, 1  ;;  %vm3188_vm1 = vcmp.lt.s32.totalorder %v3167_v51, 3 }
 0x2d8   : > { %v2702_v16 = vclz %v5773_v34  ;;  %6717 = vsinq.f32 %v3034_v24  ;;  %vm3189_vm2 = vcmp.lt.s32.totalorder %v3167_v51, 4  ;;  %v3194_v15 = vsel %vm3186_vm15, %v3173_v25, %v3176_v29 }
 0x2d9   : > { %v3191_v45 = vsel %vm3189_vm2, %v3179_v9, 2102212464  ;;  %v3195_v36 = vsel %vm3189_vm2, %v3182_v21, 920167782  ;;  %v3198_v49 = vsel %vm3186_vm15, %v3176_v29, %v3179_v9  ;;  %vm3187_vm4 = vcmp.lt.s32.totalorder %v3167_v51, 2 }
 0x2da   : > { %v5774_v3 = vadd.s32 4294967294, %v2702_v16  ;;  %v3196_v27 = vsel %vm3188_vm1, %v3179_v9, %v3195_v36  ;;  %v3199_v10 = vsel %vm3189_vm2, %v3185_v40, 1326507024  ;;  %v3190_v35 = vsel %vm3186_vm15, %v3170_v4, %v3173_v25 }
 0x2db   : > { %v3197_v14 = vsel %vm3187_vm4, %v3194_v15, %v3196_v27  ;;  %v3200_v62 = vsel %vm3188_vm1, %v3182_v21, %v3199_v10  ;;  %vm3041_vm5 = vcmp.lt.s32.totalorder %v8948_v53, 2  ;;  %v3192_v33 = vsel %vm3188_vm1, %v3176_v29, %v3191_v45 }
 0x2dc   : > { %vm5775_vm3 = vcmp.lt.s32.totalorder %v5774_v3, 0  ;;  %v3201_v12 = vsel %vm3187_vm4, %v3198_v49, %v3200_v62  ;;  %vm3038_vm6 = vweird.f32 %v8742_v59  ;;  %vm2853_vm7 = vcmp.gt.s32.totalorder %v2852_v20, 0 }
 0x2dd   : > { %v2705_v46 = vsel %vm5775_vm3, 0, %v5774_v3  ;;  %v8993_v18 = vmul.u32.u64.low %v8952_v32, %v3201_v12  ;;  %v8994_v23 = vmul.u32.u64.high %v8952_v32, %v3201_v12, %v8993_v18  ;;  %vm3042_vm8 = vcmp.eq.s32.totalorder %v8948_v53, 0 }
 0x2de   : > { %v2706_v19 = vsub.s32 32, %v2705_v46  ;;  %v2710_v26 = vsub.s32 4294967266, %v2705_v46  ;;  %v8997_v7 = vmul.u32.u64.low %v8952_v32, %v3197_v14  ;;  %v8998_v11 = vmul.u32.u64.high %v8952_v32, %v3197_v14, %v8997_v7 }
 0x2df   : > { %v2707_v63 = vshll.u32 %v8955_v56, %v2705_v46  ;;  %v3193_v37 = vsel %vm3187_vm4, %v3190_v35, %v3192_v33  ;;  %v2850_v42 = vor.u32 8388608, %v2849_v6  ;;  %v2854_v31 = vsel %vm2853_vm7, %v2852_v20, 0 }
 0x2e0   : > { %v2708_v13 = vshrl.u32 %v2690_v28, %v2706_v19  ;;  %v2711_v39 = vadd.s32 127, %v2710_v26  ;;  %vm3045_vm10 = vcmp.eq.s32.totalorder %v8948_v53, 2  ;;  %v2856_v5 = vand.u32 31, %v2854_v31 }
 0x2e1   : > { %v6716_v25 = vpop.eup %6715  ;;  %v2723_v56 = vsel %vm8981_vm14, 0, %v2721_v55  ;;  %vm3211_vm9 = vc.u32 %v8994_v23, %v8997_v7  ;;  %v3212_v28 = vadd.s32 1, %v8998_v11  ;;  %v3209_v1 = vmul.u32 %v8952_v32, %v3193_v37 }
 0x2e2   : > { %v2709_v57 = vor.u32 %v2708_v13, %v2707_v63  ;;  %v2712_v0 = vshll.u32 %v2711_v39, 23  ;;  %v6718_v30 = vpop.eup %6717  ;;  %v3046_v34 = vxor.u32 2147483648, %v6716_v25  ;;  %v2857_v24 = vsub.s32 32, %v2856_v5 }
 0x2e3   : > { %v3043_v51 = vxor.u32 2147483648, %v6718_v30  ;;  %v3213_v21 = vsel %vm3211_vm9, %v3212_v28, %v8998_v11  ;;  %v9012_v22 = vshll.u32 %v2850_v42, 8  ;;  %v9016_v16 = vadd.f32 %v7010_v8, %v8946_v17 }
 0x2e4   : > { %v2713_v29 = vor.u32 4788187, %v2712_v0  ;;  %v3047_v9 = vsel %vm3045_vm10, %v3046_v34, %v6718_v30  ;;  %v2716_v55 = vcvt.s32.f32 %v2709_v57  ;;  %v3214_v4 = vadd.s32 %v3213_v21, %v3209_v1 }
 0x2e5   : > { %v3044_v6 = vsel %vm3042_vm8, %v6716_v25, %v3043_v51  ;;  %v2727_v32 = vadd.s32 3, %v2723_v56  ;;  %v2860_v3 = vshrl.u32 %v6923_v48, %v2857_v24  ;;  %v2863_v45 = vshrl.u32 %v6924_v50, %v2857_v24 }
 0x2e6   : > { %v2714_v20 = vand.u32 2147483647, %v2713_v29  ;;  %v3048_v40 = vsel %vm3041_vm5, %v3044_v6, %v3047_v9  ;;  %v3215_v17 = vadd.s32 536870912, %v3214_v4  ;;  %v2855_v49 = vshrl.u32 %v2854_v31, 5 }
 0x2e7   : > { %v3049_v15 = vsel %vm3038_vm6, nan, %v3048_v40  ;;  %vm3156_vm11 = vcmp.lt.s32.totalorder %v8895_v47, 0  ;;  %v2859_v27 = vshll.u32 %v6922_v44, %v2856_v5  ;;  %v2862_v53 = vshll.u32 %v6923_v48, %v2856_v5 }
 0x2e8   : > { %v2717_v36 = vmul.f32 %v2716_v55, %v2714_v20  ;;  %3864 = vrot.lane.b32.xlu0 %v3049_v15, %s6928_s21  ;;  %v2866_v10 = vshrl.u32 %v6925_v52, %v2857_v24  ;;  %v2869_v46 = vshrl.u32 %v6926_v54, %v2857_v24  ;;  %v3216_v14 = vshrl.u32 %v3215_v17, 30 }
 0x2e9   : > { %v2865_v59 = vshll.u32 %v6924_v50, %v2856_v5  ;;  %v2868_v62 = vshll.u32 %v6925_v52, %v2856_v5  ;;  %v2861_v19 = vor.u32 %v2860_v3, %v2859_v27  ;;  %v2864_v26 = vor.u32 %v2863_v45, %v2862_v53 }
 0x2ea   : > { %v2718_v35 = vxor.u32 2147483648, %v2717_v36  ;;  %v2871_v33 = vshll.u32 %v6926_v54, %v2856_v5  ;;  %v2872_v12 = vshrl.u32 %v6927_v61, %v2857_v24  ;;  %v9038_v11 = vand.u32 3, %v2727_v32 }
 0x2eb   : > { %v3217_v63 = vshll.u32 %v3216_v14, 30  ;;  %v2870_v13 = vor.u32 %v2869_v46, %v2868_v62  ;;  %v2867_v37 = vor.u32 %v2866_v10, %v2865_v59  ;;  %v3365_v31 = vand.u32 2139095040, %v9016_v16 }
 0x2ec   : > { %v2719_v18 = vsel %vm2636_vm0, %v2718_v35, %v2717_v36  ;;  %v2873_v42 = vor.u32 %v2872_v12, %v2871_v33  ;;  %v3240_v57 = vsub.s32 4, %v3216_v14  ;;  %vm2874_vm12 = vcmp.lt.s32.totalorder %v2855_v49, 1 }
 0x2ed   : > { %v2722_v39 = vsel %vm8981_vm14, %v8797_v38, %v2719_v18  ;;  %v9044_v25 = vsub.s32 %v3214_v4, %v3217_v63  ;;  %v2858_v0 = vshrl.u32 %v6922_v44, %v2857_v24  ;;  %vm2877_vm13 = vcmp.lt.s32.totalorder %v2855_v49, 4  ;;  %v361_v4 = vld [vmem:[%s7001_s20 + $0xc8] sm:$0xff] }
 0x2ee   : > { %6719 = vcosq.f32 %v2722_v39  ;;  %v2882_v5 = vsel %vm2874_vm12, %v2861_v19, %v2864_v26  ;;  %vm2875_vm0 = vcmp.lt.s32.totalorder %v2855_v49, 2  ;;  %vm2876_vm14 = vcmp.lt.s32.totalorder %v2855_v49, 3 }
 0x2ef   : > { %6721 = vsinq.f32 %v2722_v39  ;;  %v3220_v30 = vsub.s32 0, %v9044_v25  ;;  %v2883_v60 = vsel %vm2877_vm13, %v2870_v13, 920167782  ;;  %v2879_v34 = vsel %vm2877_vm13, %v2867_v37, 2102212464 }
 0x2f0   : > { %v2884_v56 = vsel %vm2876_vm14, %v2867_v37, %v2883_v60  ;;  %v2886_v28 = vsel %vm2874_vm12, %v2864_v26, %v2867_v37  ;;  %v2887_v51 = vsel %vm2877_vm13, %v2873_v42, 1326507024  ;;  %v3241_v1 = vsel %vm3156_vm11, %v3240_v57, %v3216_v14 }
 0x2f1   : > { %v5793_v29 = vmin.u32 %v3220_v30, %v9044_v25  ;;  %v2885_v24 = vsel %vm2875_vm0, %v2882_v5, %v2884_v56  ;;  %v2888_v9 = vsel %vm2876_vm14, %v2870_v13, %v2887_v51  ;;  %v3366_v55 = vshrl.u32 %v3365_v31, 23 }
 0x2f2   : > { %v2889_v21 = vsel %vm2875_vm0, %v2886_v28, %v2888_v9  ;;  %v9058_v6 = vmul.u32.u64.low %v9012_v22, %v2885_v24  ;;  %v9059_v20 = vmul.u32.u64.high %v9012_v22, %v2885_v24, %v9058_v6  ;;  %v2878_v32 = vsel %vm2874_vm12, %v2858_v0, %v2861_v19 }
 0x2f3   : > { %v3222_v40 = vclz %v5793_v29  ;;  %v2880_v3 = vsel %vm2876_vm14, %v2864_v26, %v2879_v34  ;;  %vm2726_vm15 = vweird.f32 %v8797_v38  ;;  %vm9068_vm1 = vcmp.le.f32.partialorder %v3154_v58, 0.7853982 }
 0x2f4   : > { %v9073_v15 = vmul.u32.u64.low %v9012_v22, %v2889_v21  ;;  %v9074_v36 = vmul.u32.u64.high %v9012_v22, %v2889_v21, %v9073_v15  ;;  %v5800_v17 = vadd.s32 4294967169, %v3366_v55  ;;  %v3243_v53 = vsel %vm9068_vm1, 0, %v3241_v1 }
 0x2f5   : > { %v5794_v27 = vadd.s32 4294967294, %v3222_v40  ;;  %v3362_v10 = vand.u32 2147483647, %v9016_v16  ;;  %v402_v46 = vmul.f32 %v7003_v2, %v361_v4  ;;  %vm2729_vm2 = vcmp.lt.s32.totalorder %v9038_v11, 2 }
 0x2f6   : > { %v2881_v58 = vsel %vm2875_vm0, %v2878_v32, %v2880_v3  ;;  %v2900_v35 = vadd.s32 1, %v9059_v20  ;;  %v3372_v14 = vadd.s32 1, %v5800_v17  ;;  %vm2730_vm3 = vcmp.eq.s32.totalorder %v9038_v11, 0 }
 0x2f7   : > { %vm2733_vm4 = vcmp.eq.s32.totalorder %v9038_v11, 2  ;;  %v3210_v62 = vadd.s32 %v8997_v7, %v8994_v23  ;;  %vm5795_vm5 = vcmp.lt.s32.totalorder %v5794_v27, 0  ;;  %v3247_v12 = vadd.s32 3, %v3243_v53 }
 0x2f8   : > { %v6720_v59 = vpop.eup %6719  ;;  %v3225_v33 = vsel %vm5795_vm5, 0, %v5794_v27  ;;  %vm2899_vm6 = vc.u32 %v9074_v36, %v9058_v6  ;;  %v2897_v13 = vmul.u32 %v9012_v22, %v2881_v58  ;;  %vm3373_vm7 = vcmp.gt.s32.totalorder %v3372_v14, 0 }
 0x2f9   : > { %v6722_v19 = vpop.eup %6721  ;;  %v2734_v26 = vxor.u32 2147483648, %v6720_v59  ;;  %v3226_v18 = vsub.s32 32, %v3225_v33  ;;  %v3230_v63 = vsub.s32 4294967266, %v3225_v33  ;;  %v3227_v37 = vshll.u32 %v9044_v25, %v3225_v33 }
 0x2fa   : > { %v2731_v49 = vxor.u32 2147483648, %v6722_v19  ;;  %v2901_v42 = vsel %vm2899_vm6, %v2900_v35, %v9059_v20  ;;  %v3369_v5 = vand.u32 8388607, %v3362_v10  ;;  %v3374_v30 = vsel %vm3373_vm7, %v3372_v14, 0 }
 0x2fb   : > { %v2735_v39 = vsel %vm2733_vm4, %v2734_v26, %v6722_v19  ;;  %v3228_v7 = vshrl.u32 %v3210_v62, %v3226_v18  ;;  %v3231_v31 = vadd.s32 127, %v3230_v63  ;;  %v2902_v57 = vadd.s32 %v2901_v42, %v2897_v13 }
 0x2fc   : > { %v2732_v23 = vsel %vm2730_vm3, %v6720_v59, %v2731_v49  ;;  %v9099_v22 = vadd.f32 %v7010_v8, %v402_v46  ;;  %v3376_v28 = vand.u32 31, %v3374_v30  ;;  %v9106_v11 = vand.u32 3, %v3247_v12 }
 0x2fd   : > { %v2736_v0 = vsel %vm2729_vm2, %v2732_v23, %v2735_v39  ;;  %v3229_v60 = vor.u32 %v3228_v7, %v3227_v37  ;;  %v3232_v34 = vshll.u32 %v3231_v31, 23  ;;  %v2903_v56 = vadd.s32 536870912, %v2902_v57 }
 0x2fe   : > { %v2737_v25 = vsel %vm2726_vm15, nan, %v2736_v0  ;;  %v3377_v1 = vsub.s32 32, %v3376_v28  ;;  %v3053_v24 = vand.u32 2139095040, %v9099_v22  ;;  %v3370_v38 = vor.u32 8388608, %v3369_v5 }
 0x2ff   : > { %3858 = vrot.lane.b32.xlu1 %v2737_v25, %s6928_s21  ;;  %v3233_v51 = vor.u32 4788187, %v3232_v34  ;;  %v9104_v29 = vshrl.u32 %v2903_v56, 30  ;;  %v3236_v21 = vcvt.s32.f32 %v3229_v60  ;;  %v3050_v32 = vand.u32 2147483647, %v9099_v22 }
 0x300   : > { %v3380_v55 = vshrl.u32 %v6923_v48, %v3377_v1  ;;  %v3383_v4 = vshrl.u32 %v6924_v50, %v3377_v1  ;;  %v3386_v40 = vshrl.u32 %v6925_v52, %v3377_v1  ;;  %v3379_v17 = vshll.u32 %v6922_v44, %v3376_v28 }
 0x301   : > { %v3234_v9 = vand.u32 2147483647, %v3233_v51  ;;  %v2905_v20 = vshll.u32 %v9104_v29, 30  ;;  %v3389_v27 = vshrl.u32 %v6926_v54, %v3377_v1  ;;  %v3375_v53 = vshrl.u32 %v3374_v30, 5 }
 0x302   : > { %v3382_v46 = vshll.u32 %v6923_v48, %v3376_v28  ;;  %v3385_v58 = vshll.u32 %v6924_v50, %v3376_v28  ;;  %v3054_v35 = vshrl.u32 %v3053_v24, 23  ;;  %v3381_v62 = vor.u32 %v3380_v55, %v3379_v17 }
 0x303   : > { %v3237_v3 = vmul.f32 %v3236_v21, %v3234_v9  ;;  %v9114_v15 = vsub.s32 %v2902_v57, %v2905_v20  ;;  %v3388_v19 = vshll.u32 %v6925_v52, %v3376_v28  ;;  %v3391_v12 = vshll.u32 %v6926_v54, %v3376_v28 }
 0x304   : > { %v3384_v26 = vor.u32 %v3383_v4, %v3382_v46  ;;  %v3387_v33 = vor.u32 %v3386_v40, %v3385_v58  ;;  %v3392_v49 = vshrl.u32 %v6927_v61, %v3377_v1  ;;  %vm2844_vm8 = vcmp.lt.s32.totalorder %v8925_v41, 0 }
 0x305   : > { %v3238_v14 = vxor.u32 2147483648, %v3237_v3  ;;  %v2908_v59 = vsub.s32 0, %v9114_v15  ;;  %v3390_v13 = vor.u32 %v3389_v27, %v3388_v19  ;;  %v9128_v39 = vshll.u32 %v3370_v38, 8 }
 0x306   : > { %v2928_v42 = vsub.s32 4, %v9104_v29  ;;  %v3393_v23 = vor.u32 %v3392_v49, %v3391_v12  ;;  %v5788_v7 = vadd.s32 4294967169, %v3054_v35  ;;  %vm3394_vm10 = vcmp.lt.s32.totalorder %v3375_v53, 1 }
 0x307   : > { %v3239_v18 = vsel %vm3156_vm11, %v3238_v14, %v3237_v3  ;;  %v5781_v63 = vmin.u32 %v2908_v59, %v9114_v15  ;;  %vm3397_vm9 = vcmp.lt.s32.totalorder %v3375_v53, 4  ;;  %v3378_v57 = vshrl.u32 %v6922_v44, %v3377_v1 }
 0x308   : > { %v3242_v37 = vsel %vm9068_vm1, %v8895_v47, %v3239_v18  ;;  %v3399_v0 = vsel %vm3397_vm9, %v3387_v33, 2102212464  ;;  %v3402_v5 = vsel %vm3394_vm10, %v3381_v62, %v3384_v26  ;;  %vm9137_vm11 = vcmp.le.f32.partialorder %v2842_v43, 0.7853982 }
 0x309   : > { %6723 = vcosq.f32 %v3242_v37  ;;  %v2910_v31 = vclz %v5781_v63  ;;  %vm3396_vm12 = vcmp.lt.s32.totalorder %v3375_v53, 3  ;;  %v3403_v25 = vsel %vm3397_vm9, %v3390_v13, 920167782 }
 0x30a   : > { %6725 = vsinq.f32 %v3242_v37  ;;  %v3406_v60 = vsel %vm3394_vm10, %v3384_v26, %v3387_v33  ;;  %vm3395_vm13 = vcmp.lt.s32.totalorder %v3375_v53, 2  ;;  %v3398_v34 = vsel %vm3394_vm10, %v3378_v57, %v3381_v62 }
 0x30b   : > { %v5782_v45 = vadd.s32 4294967294, %v2910_v31  ;;  %v3404_v56 = vsel %vm3396_vm12, %v3387_v33, %v3403_v25  ;;  %v3407_v28 = vsel %vm3397_vm9, %v3393_v23, 1326507024  ;;  %v3400_v51 = vsel %vm3396_vm12, %v3384_v26, %v3399_v0  ;;  %v363_v33 = vld [vmem:[%s7001_s20 + $0xd8] sm:$0xff] }
 0x30c   : > { %v3405_v1 = vsel %vm3395_vm13, %v3402_v5, %v3404_v56  ;;  %v3408_v24 = vsel %vm3396_vm12, %v3390_v13, %v3407_v28  ;;  %vm3249_vm14 = vcmp.lt.s32.totalorder %v9106_v11, 2  ;;  %v2898_v38 = vadd.s32 %v9058_v6, %v9074_v36 }
 0x30d   : > { %vm5783_vm0 = vcmp.lt.s32.totalorder %v5782_v45, 0  ;;  %v3409_v21 = vsel %vm3395_vm13, %v3406_v60, %v3408_v24  ;;  %v9144_v43 = vmul.u32.u64.low %v9128_v39, %v3405_v1  ;;  %v9145_v20 = vmul.u32.u64.high %v9128_v39, %v3405_v1, %v9144_v43 }
 0x30e   : > { %v2913_v9 = vsel %vm5783_vm0, 0, %v5782_v45  ;;  %v3060_v40 = vadd.s32 1, %v5788_v7  ;;  %vm3246_vm15 = vweird.f32 %v8895_v47  ;;  %v2929_v3 = vsel %vm2844_vm8, %v2928_v42, %v9104_v29  ;;  %v366_v29 = vld [vmem:[%s7001_s20 + $0xf0] sm:$0xff] }
 0x30f   : > { %v2914_v55 = vsub.s32 32, %v2913_v9  ;;  %v2918_v4 = vsub.s32 4294967266, %v2913_v9  ;;  %v3401_v17 = vsel %vm3395_vm13, %v3398_v34, %v3400_v51  ;;  %v2915_v58 = vshll.u32 %v9114_v15, %v2913_v9 }
 0x310   : > { %v9157_v27 = vmul.u32.u64.low %v9128_v39, %v3409_v21  ;;  %v9158_v46 = vmul.u32.u64.high %v9128_v39, %v3409_v21, %v9157_v27  ;;  %vm3061_vm1 = vcmp.gt.s32.totalorder %v3060_v40, 0  ;;  %vm3250_vm2 = vcmp.eq.s32.totalorder %v9106_v11, 0 }
 0x311   : > { %v2916_v6 = vshrl.u32 %v2898_v38, %v2914_v55  ;;  %v2919_v36 = vadd.s32 127, %v2918_v4  ;;  %vm3253_vm3 = vcmp.eq.s32.totalorder %v9106_v11, 2  ;;  %v3420_v35 = vadd.s32 1, %v9145_v20 }
 0x312   : > { %v3062_v14 = vsel %vm3061_vm1, %v3060_v40, 0  ;;  %v3057_v19 = vand.u32 8388607, %v3050_v32  ;;  %v2931_v49 = vsel %vm9137_vm11, 0, %v2929_v3  ;;  %v3417_v18 = vmul.u32 %v9128_v39, %v3401_v17 }
 0x313   : > { %v6724_v53 = vpop.eup %6723  ;;  %v2917_v59 = vor.u32 %v2916_v6, %v2915_v58  ;;  %v2920_v62 = vshll.u32 %v2919_v36, 23  ;;  %v3064_v26 = vand.u32 31, %v3062_v14  ;;  %vm3419_vm4 = vc.u32 %v9158_v46, %v9144_v43 }
 0x314   : > { %v6726_v15 = vpop.eup %6725  ;;  %v3254_v12 = vxor.u32 2147483648, %v6724_v53  ;;  %v3421_v37 = vsel %vm3419_vm4, %v3420_v35, %v9145_v20  ;;  %v407_v42 = vmul.f32 %v7003_v2, %v366_v29  ;;  %v9178_v57 = vmul.f32 %v7003_v2, %v363_v33 }
 0x315   : > { %v3251_v63 = vxor.u32 2147483648, %v6726_v15  ;;  %v2921_v13 = vor.u32 4788187, %v2920_v62  ;;  %v3422_v7 = vadd.s32 %v3421_v37, %v3417_v18  ;;  %v3065_v31 = vsub.s32 32, %v3064_v26 }
 0x316   : > { %v3255_v23 = vsel %vm3253_vm3, %v3254_v12, %v6726_v15  ;;  %v2924_v5 = vcvt.s32.f32 %v2917_v59  ;;  %v2935_v45 = vadd.s32 3, %v2931_v49  ;;  %v3058_v34 = vor.u32 8388608, %v3057_v19 }
 0x317   : > { %v3252_v39 = vsel %vm3250_vm2, %v6724_v53, %v3251_v63  ;;  %v2922_v0 = vand.u32 2147483647, %v2921_v13  ;;  %v3423_v60 = vadd.s32 536870912, %v3422_v7  ;;  %v3068_v56 = vshrl.u32 %v6923_v48, %v3065_v31 }
 0x318   : > { %v3256_v25 = vsel %vm3249_vm14, %v3252_v39, %v3255_v23  ;;  %v3071_v1 = vshrl.u32 %v6924_v50, %v3065_v31  ;;  %v3074_v24 = vshrl.u32 %v6925_v52, %v3065_v31  ;;  %v3067_v21 = vshll.u32 %v6922_v44, %v3064_v26 }
 0x319   : > { %v3257_v28 = vsel %vm3246_vm15, nan, %v3256_v25  ;;  %v2925_v51 = vmul.f32 %v2924_v5, %v2922_v0  ;;  %v3424_v9 = vshrl.u32 %v3423_v60, 30  ;;  %v3070_v11 = vshll.u32 %v6923_v48, %v3064_v26 }
 0x31a   : > { %3868 = vrot.lane.b32.xlu0 %v3257_v28, %s6928_s21  ;;  %v3077_v20 = vshrl.u32 %v6926_v54, %v3065_v31  ;;  %v3063_v55 = vshrl.u32 %v3062_v14, 5  ;;  %v3073_v4 = vshll.u32 %v6924_v50, %v3064_v26  ;;  %v3076_v47 = vshll.u32 %v6925_v52, %v3064_v26 }
 0x31b   : > { %v2926_v38 = vxor.u32 2147483648, %v2925_v51  ;;  %v3425_v40 = vshll.u32 %v3424_v9, 30  ;;  %v3069_v3 = vor.u32 %v3068_v56, %v3067_v21  ;;  %v3072_v17 = vor.u32 %v3071_v1, %v3070_v11 }
 0x31c   : > { %v3080_v27 = vshrl.u32 %v6927_v61, %v3065_v31  ;;  %vm3364_vm5 = vcmp.lt.s32.totalorder %v9016_v16, 0  ;;  %v3075_v6 = vor.u32 %v3074_v24, %v3073_v4  ;;  %v3078_v36 = vor.u32 %v3077_v20, %v3076_v47 }
 0x31d   : > { %v2927_v58 = vsel %vm2844_vm8, %v2926_v38, %v2925_v51  ;;  %v3079_v35 = vshll.u32 %v6926_v54, %v3064_v26  ;;  %v9203_v29 = vand.u32 3, %v2935_v45  ;;  %v9205_v53 = vsub.s32 %v3422_v7, %v3425_v40 }
 0x31e   : > { %v2930_v14 = vsel %vm9137_vm11, %v8925_v41, %v2927_v58  ;;  %v9207_v59 = vshll.u32 %v3058_v34, 8  ;;  %v3066_v62 = vshrl.u32 %v6922_v44, %v3065_v31  ;;  %v9211_v33 = vadd.f32 %v7010_v8, %v407_v42 }
 0x31f   : > { %6727 = vcosq.f32 %v2930_v14  ;;  %v3081_v19 = vor.u32 %v3080_v27, %v3079_v35  ;;  %vm9215_vm6 = vcmp.le.f32.partialorder %v3362_v10, 0.7853982  ;;  %v3428_v30 = vsub.s32 0, %v9205_v53 }
 0x320   : > { %6729 = vsinq.f32 %v2930_v14  ;;  %vm3082_vm7 = vcmp.lt.s32.totalorder %v3063_v55, 1  ;;  %vm3085_vm8 = vcmp.lt.s32.totalorder %v3063_v55, 4  ;;  %vm3084_vm10 = vcmp.lt.s32.totalorder %v3063_v55, 3 }
 0x321   : > { %v3087_v15 = vsel %vm3085_vm8, %v3075_v6, 2102212464  ;;  %v3090_v12 = vsel %vm3082_vm7, %v3069_v3, %v3072_v17  ;;  %v3091_v49 = vsel %vm3085_vm8, %v3078_v36, 920167782  ;;  %v5801_v18 = vmin.u32 %v3428_v30, %v9205_v53 }
 0x322   : > { %v3448_v63 = vsub.s32 4, %v3424_v9  ;;  %vm3083_vm9 = vcmp.lt.s32.totalorder %v3063_v55, 2  ;;  %v3092_v13 = vsel %vm3084_vm10, %v3075_v6, %v3091_v49  ;;  %v3094_v37 = vsel %vm3082_vm7, %v3072_v17, %v3075_v6 }
 0x323   : > { %v3093_v10 = vsel %vm3083_vm9, %v3090_v12, %v3092_v13  ;;  %v3095_v42 = vsel %vm3085_vm8, %v3081_v19, 1326507024  ;;  %v3573_v23 = vand.u32 2139095040, %v9211_v33  ;;  %vm2938_vm11 = vcmp.eq.s32.totalorder %v9203_v29, 0 }
 0x324   : > { %v3430_v7 = vclz %v5801_v18  ;;  %v3086_v31 = vsel %vm3082_vm7, %v3066_v62, %v3069_v3  ;;  %v3088_v39 = vsel %vm3084_vm10, %v3072_v17, %v3087_v15  ;;  %vm2937_vm12 = vcmp.lt.s32.totalorder %v9203_v29, 2 }
 0x325   : > { %v3096_v0 = vsel %vm3084_vm10, %v3078_v36, %v3095_v42  ;;  %v9232_v5 = vmul.u32.u64.low %v9207_v59, %v3093_v10  ;;  %v9233_v45 = vmul.u32.u64.high %v9207_v59, %v3093_v10, %v9232_v5  ;;  %v3574_v25 = vshrl.u32 %v3573_v23, 23 }
 0x326   : > { %vm2941_vm13 = vcmp.eq.s32.totalorder %v9203_v29, 2  ;;  %v5802_v60 = vadd.s32 4294967294, %v3430_v7  ;;  %v3449_v34 = vsel %vm3364_vm5, %v3448_v63, %v3424_v9  ;;  %v3097_v56 = vsel %vm3083_vm9, %v3094_v37, %v3096_v0 }
 0x327   : > { %v3089_v28 = vsel %vm3083_vm9, %v3086_v31, %v3088_v39  ;;  %v9242_v51 = vmul.u32.u64.low %v9207_v59, %v3097_v56  ;;  %v9243_v1 = vmul.u32.u64.high %v9207_v59, %v3097_v56, %v9242_v51  ;;  %v5808_v24 = vadd.s32 4294967169, %v3574_v25 }
 0x328   : > { %v3418_v21 = vadd.s32 %v9144_v43, %v9158_v46  ;;  %vm5803_vm0 = vcmp.lt.s32.totalorder %v5802_v60, 0  ;;  %v3570_v11 = vand.u32 2147483647, %v9211_v33  ;;  %v9250_v20 = vadd.f32 %v7010_v8, %v9178_v57 }
 0x329   : > { %v6728_v9 = vpop.eup %6727  ;;  %v3433_v38 = vsel %vm5803_vm0, 0, %v5802_v60  ;;  %v3451_v55 = vsel %vm9215_vm6, 0, %v3449_v34  ;;  %v3108_v4 = vadd.s32 1, %v9233_v45  ;;  %v3580_v47 = vadd.s32 1, %v5808_v24 }
 0x32a   : > { %v6730_v40 = vpop.eup %6729  ;;  %v2942_v3 = vxor.u32 2147483648, %v6728_v9  ;;  %v3434_v17 = vsub.s32 32, %v3433_v38  ;;  %v3438_v27 = vsub.s32 4294967266, %v3433_v38  ;;  %v3105_v43 = vmul.u32 %v9207_v59, %v3089_v28 }
 0x32b   : > { %v2939_v46 = vxor.u32 2147483648, %v6730_v40  ;;  %v3435_v58 = vshll.u32 %v9205_v53, %v3433_v38  ;;  %vm3107_vm14 = vc.u32 %v9243_v1, %v9232_v5  ;;  %vm3581_vm15 = vcmp.gt.s32.totalorder %v3580_v47, 0 }
 0x32c   : > { %v2943_v57 = vsel %vm2941_vm13, %v2942_v3, %v6730_v40  ;;  %v3436_v6 = vshrl.u32 %v3418_v21, %v3434_v17  ;;  %v3439_v36 = vadd.s32 127, %v3438_v27  ;;  %v3109_v35 = vsel %vm3107_vm14, %v3108_v4, %v9233_v45 }
 0x32d   : > { %v2940_v14 = vsel %vm2938_vm11, %v6728_v9, %v2939_v46  ;;  %v3110_v62 = vadd.s32 %v3109_v35, %v3105_v43  ;;  %v3577_v59 = vand.u32 8388607, %v3570_v11  ;;  %v3582_v19 = vsel %vm3581_vm15, %v3580_v47, 0 }
 0x32e   : > { %vm2934_vm1 = vweird.f32 %v8925_v41  ;;  %v2944_v53 = vsel %vm2937_vm12, %v2940_v14, %v2943_v57  ;;  %v3437_v30 = vor.u32 %v3436_v6, %v3435_v58  ;;  %v3440_v15 = vshll.u32 %v3439_v36, 23 }
 0x32f   : > { %v2945_v12 = vsel %vm2934_vm1, nan, %v2944_v53  ;;  %v3111_v49 = vadd.s32 536870912, %v3110_v62  ;;  %v3584_v18 = vand.u32 31, %v3582_v19  ;;  %v9270_v13 = vadd.s32 3, %v3451_v55 }
 0x330   : > { %3862 = vrot.lane.b32.xlu1 %v2945_v12, %s6928_s21  ;;  %v3441_v63 = vor.u32 4788187, %v3440_v15  ;;  %v3578_v37 = vor.u32 8388608, %v3577_v59  ;;  %v3261_v23 = vand.u32 2139095040, %v9250_v20  ;;  %v3444_v41 = vcvt.s32.f32 %v3437_v30 }
 0x331   : > { %v3112_v10 = vshrl.u32 %v3111_v49, 30  ;;  %v3585_v42 = vsub.s32 32, %v3584_v18  ;;  %v9273_v31 = vshrl.u32 %v3582_v19, 5  ;;  %v3587_v29 = vshll.u32 %v6922_v44, %v3584_v18 }
 0x332   : > { %v3442_v7 = vand.u32 2147483647, %v3441_v63  ;;  %vm3052_vm2 = vcmp.lt.s32.totalorder %v9099_v22, 0  ;;  %v3590_v45 = vshll.u32 %v6923_v48, %v3584_v18  ;;  %v3593_v25 = vshll.u32 %v6924_v50, %v3584_v18 }
 0x333   : > { %v3113_v39 = vshll.u32 %v3112_v10, 30  ;;  %v3588_v0 = vshrl.u32 %v6923_v48, %v3585_v42  ;;  %v3591_v34 = vshrl.u32 %v6924_v50, %v3585_v42  ;;  %v3594_v56 = vshrl.u32 %v6925_v52, %v3585_v42 }
 0x334   : > { %v3445_v60 = vmul.f32 %v3444_v41, %v3442_v7  ;;  %v3597_v28 = vshrl.u32 %v6926_v54, %v3585_v42  ;;  %v3596_v24 = vshll.u32 %v6925_v52, %v3584_v18  ;;  %v3600_v21 = vshrl.u32 %v6927_v61, %v3585_v42 }
 0x335   : > { %v9283_v51 = vsub.s32 %v3110_v62, %v3113_v39  ;;  %v9287_v9 = vshll.u32 %v3578_v37, 8  ;;  %v3589_v55 = vor.u32 %v3588_v0, %v3587_v29  ;;  %v3592_v4 = vor.u32 %v3591_v34, %v3590_v45 }
 0x336   : > { %v3446_v38 = vxor.u32 2147483648, %v3445_v60  ;;  %v3595_v47 = vor.u32 %v3594_v56, %v3593_v25  ;;  %v3598_v3 = vor.u32 %v3597_v28, %v3596_v24  ;;  %v3599_v17 = vshll.u32 %v6926_v54, %v3584_v18 }
 0x337   : > { %v3116_v40 = vsub.s32 0, %v9283_v51  ;;  %v3262_v27 = vshrl.u32 %v3261_v23, 23  ;;  %v3136_v46 = vsub.s32 4, %v3112_v10  ;;  %v3586_v58 = vshrl.u32 %v6922_v44, %v3585_v42 }
 0x338   : > { %v3447_v43 = vsel %vm3364_vm5, %v3446_v38, %v3445_v60  ;;  %vm3602_vm3 = vcmp.lt.s32.totalorder %v9273_v31, 1  ;;  %v3601_v36 = vor.u32 %v3600_v21, %v3599_v17  ;;  %vm3605_vm4 = vcmp.lt.s32.totalorder %v9273_v31, 4 }
 0x339   : > { %v3450_v57 = vsel %vm9215_vm6, %v9016_v16, %v3447_v43  ;;  %v5789_v6 = vmin.u32 %v3116_v40, %v9283_v51  ;;  %v3607_v35 = vsel %vm3605_vm4, %v3595_v47, 2102212464  ;;  %v3610_v14 = vsel %vm3602_vm3, %v3589_v55, %v3592_v4 }
 0x33a   : > { %6731 = vcosq.f32 %v3450_v57  ;;  %v3611_v62 = vsel %vm3605_vm4, %v3598_v3, 920167782  ;;  %vm3603_vm5 = vcmp.lt.s32.totalorder %v9273_v31, 2  ;;  %vm3604_vm6 = vcmp.lt.s32.totalorder %v9273_v31, 3 }
 0x33b   : > { %6733 = vsinq.f32 %v3450_v57  ;;  %v3118_v59 = vclz %v5789_v6  ;;  %v3137_v26 = vsel %vm3052_vm2, %v3136_v46, %v3112_v10  ;;  %v3606_v19 = vsel %vm3602_vm3, %v3586_v58, %v3589_v55 }
 0x33c   : > { %v3612_v53 = vsel %vm3604_vm6, %v3595_v47, %v3611_v62  ;;  %v3614_v30 = vsel %vm3602_vm3, %v3592_v4, %v3595_v47  ;;  %v3608_v12 = vsel %vm3604_vm6, %v3592_v4, %v3607_v35  ;;  %v3615_v18 = vsel %vm3605_vm4, %v3601_v36, 1326507024 }
 0x33d   : > { %v5790_v15 = vadd.s32 4294967294, %v3118_v59  ;;  %v3613_v49 = vsel %vm3603_vm5, %v3610_v14, %v3612_v53  ;;  %v3616_v63 = vsel %vm3604_vm6, %v3598_v3, %v3615_v18  ;;  %v5796_v10 = vadd.s32 4294967169, %v3262_v27 }
 0x33e   : > { %v9319_v37 = vmul.u32.u64.low %v9287_v9, %v3613_v49  ;;  %v9320_v42 = vmul.u32.u64.high %v9287_v9, %v3613_v49, %v9319_v37  ;;  %vm9325_vm7 = vcmp.le.f32.partialorder %v3050_v32, 0.7853982  ;;  %v3106_v7 = vadd.s32 %v9232_v5, %v9243_v1 }
 0x33f   : > { %vm5791_vm8 = vcmp.lt.s32.totalorder %v5790_v15, 0  ;;  %v3617_v41 = vsel %vm3603_vm5, %v3614_v30, %v3616_v63  ;;  %v3268_v45 = vadd.s32 1, %v5796_v10  ;;  %vm3454_vm10 = vweird.f32 %v9016_v16 }
 0x340   : > { %v3121_v29 = vsel %vm5791_vm8, 0, %v5790_v15  ;;  %v9334_v39 = vmul.u32.u64.low %v9287_v9, %v3617_v41  ;;  %v9335_v0 = vmul.u32.u64.high %v9287_v9, %v3617_v41, %v9334_v39  ;;  %v3139_v60 = vsel %vm9325_vm7, 0, %v3137_v26 }
 0x341   : > { %v3122_v25 = vsub.s32 32, %v3121_v29  ;;  %v3126_v32 = vsub.s32 4294967266, %v3121_v29  ;;  %v3609_v5 = vsel %vm3603_vm5, %v3606_v19, %v3608_v12  ;;  %v3456_v1 = vand.u32 3, %v9270_v13  ;;  %v9355_v19 = vpop.permute.xlu1 %3816 }
 0x342   : > { %v3628_v34 = vadd.s32 1, %v9320_v42  ;;  %v3258_v56 = vand.u32 2147483647, %v9250_v20  ;;  %vm3269_vm9 = vcmp.gt.s32.totalorder %v3268_v45, 0  ;;  %v3123_v28 = vshll.u32 %v9283_v51, %v3121_v29  ;;  %v9371_v29 = vld [vmem:[%s7001_s20 + $0xe8] sm:$0xff] }
 0x343   : > { %v3124_v24 = vshrl.u32 %v3106_v7, %v3122_v25  ;;  %v3127_v21 = vadd.s32 127, %v3126_v32  ;;  %v3270_v38 = vsel %vm3269_vm9, %v3268_v45, 0  ;;  %v3143_v4 = vadd.s32 3, %v3139_v60 }
 0x344   : > { %v6732_v55 = vpop.eup %6731  ;;  %v3625_v47 = vmul.u32 %v9287_v9, %v3609_v5  ;;  %vm3627_vm11 = vc.u32 %v9335_v0, %v9319_v37  ;;  %v3272_v31 = vand.u32 31, %v3270_v38  ;;  %vm3461_vm12 = vcmp.eq.s32.totalorder %v3456_v1, 2 }
 0x345   : > { %v6734_v40 = vpop.eup %6733  ;;  %v3462_v13 = vxor.u32 2147483648, %v6732_v55  ;;  %v3125_v3 = vor.u32 %v3124_v24, %v3123_v28  ;;  %v3128_v17 = vshll.u32 %v3127_v21, 23  ;;  %v3629_v27 = vsel %vm3627_vm11, %v3628_v34, %v9320_v42 }
 0x346   : > { %v3459_v43 = vxor.u32 2147483648, %v6734_v40  ;;  %v3630_v51 = vadd.s32 %v3629_v27, %v3625_v47  ;;  %v3273_v46 = vsub.s32 32, %v3272_v31  ;;  %vm3457_vm13 = vcmp.lt.s32.totalorder %v3456_v1, 2  ;;  %v9390_v27 = vpop.permute.xlu0 %3820 }
 0x347   : > { %vm3458_vm0 = vcmp.eq.s32.totalorder %v3456_v1, 0  ;;  %v3463_v58 = vsel %vm3461_vm12, %v3462_v13, %v6734_v40  ;;  %v3129_v57 = vor.u32 4788187, %v3128_v17  ;;  %v9350_v9 = vand.u32 3, %v3143_v4 }
 0x348   : > { %v3460_v6 = vsel %vm3458_vm0, %v6732_v55, %v3459_v43  ;;  %v3631_v36 = vadd.s32 536870912, %v3630_v51  ;;  %v3265_v35 = vand.u32 8388607, %v3258_v56  ;;  %v3132_v59 = vcvt.s32.f32 %v3125_v3  ;;  %v9381_v55 = vpop.permute.xlu1 %3818 }
 0x349   : > { %v3464_v14 = vsel %vm3457_vm13, %v3460_v6, %v3463_v58  ;;  %v3130_v62 = vand.u32 2147483647, %v3129_v57  ;;  %v3276_v26 = vshrl.u32 %v6923_v48, %v3273_v46  ;;  %v3279_v15 = vshrl.u32 %v6924_v50, %v3273_v46 }
 0x34a   : > { %v3465_v53 = vsel %vm3454_vm10, nan, %v3464_v14  ;;  %v9359_v30 = vshrl.u32 %v3631_v36, 30  ;;  %v3282_v12 = vshrl.u32 %v6925_v52, %v3273_v46  ;;  %v3271_v18 = vshrl.u32 %v3270_v38, 5 }
 0x34b   : > { %3872 = vrot.lane.b32.xlu0 %v3465_v53, %s6928_s21  ;;  %v3133_v49 = vmul.f32 %v3132_v59, %v3130_v62  ;;  %v3284_v63 = vshll.u32 %v6925_v52, %v3272_v31  ;;  %v3285_v42 = vshrl.u32 %v6926_v54, %v3273_v46  ;;  %v3275_v7 = vshll.u32 %v6922_v44, %v3272_v31 }
 0x34c   : > { %v3633_v10 = vshll.u32 %v9359_v30, 30  ;;  %v3278_v16 = vshll.u32 %v6923_v48, %v3272_v31  ;;  %v3281_v41 = vshll.u32 %v6924_v50, %v3272_v31  ;;  %v3287_v25 = vshll.u32 %v6926_v54, %v3272_v31  ;;  %v9400_v59 = vpop.permute.xlu1 %3822 }
 0x34d   : > { %v3134_v39 = vxor.u32 2147483648, %v3133_v49  ;;  %v3286_v45 = vor.u32 %v3285_v42, %v3284_v63  ;;  %v3288_v32 = vshrl.u32 %v6927_v61, %v3273_v46  ;;  %v3277_v5 = vor.u32 %v3276_v26, %v3275_v7  ;;  %v3783_v63 = vld [vmem:[%s10363_s3 + $0x8] sm:$0xff] }
 0x34e   : > { %v9375_v60 = vsub.s32 %v3630_v51, %v3633_v10  ;;  %v3280_v1 = vor.u32 %v3279_v15, %v3278_v16  ;;  %v3283_v34 = vor.u32 %v3282_v12, %v3281_v41  ;;  %v3266_v24 = vor.u32 8388608, %v3265_v35 }
 0x34f   : > { %v3135_v28 = vsel %vm3052_vm2, %v3134_v39, %v3133_v49  ;;  %v3289_v21 = vor.u32 %v3288_v32, %v3287_v25  ;;  %v406_v38 = vmul.f32 %v7003_v2, %v9371_v29  ;;  %v3274_v31 = vshrl.u32 %v6922_v44, %v3273_v46  ;;  %v3782_v49 = vld [vmem:[%s10363_s3] sm:$0xff]  ;;  %v9426_v39 = vpop.permute.xlu0 %3824 }
 0x350   : > { %v3138_v4 = vsel %vm9325_vm7, %v9099_v22, %v3135_v28  ;;  %v3636_v47 = vsub.s32 0, %v9375_v60  ;;  %vm3293_vm14 = vcmp.lt.s32.totalorder %v3271_v18, 4  ;;  %vm3572_vm15 = vcmp.lt.s32.totalorder %v9211_v33, 0 }
 0x351   : > { %6735 = vcosq.f32 %v3138_v4  ;;  %vm3290_vm1 = vcmp.lt.s32.totalorder %v3271_v18, 1  ;;  %vm3292_vm2 = vcmp.lt.s32.totalorder %v3271_v18, 3  ;;  %v3299_v40 = vsel %vm3293_vm14, %v3286_v45, 920167782 }
 0x352   : > { %6737 = vsinq.f32 %v3138_v4  ;;  %v5809_v13 = vmin.u32 %v3636_v47, %v9375_v60  ;;  %v3295_v3 = vsel %vm3293_vm14, %v3283_v34, 2102212464  ;;  %v3298_v17 = vsel %vm3290_vm1, %v3277_v5, %v3280_v1 }
 0x353   : > { %v3300_v23 = vsel %vm3292_vm2, %v3283_v34, %v3299_v40  ;;  %v3302_v43 = vsel %vm3290_vm1, %v3280_v1, %v3283_v34  ;;  %v3303_v51 = vsel %vm3293_vm14, %v3289_v21, 1326507024  ;;  %v3306_v58 = vshll.u32 %v3266_v24, 8 }
 0x354   : > { %v3638_v46 = vclz %v5809_v13  ;;  %v3656_v57 = vsub.s32 4, %v9359_v30  ;;  %vm3291_vm3 = vcmp.lt.s32.totalorder %v3271_v18, 2  ;;  %v3294_v6 = vsel %vm3290_vm1, %v3274_v31, %v3277_v5 }
 0x355   : > { %v3296_v36 = vsel %vm3292_vm2, %v3280_v1, %v3295_v3  ;;  %v3301_v35 = vsel %vm3291_vm3, %v3298_v17, %v3300_v23  ;;  %v3304_v14 = vsel %vm3292_vm2, %v3286_v45, %v3303_v51  ;;  %v9398_v62 = vadd.f32 %v7010_v8, %v406_v38 }
 0x356   : > { %v5810_v26 = vadd.s32 4294967294, %v3638_v46  ;;  %v3305_v53 = vsel %vm3291_vm3, %v3302_v43, %v3304_v14  ;;  %v9403_v15 = vmul.u32.u64.low %v3306_v58, %v3301_v35  ;;  %v9404_v12 = vmul.u32.u64.high %v3306_v58, %v3301_v35, %v9403_v15 }
 0x357   : > { %vm3145_vm4 = vcmp.lt.s32.totalorder %v9350_v9, 2  ;;  %vm9416_vm5 = vcmp.le.f32.partialorder %v3570_v11, 0.7853982  ;;  %v9420_v10 = vmul.u32.u64.low %v3306_v58, %v3305_v53  ;;  %v9421_v7 = vmul.u32.u64.high %v3306_v58, %v3305_v53, %v9420_v10 }
 0x358   : > { %vm3146_vm6 = vcmp.eq.s32.totalorder %v9350_v9, 0  ;;  %vm5811_vm7 = vcmp.lt.s32.totalorder %v5810_v26, 0  ;;  %v3297_v16 = vsel %vm3291_vm3, %v3294_v6, %v3296_v36  ;;  %v3469_v41 = vand.u32 2139095040, %v9398_v62 }
 0x359   : > { %vm3149_vm8 = vcmp.eq.s32.totalorder %v9350_v9, 2  ;;  %v3626_v11 = vadd.s32 %v9319_v37, %v9335_v0  ;;  %v3641_v45 = vsel %vm5811_vm7, 0, %v5810_v26  ;;  %v6399_v25 = vpack.c.bf16 %v3783_v63, %v3782_v49  ;;  %v9438_v37 = vpop.permute.xlu1 %3826 }
 0x35a   : > { %v3642_v32 = vsub.s32 32, %v3641_v45  ;;  %v3646_v5 = vsub.s32 4294967266, %v3641_v45  ;;  %v3657_v1 = vsel %vm3572_vm15, %v3656_v57, %v9359_v30  ;;  %v3316_v18 = vadd.s32 1, %v9404_v12  ;;  %v9442_v30 = vld [vmem:[%s7001_s20 + $0xf8] sm:$0xff] }
 0x35b   : > { %v6736_v34 = vpop.eup %6735  ;;  %v3643_v28 = vshll.u32 %v9375_v60, %v3641_v45  ;;  %v3313_v24 = vmul.u32 %v3306_v58, %v3297_v16  ;;  %vm3315_vm10 = vc.u32 %v9421_v7, %v9403_v15  ;;  %v3470_v21 = vshrl.u32 %v3469_v41, 23  ;;  %6400 = vmatprep.subr.bf16.mxu0 %v6399_v25  ;;  %v9449_v58 = vpop.permute.xlu0 %3828 }
 0x35c   : > { %v6738_v0 = vpop.eup %6737  ;;  %v3150_v38 = vxor.u32 2147483648, %v6736_v34  ;;  %v3644_v4 = vshrl.u32 %v3626_v11, %v3642_v32  ;;  %v3647_v47 = vadd.s32 127, %v3646_v5  ;;  %v3317_v31 = vsel %vm3315_vm10, %v3316_v18, %v9404_v12  ;;  %6402 = vmatpush3.bf16.msra.mxu0 %v6399_v25 }
 0x35d   : > { %v3147_v40 = vxor.u32 2147483648, %v6738_v0  ;;  %v3659_v60 = vsel %vm9416_vm5, 0, %v3657_v1  ;;  %v3318_v13 = vadd.s32 %v3317_v31, %v3313_v24  ;;  %v5804_v3 = vadd.s32 4294967169, %v3470_v21  ;;  %v9463_v63 = vpop.permute.xlu1 %3830 }
 0x35e   : > { %v3151_v17 = vsel %vm3149_vm8, %v3150_v38, %v6738_v0  ;;  %v3645_v23 = vor.u32 %v3644_v4, %v3643_v28  ;;  %v3648_v43 = vshll.u32 %v3647_v47, 23  ;;  %v3466_v51 = vand.u32 2147483647, %v9398_v62 }
 0x35f   : > { %v3148_v46 = vsel %vm3146_vm6, %v6736_v34, %v3147_v40  ;;  %v3319_v57 = vadd.s32 536870912, %v3318_v13  ;;  %v3476_v6 = vadd.s32 1, %v5804_v3  ;;  %v408_v36 = vmul.f32 %v7003_v2, %v9442_v30  ;;  %v9469_v45 = vpop.permute.xlu0 %3832 }
 0x360   : > { %vm3142_vm9 = vweird.f32 %v9099_v22  ;;  %v3152_v35 = vsel %vm3145_vm4, %v3148_v46, %v3151_v17  ;;  %v3649_v14 = vor.u32 4788187, %v3648_v43  ;;  %v3663_v26 = vadd.s32 3, %v3659_v60 }
 0x361   : > { %v3153_v53 = vsel %vm3142_vm9, nan, %v3152_v35  ;;  %v9458_v12 = vshrl.u32 %v3319_v57, 30  ;;  %vm3477_vm11 = vcmp.gt.s32.totalorder %v3476_v6, 0  ;;  %v9461_v49 = vadd.f32 %v7010_v8, %v408_v36 }
 0x362   : > { %3866 = vrot.lane.b32.xlu1 %v3153_v53, %s6928_s21  ;;  %v3650_v10 = vand.u32 2147483647, %v3649_v14  ;;  %v3652_v2 = vcvt.s32.f32 %v3645_v23  ;;  %v3473_v22 = vand.u32 8388607, %v3466_v51  ;;  %v3478_v9 = vsel %vm3477_vm11, %v3476_v6, 0 }
 0x363   : > { %v3321_v16 = vshll.u32 %v9458_v12, 30  ;;  %v3480_v41 = vand.u32 31, %v3478_v9  ;;  %vm3880_vm12 = vcmask 130048   ;;  %v9471_v25 = vand.u32 3, %v3663_v26  ;;  %v9507_v3 = vpop.permute.xlu0 %3836 }
 0x364   : > { %v3653_v11 = vmul.f32 %v3652_v2, %v3650_v10  ;;  %6167 = vmatprep.mubr.msk.f32.mxu0 %vm3880_vm12, %v9355_v19  ;;  %v9479_v1 = vadd.s32 %v9403_v15, %v9421_v7  ;;  %v3474_v18 = vor.u32 8388608, %v3473_v22  ;;  %v3677_v34 = vand.u32 2139095040, %v9461_v49  ;;  %v9491_v19 = vpop.permute.xlu1 %3834 }
 0x365   : > { %v9473_v8 = vsub.s32 %v3318_v13, %v3321_v16  ;;  %v3481_v32 = vsub.s32 32, %v3480_v41  ;;  %6168 = vmatmul.mubr.msk.f32.vlgmr.msra.gmra.mrb[0].mxu0 %vm3880_vm12, %v9381_v55  ;;  %v9485_v24 = vshrl.u32 %v3478_v9, 5  ;;  %v3483_v21 = vshll.u32 %v6922_v44, %v3480_v41 }
 0x366   : > { %v3654_v5 = vxor.u32 2147483648, %v3653_v11  ;;  %6170 = vmatprep.mubr.msk.f32.mxu0 %vm3880_vm12, %v9390_v27  ;;  %v3486_v7 = vshll.u32 %v6923_v48, %v3480_v41  ;;  %v3489_v31 = vshll.u32 %v6924_v50, %v3480_v41  ;;  %v3492_v27 = vshll.u32 %v6925_v52, %v3480_v41 }
 0x367   : > { %v3324_v28 = vsub.s32 0, %v9473_v8  ;;  %v3484_v0 = vshrl.u32 %v6923_v48, %v3481_v32  ;;  %v3487_v55 = vshrl.u32 %v6924_v50, %v3481_v32  ;;  %v3490_v38 = vshrl.u32 %v6925_v52, %v3481_v32 }
 0x368   : > { %v3655_v15 = vsel %vm3572_vm15, %v3654_v5, %v3653_v11  ;;  %v3493_v13 = vshrl.u32 %v6926_v54, %v3481_v32  ;;  %v9509_v23 = vshll.u32 %v3474_v18, 8  ;;  %v3482_v43 = vshrl.u32 %v6922_v44, %v3481_v32  ;;  %v9518_v35 = vpop.permute.xlu1 %3838 }
 0x369   : > { %v3658_v4 = vsel %vm9416_vm5, %v9211_v33, %v3655_v15  ;;  %v5797_v47 = vmin.u32 %v3324_v28, %v9473_v8  ;;  %v3485_v40 = vor.u32 %v3484_v0, %v3483_v21  ;;  %v3488_v60 = vor.u32 %v3487_v55, %v3486_v7  ;;  %6171 = vmatmul.mubr.msk.f32.gmra.mrb[2].mxu0 %vm3880_vm12, %v9400_v59  ;;  %v3778_v21 = vld [vmem:[%s10362_s2] sm:$0xff] }
 0x36a   : > { %6739 = vcosq.f32 %v3658_v4  ;;  %v3491_v42 = vor.u32 %v3490_v38, %v3489_v31  ;;  %6173 = vmatprep.mubr.msk.f32.mxu0 %vm3880_vm12, %v9426_v39  ;;  %v3494_v46 = vor.u32 %v3493_v13, %v3492_v27  ;;  %v3495_v57 = vshll.u32 %v6926_v54, %v3480_v41  ;;  %v3780_v38 = vld [vmem:[%s10362_s2 + $0x10] sm:$0xff] }
 0x36b   : > { %6741 = vsinq.f32 %v3658_v4  ;;  %v3326_v17 = vclz %v5797_v47  ;;  %v3496_v6 = vshrl.u32 %v6927_v61, %v3481_v32  ;;  %vm3498_vm13 = vcmp.lt.s32.totalorder %v9485_v24, 1 }
 0x36c   : > { %vm3500_vm0 = vcmp.lt.s32.totalorder %v9485_v24, 3  ;;  %v3678_v59 = vshrl.u32 %v3677_v34, 23  ;;  %vm3669_vm14 = vcmp.eq.s32.totalorder %v9471_v25, 2  ;;  %vm3501_vm15 = vcmp.lt.s32.totalorder %v9485_v24, 4 }
 0x36d   : > { %v5798_v36 = vadd.s32 4294967294, %v3326_v17  ;;  %v3497_v14 = vor.u32 %v3496_v6, %v3495_v57  ;;  %v3502_v39 = vsel %vm3498_vm13, %v3482_v43, %v3485_v40  ;;  %v3506_v26 = vsel %vm3498_vm13, %v3485_v40, %v3488_v60  ;;  %6174 = vmatmul.mubr.msk.f32.gmra.mrb[4].mxu0 %vm3880_vm12, %v9438_v37  ;;  %v9532_v37 = vpop.permute.xlu0 %3840 }
 0x36e   : > { %vm3666_vm1 = vcmp.eq.s32.totalorder %v9471_v25, 0  ;;  %v3503_v53 = vsel %vm3501_vm15, %v3491_v42, 2102212464  ;;  %v3507_v10 = vsel %vm3501_vm15, %v3494_v46, 920167782  ;;  %v3510_v2 = vsel %vm3498_vm13, %v3488_v60, %v3491_v42  ;;  %6176 = vmatprep.mubr.msk.f32.mxu0 %vm3880_vm12, %v9449_v58 }
 0x36f   : > { %vm5799_vm2 = vcmp.lt.s32.totalorder %v5798_v36, 0  ;;  %vm3665_vm3 = vcmp.lt.s32.totalorder %v9471_v25, 2  ;;  %v3504_v9 = vsel %vm3500_vm0, %v3488_v60, %v3503_v53  ;;  %v3508_v16 = vsel %vm3500_vm0, %v3491_v42, %v3507_v10 }
 0x370   : > { %v3329_v22 = vsel %vm5799_vm2, 0, %v5798_v36  ;;  %v3511_v41 = vsel %vm3501_vm15, %v3497_v14, 1326507024  ;;  %vm3662_vm4 = vweird.f32 %v9211_v33  ;;  %vm3499_vm5 = vcmp.lt.s32.totalorder %v9485_v24, 2  ;;  %v3843_v24 = vpop.permute.xlu1 %3842 }
 0x371   : > { %v3330_v11 = vsub.s32 32, %v3329_v22  ;;  %v3334_v32 = vsub.s32 4294967266, %v3329_v22  ;;  %v3674_v58 = vand.u32 2147483647, %v9461_v49  ;;  %v3331_v5 = vshll.u32 %v9473_v8, %v3329_v22  ;;  %6177 = vmatmul.mubr.msk.f32.gmra.mrb[6].mxu0 %vm3880_vm12, %v9463_v63  ;;  %v3779_v8 = vld [vmem:[%s10362_s2 + $0x8] sm:$0xff]  ;;  %v3781_v63 = vld [vmem:[%s10362_s2 + $0x18] sm:$0xff]  ;;  %v3845_v57 = vpop.permute.xlu0 %3844 }
 0x372   : > { %v3509_v18 = vsel %vm3499_vm5, %v3506_v26, %v3508_v16  ;;  %v3512_v34 = vsel %vm3500_vm0, %v3494_v46, %v3511_v41  ;;  %v5812_v28 = vadd.s32 4294967169, %v3678_v59  ;;  %v3505_v7 = vsel %vm3499_vm5, %v3502_v39, %v3504_v9  ;;  %6179 = vmatprep.mubr.msk.f32.mxu0 %vm3880_vm12, %v9469_v45 }
 0x373   : > { %v3332_v0 = vshrl.u32 %v9479_v1, %v3330_v11  ;;  %v3335_v15 = vadd.s32 127, %v3334_v32  ;;  %v3513_v55 = vsel %vm3499_vm5, %v3510_v2, %v3512_v34  ;;  %v9568_v43 = vand.u32 8388607, %v3674_v58 }
 0x374   : > { %v6740_v1 = vpop.eup %6739  ;;  %v9558_v4 = vmul.u32.u64.low %v9509_v23, %v3513_v55  ;;  %v9559_v47 = vmul.u32.u64.high %v9509_v23, %v3513_v55, %v9558_v4  ;;  %v9562_v31 = vmul.u32.u64.low %v9509_v23, %v3509_v18  ;;  %v9563_v27 = vmul.u32.u64.high %v9509_v23, %v3509_v18, %v9562_v31  ;;  %v3847_v9 = vpop.permute.xlu1 %3846 }
 0x375   : > { %v6742_v45 = vpop.eup %6741  ;;  %v3670_v40 = vxor.u32 2147483648, %v6740_v1  ;;  %v3333_v60 = vor.u32 %v3332_v0, %v3331_v5  ;;  %v3336_v13 = vshll.u32 %v3335_v15, 23  ;;  %v3684_v17 = vadd.s32 1, %v5812_v28  ;;  %6180 = vmatmul.mubr.msk.f32.gmra.mrb[8].mxu0 %vm3880_vm12, %v9491_v19 }
 0x376   : > { %v3667_v42 = vxor.u32 2147483648, %v6742_v45  ;;  %v6403_v46 = vpack.c.bf16 %v3779_v8, %v3778_v21  ;;  %v6407_v6 = vpack.c.bf16 %v3781_v63, %v3780_v38  ;;  %v3344_v14 = vsub.s32 4, %v9458_v12  ;;  %6182 = vmatprep.mubr.msk.f32.mxu0 %vm3880_vm12, %v9507_v3 }
 0x377   : > { %v3671_v36 = vsel %vm3669_vm14, %v3670_v40, %v6742_v45  ;;  %v3337_v59 = vor.u32 4788187, %v3336_v13  ;;  %vm3685_vm6 = vcmp.gt.s32.totalorder %v3684_v17, 0  ;;  %v3521_v26 = vmul.u32 %v9509_v23, %v3505_v7 }
 0x378   : > { %v3668_v39 = vsel %vm3666_vm1, %v6740_v1, %v3667_v42  ;;  %vm3523_vm7 = vc.u32 %v9559_v47, %v9562_v31  ;;  %v3524_v19 = vadd.s32 1, %v9563_v27  ;;  %6404 = vmatprep.subr.bf16.mxu0 %v6403_v46  ;;  %v3340_v2 = vcvt.s32.f32 %v3333_v60 }
 0x379   : > { %v3672_v53 = vsel %vm3665_vm3, %v3668_v39, %v3671_v36  ;;  %v3338_v10 = vand.u32 2147483647, %v3337_v59  ;;  %v3686_v22 = vsel %vm3685_vm6, %v3684_v17, 0  ;;  %6406 = vmatpush3.bf16.msra.mxu0 %v6403_v46  ;;  %vm3260_vm8 = vcmp.lt.s32.totalorder %v9250_v20, 0 }
 0x37a   : > { %v3673_v3 = vsel %vm3662_vm4, nan, %v3672_v53  ;;  %v3525_v23 = vsel %vm3523_vm7, %v3524_v19, %v9563_v27  ;;  %v3688_v16 = vand.u32 31, %v3686_v22  ;;  %6183 = vmatmul.mubr.msk.f32.gmra.mrb[10].mxu0 %vm3880_vm12, %v9518_v35  ;;  %6408 = vmatprep.subr.bf16.mxu0 %v6407_v6  ;;  %vm9594_vm10 = vcmp.le.f32.partialorder %v3258_v56, 0.7853982  ;;  %v3849_v56 = vpop.permute.xlu0 %3848 }
 0x37b   : > { %3876 = vrot.lane.b32.xlu0 %v3673_v3, %s6928_s21  ;;  %v3341_v41 = vmul.f32 %v3340_v2, %v3338_v10  ;;  %v3526_v33 = vadd.s32 %v3525_v23, %v3521_v26  ;;  %v3682_v11 = vor.u32 8388608, %v9568_v43  ;;  %6185 = vmatprep.mubr.msk.f32.mxu0 %vm3880_vm12, %v9532_v37  ;;  %v3345_v35 = vsel %vm3260_vm8, %v3344_v14, %v9458_v12 }
 0x37c   : > { %v9604_v32 = vshrl.u32 %v3686_v22, 5  ;;  %v3689_v5 = vsub.s32 32, %v3688_v16  ;;  %v3691_v18 = vshll.u32 %v6922_v44, %v3688_v16  ;;  %v3694_v21 = vshll.u32 %v6923_v48, %v3688_v16 }
 0x37d   : > { %v3342_v34 = vxor.u32 2147483648, %v3341_v41  ;;  %v3527_v28 = vadd.s32 536870912, %v3526_v33  ;;  %v3697_v0 = vshll.u32 %v6924_v50, %v3688_v16  ;;  %6410 = vmatpush3.bf16.msra.mxu0 %v6407_v6  ;;  %v3700_v12 = vshll.u32 %v6925_v52, %v3688_v16 }
 0x37e   : > { %v3692_v15 = vshrl.u32 %v6923_v48, %v3689_v5  ;;  %v3695_v37 = vshrl.u32 %v6924_v50, %v3689_v5  ;;  %v3698_v7 = vshrl.u32 %v6925_v52, %v3689_v5  ;;  %6186 = vmatmul.mubr.msk.f32.gmra.mrb[12].mxu0 %vm3880_vm12, %v3843_v24  ;;  %v3701_v38 = vshrl.u32 %v6926_v54, %v3689_v5  ;;  %v3851_v48 = vpop.permute.xlu1 %3850  ;;  %v3853_v60 = vpop.permute.xlu0 %3852 }
 0x37f   : > { %v3343_v55 = vsel %vm3260_vm8, %v3342_v34, %v3341_v41  ;;  %v9616_v8 = vshrl.u32 %v3527_v28, 30  ;;  %v3704_v63 = vshrl.u32 %v6927_v61, %v3689_v5  ;;  %6188 = vmatprep.mubr.msk.f32.mxu0 %vm3880_vm12, %v3845_v57  ;;  %v3703_v24 = vshll.u32 %v6926_v54, %v3688_v16 }
 0x380   : > { %v3346_v50 = vsel %vm9594_vm10, %v9250_v20, %v3343_v55  ;;  %v3693_v1 = vor.u32 %v3692_v15, %v3691_v18  ;;  %v3696_v52 = vor.u32 %v3695_v37, %v3694_v21  ;;  %v3347_v4 = vsel %vm9594_vm10, 0, %v3345_v35 }
 0x381   : > { %6743 = vcosq.f32 %v3346_v50  ;;  %v3529_v27 = vshll.u32 %v9616_v8, 30  ;;  %v3702_v45 = vor.u32 %v3701_v38, %v3700_v12  ;;  %v3699_v61 = vor.u32 %v3698_v7, %v3697_v0 }
 0x382   : > { %6745 = vsinq.f32 %v3346_v50  ;;  %v3705_v40 = vor.u32 %v3704_v63, %v3703_v24  ;;  %6189 = vmatmul.mubr.msk.f32.gmra.mrb[14].mxu0 %vm3880_vm12, %v3847_v9  ;;  %vm3706_vm9 = vcmp.lt.s32.totalorder %v9604_v32, 1  ;;  %v3351_v54 = vadd.s32 3, %v3347_v4  ;;  %v3855_v57 = vpop.permute.xlu1 %3854  ;;  %v3857_v3 = vpop.permute.xlu0 %3856 }
 0x383   : > { %v9629_v13 = vsub.s32 %v3526_v33, %v3529_v27  ;;  %6191 = vmatprep.mubr.msk.f32.mxu0 %vm3880_vm12, %v3849_v56  ;;  %vm3709_vm11 = vcmp.lt.s32.totalorder %v9604_v32, 4  ;;  %v3714_v17 = vsel %vm3706_vm9, %v3693_v1, %v3696_v52  ;;  %v3722_v42 = vshll.u32 %v3682_v11, 8 }
 0x384   : > { %vm3707_vm13 = vcmp.lt.s32.totalorder %v9604_v32, 2  ;;  %vm3708_vm0 = vcmp.lt.s32.totalorder %v9604_v32, 3  ;;  %v3715_v46 = vsel %vm3709_vm11, %v3702_v45, 920167782  ;;  %v3711_v6 = vsel %vm3709_vm11, %v3699_v61, 2102212464 }
 0x385   : > { %v3532_v43 = vsub.s32 0, %v9629_v13  ;;  %v3716_v36 = vsel %vm3708_vm0, %v3699_v61, %v3715_v46  ;;  %v3718_v59 = vsel %vm3706_vm9, %v3696_v52, %v3699_v61  ;;  %v3719_v14 = vsel %vm3709_vm11, %v3705_v40, 1326507024 }
 0x386   : > { %6192 = vmatmul.mubr.msk.f32.gmra.mrb[16].mxu0 %vm3880_vm12, %v3851_v48  ;;  %v3690_v26 = vshrl.u32 %v6922_v44, %v3689_v5  ;;  %v3717_v19 = vsel %vm3707_vm13, %v3714_v17, %v3716_v36  ;;  %v3720_v53 = vsel %vm3708_vm0, %v3702_v45, %v3719_v14  ;;  %v3352_v10 = vand.u32 3, %v3351_v54  ;;  %v3859_v35 = vpop.permute.xlu1 %3858  ;;  %v3861_v37 = vpop.permute.xlu0 %3860 }
 0x387   : > { %v5805_v39 = vmin.u32 %v3532_v43, %v9629_v13  ;;  %6194 = vmatprep.mubr.msk.f32.mxu0 %vm3880_vm12, %v3853_v60  ;;  %v3721_v2 = vsel %vm3707_vm13, %v3718_v59, %v3720_v53  ;;  %v9653_v22 = vmul.u32.u64.low %v3722_v42, %v3717_v19  ;;  %v9654_v9 = vmul.u32.u64.high %v3722_v42, %v3717_v19, %v9653_v22 }
 0x388   : > { %v3710_v44 = vsel %vm3706_vm9, %v3690_v26, %v3693_v1  ;;  %v3712_v16 = vsel %vm3708_vm0, %v3696_v52, %v3711_v6  ;;  %v9661_v25 = vmul.u32.u64.low %v3722_v42, %v3721_v2  ;;  %v9662_v41 = vmul.u32.u64.high %v3722_v42, %v3721_v2, %v9661_v25 }
 0x389   : > { %v3534_v23 = vclz %v5805_v39  ;;  %vm3353_vm14 = vcmp.lt.s32.totalorder %v3352_v10, 2  ;;  %v3713_v56 = vsel %vm3707_vm13, %v3710_v44, %v3712_v16  ;;  %v3732_v34 = vadd.s32 1, %v9654_v9 }
 0x38a   : > { %6195 = vmatmul.mubr.msk.f32.gmra.mrb[18].mxu0 %vm3880_vm12, %v3855_v57  ;;  %vm3354_vm15 = vcmp.eq.s32.totalorder %v3352_v10, 0  ;;  %vm3357_vm1 = vcmp.eq.s32.totalorder %v3352_v10, 2  ;;  %v3522_v0 = vadd.s32 %v9562_v31, %v9559_v47  ;;  %vm3731_vm3 = vc.u32 %v9662_v41, %v9653_v22  ;;  %v3865_v19 = vpop.permute.xlu0 %3864 }
 0x38b   : > { %v6744_v33 = vpop.eup %6743  ;;  %v5806_v11 = vadd.s32 4294967294, %v3534_v23  ;;  %6197 = vmatprep.mubr.msk.f32.mxu0 %vm3880_vm12, %v3857_v3  ;;  %v3729_v55 = vmul.u32 %v3722_v42, %v3713_v56  ;;  %vm3350_vm4 = vweird.f32 %v9250_v20  ;;  %v3733_v47 = vsel %vm3731_vm3, %v3732_v34, %v9654_v9 }
 0x38c   : > { %v6746_v5 = vpop.eup %6745  ;;  %v3358_v18 = vxor.u32 2147483648, %v6744_v33  ;;  %v3552_v54 = vsub.s32 4, %v9616_v8  ;;  %vm3468_vm5 = vcmp.lt.s32.totalorder %v9398_v62, 0  ;;  %vm3467_vm6 = vcmp.le.f32.partialorder %v3466_v51, 0.7853982 }
 0x38d   : > { %v3355_v28 = vxor.u32 2147483648, %v6746_v5  ;;  %vm5807_vm2 = vcmp.lt.s32.totalorder %v5806_v11, 0  ;;  %v3734_v1 = vadd.s32 %v3733_v47, %v3729_v55  ;;  %v3730_v51 = vadd.s32 %v9653_v22, %v9662_v41 }
 0x38e   : > { %v3359_v21 = vsel %vm3357_vm1, %v3358_v18, %v6746_v5  ;;  %v3537_v15 = vsel %vm5807_vm2, 0, %v5806_v11  ;;  %6198 = vmatmul.mubr.msk.f32.gmra.mrb[20].mxu0 %vm3880_vm12, %v3859_v35  ;;  %v3553_v46 = vsel %vm3468_vm5, %v3552_v54, %v9616_v8  ;;  %vm3558_vm11 = vweird.f32 %v9398_v62 }
 0x38f   : > { %v3356_v7 = vsel %vm3354_vm15, %v6744_v33, %v3355_v28  ;;  %v3538_v32 = vsub.s32 32, %v3537_v15  ;;  %v3542_v12 = vsub.s32 4294967266, %v3537_v15  ;;  %6200 = vmatprep.mubr.msk.f32.mxu0 %vm3880_vm12, %v3861_v37  ;;  %v3539_v63 = vshll.u32 %v9629_v13, %v3537_v15 }
 0x390   : > { %v3360_v38 = vsel %vm3353_vm14, %v3356_v7, %v3359_v21  ;;  %v3735_v4 = vadd.s32 536870912, %v3734_v1  ;;  %v3555_v59 = vsel %vm3467_vm6, 0, %v3553_v46  ;;  %vm3676_vm13 = vcmp.lt.s32.totalorder %v9461_v49, 0 }
 0x391   : > { %v3361_v31 = vsel %vm3350_vm4, nan, %v3360_v38  ;;  %v3540_v48 = vshrl.u32 %v3522_v0, %v3538_v32  ;;  %v3543_v50 = vadd.s32 127, %v3542_v12  ;;  %v3559_v26 = vadd.s32 3, %v3555_v59  ;;  %v6886_v59 = vld [vmem:[%s7001_s20 + $0x18] sm:$0xff] }
 0x392   : > { %3870 = vrot.lane.b32.xlu1 %v3361_v31, %s6928_s21  ;;  %v3736_v45 = vshrl.u32 %v3735_v4, 30  ;;  %vm3675_vm0 = vcmp.le.f32.partialorder %v3674_v58, 0.7853982  ;;  %vm3766_vm2 = vweird.f32 %v9461_v49  ;;  %v4723_v4 = vld [vmem:[%s10365_s5] sm:$0xff]  ;;  %vm4170_vm3 = vcmask 261120  }
 0x393   : > { %v3541_v52 = vor.u32 %v3540_v48, %v3539_v63  ;;  %v3544_v24 = vshll.u32 %v3543_v50, 23  ;;  %v3560_v2 = vand.u32 3, %v3559_v26  ;;  %v6889_v26 = vld [vmem:[%s7001_s20 + $0x30] sm:$0xff] }
 0x394   : > { %v3737_v20 = vshll.u32 %v3736_v45, 30  ;;  %v3760_v0 = vsub.s32 4, %v3736_v45 }
 0x395   : > { %v3545_v27 = vor.u32 4788187, %v3544_v24  ;;  %v3548_v40 = vcvt.s32.f32 %v3541_v52  ;;  %vm3565_vm8 = vcmp.eq.s32.totalorder %v3560_v2, 2  ;;  %vm3562_vm10 = vcmp.eq.s32.totalorder %v3560_v2, 0  ;;  %v3869_v24 = vpop.permute.xlu0 %3868 }
 0x396   : > { %v3738_v13 = vsub.s32 %v3734_v1, %v3737_v20  ;;  %vm3561_vm9 = vcmp.lt.s32.totalorder %v3560_v2, 2  ;;  %v3761_v7 = vsel %vm3676_vm13, %v3760_v0, %v3736_v45  ;;  %v4727_v20 = vld [vmem:[%s10365_s5 + $0x20] sm:$0xff]  ;;  %v4729_v0 = vld [vmem:[%s10365_s5 + $0x30] sm:$0xff] }
 0x397   : > { %v3546_v61 = vand.u32 2147483647, %v3545_v27  ;;  %v3763_v12 = vsel %vm3675_vm0, 0, %v3761_v7  ;;  %v4724_v27 = vld [vmem:[%s10365_s5 + $0x8] sm:$0xff]  ;;  %v6895_v2 = vld [vmem:[%s7001_s20 + $0x60] sm:$0xff] }
 0x398   : > { %v3740_v42 = vsub.s32 0, %v3738_v13  ;;  %v6411_v45 = vpack.c.bf16 %v4724_v27, %v4723_v4 }
 0x399   : > { %v3549_v60 = vmul.f32 %v3548_v40, %v3546_v61  ;;  %v4726_v61 = vld [vmem:[%s10365_s5 + $0x18] sm:$0xff] }
 0x39a   : > { %v5813_v57 = vmin.u32 %v3740_v42, %v3738_v13  ;;  %6412 = vmatprep.subr.bf16.mxu0 %v6411_v45  ;;  %6443 = vmatprep.subr.bf16.mxu1 %v6411_v45 }
 0x39b   : > { %v3550_v17 = vxor.u32 2147483648, %v3549_v60  ;;  %6447 = vmatpush3.bf16.msra.mxu1 %v6411_v45 }
 0x39c   : > { %v3742_v36 = vclz %v5813_v57  ;;  %v6883_v57 = vld [vmem:[%s7001_s20] sm:$0xff] }
 0x39d   : > { %v3551_v43 = vsel %vm3468_vm5, %v3550_v17, %v3549_v60  ;;  %v4728_v60 = vld [vmem:[%s10365_s5 + $0x28] sm:$0xff] }
 0x39e   : > { %v3554_v6 = vsel %vm3467_vm6, %v9398_v62, %v3551_v43  ;;  %v5814_v14 = vadd.s32 4294967294, %v3742_v36  ;;  %v3767_v62 = vadd.s32 3, %v3763_v12  ;;  %v6419_v54 = vpack.c.bf16 %v4728_v60, %v4727_v20  ;;  %v6885_v36 = vld [vmem:[%s7001_s20 + $0x10] sm:$0xff] }
 0x39f   : > { %6747 = vcosq.f32 %v3554_v6 }
 0x3a0   : > { %6749 = vsinq.f32 %v3554_v6  ;;  %vm5815_vm7 = vcmp.lt.s32.totalorder %v5814_v14, 0  ;;  %v3768_v55 = vand.u32 3, %v3767_v62  ;;  %v6884_v6 = vld [vmem:[%s7001_s20 + $0x8] sm:$0xff] }
 0x3a1   : > { %v3745_v53 = vsel %vm5815_vm7, 0, %v5814_v14  ;;  %v6887_v14 = vld [vmem:[%s7001_s20 + $0x20] sm:$0xff] }
 0x3a2   : > { %v3863_v39 = vpop.permute.xlu1 %3862  ;;  %v3746_v8 = vsub.s32 32, %v3745_v53  ;;  %v3750_v10 = vsub.s32 4294967266, %v3745_v53  ;;  %v3747_v9 = vshll.u32 %v3738_v13, %v3745_v53  ;;  %vm3773_vm14 = vcmp.eq.s32.totalorder %v3768_v55, 2  ;;  %v6891_v53 = vld [vmem:[%s7001_s20 + $0x40] sm:$0xff] }
 0x3a3   : > { %6201 = vmatmul.mubr.msk.f32.gmra.mrb[22].mxu0 %vm3880_vm12, %v3863_v39  ;;  %vm3770_vm15 = vcmp.eq.s32.totalorder %v3768_v55, 0  ;;  %vm3769_vm1 = vcmp.lt.s32.totalorder %v3768_v55, 2  ;;  %v6888_v39 = vld [vmem:[%s7001_s20 + $0x28] sm:$0xff] }
 0x3a4   : > { %6203 = vmatprep.mubr.msk.f32.mxu0 %vm3880_vm12, %v3865_v19  ;;  %v3748_v3 = vshrl.u32 %v3730_v51, %v3746_v8  ;;  %v3751_v23 = vadd.s32 127, %v3750_v10  ;;  %v6890_v19 = vld [vmem:[%s7001_s20 + $0x38] sm:$0xff]  ;;  %v6892_v51 = vld [vmem:[%s7001_s20 + $0x48] sm:$0xff]  ;;  %v6893_v8 = vld [vmem:[%s7001_s20 + $0x50] sm:$0xff] }
 0x3a5   : > { %v6894_v10 = vld [vmem:[%s7001_s20 + $0x58] sm:$0xff] }
 0x3a6   : > { %v3749_v16 = vor.u32 %v3748_v3, %v3747_v9  ;;  %v3752_v25 = vshll.u32 %v3751_v23, 23  ;;  %v6896_v9 = vld [vmem:[%s7001_s20 + $0x68] sm:$0xff]  ;;  %v6897_v3 = vld [vmem:[%s7001_s20 + $0x70] sm:$0xff]  ;;  %v6898_v23 = vld [vmem:[%s7001_s20 + $0x78] sm:$0xff] }
 0x3a8   : > { %v3753_v5 = vor.u32 4788187, %v3752_v25  ;;  %v3756_v22 = vcvt.s32.f32 %v3749_v16  ;;  %v6900_v16 = vld [vmem:[%s7001_s20 + $0x88] sm:$0xff]  ;;  %v6901_v25 = vld [vmem:[%s7001_s20 + $0x90] sm:$0xff] }
 0x3a9   : > { %v6748_v44 = vpop.eup %6747 }
 0x3aa   : > { %v6750_v33 = vpop.eup %6749  ;;  %v3566_v11 = vxor.u32 2147483648, %v6748_v44  ;;  %v3754_v34 = vand.u32 2147483647, %v3753_v5  ;;  %v6905_v5 = vld [vmem:[%s7001_s20 + $0xb0] sm:$0xff] }
 0x3ab   : > { %v3563_v35 = vxor.u32 2147483648, %v6750_v33 }
 0x3ac   : > { %v3567_v18 = vsel %vm3565_vm8, %v3566_v11, %v6750_v33  ;;  %v3757_v21 = vmul.f32 %v3756_v22, %v3754_v34  ;;  %v6902_v33 = vld [vmem:[%s7001_s20 + $0x98] sm:$0xff]  ;;  %v6903_v11 = vld [vmem:[%s7001_s20 + $0xa0] sm:$0xff]  ;;  %v6908_v34 = vld [vmem:[%s7001_s20 + $0xc8] sm:$0xff] }
 0x3ad   : > { %v3564_v56 = vsel %vm3562_vm10, %v6748_v44, %v3563_v35  ;;  %v6899_v44 = vld [vmem:[%s7001_s20 + $0x80] sm:$0xff]  ;;  %v6904_v35 = vld [vmem:[%s7001_s20 + $0xa8] sm:$0xff]  ;;  %v6909_v22 = vld [vmem:[%s7001_s20 + $0xd0] sm:$0xff] }
 0x3ae   : > { %v3568_v41 = vsel %vm3561_vm9, %v3564_v56, %v3567_v18  ;;  %v3758_v15 = vxor.u32 2147483648, %v3757_v21  ;;  %v6906_v18 = vld [vmem:[%s7001_s20 + $0xb8] sm:$0xff]  ;;  %v6907_v56 = vld [vmem:[%s7001_s20 + $0xc0] sm:$0xff] }
 0x3af   : > { %v3569_v28 = vsel %vm3558_vm11, nan, %v3568_v41  ;;  %v6910_v41 = vld [vmem:[%s7001_s20 + $0xd8] sm:$0xff] }
 0x3b0   : > { %3874 = vrot.lane.b32.xlu1 %v3569_v28, %s6928_s21  ;;  %v3759_v37 = vsel %vm3676_vm13, %v3758_v15, %v3757_v21  ;;  %v6911_v28 = vld [vmem:[%s7001_s20 + $0xe0] sm:$0xff]  ;;  %v6912_v21 = vld [vmem:[%s7001_s20 + $0xf0] sm:$0xff]  ;;  %v4730_v15 = vld [vmem:[%s10365_s5 + $0x38] sm:$0xff] }
 0x3b1   : > { %v3762_v32 = vsel %vm3675_vm0, %v9461_v49, %v3759_v37  ;;  %v4725_v49 = vld [vmem:[%s10365_s5 + $0x10] sm:$0xff]  ;;  %v6423_v37 = vpack.c.bf16 %v4730_v15, %v4729_v0 }
 0x3b2   : > { %6751 = vcosq.f32 %v3762_v32  ;;  %v6415_v40 = vpack.c.bf16 %v4726_v61, %v4725_v49 }
 0x3b3   : > { %6753 = vsinq.f32 %v3762_v32  ;;  %v9805_v32 = vld [vmem:[%s10364_s4] ss:$0 sm:$0xff] }
 0x3b4   : > { %6444 = vmatprep.subr.bf16.mxu1 %v6415_v40 }
 0x3b5   : > { %6448 = vmatpush3.bf16.msra.mxu1 %v6415_v40 }
 0x3b6   : > { %6445 = vmatprep.subr.bf16.mxu1 %v6419_v54 }
 0x3b9   : > { %6449 = vmatpush3.bf16.msra.mxu1 %v6419_v54 }
 0x3ba   : > { %6446 = vmatprep.subr.bf16.mxu1 %v6423_v37 }
 0x3bc   : > { %v6752_v38 = vpop.eup %6751 }
 0x3bd   : > { %v6754_v63 = vpop.eup %6753  ;;  %v3774_v47 = vxor.u32 2147483648, %v6752_v38  ;;  %v3873_v17 = vpop.permute.xlu0 %3872  ;;  %6450 = vmatpush3.bf16.msra.mxu1 %v6423_v37 }
 0x3be   : > { %v3771_v31 = vxor.u32 2147483648, %v6754_v63 }
 0x3bf   : > { %v3775_v48 = vsel %vm3773_vm14, %v3774_v47, %v6754_v63 }
 0x3c0   : > { %v3772_v50 = vsel %vm3770_vm15, %v6752_v38, %v3771_v31 }
 0x3c1   : > { %v3776_v58 = vsel %vm3769_vm1, %v3772_v50, %v3775_v48 }
 0x3c2   : > { %v3777_v1 = vsel %vm3766_vm2, nan, %v3776_v58 }
 0x3c3   : > { %3878 = vrot.lane.b32.xlu1 %v3777_v1, %s6928_s21 }
 0x3d4   : > { %v3867_v52 = vpop.permute.xlu1 %3866 }
 0x3d5   : > { %6204 = vmatmul.mubr.msk.f32.gmra.mrb[24].mxu0 %vm3880_vm12, %v3867_v52 }
 0x3d6   : > { %6206 = vmatprep.mubr.msk.f32.mxu0 %vm3880_vm12, %v3869_v24 }
 0x3ed   : > { %v3877_v43 = vpop.permute.xlu0 %3876 }
 0x404   : > { %v3871_v13 = vpop.permute.xlu1 %3870 }
 0x405   : > { %6207 = vmatmul.mubr.msk.f32.gmra.mrb[26].mxu0 %vm3880_vm12, %v3871_v13 }
 0x406   : > { %6209 = vmatprep.mubr.msk.f32.mxu0 %vm3880_vm12, %v3873_v17 }
 0x422   : > { %v3875_v42 = vpop.permute.xlu1 %3874 }
 0x423   : > { %6210 = vmatmul.mubr.msk.f32.gmra.mrb[28].mxu0 %vm3880_vm12, %v3875_v42 }
 0x424   : > { %6212 = vmatprep.mubr.msk.f32.mxu0 %vm3880_vm12, %v3877_v43 }
 0x435   : > { %v3879_v46 = vpop.permute.xlu1 %3878 }
 0x436   : > { %6213 = vmatmul.mubr.msk.f32.gmra.mrb[30].mxu0 %vm3880_vm12, %v3879_v46  ;;  %vm4738_vm12 = vcmask 523264  }
 0x437   : > { %6223 = vmatprep.mubr.msk.f32.mxu0 %vm4170_vm3, %v6883_v57 }
 0x43a   : > { %6224 = vmatmul.mubr.msk.f32.vlgmr.msra.gmra.mrb[0].mxu0 %vm4170_vm3, %v6884_v6 }
 0x43b   : > { %6226 = vmatprep.mubr.msk.f32.mxu0 %vm4170_vm3, %v6885_v36  ;;  %6414 = vmatpush3.bf16.msra.mxu0 %v6411_v45 }
 0x43c   : > { %6416 = vmatprep.subr.bf16.mxu0 %v6415_v40 }
 0x43e   : > { %6227 = vmatmul.mubr.msk.f32.gmra.mrb[2].mxu0 %vm4170_vm3, %v6886_v59 }
 0x43f   : > { %6229 = vmatprep.mubr.msk.f32.mxu0 %vm4170_vm3, %v6887_v14  ;;  %6418 = vmatpush3.bf16.msra.mxu0 %v6415_v40 }
 0x440   : > { %6420 = vmatprep.subr.bf16.mxu0 %v6419_v54 }
 0x442   : > { %6230 = vmatmul.mubr.msk.f32.gmra.mrb[4].mxu0 %vm4170_vm3, %v6888_v39 }
 0x443   : > { %6232 = vmatprep.mubr.msk.f32.mxu0 %vm4170_vm3, %v6889_v26  ;;  %6422 = vmatpush3.bf16.msra.mxu0 %v6419_v54 }
 0x444   : > { %6424 = vmatprep.subr.bf16.mxu0 %v6423_v37 }
 0x446   : > { %6233 = vmatmul.mubr.msk.f32.gmra.mrb[6].mxu0 %vm4170_vm3, %v6890_v19 }
 0x447   : > { %6235 = vmatprep.mubr.msk.f32.mxu0 %vm4170_vm3, %v6891_v53  ;;  %6426 = vmatpush3.bf16.msra.mxu0 %v6423_v37 }
 0x44a   : > { %6236 = vmatmul.mubr.msk.f32.gmra.mrb[8].mxu0 %vm4170_vm3, %v6892_v51 }
 0x44b   : > { %6238 = vmatprep.mubr.msk.f32.mxu0 %vm4170_vm3, %v6893_v8 }
 0x44e   : > { %6239 = vmatmul.mubr.msk.f32.gmra.mrb[10].mxu0 %vm4170_vm3, %v6894_v10 }
 0x44f   : > { %6241 = vmatprep.mubr.msk.f32.mxu0 %vm4170_vm3, %v6895_v2 }
 0x452   : > { %6242 = vmatmul.mubr.msk.f32.gmra.mrb[12].mxu0 %vm4170_vm3, %v6896_v9 }
 0x453   : > { %6244 = vmatprep.mubr.msk.f32.mxu0 %vm4170_vm3, %v6897_v3 }
 0x456   : > { %6245 = vmatmul.mubr.msk.f32.gmra.mrb[14].mxu0 %vm4170_vm3, %v6898_v23 }
 0x457   : > { %6247 = vmatprep.mubr.msk.f32.mxu0 %vm4170_vm3, %v6899_v44 }
 0x45a   : > { %6248 = vmatmul.mubr.msk.f32.gmra.mrb[16].mxu0 %vm4170_vm3, %v6900_v16 }
 0x45b   : > { %6250 = vmatprep.mubr.msk.f32.mxu0 %vm4170_vm3, %v6901_v25 }
 0x45e   : > { %6251 = vmatmul.mubr.msk.f32.gmra.mrb[18].mxu0 %vm4170_vm3, %v6902_v33 }
 0x45f   : > { %6253 = vmatprep.mubr.msk.f32.mxu0 %vm4170_vm3, %v6903_v11 }
 0x462   : > { %6254 = vmatmul.mubr.msk.f32.gmra.mrb[20].mxu0 %vm4170_vm3, %v6904_v35  ;;  %v5254_v35 = vld [vmem:[%s10367_s7 + $0x10] sm:$0xff] }
 0x463   : > { %6256 = vmatprep.mubr.msk.f32.mxu0 %vm4170_vm3, %v6905_v5  ;;  %v5255_v5 = vld [vmem:[%s10367_s7 + $0x18] sm:$0xff] }
 0x464   : > { %v6431_v37 = vpack.c.bf16 %v5255_v5, %v5254_v35 }
 0x466   : > { %6257 = vmatmul.mubr.msk.f32.gmra.mrb[22].mxu0 %vm4170_vm3, %v6906_v18 }
 0x467   : > { %6259 = vmatprep.mubr.msk.f32.mxu0 %vm4170_vm3, %v6907_v56 }
 0x46a   : > { %6260 = vmatmul.mubr.msk.f32.gmra.mrb[24].mxu0 %vm4170_vm3, %v6908_v34 }
 0x46b   : > { %6262 = vmatprep.mubr.msk.f32.mxu0 %vm4170_vm3, %v6909_v22 }
 0x46e   : > { %6263 = vmatmul.mubr.msk.f32.gmra.mrb[26].mxu0 %vm4170_vm3, %v6910_v41 }
 0x46f   : > { %6265 = vmatprep.mubr.msk.f32.mxu0 %vm4170_vm3, %v6911_v28 }
 0x472   : > { %6266 = vmatmul.mubr.msk.f32.gmra.mrb[28].mxu0 %vm4170_vm3, %v9371_v29  ;;  %v5252_v29 = vld [vmem:[%s10367_s7] sm:$0xff] }
 0x473   : > { %6268 = vmatprep.mubr.msk.f32.mxu0 %vm4170_vm3, %v6912_v21 }
 0x476   : > { %6269 = vmatmul.mubr.msk.f32.gmra.mrb[30].mxu0 %vm4170_vm3, %v9442_v30  ;;  %v5253_v30 = vld [vmem:[%s10367_s7 + $0x8] sm:$0xff] }
 0x477   : > { %v9799_v7 = vpack.c.bf16 %v5253_v30, %v5252_v29 }
 0x479   : > { %6428 = vmatprep.subr.bf16.mxu1 %v9799_v7 }
 0x50d   : > { %v6225_v12 = vpop.f32.mrb[0].mxu0 }
 0x50e   : > { %v4500_v62 = vadd.f32 %v6225_v12, %v9805_v32  ;;  %v4333_v55 = vpop.f32.mrb[1].mxu0 }
 0x50f   : > { %v4499_v38 = vadd.f32 %v9805_v32, %v4333_v55 }
 0x510   : > { %v4564_v63 = vmin.f32 %v4500_v62, 0.0  ;;  %vm4532_vm5 = vcmp.gt.f32.partialorder %v4500_v62, 0.0 }
 0x511   : > { %v4563_v47 = vmin.f32 %v4499_v38, 0.0  ;;  %v6228_v31 = vpop.f32.mrb[2].mxu0  ;;  %vm4531_vm4 = vcmp.gt.f32.partialorder %v4499_v38, 0.0 }
 0x512   : > { %v4597_v48 = vmul.f32 1.442695, %v4564_v63  ;;  %v9810_v50 = vadd.f32 %v6228_v31, %v9805_v32  ;;  %v4343_v58 = vpop.f32.mrb[3].mxu0  ;;  %v5257_v63 = vld [vmem:[%s10367_s7 + $0x28] sm:$0xff] }
 0x513   : > { %v4595_v1 = vmul.f32 1.442695, %v4563_v47  ;;  %v9813_v52 = vadd.f32 %v9805_v32, %v4343_v58 }
 0x514   : > { %6755 = vpow2.f32 %v4597_v48  ;;  %v4566_v24 = vmin.f32 %v9810_v50, 0.0  ;;  %vm4534_vm7 = vcmp.gt.f32.partialorder %v9810_v50, 0.0 }
 0x515   : > { %6757 = vpow2.f32 %v4595_v1  ;;  %v4565_v4 = vmin.f32 %v9813_v52, 0.0  ;;  %v6231_v27 = vpop.f32.mrb[4].mxu0  ;;  %vm4533_vm6 = vcmp.gt.f32.partialorder %v9813_v52, 0.0 }
 0x516   : > { %v4601_v49 = vmul.f32 1.442695, %v4566_v24  ;;  %v9818_v45 = vadd.f32 %v6231_v27, %v9805_v32  ;;  %v4353_v61 = vpop.f32.mrb[5].mxu0 }
 0x517   : > { %v4599_v40 = vmul.f32 1.442695, %v4565_v4  ;;  %v9821_v20 = vadd.f32 %v9805_v32, %v4353_v61 }
 0x518   : > { %6759 = vpow2.f32 %v4601_v49  ;;  %v4568_v60 = vmin.f32 %v9818_v45, 0.0  ;;  %vm4536_vm10 = vcmp.gt.f32.partialorder %v9818_v45, 0.0 }
 0x519   : > { %6761 = vpow2.f32 %v4599_v40  ;;  %v4567_v54 = vmin.f32 %v9821_v20, 0.0  ;;  %v6234_v13 = vpop.f32.mrb[6].mxu0  ;;  %vm4535_vm8 = vcmp.gt.f32.partialorder %v9821_v20, 0.0 }
 0x51a   : > { %v4605_v17 = vmul.f32 1.442695, %v4568_v60  ;;  %v9826_v42 = vadd.f32 %v6234_v13, %v9805_v32  ;;  %v4363_v43 = vpop.f32.mrb[7].mxu0 }
 0x51b   : > { %v4603_v46 = vmul.f32 1.442695, %v4567_v54  ;;  %v9829_v57 = vadd.f32 %v9805_v32, %v4363_v43 }
 0x51c   : > { %6763 = vpow2.f32 %v4605_v17  ;;  %v4570_v6 = vmin.f32 %v9826_v42, 0.0  ;;  %vm4538_vm11 = vcmp.gt.f32.partialorder %v9826_v42, 0.0 }
 0x51d   : > { %6765 = vpow2.f32 %v4603_v46  ;;  %v4569_v36 = vmin.f32 %v9829_v57, 0.0  ;;  %v6237_v59 = vpop.f32.mrb[8].mxu0  ;;  %vm4537_vm9 = vcmp.gt.f32.partialorder %v9829_v57, 0.0 }
 0x51e   : > { %v6756_v14 = vpop.eup %6755  ;;  %v4609_v39 = vmul.f32 1.442695, %v4570_v6  ;;  %v9834_v26 = vadd.f32 %v6237_v59, %v9805_v32  ;;  %v4373_v19 = vpop.f32.mrb[9].mxu0 }
 0x51f   : > { %v6758_v53 = vpop.eup %6757  ;;  %v5882_v51 = vadd.f32 -1.0, %v6756_v14  ;;  %v4607_v8 = vmul.f32 1.442695, %v4569_v36  ;;  %v9837_v10 = vadd.f32 %v9805_v32, %v4373_v19 }
 0x520   : > { %6767 = vpow2.f32 %v4609_v39  ;;  %v4572_v2 = vmin.f32 %v9834_v26, 0.0  ;;  %v5881_v9 = vadd.f32 -1.0, %v6758_v53  ;;  %vm4540_vm0 = vcmp.gt.f32.partialorder %v9834_v26, 0.0 }
 0x521   : > { %6769 = vpow2.f32 %v4607_v8  ;;  %v4571_v3 = vmin.f32 %v9837_v10, 0.0  ;;  %v6240_v23 = vpop.f32.mrb[10].mxu0  ;;  %v4692_v56 = vsel %vm4532_vm5, %v4500_v62, %v5882_v51  ;;  %vm4539_vm13 = vcmp.gt.f32.partialorder %v9837_v10, 0.0 }
 0x522   : > { %v6760_v44 = vpop.eup %6759  ;;  %v4613_v16 = vmul.f32 1.442695, %v4572_v2  ;;  %v9842_v25 = vadd.f32 %v6240_v23, %v9805_v32  ;;  %v4383_v33 = vpop.f32.mrb[11].mxu0  ;;  %v4691_v11 = vsel %vm4531_vm4, %v4499_v38, %v5881_v9  ;;  %v5256_v38 = vld [vmem:[%s10367_s7 + $0x20] sm:$0xff] }
 0x523   : > { %v6762_v18 = vpop.eup %6761  ;;  %v4611_v34 = vmul.f32 1.442695, %v4571_v3  ;;  %v9851_v22 = vadd.f32 %v9805_v32, %v4383_v33  ;;  %6287 = vmatprep.mubr.msk.f32.mxu0 %vm4738_vm12, %v4691_v11  ;;  %v5884_v41 = vadd.f32 -1.0, %v6760_v44  ;;  %v6435_v49 = vpack.c.bf16 %v5257_v63, %v5256_v38 }
 0x524   : > { %6771 = vpow2.f32 %v4613_v16  ;;  %v4574_v28 = vmin.f32 %v9842_v25, 0.0  ;;  %6288 = vmatmul.mubr.msk.f32.vlgmr.msra.gmra.mrb[32].mxu0 %vm4738_vm12, %v4692_v56  ;;  %v5883_v21 = vadd.f32 -1.0, %v6762_v18  ;;  %vm4542_vm15 = vcmp.gt.f32.partialorder %v9842_v25, 0.0 }
 0x525   : > { %6773 = vpow2.f32 %v4611_v34  ;;  %v4573_v0 = vmin.f32 %v9851_v22, 0.0  ;;  %v6243_v15 = vpop.f32.mrb[12].mxu0  ;;  %v4694_v58 = vsel %vm4534_vm7, %v9810_v50, %v5884_v41  ;;  %vm4541_vm14 = vcmp.gt.f32.partialorder %v9851_v22, 0.0 }
 0x526   : > { %v6764_v29 = vpop.eup %6763  ;;  %v4617_v30 = vmul.f32 1.442695, %v4574_v28  ;;  %v9860_v12 = vadd.f32 %v6243_v15, %v9805_v32  ;;  %v4393_v62 = vpop.f32.mrb[13].mxu0  ;;  %v4693_v55 = vsel %vm4533_vm6, %v9813_v52, %v5883_v21 }
 0x527   : > { %v6766_v47 = vpop.eup %6765  ;;  %v4615_v31 = vmul.f32 1.442695, %v4573_v0  ;;  %v9870_v48 = vadd.f32 %v9805_v32, %v4393_v62  ;;  %6290 = vmatprep.mubr.msk.f32.mxu1 %vm4738_vm12, %v4693_v55  ;;  %v5886_v1 = vadd.f32 -1.0, %v6764_v29 }
 0x528   : > { %6775 = vpow2.f32 %v4617_v30  ;;  %v4576_v52 = vmin.f32 %v9860_v12, 0.0  ;;  %6291 = vmatmul.mubr.msk.f32.vlgmr.msra.gmra.mrb[0].mxu1 %vm4738_vm12, %v4694_v58  ;;  %v5885_v24 = vadd.f32 -1.0, %v6766_v47  ;;  %vm4544_vm2 = vcmp.gt.f32.partialorder %v9860_v12, 0.0 }
 0x529   : > { %6777 = vpow2.f32 %v4615_v31  ;;  %v4575_v4 = vmin.f32 %v9870_v48, 0.0  ;;  %v6246_v27 = vpop.f32.mrb[14].mxu0  ;;  %6430 = vmatpush3.bf16.msra.mxu1 %v9799_v7  ;;  %v4696_v7 = vsel %vm4536_vm10, %v9818_v45, %v5886_v1  ;;  %vm4543_vm1 = vcmp.gt.f32.partialorder %v9870_v48, 0.0 }
 0x52a   : > { %v6768_v61 = vpop.eup %6767  ;;  %v4621_v50 = vmul.f32 1.442695, %v4576_v52  ;;  %v9881_v40 = vadd.f32 %v6246_v27, %v9805_v32  ;;  %v4403_v60 = vpop.f32.mrb[15].mxu0  ;;  %v4695_v54 = vsel %vm4535_vm8, %v9821_v20, %v5885_v24  ;;  %6432 = vmatprep.subr.bf16.mxu1 %v6431_v37 }
 0x52b   : > { %v6770_v13 = vpop.eup %6769  ;;  %v4619_v17 = vmul.f32 1.442695, %v4575_v4  ;;  %v9885_v43 = vadd.f32 %v9805_v32, %v4403_v60  ;;  %6293 = vmatprep.mubr.msk.f32.mxu1 %vm4738_vm12, %v4695_v54  ;;  %v5888_v46 = vadd.f32 -1.0, %v6768_v61 }
 0x52c   : > { %6779 = vpow2.f32 %v4621_v50  ;;  %v4578_v6 = vmin.f32 %v9881_v40, 0.0  ;;  %6294 = vmatmul.mubr.msk.f32.gmra.mrb[2].mxu1 %vm4738_vm12, %v4696_v7  ;;  %v5887_v36 = vadd.f32 -1.0, %v6770_v13  ;;  %vm4546_vm4 = vcmp.gt.f32.partialorder %v9881_v40, 0.0 }
 0x52d   : > { %6781 = vpow2.f32 %v4619_v17  ;;  %v4577_v20 = vmin.f32 %v9885_v43, 0.0  ;;  %v6249_v59 = vpop.f32.mrb[16].mxu0  ;;  %6434 = vmatpush3.bf16.msra.mxu1 %v6431_v37  ;;  %v4698_v9 = vsel %vm4538_vm11, %v9826_v42, %v5888_v46  ;;  %vm4545_vm3 = vcmp.gt.f32.partialorder %v9885_v43, 0.0 }
 0x52e   : > { %v6772_v14 = vpop.eup %6771  ;;  %v4625_v39 = vmul.f32 1.442695, %v4578_v6  ;;  %v9895_v45 = vadd.f32 %v6249_v59, %v9805_v32  ;;  %v4413_v19 = vpop.f32.mrb[17].mxu0  ;;  %v4697_v53 = vsel %vm4537_vm9, %v9829_v57, %v5887_v36  ;;  %6436 = vmatprep.subr.bf16.mxu1 %v6435_v49 }
 0x52f   : > { %v6774_v51 = vpop.eup %6773  ;;  %v4623_v8 = vmul.f32 1.442695, %v4577_v20  ;;  %v9899_v2 = vadd.f32 %v9805_v32, %v4413_v19  ;;  %6296 = vmatprep.mubr.msk.f32.mxu1 %vm4738_vm12, %v4697_v53  ;;  %v5890_v3 = vadd.f32 -1.0, %v6772_v14 }
 0x530   : > { %6783 = vpow2.f32 %v4625_v39  ;;  %v4580_v23 = vmin.f32 %v9895_v45, 0.0  ;;  %6297 = vmatmul.mubr.msk.f32.gmra.mrb[4].mxu1 %vm4738_vm12, %v4698_v9  ;;  %v5889_v44 = vadd.f32 -1.0, %v6774_v51  ;;  %vm4548_vm6 = vcmp.gt.f32.partialorder %v9895_v45, 0.0 }
 0x531   : > { %6785 = vpow2.f32 %v4623_v8  ;;  %v4579_v57 = vmin.f32 %v9899_v2, 0.0  ;;  %v6252_v16 = vpop.f32.mrb[18].mxu0  ;;  %6438 = vmatpush3.bf16.msra.mxu1 %v6435_v49  ;;  %v4700_v41 = vsel %vm4540_vm0, %v9834_v26, %v5890_v3  ;;  %vm4547_vm5 = vcmp.gt.f32.partialorder %v9899_v2, 0.0 }
 0x532   : > { %v6776_v33 = vpop.eup %6775  ;;  %v4629_v11 = vmul.f32 1.442695, %v4580_v23  ;;  %v9909_v42 = vadd.f32 %v6252_v16, %v9805_v32  ;;  %v4423_v35 = vpop.f32.mrb[19].mxu0  ;;  %v4699_v5 = vsel %vm4539_vm13, %v9837_v10, %v5889_v44 }
 0x533   : > { %v6778_v18 = vpop.eup %6777  ;;  %v4627_v56 = vmul.f32 1.442695, %v4579_v57  ;;  %v9913_v34 = vadd.f32 %v9805_v32, %v4423_v35  ;;  %6299 = vmatprep.mubr.msk.f32.mxu1 %vm4738_vm12, %v4699_v5  ;;  %v5892_v28 = vadd.f32 -1.0, %v6776_v33 }
 0x534   : > { %6787 = vpow2.f32 %v4629_v11  ;;  %v4582_v21 = vmin.f32 %v9909_v42, 0.0  ;;  %6300 = vmatmul.mubr.msk.f32.gmra.mrb[6].mxu1 %vm4738_vm12, %v4700_v41  ;;  %v5891_v0 = vadd.f32 -1.0, %v6778_v18  ;;  %vm4550_vm8 = vcmp.gt.f32.partialorder %v9909_v42, 0.0 }
 0x535   : > { %6789 = vpow2.f32 %v4627_v56  ;;  %v4581_v10 = vmin.f32 %v9913_v34, 0.0  ;;  %v6255_v15 = vpop.f32.mrb[20].mxu0  ;;  %v4702_v47 = vsel %vm4542_vm15, %v9842_v25, %v5892_v28  ;;  %vm4549_vm7 = vcmp.gt.f32.partialorder %v9913_v34, 0.0 }
 0x536   : > { %v6780_v37 = vpop.eup %6779  ;;  %v4633_v29 = vmul.f32 1.442695, %v4582_v21  ;;  %v9923_v30 = vadd.f32 %v6255_v15, %v9805_v32  ;;  %v4433_v26 = vpop.f32.mrb[21].mxu0  ;;  %v4701_v62 = vsel %vm4541_vm14, %v9851_v22, %v5891_v0 }
 0x537   : > { %v6782_v55 = vpop.eup %6781  ;;  %v4631_v38 = vmul.f32 1.442695, %v4581_v10  ;;  %v9927_v63 = vadd.f32 %v9805_v32, %v4433_v26  ;;  %6302 = vmatprep.mubr.msk.f32.mxu1 %vm4738_vm12, %v4701_v62  ;;  %v5894_v31 = vadd.f32 -1.0, %v6780_v37 }
 0x538   : > { %6791 = vpow2.f32 %v4633_v29  ;;  %v4584_v58 = vmin.f32 %v9923_v30, 0.0  ;;  %6303 = vmatmul.mubr.msk.f32.gmra.mrb[8].mxu1 %vm4738_vm12, %v4702_v47  ;;  %v5893_v1 = vadd.f32 -1.0, %v6782_v55  ;;  %vm4552_vm9 = vcmp.gt.f32.partialorder %v9923_v30, 0.0 }
 0x539   : > { %6793 = vpow2.f32 %v4631_v38  ;;  %v4583_v22 = vmin.f32 %v9927_v63, 0.0  ;;  %v6258_v52 = vpop.f32.mrb[22].mxu0  ;;  %v4704_v54 = vsel %vm4544_vm2, %v9860_v12, %v5894_v31  ;;  %vm4551_vm10 = vcmp.gt.f32.partialorder %v9927_v63, 0.0 }
 0x53a   : > { %v6784_v24 = vpop.eup %6783  ;;  %v4637_v4 = vmul.f32 1.442695, %v4584_v58  ;;  %v9937_v27 = vadd.f32 %v6258_v52, %v9805_v32  ;;  %v4443_v25 = vpop.f32.mrb[23].mxu0  ;;  %v4703_v49 = vsel %vm4543_vm1, %v9870_v48, %v5893_v1 }
 0x53b   : > { %v6786_v61 = vpop.eup %6785  ;;  %v4635_v50 = vmul.f32 1.442695, %v4583_v22  ;;  %v9941_v60 = vadd.f32 %v9805_v32, %v4443_v25  ;;  %6305 = vmatprep.mubr.msk.f32.mxu1 %vm4738_vm12, %v4703_v49  ;;  %v5896_v13 = vadd.f32 -1.0, %v6784_v24 }
 0x53c   : > { %6795 = vpow2.f32 %v4637_v4  ;;  %v4586_v17 = vmin.f32 %v9937_v27, 0.0  ;;  %6306 = vmatmul.mubr.msk.f32.gmra.mrb[10].mxu1 %vm4738_vm12, %v4704_v54  ;;  %v5895_v7 = vadd.f32 -1.0, %v6786_v61  ;;  %vm4554_vm13 = vcmp.gt.f32.partialorder %v9937_v27, 0.0 }
 0x53d   : > { %6797 = vpow2.f32 %v4635_v50  ;;  %v4585_v48 = vmin.f32 %v9941_v60, 0.0  ;;  %v6261_v46 = vpop.f32.mrb[24].mxu0  ;;  %v4706_v53 = vsel %vm4546_vm4, %v9881_v40, %v5896_v13  ;;  %vm4553_vm11 = vcmp.gt.f32.partialorder %v9941_v60, 0.0 }
 0x53e   : > { %v6788_v6 = vpop.eup %6787  ;;  %v4641_v36 = vmul.f32 1.442695, %v4586_v17  ;;  %v9951_v20 = vadd.f32 %v6261_v46, %v9805_v32  ;;  %v4453_v12 = vpop.f32.mrb[25].mxu0  ;;  %v4705_v59 = vsel %vm4545_vm3, %v9885_v43, %v5895_v7 }
 0x53f   : > { %v6790_v14 = vpop.eup %6789  ;;  %v4639_v39 = vmul.f32 1.442695, %v4585_v48  ;;  %v9955_v19 = vadd.f32 %v9805_v32, %v4453_v12  ;;  %6308 = vmatprep.mubr.msk.f32.mxu1 %vm4738_vm12, %v4705_v59  ;;  %v5898_v51 = vadd.f32 -1.0, %v6788_v6 }
 0x540   : > { %6799 = vpow2.f32 %v4641_v36  ;;  %v4588_v8 = vmin.f32 %v9951_v20, 0.0  ;;  %6309 = vmatmul.mubr.msk.f32.gmra.mrb[12].mxu1 %vm4738_vm12, %v4706_v53  ;;  %v5897_v9 = vadd.f32 -1.0, %v6790_v14  ;;  %vm4556_vm14 = vcmp.gt.f32.partialorder %v9951_v20, 0.0 }
 0x541   : > { %6801 = vpow2.f32 %v4639_v39  ;;  %v4587_v43 = vmin.f32 %v9955_v19, 0.0  ;;  %v6264_v3 = vpop.f32.mrb[26].mxu0  ;;  %v4708_v5 = vsel %vm4548_vm6, %v9895_v45, %v5898_v51  ;;  %vm4555_vm0 = vcmp.gt.f32.partialorder %v9955_v19, 0.0 }
 0x542   : > { %v6792_v23 = vpop.eup %6791  ;;  %v4645_v44 = vmul.f32 1.442695, %v4588_v8  ;;  %v9965_v57 = vadd.f32 %v6264_v3, %v9805_v32  ;;  %v4463_v40 = vpop.f32.mrb[27].mxu0  ;;  %v4707_v16 = vsel %vm4547_vm5, %v9899_v2, %v5897_v9 }
 0x543   : > { %v6794_v33 = vpop.eup %6793  ;;  %v4643_v11 = vmul.f32 1.442695, %v4587_v43  ;;  %v9969_v35 = vadd.f32 %v9805_v32, %v4463_v40  ;;  %6311 = vmatprep.mubr.msk.f32.mxu1 %vm4738_vm12, %v4707_v16  ;;  %v5900_v18 = vadd.f32 -1.0, %v6792_v23 }
 0x544   : > { %6803 = vpow2.f32 %v4645_v44  ;;  %v4590_v56 = vmin.f32 %v9965_v57, 0.0  ;;  %6312 = vmatmul.mubr.msk.f32.gmra.mrb[14].mxu1 %vm4738_vm12, %v4708_v5  ;;  %v5899_v41 = vadd.f32 -1.0, %v6794_v33  ;;  %vm4558_vm1 = vcmp.gt.f32.partialorder %v9965_v57, 0.0  ;;  %v5258_v33 = vld [vmem:[%s10367_s7 + $0x30] sm:$0xff]  ;;  %v10038_v5 = vld [vmem:[%s10366_s6] ss:$0 sm:$0xff] }
 0x545   : > { %6805 = vpow2.f32 %v4643_v11  ;;  %v4589_v2 = vmin.f32 %v9969_v35, 0.0  ;;  %v6267_v28 = vpop.f32.mrb[28].mxu0  ;;  %v4710_v62 = vsel %vm4550_vm8, %v9909_v42, %v5900_v18  ;;  %vm4557_vm15 = vcmp.gt.f32.partialorder %v9969_v35, 0.0  ;;  %v5259_v11 = vld [vmem:[%s10367_s7 + $0x38] sm:$0xff] }
 0x546   : > { %v6796_v21 = vpop.eup %6795  ;;  %v4649_v0 = vmul.f32 1.442695, %v4590_v56  ;;  %v9979_v10 = vadd.f32 %v6267_v28, %v9805_v32  ;;  %v4473_v45 = vpop.f32.mrb[29].mxu0  ;;  %v4709_v15 = vsel %vm4549_vm7, %v9913_v34, %v5899_v41 }
 0x547   : > { %v6798_v37 = vpop.eup %6797  ;;  %v4647_v29 = vmul.f32 1.442695, %v4589_v2  ;;  %v9983_v26 = vadd.f32 %v9805_v32, %v4473_v45  ;;  %6314 = vmatprep.mubr.msk.f32.mxu1 %vm4738_vm12, %v4709_v15  ;;  %v5902_v55 = vadd.f32 -1.0, %v6796_v21 }
 0x548   : > { %6807 = vpow2.f32 %v4649_v0  ;;  %v4592_v38 = vmin.f32 %v9979_v10, 0.0  ;;  %6315 = vmatmul.mubr.msk.f32.gmra.mrb[16].mxu1 %vm4738_vm12, %v4710_v62  ;;  %v5901_v47 = vadd.f32 -1.0, %v6798_v37  ;;  %vm4560_vm3 = vcmp.gt.f32.partialorder %v9979_v10, 0.0 }
 0x549   : > { %6809 = vpow2.f32 %v4647_v29  ;;  %v4591_v34 = vmin.f32 %v9983_v26, 0.0  ;;  %v6270_v31 = vpop.f32.mrb[30].mxu0  ;;  %v4712_v49 = vsel %vm4552_vm9, %v9923_v30, %v5902_v55  ;;  %vm4559_vm2 = vcmp.gt.f32.partialorder %v9983_v26, 0.0 }
 0x54a   : > { %v6800_v58 = vpop.eup %6799  ;;  %v4653_v1 = vmul.f32 1.442695, %v4592_v38  ;;  %v9993_v22 = vadd.f32 %v6270_v31, %v9805_v32  ;;  %v4483_v42 = vpop.f32.mrb[31].mxu0  ;;  %v4711_v52 = vsel %vm4551_vm10, %v9927_v63, %v5901_v47 }
 0x54b   : > { %v6802_v24 = vpop.eup %6801  ;;  %v4651_v4 = vmul.f32 1.442695, %v4591_v34  ;;  %v4529_v25 = vadd.f32 %v9805_v32, %v4483_v42  ;;  %6317 = vmatprep.mubr.msk.f32.mxu1 %vm4738_vm12, %v4711_v52  ;;  %v5904_v61 = vadd.f32 -1.0, %v6800_v58 }
 0x54c   : > { %6811 = vpow2.f32 %v4653_v1  ;;  %v4594_v50 = vmin.f32 %v9993_v22, 0.0  ;;  %6318 = vmatmul.mubr.msk.f32.gmra.mrb[18].mxu1 %vm4738_vm12, %v4712_v49  ;;  %v5903_v54 = vadd.f32 -1.0, %v6802_v24  ;;  %vm4562_vm5 = vcmp.gt.f32.partialorder %v9993_v22, 0.0 }
 0x54d   : > { %6813 = vpow2.f32 %v4651_v4  ;;  %v4593_v13 = vmin.f32 %v4529_v25, 0.0  ;;  %v4714_v30 = vsel %vm4554_vm13, %v9937_v27, %v5904_v61  ;;  %vm4561_vm4 = vcmp.gt.f32.partialorder %v4529_v25, 0.0 }
 0x54e   : > { %v6804_v63 = vpop.eup %6803  ;;  %v4657_v17 = vmul.f32 1.442695, %v4594_v50  ;;  %v4713_v32 = vsel %vm4553_vm11, %v9941_v60, %v5903_v54 }
 0x54f   : > { %v6806_v7 = vpop.eup %6805  ;;  %v4655_v48 = vmul.f32 1.442695, %v4593_v13  ;;  %6320 = vmatprep.mubr.msk.f32.mxu1 %vm4738_vm12, %v4713_v32  ;;  %v5906_v46 = vadd.f32 -1.0, %v6804_v63 }
 0x550   : > { %6815 = vpow2.f32 %v4657_v17  ;;  %6321 = vmatmul.mubr.msk.f32.gmra.mrb[20].mxu1 %vm4738_vm12, %v4714_v30  ;;  %v5905_v6 = vadd.f32 -1.0, %v6806_v7 }
 0x551   : > { %6817 = vpow2.f32 %v4655_v48  ;;  %v4716_v59 = vsel %vm4556_vm14, %v9951_v20, %v5906_v46 }
 0x552   : > { %v6808_v36 = vpop.eup %6807  ;;  %v4715_v12 = vsel %vm4555_vm0, %v9955_v19, %v5905_v6 }
 0x553   : > { %v6810_v60 = vpop.eup %6809  ;;  %6323 = vmatprep.mubr.msk.f32.mxu1 %vm4738_vm12, %v4715_v12  ;;  %v5908_v14 = vadd.f32 -1.0, %v6808_v36 }
 0x554   : > { %6324 = vmatmul.mubr.msk.f32.gmra.mrb[22].mxu1 %vm4738_vm12, %v4716_v59  ;;  %v5907_v27 = vadd.f32 -1.0, %v6810_v60 }
 0x555   : > { %v4718_v19 = vsel %vm4558_vm1, %v9965_v57, %v5908_v14 }
 0x556   : > { %v6812_v39 = vpop.eup %6811  ;;  %v4717_v53 = vsel %vm4557_vm15, %v9969_v35, %v5907_v27  ;;  %v6439_v35 = vpack.c.bf16 %v5259_v11, %v5258_v33 }
 0x557   : > { %v6814_v51 = vpop.eup %6813  ;;  %6326 = vmatprep.mubr.msk.f32.mxu1 %vm4738_vm12, %v4717_v53  ;;  %v5910_v8 = vadd.f32 -1.0, %v6812_v39 }
 0x558   : > { %6327 = vmatmul.mubr.msk.f32.gmra.mrb[24].mxu1 %vm4738_vm12, %v4718_v19  ;;  %v5909_v20 = vadd.f32 -1.0, %v6814_v51  ;;  %6440 = vmatprep.subr.bf16.mxu1 %v6439_v35 }
 0x559   : > { %v4720_v23 = vsel %vm4560_vm3, %v9979_v10, %v5910_v8  ;;  %6442 = vmatpush3.bf16.msra.mxu1 %v6439_v35 }
 0x55a   : > { %v6816_v9 = vpop.eup %6815  ;;  %v4719_v43 = vsel %vm4559_vm2, %v9983_v26, %v5909_v20 }
 0x55b   : > { %v6818_v3 = vpop.eup %6817  ;;  %6329 = vmatprep.mubr.msk.f32.mxu1 %vm4738_vm12, %v4719_v43  ;;  %v5912_v44 = vadd.f32 -1.0, %v6816_v9 }
 0x55c   : > { %6330 = vmatmul.mubr.msk.f32.gmra.mrb[26].mxu1 %vm4738_vm12, %v4720_v23  ;;  %v5911_v57 = vadd.f32 -1.0, %v6818_v3 }
 0x55d   : > { %v4722_v16 = vsel %vm4562_vm5, %v9993_v22, %v5912_v44 }
 0x55e   : > { %v4721_v40 = vsel %vm4561_vm4, %v4529_v25, %v5911_v57 }
 0x55f   : > { %6332 = vmatprep.mubr.msk.f32.mxu1 %vm4738_vm12, %v4721_v40 }
 0x560   : > { %6333 = vmatmul.mubr.msk.f32.gmra.mrb[28].mxu1 %vm4738_vm12, %v4722_v16 }
 0x5f7   : > { %v6289_v18 = vpop.f32.mrb[32].mxu0 }
 0x5f8   : > { %v4907_v56 = vadd.f32 %v6289_v18, %v10038_v5  ;;  %v4901_v41 = vpop.f32.mrb[33].mxu0 }
 0x5f9   : > { %v4902_v2 = vadd.f32 %v10038_v5, %v4901_v41 }
 0x5fa   : > { %v5093_v28 = vmin.f32 %v4907_v56, 0.0  ;;  %vm5061_vm7 = vcmp.gt.f32.partialorder %v4907_v56, 0.0 }
 0x5fb   : > { %v5092_v21 = vmin.f32 %v4902_v2, 0.0  ;;  %v6292_v0 = vpop.f32.mrb[0].mxu1  ;;  %vm5060_vm6 = vcmp.gt.f32.partialorder %v4902_v2, 0.0 }
 0x5fc   : > { %v5126_v10 = vmul.f32 1.442695, %v5093_v28  ;;  %v10043_v45 = vadd.f32 %v6292_v0, %v10038_v5  ;;  %v4911_v15 = vpop.f32.mrb[1].mxu1 }
 0x5fd   : > { %v5124_v37 = vmul.f32 1.442695, %v5092_v21  ;;  %v10046_v29 = vadd.f32 %v10038_v5, %v4911_v15 }
 0x5fe   : > { %6819 = vpow2.f32 %v5126_v10  ;;  %v5095_v26 = vmin.f32 %v10043_v45, 0.0  ;;  %vm5063_vm10 = vcmp.gt.f32.partialorder %v10043_v45, 0.0 }
 0x5ff   : > { %6821 = vpow2.f32 %v5124_v37  ;;  %v5094_v62 = vmin.f32 %v10046_v29, 0.0  ;;  %v6295_v55 = vpop.f32.mrb[2].mxu1  ;;  %vm5062_vm8 = vcmp.gt.f32.partialorder %v10046_v29, 0.0 }
 0x600   : > { %v5130_v38 = vmul.f32 1.442695, %v5095_v26  ;;  %v10051_v47 = vadd.f32 %v6295_v55, %v10038_v5  ;;  %v4921_v34 = vpop.f32.mrb[3].mxu1 }
 0x601   : > { %v5128_v31 = vmul.f32 1.442695, %v5094_v62  ;;  %v10054_v58 = vadd.f32 %v10038_v5, %v4921_v34 }
 0x602   : > { %6823 = vpow2.f32 %v5130_v38  ;;  %v5097_v1 = vmin.f32 %v10051_v47, 0.0  ;;  %vm5065_vm11 = vcmp.gt.f32.partialorder %v10051_v47, 0.0 }
 0x603   : > { %6825 = vpow2.f32 %v5128_v31  ;;  %v5096_v22 = vmin.f32 %v10054_v58, 0.0  ;;  %v6298_v42 = vpop.f32.mrb[4].mxu1  ;;  %vm5064_vm9 = vcmp.gt.f32.partialorder %v10054_v58, 0.0 }
 0x604   : > { %v5134_v52 = vmul.f32 1.442695, %v5097_v1  ;;  %v10059_v24 = vadd.f32 %v6298_v42, %v10038_v5  ;;  %v4931_v4 = vpop.f32.mrb[5].mxu1 }
 0x605   : > { %v5132_v25 = vmul.f32 1.442695, %v5096_v22  ;;  %v10062_v49 = vadd.f32 %v10038_v5, %v4931_v4 }
 0x606   : > { %6827 = vpow2.f32 %v5134_v52  ;;  %v5099_v61 = vmin.f32 %v10059_v24, 0.0  ;;  %vm5067_vm0 = vcmp.gt.f32.partialorder %v10059_v24, 0.0 }
 0x607   : > { %6829 = vpow2.f32 %v5132_v25  ;;  %v5098_v50 = vmin.f32 %v10062_v49, 0.0  ;;  %v6301_v54 = vpop.f32.mrb[6].mxu1  ;;  %vm5066_vm13 = vcmp.gt.f32.partialorder %v10062_v49, 0.0 }
 0x608   : > { %v6820_v13 = vpop.eup %6819  ;;  %v5138_v63 = vmul.f32 1.442695, %v5099_v61  ;;  %v10067_v17 = vadd.f32 %v6301_v54, %v10038_v5  ;;  %v4941_v32 = vpop.f32.mrb[7].mxu1 }
 0x609   : > { %v6822_v7 = vpop.eup %6821  ;;  %v5947_v48 = vadd.f32 -1.0, %v6820_v13  ;;  %v5136_v30 = vmul.f32 1.442695, %v5098_v50  ;;  %v10070_v46 = vadd.f32 %v10038_v5, %v4941_v32 }
 0x60a   : > { %6831 = vpow2.f32 %v5138_v63  ;;  %v5101_v6 = vmin.f32 %v10067_v17, 0.0  ;;  %v5946_v36 = vadd.f32 -1.0, %v6822_v7  ;;  %vm5069_vm15 = vcmp.gt.f32.partialorder %v10067_v17, 0.0 }
 0x60b   : > { %6833 = vpow2.f32 %v5136_v30  ;;  %v5100_v12 = vmin.f32 %v10070_v46, 0.0  ;;  %v6304_v60 = vpop.f32.mrb[8].mxu1  ;;  %v5221_v19 = vsel %vm5061_vm7, %v4907_v56, %v5947_v48  ;;  %vm5068_vm14 = vcmp.gt.f32.partialorder %v10070_v46, 0.0 }
 0x60c   : > { %v6824_v59 = vpop.eup %6823  ;;  %v5142_v14 = vmul.f32 1.442695, %v5101_v6  ;;  %v10075_v27 = vadd.f32 %v6304_v60, %v10038_v5  ;;  %v4951_v39 = vpop.f32.mrb[9].mxu1  ;;  %v5220_v53 = vsel %vm5060_vm6, %v4902_v2, %v5946_v36 }
 0x60d   : > { %v6826_v51 = vpop.eup %6825  ;;  %v5140_v8 = vmul.f32 1.442695, %v5100_v12  ;;  %v10078_v20 = vadd.f32 %v10038_v5, %v4951_v39  ;;  %6351 = vmatprep.mubr.msk.f32.mxu1 %vm4738_vm12, %v5220_v53  ;;  %v5949_v9 = vadd.f32 -1.0, %v6824_v59 }
 0x60e   : > { %6835 = vpow2.f32 %v5142_v14  ;;  %v5103_v43 = vmin.f32 %v10075_v27, 0.0  ;;  %6352 = vmatmul.mubr.msk.f32.vlgmr.msra.gmra.mrb[30].mxu1 %vm4738_vm12, %v5221_v19  ;;  %v5948_v3 = vadd.f32 -1.0, %v6826_v51  ;;  %vm5071_vm2 = vcmp.gt.f32.partialorder %v10075_v27, 0.0 }
 0x60f   : > { %6837 = vpow2.f32 %v5140_v8  ;;  %v5102_v23 = vmin.f32 %v10078_v20, 0.0  ;;  %v6307_v44 = vpop.f32.mrb[10].mxu1  ;;  %v5223_v41 = vsel %vm5063_vm10, %v10043_v45, %v5949_v9  ;;  %vm5070_vm1 = vcmp.gt.f32.partialorder %v10078_v20, 0.0 }
 0x610   : > { %v6828_v57 = vpop.eup %6827  ;;  %v5146_v40 = vmul.f32 1.442695, %v5103_v43  ;;  %v10087_v16 = vadd.f32 %v6307_v44, %v10038_v5  ;;  %v4961_v33 = vpop.f32.mrb[11].mxu1  ;;  %v5222_v11 = vsel %vm5062_vm8, %v10046_v29, %v5948_v3 }
 0x611   : > { %v6830_v35 = vpop.eup %6829  ;;  %v5144_v18 = vmul.f32 1.442695, %v5102_v23  ;;  %v10091_v56 = vadd.f32 %v10038_v5, %v4961_v33  ;;  %6354 = vmatprep.mubr.msk.f32.mxu1 %vm4738_vm12, %v5222_v11  ;;  %v5951_v2 = vadd.f32 -1.0, %v6828_v57 }
 0x612   : > { %6839 = vpow2.f32 %v5146_v40  ;;  %v5105_v28 = vmin.f32 %v10087_v16, 0.0  ;;  %6355 = vmatmul.mubr.msk.f32.gmra.mrb[32].mxu1 %vm4738_vm12, %v5223_v41  ;;  %v5950_v21 = vadd.f32 -1.0, %v6830_v35  ;;  %vm5073_vm4 = vcmp.gt.f32.partialorder %v10087_v16, 0.0 }
 0x613   : > { %6841 = vpow2.f32 %v5144_v18  ;;  %v5104_v0 = vmin.f32 %v10091_v56, 0.0  ;;  %v6310_v10 = vpop.f32.mrb[12].mxu1  ;;  %v5225_v34 = vsel %vm5065_vm11, %v10051_v47, %v5951_v2  ;;  %vm5072_vm3 = vcmp.gt.f32.partialorder %v10091_v56, 0.0 }
 0x614   : > { %v6832_v15 = vpop.eup %6831  ;;  %v5150_v37 = vmul.f32 1.442695, %v5105_v28  ;;  %v10101_v29 = vadd.f32 %v6310_v10, %v10038_v5  ;;  %v4971_v45 = vpop.f32.mrb[13].mxu1  ;;  %v5224_v26 = vsel %vm5064_vm9, %v10054_v58, %v5950_v21 }
 0x615   : > { %v6834_v62 = vpop.eup %6833  ;;  %v5148_v55 = vmul.f32 1.442695, %v5104_v0  ;;  %v10105_v38 = vadd.f32 %v10038_v5, %v4971_v45  ;;  %6357 = vmatprep.mubr.msk.f32.mxu1 %vm4738_vm12, %v5224_v26  ;;  %v5953_v31 = vadd.f32 -1.0, %v6832_v15 }
 0x616   : > { %6843 = vpow2.f32 %v5150_v37  ;;  %v5107_v1 = vmin.f32 %v10101_v29, 0.0  ;;  %6358 = vmatmul.mubr.msk.f32.gmra.mrb[34].mxu1 %vm4738_vm12, %v5225_v34  ;;  %v5952_v22 = vadd.f32 -1.0, %v6834_v62  ;;  %vm5075_vm6 = vcmp.gt.f32.partialorder %v10101_v29, 0.0 }
 0x617   : > { %6845 = vpow2.f32 %v5148_v55  ;;  %v5106_v58 = vmin.f32 %v10105_v38, 0.0  ;;  %v6313_v42 = vpop.f32.mrb[14].mxu1  ;;  %v5227_v63 = vsel %vm5067_vm0, %v10059_v24, %v5953_v31  ;;  %vm5074_vm5 = vcmp.gt.f32.partialorder %v10105_v38, 0.0 }
 0x618   : > { %v6836_v52 = vpop.eup %6835  ;;  %v5154_v4 = vmul.f32 1.442695, %v5107_v1  ;;  %v10115_v25 = vadd.f32 %v6313_v42, %v10038_v5  ;;  %v4981_v47 = vpop.f32.mrb[15].mxu1  ;;  %v5226_v61 = vsel %vm5066_vm13, %v10062_v49, %v5952_v22 }
 0x619   : > { %v6838_v50 = vpop.eup %6837  ;;  %v5152_v54 = vmul.f32 1.442695, %v5106_v58  ;;  %v10119_v13 = vadd.f32 %v10038_v5, %v4981_v47  ;;  %6360 = vmatprep.mubr.msk.f32.mxu1 %vm4738_vm12, %v5226_v61  ;;  %v5955_v32 = vadd.f32 -1.0, %v6836_v52 }
 0x61a   : > { %6847 = vpow2.f32 %v5154_v4  ;;  %v5109_v7 = vmin.f32 %v10115_v25, 0.0  ;;  %6361 = vmatmul.mubr.msk.f32.gmra.mrb[36].mxu1 %vm4738_vm12, %v5227_v63  ;;  %v5954_v48 = vadd.f32 -1.0, %v6838_v50  ;;  %vm5077_vm8 = vcmp.gt.f32.partialorder %v10115_v25, 0.0 }
 0x61b   : > { %6849 = vpow2.f32 %v5152_v54  ;;  %v5108_v49 = vmin.f32 %v10119_v13, 0.0  ;;  %v6316_v30 = vpop.f32.mrb[16].mxu1  ;;  %v5229_v53 = vsel %vm5069_vm15, %v10067_v17, %v5955_v32  ;;  %vm5076_vm7 = vcmp.gt.f32.partialorder %v10119_v13, 0.0 }
 0x61c   : > { %v6840_v6 = vpop.eup %6839  ;;  %v5158_v36 = vmul.f32 1.442695, %v5109_v7  ;;  %v10129_v12 = vadd.f32 %v6316_v30, %v10038_v5  ;;  %v4991_v24 = vpop.f32.mrb[17].mxu1  ;;  %v5228_v60 = vsel %vm5068_vm14, %v10070_v46, %v5954_v48 }
 0x61d   : > { %v6842_v59 = vpop.eup %6841  ;;  %v5156_v14 = vmul.f32 1.442695, %v5108_v49  ;;  %v10133_v39 = vadd.f32 %v10038_v5, %v4991_v24  ;;  %6363 = vmatprep.mubr.msk.f32.mxu1 %vm4738_vm12, %v5228_v60  ;;  %v5957_v51 = vadd.f32 -1.0, %v6840_v6 }
 0x61e   : > { %6851 = vpow2.f32 %v5158_v36  ;;  %v5111_v19 = vmin.f32 %v10129_v12, 0.0  ;;  %6364 = vmatmul.mubr.msk.f32.gmra.mrb[38].mxu1 %vm4738_vm12, %v5229_v53  ;;  %v5956_v8 = vadd.f32 -1.0, %v6842_v59  ;;  %vm5079_vm9 = vcmp.gt.f32.partialorder %v10129_v12, 0.0 }
 0x61f   : > { %6853 = vpow2.f32 %v5156_v14  ;;  %v5110_v46 = vmin.f32 %v10133_v39, 0.0  ;;  %v6319_v9 = vpop.f32.mrb[18].mxu1  ;;  %v5231_v11 = vsel %vm5071_vm2, %v10075_v27, %v5957_v51  ;;  %vm5078_vm10 = vcmp.gt.f32.partialorder %v10133_v39, 0.0 }
 0x620   : > { %v6844_v43 = vpop.eup %6843  ;;  %v5162_v3 = vmul.f32 1.442695, %v5111_v19  ;;  %v10143_v23 = vadd.f32 %v6319_v9, %v10038_v5  ;;  %v5001_v17 = vpop.f32.mrb[19].mxu1  ;;  %v5230_v44 = vsel %vm5070_vm1, %v10078_v20, %v5956_v8 }
 0x621   : > { %v6846_v57 = vpop.eup %6845  ;;  %v5160_v40 = vmul.f32 1.442695, %v5110_v46  ;;  %v10147_v33 = vadd.f32 %v10038_v5, %v5001_v17  ;;  %6366 = vmatprep.mubr.msk.f32.mxu1 %vm4738_vm12, %v5230_v44  ;;  %v5959_v35 = vadd.f32 -1.0, %v6844_v43 }
 0x622   : > { %6855 = vpow2.f32 %v5162_v3  ;;  %v5113_v18 = vmin.f32 %v10143_v23, 0.0  ;;  %6367 = vmatmul.mubr.msk.f32.gmra.mrb[40].mxu1 %vm4738_vm12, %v5231_v11  ;;  %v5958_v41 = vadd.f32 -1.0, %v6846_v57  ;;  %vm5081_vm13 = vcmp.gt.f32.partialorder %v10143_v23, 0.0 }
 0x623   : > { %6857 = vpow2.f32 %v5160_v40  ;;  %v5112_v20 = vmin.f32 %v10147_v33, 0.0  ;;  %v6322_v2 = vpop.f32.mrb[20].mxu1  ;;  %v5233_v26 = vsel %vm5073_vm4, %v10087_v16, %v5959_v35  ;;  %vm5080_vm11 = vcmp.gt.f32.partialorder %v10147_v33, 0.0 }
 0x624   : > { %v6848_v28 = vpop.eup %6847  ;;  %v5166_v21 = vmul.f32 1.442695, %v5113_v18  ;;  %v10157_v0 = vadd.f32 %v6322_v2, %v10038_v5  ;;  %v5011_v27 = vpop.f32.mrb[21].mxu1  ;;  %v5232_v10 = vsel %vm5072_vm3, %v10091_v56, %v5958_v41 }
 0x625   : > { %v6850_v15 = vpop.eup %6849  ;;  %v5164_v37 = vmul.f32 1.442695, %v5112_v20  ;;  %v10161_v45 = vadd.f32 %v10038_v5, %v5011_v27  ;;  %6369 = vmatprep.mubr.msk.f32.mxu1 %vm4738_vm12, %v5232_v10  ;;  %v5961_v62 = vadd.f32 -1.0, %v6848_v28 }
 0x626   : > { %6859 = vpow2.f32 %v5166_v21  ;;  %v5115_v55 = vmin.f32 %v10157_v0, 0.0  ;;  %6370 = vmatmul.mubr.msk.f32.gmra.mrb[42].mxu1 %vm4738_vm12, %v5233_v26  ;;  %v5960_v34 = vadd.f32 -1.0, %v6850_v15  ;;  %vm5083_vm14 = vcmp.gt.f32.partialorder %v10157_v0, 0.0 }
 0x627   : > { %6861 = vpow2.f32 %v5164_v37  ;;  %v5114_v56 = vmin.f32 %v10161_v45, 0.0  ;;  %v6325_v31 = vpop.f32.mrb[22].mxu1  ;;  %v5235_v61 = vsel %vm5075_vm6, %v10101_v29, %v5961_v62  ;;  %vm5082_vm0 = vcmp.gt.f32.partialorder %v10161_v45, 0.0 }
 0x628   : > { %v6852_v1 = vpop.eup %6851  ;;  %v5170_v22 = vmul.f32 1.442695, %v5115_v55  ;;  %v10171_v58 = vadd.f32 %v6325_v31, %v10038_v5  ;;  %v5021_v16 = vpop.f32.mrb[23].mxu1  ;;  %v5234_v42 = vsel %vm5074_vm5, %v10105_v38, %v5960_v34 }
 0x629   : > { %v6854_v52 = vpop.eup %6853  ;;  %v5168_v4 = vmul.f32 1.442695, %v5114_v56  ;;  %v10175_v47 = vadd.f32 %v10038_v5, %v5021_v16  ;;  %6372 = vmatprep.mubr.msk.f32.mxu1 %vm4738_vm12, %v5234_v42  ;;  %v5963_v50 = vadd.f32 -1.0, %v6852_v1 }
 0x62a   : > { %6863 = vpow2.f32 %v5170_v22  ;;  %v5117_v54 = vmin.f32 %v10171_v58, 0.0  ;;  %6373 = vmatmul.mubr.msk.f32.gmra.mrb[44].mxu1 %vm4738_vm12, %v5235_v61  ;;  %v5962_v63 = vadd.f32 -1.0, %v6854_v52  ;;  %vm5085_vm1 = vcmp.gt.f32.partialorder %v10171_v58, 0.0 }
 0x62b   : > { %6865 = vpow2.f32 %v5168_v4  ;;  %v5116_v38 = vmin.f32 %v10175_v47, 0.0  ;;  %v6328_v32 = vpop.f32.mrb[24].mxu1  ;;  %v5237_v60 = vsel %vm5077_vm8, %v10115_v25, %v5963_v50  ;;  %vm5084_vm15 = vcmp.gt.f32.partialorder %v10175_v47, 0.0 }
 0x62c   : > { %v6856_v7 = vpop.eup %6855  ;;  %v5174_v48 = vmul.f32 1.442695, %v5117_v54  ;;  %v10185_v49 = vadd.f32 %v6328_v32, %v10038_v5  ;;  %v5031_v29 = vpop.f32.mrb[25].mxu1  ;;  %v5236_v30 = vsel %vm5076_vm7, %v10119_v13, %v5962_v63  ;;  %vm5588_vm8 = vcmask 97280  }
 0x62d   : > { %v6858_v6 = vpop.eup %6857  ;;  %v5172_v36 = vmul.f32 1.442695, %v5116_v38  ;;  %v10189_v24 = vadd.f32 %v10038_v5, %v5031_v29  ;;  %6375 = vmatprep.mubr.msk.f32.mxu1 %vm4738_vm12, %v5236_v30  ;;  %v5965_v59 = vadd.f32 -1.0, %v6856_v7 }
 0x62e   : > { %6867 = vpow2.f32 %v5174_v48  ;;  %v5119_v14 = vmin.f32 %v10185_v49, 0.0  ;;  %6376 = vmatmul.mubr.msk.f32.gmra.mrb[46].mxu1 %vm4738_vm12, %v5237_v60  ;;  %v5964_v53 = vadd.f32 -1.0, %v6858_v6  ;;  %vm5087_vm3 = vcmp.gt.f32.partialorder %v10185_v49, 0.0  ;;  %v10252_v6 = vld [vmem:[%s10368_s8] ss:$0 sm:$0xff] }
 0x62f   : > { %6869 = vpow2.f32 %v5172_v36  ;;  %v5118_v13 = vmin.f32 %v10189_v24, 0.0  ;;  %v6331_v51 = vpop.f32.mrb[26].mxu1  ;;  %v5239_v44 = vsel %vm5079_vm9, %v10129_v12, %v5965_v59  ;;  %vm5086_vm2 = vcmp.gt.f32.partialorder %v10189_v24, 0.0 }
 0x630   : > { %v6860_v19 = vpop.eup %6859  ;;  %v5178_v8 = vmul.f32 1.442695, %v5119_v14  ;;  %v10199_v46 = vadd.f32 %v6331_v51, %v10038_v5  ;;  %v5041_v25 = vpop.f32.mrb[27].mxu1  ;;  %v5238_v9 = vsel %vm5078_vm10, %v10133_v39, %v5964_v53 }
 0x631   : > { %v6862_v43 = vpop.eup %6861  ;;  %v5176_v3 = vmul.f32 1.442695, %v5118_v13  ;;  %v10203_v17 = vadd.f32 %v10038_v5, %v5041_v25  ;;  %6378 = vmatprep.mubr.msk.f32.mxu1 %vm4738_vm12, %v5238_v9  ;;  %v5967_v57 = vadd.f32 -1.0, %v6860_v19 }
 0x632   : > { %6871 = vpow2.f32 %v5178_v8  ;;  %v5121_v40 = vmin.f32 %v10199_v46, 0.0  ;;  %6379 = vmatmul.mubr.msk.f32.gmra.mrb[48].mxu1 %vm4738_vm12, %v5239_v44  ;;  %v5966_v11 = vadd.f32 -1.0, %v6862_v43  ;;  %vm5089_vm5 = vcmp.gt.f32.partialorder %v10199_v46, 0.0 }
 0x633   : > { %6873 = vpow2.f32 %v5176_v3  ;;  %v5120_v39 = vmin.f32 %v10203_v17, 0.0  ;;  %v6334_v35 = vpop.f32.mrb[28].mxu1  ;;  %v5241_v10 = vsel %vm5081_vm13, %v10143_v23, %v5967_v57  ;;  %vm5088_vm4 = vcmp.gt.f32.partialorder %v10203_v17, 0.0 }
 0x634   : > { %v6864_v18 = vpop.eup %6863  ;;  %v5182_v41 = vmul.f32 1.442695, %v5121_v40  ;;  %v10213_v20 = vadd.f32 %v6334_v35, %v10038_v5  ;;  %v5051_v12 = vpop.f32.mrb[29].mxu1  ;;  %v5240_v2 = vsel %vm5080_vm11, %v10147_v33, %v5966_v11 }
 0x635   : > { %v6866_v28 = vpop.eup %6865  ;;  %v5180_v21 = vmul.f32 1.442695, %v5120_v39  ;;  %v5052_v27 = vadd.f32 %v10038_v5, %v5051_v12  ;;  %6381 = vmatprep.mubr.msk.f32.mxu1 %vm4738_vm12, %v5240_v2  ;;  %v5969_v15 = vadd.f32 -1.0, %v6864_v18 }
 0x636   : > { %6875 = vpow2.f32 %v5182_v41  ;;  %v5123_v37 = vmin.f32 %v10213_v20, 0.0  ;;  %6382 = vmatmul.mubr.msk.f32.gmra.mrb[50].mxu1 %vm4738_vm12, %v5241_v10  ;;  %v5968_v26 = vadd.f32 -1.0, %v6866_v28  ;;  %vm5091_vm7 = vcmp.gt.f32.partialorder %v10213_v20, 0.0 }
 0x637   : > { %6877 = vpow2.f32 %v5180_v21  ;;  %v5122_v62 = vmin.f32 %v5052_v27, 0.0  ;;  %v5243_v23 = vsel %vm5083_vm14, %v10157_v0, %v5969_v15  ;;  %vm5090_vm6 = vcmp.gt.f32.partialorder %v5052_v27, 0.0 }
 0x638   : > { %v6868_v33 = vpop.eup %6867  ;;  %v5186_v55 = vmul.f32 1.442695, %v5123_v37  ;;  %v5242_v5 = vsel %vm5082_vm0, %v10161_v45, %v5968_v26 }
 0x639   : > { %v6870_v34 = vpop.eup %6869  ;;  %v5184_v56 = vmul.f32 1.442695, %v5122_v62  ;;  %6384 = vmatprep.mubr.msk.f32.mxu1 %vm4738_vm12, %v5242_v5  ;;  %v5971_v31 = vadd.f32 -1.0, %v6868_v33 }
 0x63a   : > { %6879 = vpow2.f32 %v5186_v55  ;;  %6385 = vmatmul.mubr.msk.f32.gmra.mrb[52].mxu1 %vm4738_vm12, %v5243_v23  ;;  %v5970_v1 = vadd.f32 -1.0, %v6870_v34 }
 0x63b   : > { %6881 = vpow2.f32 %v5184_v56  ;;  %v5245_v42 = vsel %vm5085_vm1, %v10171_v58, %v5971_v31 }
 0x63c   : > { %v6872_v22 = vpop.eup %6871  ;;  %v5244_v16 = vsel %vm5084_vm15, %v10175_v47, %v5970_v1 }
 0x63d   : > { %v6874_v45 = vpop.eup %6873  ;;  %6387 = vmatprep.mubr.msk.f32.mxu1 %vm4738_vm12, %v5244_v16  ;;  %v5973_v52 = vadd.f32 -1.0, %v6872_v22 }
 0x63e   : > { %6388 = vmatmul.mubr.msk.f32.gmra.mrb[54].mxu1 %vm4738_vm12, %v5245_v42  ;;  %v5972_v0 = vadd.f32 -1.0, %v6874_v45 }
 0x63f   : > { %v5247_v47 = vsel %vm5087_vm3, %v10185_v49, %v5973_v52 }
 0x640   : > { %v6876_v4 = vpop.eup %6875  ;;  %v5246_v61 = vsel %vm5086_vm2, %v10189_v24, %v5972_v0 }
 0x641   : > { %v6878_v50 = vpop.eup %6877  ;;  %6390 = vmatprep.mubr.msk.f32.mxu1 %vm4738_vm12, %v5246_v61  ;;  %v5975_v54 = vadd.f32 -1.0, %v6876_v4 }
 0x642   : > { %6391 = vmatmul.mubr.msk.f32.gmra.mrb[56].mxu1 %vm4738_vm12, %v5247_v47  ;;  %v5974_v58 = vadd.f32 -1.0, %v6878_v50 }
 0x643   : > { %v5249_v7 = vsel %vm5089_vm5, %v10199_v46, %v5975_v54 }
 0x644   : > { %v6880_v63 = vpop.eup %6879  ;;  %v5248_v38 = vsel %vm5088_vm4, %v10203_v17, %v5974_v58 }
 0x645   : > { %v6882_v32 = vpop.eup %6881  ;;  %6393 = vmatprep.mubr.msk.f32.mxu1 %vm4738_vm12, %v5248_v38  ;;  %v5977_v48 = vadd.f32 -1.0, %v6880_v63 }
 0x646   : > { %6394 = vmatmul.mubr.msk.f32.gmra.mrb[58].mxu1 %vm4738_vm12, %v5249_v7  ;;  %v5976_v49 = vadd.f32 -1.0, %v6882_v32 }
 0x647   : > { %v5251_v30 = vsel %vm5091_vm7, %v10213_v20, %v5977_v48 }
 0x648   : > { %v5250_v29 = vsel %vm5090_vm6, %v5052_v27, %v5976_v49 }
 0x649   : > { %6396 = vmatprep.mubr.msk.f32.mxu1 %vm4738_vm12, %v5250_v29 }
 0x64a   : > { %6397 = vmatmul.mubr.msk.f32.gmra.mrb[60].mxu1 %vm4738_vm12, %v5251_v30 }
 0x6e1   : > { %v6353_v36 = vpop.f32.mrb[30].mxu1 }
 0x6e2   : > { %v5435_v24 = vadd.f32 %v6353_v36, %v10252_v6  ;;  %v5429_v60 = vpop.f32.mrb[31].mxu1 }
 0x6e3   : > { %v5430_v59 = vadd.f32 %v10252_v6, %v5429_v60 }
 0x6e4   : > { %5590 = vst.msk [vmem:[%s10259_s22 + $0x8] sm:$0xff] %vm5588_vm8, %v5435_v24 }
 0x6e5   : > { %5589 = vst.msk [vmem:[%s10259_s22] sm:$0xff] %vm5588_vm8, %v5430_v59  ;;  %v6356_v14 = vpop.f32.mrb[32].mxu1 }
 0x6e6   : > { %v5445_v53 = vadd.f32 %v6356_v14, %v10252_v6  ;;  %v5439_v13 = vpop.f32.mrb[33].mxu1 }
 0x6e7   : > { %v5440_v51 = vadd.f32 %v10252_v6, %v5439_v13 }
 0x6e8   : > { %5592 = vst.msk [vmem:[%s10259_s22 + $0x18] sm:$0xff] %vm5588_vm8, %v5445_v53 }
 0x6e9   : > { %5591 = vst.msk [vmem:[%s10259_s22 + $0x10] sm:$0xff] %vm5588_vm8, %v5440_v51  ;;  %v6359_v19 = vpop.f32.mrb[34].mxu1 }
 0x6ea   : > { %v5455_v8 = vadd.f32 %v6359_v19, %v10252_v6  ;;  %v5449_v46 = vpop.f32.mrb[35].mxu1 }
 0x6eb   : > { %v5450_v25 = vadd.f32 %v10252_v6, %v5449_v46 }
 0x6ec   : > { %5594 = vst.msk [vmem:[%s10259_s22 + $0x28] sm:$0xff] %vm5588_vm8, %v5455_v8 }
 0x6ed   : > { %5593 = vst.msk [vmem:[%s10259_s22 + $0x20] sm:$0xff] %vm5588_vm8, %v5450_v25  ;;  %v6362_v9 = vpop.f32.mrb[36].mxu1 }
 0x6ee   : > { %v5465_v43 = vadd.f32 %v6362_v9, %v10252_v6  ;;  %v5459_v3 = vpop.f32.mrb[37].mxu1 }
 0x6ef   : > { %v5460_v17 = vadd.f32 %v10252_v6, %v5459_v3 }
 0x6f0   : > { %5596 = vst.msk [vmem:[%s10259_s22 + $0x38] sm:$0xff] %vm5588_vm8, %v5465_v43 }
 0x6f1   : > { %5595 = vst.msk [vmem:[%s10259_s22 + $0x30] sm:$0xff] %vm5588_vm8, %v5460_v17  ;;  %v6365_v44 = vpop.f32.mrb[38].mxu1 }
 0x6f2   : > { %v5475_v57 = vadd.f32 %v6365_v44, %v10252_v6  ;;  %v5469_v40 = vpop.f32.mrb[39].mxu1 }
 0x6f3   : > { %v5470_v11 = vadd.f32 %v10252_v6, %v5469_v40 }
 0x6f4   : > { %5598 = vst.msk [vmem:[%s10259_s22 + $0x48] sm:$0xff] %vm5588_vm8, %v5475_v57 }
 0x6f5   : > { %5597 = vst.msk [vmem:[%s10259_s22 + $0x40] sm:$0xff] %vm5588_vm8, %v5470_v11  ;;  %v6368_v39 = vpop.f32.mrb[40].mxu1 }
 0x6f6   : > { %v5485_v35 = vadd.f32 %v6368_v39, %v10252_v6  ;;  %v5479_v18 = vpop.f32.mrb[41].mxu1 }
 0x6f7   : > { %v5480_v41 = vadd.f32 %v10252_v6, %v5479_v18 }
 0x6f8   : > { %5600 = vst.msk [vmem:[%s10259_s22 + $0x58] sm:$0xff] %vm5588_vm8, %v5485_v35 }
 0x6f9   : > { %5599 = vst.msk [vmem:[%s10259_s22 + $0x50] sm:$0xff] %vm5588_vm8, %v5480_v41  ;;  %v6371_v20 = vpop.f32.mrb[42].mxu1 }
 0x6fa   : > { %v5495_v12 = vadd.f32 %v6371_v20, %v10252_v6  ;;  %v5489_v2 = vpop.f32.mrb[43].mxu1 }
 0x6fb   : > { %v5490_v28 = vadd.f32 %v10252_v6, %v5489_v2 }
 0x6fc   : > { %5602 = vst.msk [vmem:[%s10259_s22 + $0x68] sm:$0xff] %vm5588_vm8, %v5495_v12 }
 0x6fd   : > { %5601 = vst.msk [vmem:[%s10259_s22 + $0x60] sm:$0xff] %vm5588_vm8, %v5490_v28  ;;  %v6374_v21 = vpop.f32.mrb[44].mxu1 }
 0x6fe   : > { %v5505_v27 = vadd.f32 %v6374_v21, %v10252_v6  ;;  %v5499_v10 = vpop.f32.mrb[45].mxu1 }
 0x6ff   : > { %v5500_v15 = vadd.f32 %v10252_v6, %v5499_v10 }
 0x700   : > { %5604 = vst.msk [vmem:[%s10259_s22 + $0x78] sm:$0xff] %vm5588_vm8, %v5505_v27 }
 0x701   : > { %5603 = vst.msk [vmem:[%s10259_s22 + $0x70] sm:$0xff] %vm5588_vm8, %v5500_v15  ;;  %v6377_v37 = vpop.f32.mrb[46].mxu1 }
 0x702   : > { %v5515_v26 = vadd.f32 %v6377_v37, %v10252_v6  ;;  %v5509_v62 = vpop.f32.mrb[47].mxu1 }
 0x703   : > { %v5510_v33 = vadd.f32 %v10252_v6, %v5509_v62 }
 0x704   : > { %5606 = vst.msk [vmem:[%s10259_s22 + $0x88] sm:$0xff] %vm5588_vm8, %v5515_v26 }
 0x705   : > { %5605 = vst.msk [vmem:[%s10259_s22 + $0x80] sm:$0xff] %vm5588_vm8, %v5510_v33  ;;  %v6380_v55 = vpop.f32.mrb[48].mxu1 }
 0x706   : > { %v5525_v5 = vadd.f32 %v6380_v55, %v10252_v6  ;;  %v5519_v34 = vpop.f32.mrb[49].mxu1 }
 0x707   : > { %v5520_v56 = vadd.f32 %v10252_v6, %v5519_v34 }
 0x708   : > { %5608 = vst.msk [vmem:[%s10259_s22 + $0x98] sm:$0xff] %vm5588_vm8, %v5525_v5 }
 0x709   : > { %5607 = vst.msk [vmem:[%s10259_s22 + $0x90] sm:$0xff] %vm5588_vm8, %v5520_v56  ;;  %v6383_v23 = vpop.f32.mrb[50].mxu1 }
 0x70a   : > { %v5535_v31 = vadd.f32 %v6383_v23, %v10252_v6  ;;  %v5529_v1 = vpop.f32.mrb[51].mxu1 }
 0x70b   : > { %v5530_v22 = vadd.f32 %v10252_v6, %v5529_v1 }
 0x70c   : > { %5610 = vst.msk [vmem:[%s10259_s22 + $0xa8] sm:$0xff] %vm5588_vm8, %v5535_v31 }
 0x70d   : > { %5609 = vst.msk [vmem:[%s10259_s22 + $0xa0] sm:$0xff] %vm5588_vm8, %v5530_v22  ;;  %v6386_v16 = vpop.f32.mrb[52].mxu1 }
 0x70e   : > { %v5545_v45 = vadd.f32 %v6386_v16, %v10252_v6  ;;  %v5539_v42 = vpop.f32.mrb[53].mxu1 }
 0x70f   : > { %v5540_v52 = vadd.f32 %v10252_v6, %v5539_v42 }
 0x710   : > { %5612 = vst.msk [vmem:[%s10259_s22 + $0xb8] sm:$0xff] %vm5588_vm8, %v5545_v45 }
 0x711   : > { %5611 = vst.msk [vmem:[%s10259_s22 + $0xb0] sm:$0xff] %vm5588_vm8, %v5540_v52  ;;  %v6389_v0 = vpop.f32.mrb[54].mxu1 }
 0x712   : > { %v5555_v4 = vadd.f32 %v6389_v0, %v10252_v6  ;;  %v5549_v61 = vpop.f32.mrb[55].mxu1 }
 0x713   : > { %v5550_v50 = vadd.f32 %v10252_v6, %v5549_v61 }
 0x714   : > { %5614 = vst.msk [vmem:[%s10259_s22 + $0xc8] sm:$0xff] %vm5588_vm8, %v5555_v4 }
 0x715   : > { %5613 = vst.msk [vmem:[%s10259_s22 + $0xc0] sm:$0xff] %vm5588_vm8, %v5550_v50  ;;  %v6392_v47 = vpop.f32.mrb[56].mxu1 }
 0x716   : > { %v5565_v54 = vadd.f32 %v6392_v47, %v10252_v6  ;;  %v5559_v58 = vpop.f32.mrb[57].mxu1 }
 0x717   : > { %v5560_v63 = vadd.f32 %v10252_v6, %v5559_v58 }
 0x718   : > { %5616 = vst.msk [vmem:[%s10259_s22 + $0xd8] sm:$0xff] %vm5588_vm8, %v5565_v54 }
 0x719   : > { %5615 = vst.msk [vmem:[%s10259_s22 + $0xd0] sm:$0xff] %vm5588_vm8, %v5560_v63  ;;  %v6395_v38 = vpop.f32.mrb[58].mxu1 }
 0x71a   : > { %v5575_v32 = vadd.f32 %v6395_v38, %v10252_v6  ;;  %v5569_v7 = vpop.f32.mrb[59].mxu1 }
 0x71b   : > { %v5570_v48 = vadd.f32 %v10252_v6, %v5569_v7 }
 0x71c   : > { %5618 = vst.msk [vmem:[%s10259_s22 + $0xe8] sm:$0xff] %vm5588_vm8, %v5575_v32 }
 0x71d   : > { %5617 = vst.msk [vmem:[%s10259_s22 + $0xe0] sm:$0xff] %vm5588_vm8, %v5570_v48  ;;  %v6398_v49 = vpop.f32.mrb[60].mxu1 }
 0x71e   : > { %v5585_v29 = vadd.f32 %v6398_v49, %v10252_v6  ;;  %v5579_v30 = vpop.f32.mrb[61].mxu1 }
 0x71f   : > { %v5580_v36 = vadd.f32 %v10252_v6, %v5579_v30 }
 0x720   : > { %5620 = vst.msk [vmem:[%s10259_s22 + $0xf8] sm:$0xff] %vm5588_vm8, %v5585_v29 }
 0x721   : > { %5619 = vst.msk [vmem:[%s10259_s22 + $0xf0] sm:$0xff] %vm5588_vm8, %v5580_v36 }
 0x722 PF: > { %s19_s30 = sadd.s32 1, %s6919_s30  }
 0x723   : > { %p16_p4 = scmp.ge.s32.totalorder %s19_s30, 4  }
 0x725   :  { %18 = sbr.rel (!%p16_p4) target bundleno = 1 (0x1), region = 86 }

</bundles_post_ra>
